<compile_context>
chip_gen: v5e
topology: v5e:2x2
jax: 0.10.0
libtpu: 0.0.40
codegen_flags: <defaults>
</compile_context>

<pallas_src>
import functools
import numpy as np
import jax
import jax.numpy as jnp
from jax.experimental import pallas as pl
from jax.experimental.pallas import tpu as pltpu


_VMEM_LIMIT = 48 * 1024 * 1024   # scoped-VMEM limit (< v7x physical 64 MiB)
_DEF_TILE_N = 1024               # point-row tile (2048 also fits on v5e/v6e)
_ROW_BLK = 128                   # in-kernel row sub-block (f32 slabs ~ vreg-file sized)
_CO_BLK = 256                    # conv3 output-channel sub-block in the trunk


def _fma3(xb, w1, b1):
    """3 -> C first layer via VPU broadcast-FMAs (K=3 would waste the MXU)."""
    return (xb[:, 0:1] * w1[0:1, :] + xb[:, 1:2] * w1[1:2, :]
            + xb[:, 2:3] * w1[2:3, :] + b1)


# ----------------------------------------------------------------------------
# Pallas kernels
# ----------------------------------------------------------------------------
def _trunk_kernel(*refs, head_relu, last_relu, row_blk, co_blk):
    """Fused per-point MLP (3->64->128->1024) + max-over-points + small
    per-batch head applied to the pooled vector on the last row tile.

    grid = (B, num_row_tiles); the row-tile axis is the reduction axis.  The
    running max lives in a VMEM scratch; the only HBM output is the small
    per-batch head result (STN fc stack output, or g @ W_g + b).
    """
    n_head = len(head_relu)
    x_ref, w1_ref, b1_ref, w2_ref, b2_ref, w3_ref, b3_ref = refs[:7]
    head_refs = refs[7:7 + 2 * n_head]
    out_ref = refs[7 + 2 * n_head]
    acc_ref = refs[8 + 2 * n_head]

    t = pl.program_id(1)
    tn = x_ref.shape[1]
    c3 = w3_ref.shape[1]
    n_cblk = (c3 + co_blk - 1) // co_blk

    w1 = w1_ref[0]        # (3, 64)   f32
    b1 = b1_ref[...]      # (1, 64)   f32
    w2 = w2_ref[...]      # (64, 128) bf16
    b2 = b2_ref[...]      # (1, 128)  f32

    # Row/channel sub-blocked compute: the large (tile_n, 1024) f32 activation
    # is never materialized -- each (row_blk, co_blk) slab is reduced to a
    # (1, co_blk) max while it is still register/VMEM-local.
    run_max = [None] * n_cblk
    for r0 in range(0, tn, row_blk):
        rb = min(row_blk, tn - r0)
        xb = x_ref[0, r0:r0 + rb, :]                             # (rb, 3) f32
        h1 = jnp.maximum(_fma3(xb, w1, b1), 0.0)                 # (rb, 64)
        h2 = jnp.dot(h1.astype(jnp.bfloat16), w2,
                     preferred_element_type=jnp.float32) + b2
        h2 = jnp.maximum(h2, 0.0).astype(jnp.bfloat16)           # (rb, 128)
        for ci in range(n_cblk):
            c0 = ci * co_blk
            cw = min(co_blk, c3 - c0)
            part = jnp.dot(h2, w3_ref[:, c0:c0 + cw],
                           preferred_element_type=jnp.float32)
            part = part + b3_ref[:, c0:c0 + cw]
            if last_relu:
                part = jnp.maximum(part, 0.0)
            pmax = jnp.max(part, axis=0, keepdims=True)          # (1, cw)
            run_max[ci] = (pmax if run_max[ci] is None
                           else jnp.maximum(run_max[ci], pmax))

    # Merge this row tile's maxima into the per-batch accumulator.
    for ci in range(n_cblk):
        c0 = ci * co_blk
        cw = run_max[ci].shape[1]

        @pl.when(t == 0)
        def _(ci=ci, c0=c0, cw=cw):
            acc_ref[:, c0:c0 + cw] = run_max[ci]

        @pl.when(t != 0)
        def _(ci=ci, c0=c0, cw=cw):
            acc_ref[:, c0:c0 + cw] = jnp.maximum(acc_ref[:, c0:c0 + cw],
                                                 run_max[ci])

    # Finalize: run the small per-batch head on the pooled vector; its weight
    # DMAs are hidden under the trunk compute of earlier row tiles.
    @pl.when(t == pl.num_programs(1) - 1)
    def _():
        h = acc_ref[...]                                         # (1, c3) f32
        for li in range(n_head):
            hw = head_refs[2 * li][...]
            hb = head_refs[2 * li + 1][...]
            h = jnp.dot(h.astype(jnp.bfloat16), hw,
                        preferred_element_type=jnp.float32) + hb
            if head_relu[li]:
                h = jnp.maximum(h, 0.0)
        out_ref[0] = h


def _head_kernel(x_ref, weff_ref, b1_ref, gw_ref, wp_ref,
                 w2_ref, b2_ref, w3_ref, b3_ref, w4_ref, b4_ref, y_ref,
                 *, row_blk):
    """Fused per-point segmentation head.

    The 1088-channel concat + head_c1 are split algebraically:
        relu(concat(g, pf) @ W_hc1 + b) == relu(pf @ W_p + gw)
    with gw = g @ W_g + b precomputed per batch inside the feat trunk kernel.
    pointfeat (64 ch) is recomputed from x (3 ch) instead of stored/reloaded.
    Rows are processed in row_blk sub-blocks so the (rows, 512)/(rows, 256)
    f32 intermediates stay near the vector registers.
    """
    tn = x_ref.shape[1]
    w1 = weff_ref[0]      # (3, 64)   f32 (3x3 transform already folded in)
    b1 = b1_ref[...]      # (1, 64)   f32
    gw = gw_ref[0]        # (1, 512)  f32
    wp = wp_ref[...]      # (64, 512) bf16
    w2 = w2_ref[...]; b2 = b2_ref[...]
    w3 = w3_ref[...]; b3 = b3_ref[...]
    w4 = w4_ref[...]; b4 = b4_ref[...]
    for r0 in range(0, tn, row_blk):
        rb = min(row_blk, tn - r0)
        xb = x_ref[0, r0:r0 + rb, :]                             # (rb, 3)
        pf = jnp.maximum(_fma3(xb, w1, b1), 0.0)                 # (rb, 64)
        h = jnp.dot(pf.astype(jnp.bfloat16), wp,
                    preferred_element_type=jnp.float32) + gw
        h = jnp.maximum(h, 0.0)                                  # (rb, 512)
        h = jnp.dot(h.astype(jnp.bfloat16), w2,
                    preferred_element_type=jnp.float32) + b2
        h = jnp.maximum(h, 0.0)                                  # (rb, 256)
        h = jnp.dot(h.astype(jnp.bfloat16), w3,
                    preferred_element_type=jnp.float32) + b3
        h = jnp.maximum(h, 0.0)                                  # (rb, 128)
        y = jnp.dot(h.astype(jnp.bfloat16), w4,
                    preferred_element_type=jnp.float32) + b4
        y_ref[0, r0:r0 + rb, :] = y.astype(y_ref.dtype)


# ----------------------------------------------------------------------------
# pallas_call wrappers
# ----------------------------------------------------------------------------
def _trunk_max_head(x, w1b, b1, w2, b2, w3, b3, head_wb, head_relu, *,
                    last_relu, tile_n):
    """x: (B, Np, 3) f32; w1b: (1|B, 3, 64) f32; returns (B, head_out) f32."""
    B, Np, Din = x.shape
    C1, C2, C3 = w1b.shape[-1], w2.shape[-1], w3.shape[-1]
    out_dim = head_wb[-2].shape[-1]
    w1_map = ((lambda b, t: (b, 0, 0)) if w1b.shape[0] == B
              else (lambda b, t: (0, 0, 0)))

    in_specs = [
        pl.BlockSpec((1, tile_n, Din), lambda b, t: (b, t, 0)),
        pl.BlockSpec((1, Din, C1), w1_map),
        pl.BlockSpec((1, C1), lambda b, t: (0, 0)),
        pl.BlockSpec((C1, C2), lambda b, t: (0, 0)),
        pl.BlockSpec((1, C2), lambda b, t: (0, 0)),
        pl.BlockSpec((C2, C3), lambda b, t: (0, 0)),
        pl.BlockSpec((1, C3), lambda b, t: (0, 0)),
    ]
    in_specs += [pl.BlockSpec(a.shape, lambda b, t: (0, 0)) for a in head_wb]

    out = pl.pallas_call(
        functools.partial(_trunk_kernel, head_relu=head_relu,
                          last_relu=last_relu, row_blk=_ROW_BLK,
                          co_blk=_CO_BLK),
        out_shape=jax.ShapeDtypeStruct((B, 1, out_dim), jnp.float32),
        grid_spec=pltpu.PrefetchScalarGridSpec(
            num_scalar_prefetch=0,
            grid=(B, Np // tile_n),
            in_specs=in_specs,
            out_specs=pl.BlockSpec((1, 1, out_dim), lambda b, t: (b, 0, 0)),
            scratch_shapes=[pltpu.VMEM((1, C3), jnp.float32)],
        ),
        compiler_params=pltpu.CompilerParams(
            dimension_semantics=("parallel", "arbitrary"),
            vmem_limit_bytes=_VMEM_LIMIT),
    )(x, w1b, b1, w2, b2, w3, b3, *head_wb)
    return out[:, 0, :]


def _seg_head(x, w_eff, b1, gw, wp, w2, b2, w3, b3, w4, b4, *, tile_n):
    """x: (B, Np, 3) f32; gw: (B, 1, 512) f32; returns (B, Np, dim_out) f32."""
    B, Np, Din = x.shape
    C1, Ch = w_eff.shape[-1], wp.shape[-1]
    C2, C3, C4 = w2.shape[-1], w3.shape[-1], w4.shape[-1]
    return pl.pallas_call(
        functools.partial(_head_kernel, row_blk=_ROW_BLK),
        out_shape=jax.ShapeDtypeStruct((B, Np, C4), jnp.float32),
        grid_spec=pltpu.PrefetchScalarGridSpec(
            num_scalar_prefetch=0,
            grid=(B, Np // tile_n),
            in_specs=[
                pl.BlockSpec((1, tile_n, Din), lambda b, t: (b, t, 0)),
                pl.BlockSpec((1, Din, C1),     lambda b, t: (b, 0, 0)),
                pl.BlockSpec((1, C1),          lambda b, t: (0, 0)),
                pl.BlockSpec((1, 1, Ch),       lambda b, t: (b, 0, 0)),
                pl.BlockSpec((C1, Ch),         lambda b, t: (0, 0)),
                pl.BlockSpec((Ch, C2),         lambda b, t: (0, 0)),
                pl.BlockSpec((1, C2),          lambda b, t: (0, 0)),
                pl.BlockSpec((C2, C3),         lambda b, t: (0, 0)),
                pl.BlockSpec((1, C3),          lambda b, t: (0, 0)),
                pl.BlockSpec((C3, C4),         lambda b, t: (0, 0)),
                pl.BlockSpec((1, C4),          lambda b, t: (0, 0)),
            ],
            out_specs=pl.BlockSpec((1, tile_n, C4), lambda b, t: (b, t, 0)),
        ),
        compiler_params=pltpu.CompilerParams(
            dimension_semantics=("parallel", "parallel"),
            vmem_limit_bytes=_VMEM_LIMIT),
    )(x, w_eff, b1, gw, wp, w2, b2, w3, b3, w4, b4)


# ----------------------------------------------------------------------------
# Parameters (deterministic synthetic init; BatchNorm folded in eval mode)
# ----------------------------------------------------------------------------
def _folded_layer(key, cin, cout, with_bn, eps=1e-5):
    k = jax.random.split(key, 6)
    w = jax.random.normal(k[0], (cin, cout), jnp.float32) / np.sqrt(cin)
    b = 0.05 * jax.random.normal(k[1], (cout,), jnp.float32)
    if with_bn:
        gamma = 1.0 + 0.1 * jax.random.normal(k[2], (cout,), jnp.float32)
        beta = 0.1 * jax.random.normal(k[3], (cout,), jnp.float32)
        mean = 0.1 * jax.random.normal(k[4], (cout,), jnp.float32)
        var = 0.5 + jax.random.uniform(k[5], (cout,), jnp.float32)
        scale = gamma * jax.lax.rsqrt(var + eps)
        w = w * scale[None, :]
        b = (b - mean) * scale + beta
    return w, b.reshape(1, cout)


def init_params(key, dim_in=3, dim_out=128):
    layers = [
        # STN3d
        ("stn_c1", dim_in, 64, True), ("stn_c2", 64, 128, True),
        ("stn_c3", 128, 1024, True), ("stn_fc1", 1024, 512, True),
        ("stn_fc2", 512, 256, True), ("stn_fc3", 256, 9, False),
        # PointNetfeat
        ("feat_c1", dim_in, 64, True), ("feat_c2", 64, 128, True),
        ("feat_c3", 128, 1024, True),
        # segmentation head (atomsurf PointNet wrapper)
        ("head_c1", 1088, 512, True), ("head_c2", 512, 256, True),
        ("head_c3", 256, 128, True), ("head_c4", 128, dim_out, False),
    ]
    keys = jax.random.split(key, len(layers))
    return {name: _folded_layer(k, ci, co, bn)
            for k, (name, ci, co, bn) in zip(keys, layers)}


# ----------------------------------------------------------------------------
# Forward pass (glue in JAX, all heavy compute in the fused Pallas kernels)
# ----------------------------------------------------------------------------
def pointnet_forward(x, p, max_tile=_DEF_TILE_N):
    """x: (B, N, 3) channels-last points; returns (B, N, dim_out) f32."""
    B, N, Din = x.shape
    assert Din == 3  # TODO(synk): STNkd path for dim_in != 3 not implemented.
    x = x.astype(jnp.float32)

    # Row tile: multiple of 16 (bf16 sublane packing); edge-pad N to a tile
    # multiple.  Edge padding is idempotent for the max-pools and the padded
    # head rows are sliced off at the end.
    tile_n = ((N + 15) // 16) * 16 if N <= max_tile else max_tile
    n_pad = ((N + tile_n - 1) // tile_n) * tile_n
    if n_pad != N:
        x = jnp.pad(x, ((0, 0), (0, n_pad - N), (0, 0)), mode="edge")

    def bf(w):
        return w.astype(jnp.bfloat16)

    # ---- STN3d: trunk (3->64->128->1024, relu) + fused max + fused FC head
    #      (1024->512->256->9, fc3 output padded to 128 lanes) ----
    w_s1, b_s1 = p["stn_c1"]; w_s2, b_s2 = p["stn_c2"]; w_s3, b_s3 = p["stn_c3"]
    w_f1, b_f1 = p["stn_fc1"]; w_f2, b_f2 = p["stn_fc2"]; w_f3, b_f3 = p["stn_fc3"]
    lane_pad = 128 - w_f3.shape[1]
    w_f3p = jnp.pad(w_f3, ((0, 0), (0, lane_pad)))
    b_f3p = jnp.pad(b_f3, ((0, 0), (0, lane_pad)))
    t9 = _trunk_max_head(
        x, w_s1[None], b_s1, bf(w_s2), b_s2, bf(w_s3), b_s3,
        head_wb=(bf(w_f1), b_f1, bf(w_f2), b_f2, bf(w_f3p), b_f3p),
        head_relu=(True, True, False),
        last_relu=True, tile_n=tile_n)                          # (B, 128)
    trans = t9[:, :9].reshape(B, 3, 3) + jnp.eye(3, dtype=jnp.float32)[None]

    # ---- fold the 3x3 transform into feat conv1:
    #      (x @ trans) @ W_c1 == x @ (trans @ W_c1) ----
    w_c1, b_c1 = p["feat_c1"]; w_c2, b_c2 = p["feat_c2"]; w_c3, b_c3 = p["feat_c3"]
    w_eff = jnp.einsum("bij,jk->bik", trans, w_c1)              # (B, 3, 64) f32

    # ---- PointNetfeat trunk + fused max (bn3(conv3): no relu before max)
    #      + fused  gw = g_feat @ W_g + b_hc1  finalize ----
    w_h1, b_h1 = p["head_c1"]                                   # (1088, 512)
    w_g, w_p = w_h1[:1024], w_h1[1024:]
    gw = _trunk_max_head(
        x, w_eff, b_c1, bf(w_c2), b_c2, bf(w_c3), b_c3,
        head_wb=(bf(w_g), b_h1),
        head_relu=(False,),
        last_relu=False, tile_n=tile_n)                         # (B, 512)

    # ---- per-point segmentation head ----
    w_h2, b_h2 = p["head_c2"]; w_h3, b_h3 = p["head_c3"]; w_h4, b_h4 = p["head_c4"]
    y = _seg_head(x, w_eff, b_c1, gw[:, None, :], bf(w_p),
                  bf(w_h2), b_h2, bf(w_h3), b_h3, bf(w_h4), b_h4,
                  tile_n=tile_n)                                # (B, n_pad, dim_out)
    return y[:, :N, :]


# ----------------------------------------------------------------------------
if __name__ == "__main__":
    key = jax.random.PRNGKey(0)
    kp, kx = jax.random.split(key)

    DIM_IN, DIM_OUT = 3, 128
    B, N = 2, 16

    params = init_params(kp, dim_in=DIM_IN, dim_out=DIM_OUT)
    x = jax.random.normal(kx, (B, N, DIM_IN), jnp.float32)   # surface.x (channels-last)

    fwd = jax.jit(pointnet_forward)
    y = fwd(x, params)
    jax.block_until_ready(y)
    assert y.shape == (B, N, DIM_OUT), y.shape
    assert y.dtype == jnp.float32
    assert bool(jnp.all(jnp.isfinite(y)))
    print("KERNEL_OK")
</pallas_src>

<mosaic_0001>
module attributes {stable_mosaic.version = 11 : i64} {
  func.func @_trunk_kernel(%arg0: i32, %arg1: i32, %arg2: memref<1x16x3xf32, #tpu.memory_space<vmem>>, %arg3: memref<1x3x64xf32, #tpu.memory_space<vmem>>, %arg4: memref<1x64xf32, #tpu.memory_space<vmem>>, %arg5: memref<64x128xbf16, #tpu.memory_space<vmem>>, %arg6: memref<1x128xf32, #tpu.memory_space<vmem>>, %arg7: memref<128x1024xbf16, #tpu.memory_space<vmem>>, %arg8: memref<1x1024xf32, #tpu.memory_space<vmem>>, %arg9: memref<1024x512xbf16, #tpu.memory_space<vmem>>, %arg10: memref<1x512xf32, #tpu.memory_space<vmem>>, %arg11: memref<512x256xbf16, #tpu.memory_space<vmem>>, %arg12: memref<1x256xf32, #tpu.memory_space<vmem>>, %arg13: memref<256x128xbf16, #tpu.memory_space<vmem>>, %arg14: memref<1x128xf32, #tpu.memory_space<vmem>>, %arg15: memref<1x1x128xf32, #tpu.memory_space<vmem>>, %arg16: memref<1x1024xf32, #tpu.memory_space<vmem>>) attributes {dimension_semantics = [#tpu.dimension_semantics<parallel>, #tpu.dimension_semantics<arbitrary>], iteration_bounds = array<i64: 2, 1>, scalar_prefetch = 0 : i64, scratch_operands = 1 : i64, tpu.core_type = #tpu.core_type<tc>, window_params = [{transform_indices = @transform_0, window_bounds = array<i64: 1, 16, 3>}, {pipeline_mode = #tpu.pipeline_mode<synchronous>, transform_indices = @transform_1, window_bounds = array<i64: 1, 3, 64>}, {pipeline_mode = #tpu.pipeline_mode<synchronous>, transform_indices = @transform_2, window_bounds = array<i64: 1, 64>}, {pipeline_mode = #tpu.pipeline_mode<synchronous>, transform_indices = @transform_3, window_bounds = array<i64: 64, 128>}, {pipeline_mode = #tpu.pipeline_mode<synchronous>, transform_indices = @transform_4, window_bounds = array<i64: 1, 128>}, {pipeline_mode = #tpu.pipeline_mode<synchronous>, transform_indices = @transform_5, window_bounds = array<i64: 128, 1024>}, {pipeline_mode = #tpu.pipeline_mode<synchronous>, transform_indices = @transform_6, window_bounds = array<i64: 1, 1024>}, {pipeline_mode = #tpu.pipeline_mode<synchronous>, transform_indices = @transform_7, window_bounds = array<i64: 1024, 512>}, {pipeline_mode = #tpu.pipeline_mode<synchronous>, transform_indices = @transform_8, window_bounds = array<i64: 1, 512>}, {pipeline_mode = #tpu.pipeline_mode<synchronous>, transform_indices = @transform_9, window_bounds = array<i64: 512, 256>}, {pipeline_mode = #tpu.pipeline_mode<synchronous>, transform_indices = @transform_10, window_bounds = array<i64: 1, 256>}, {pipeline_mode = #tpu.pipeline_mode<synchronous>, transform_indices = @transform_11, window_bounds = array<i64: 256, 128>}, {pipeline_mode = #tpu.pipeline_mode<synchronous>, transform_indices = @transform_12, window_bounds = array<i64: 1, 128>}, {transform_indices = @transform_13, window_bounds = array<i64: 1, 1, 128>}]} {
    %c0 = arith.constant 0 : index
    %c0_0 = arith.constant 0 : index
    %c0_1 = arith.constant 0 : index
    %0 = vector.load %arg3[%c0, %c0_0, %c0_1] : memref<1x3x64xf32, #tpu.memory_space<vmem>>, vector<1x3x64xf32>
    %1 = vector.shape_cast %0 : vector<1x3x64xf32> to vector<3x64xf32>
    %c0_2 = arith.constant 0 : index
    %c0_3 = arith.constant 0 : index
    %2 = vector.load %arg4[%c0_2, %c0_3] : memref<1x64xf32, #tpu.memory_space<vmem>>, vector<1x64xf32>
    %c0_4 = arith.constant 0 : index
    %c0_5 = arith.constant 0 : index
    %3 = vector.load %arg5[%c0_4, %c0_5] : memref<64x128xbf16, #tpu.memory_space<vmem>>, vector<64x128xbf16>
    %c0_6 = arith.constant 0 : index
    %c0_7 = arith.constant 0 : index
    %4 = vector.load %arg6[%c0_6, %c0_7] : memref<1x128xf32, #tpu.memory_space<vmem>>, vector<1x128xf32>
    %c0_8 = arith.constant 0 : index
    %c0_9 = arith.constant 0 : index
    %c0_10 = arith.constant 0 : index
    %5 = vector.load %arg2[%c0_8, %c0_9, %c0_10] : memref<1x16x3xf32, #tpu.memory_space<vmem>>, vector<1x16x3xf32>
    %6 = vector.shape_cast %5 : vector<1x16x3xf32> to vector<16x3xf32>
    %7 = vector.extract_strided_slice %6 {offsets = [0, 0], sizes = [16, 1], strides = [1, 1]} : vector<16x3xf32> to vector<16x1xf32>
    %8 = vector.extract_strided_slice %1 {offsets = [0, 0], sizes = [1, 64], strides = [1, 1]} : vector<3x64xf32> to vector<1x64xf32>
    %9 = vector.broadcast %7 : vector<16x1xf32> to vector<16x64xf32>
    %10 = vector.broadcast %8 : vector<1x64xf32> to vector<16x64xf32>
    %11 = arith.mulf %9, %10 : vector<16x64xf32>
    %12 = vector.extract_strided_slice %6 {offsets = [0, 1], sizes = [16, 1], strides = [1, 1]} : vector<16x3xf32> to vector<16x1xf32>
    %13 = vector.extract_strided_slice %1 {offsets = [1, 0], sizes = [1, 64], strides = [1, 1]} : vector<3x64xf32> to vector<1x64xf32>
    %14 = vector.broadcast %12 : vector<16x1xf32> to vector<16x64xf32>
    %15 = vector.broadcast %13 : vector<1x64xf32> to vector<16x64xf32>
    %16 = arith.mulf %14, %15 : vector<16x64xf32>
    %17 = arith.addf %11, %16 : vector<16x64xf32>
    %18 = vector.extract_strided_slice %6 {offsets = [0, 2], sizes = [16, 1], strides = [1, 1]} : vector<16x3xf32> to vector<16x1xf32>
    %19 = vector.extract_strided_slice %1 {offsets = [2, 0], sizes = [1, 64], strides = [1, 1]} : vector<3x64xf32> to vector<1x64xf32>
    %20 = vector.broadcast %18 : vector<16x1xf32> to vector<16x64xf32>
    %21 = vector.broadcast %19 : vector<1x64xf32> to vector<16x64xf32>
    %22 = arith.mulf %20, %21 : vector<16x64xf32>
    %23 = arith.addf %17, %22 : vector<16x64xf32>
    %24 = vector.broadcast %2 : vector<1x64xf32> to vector<16x64xf32>
    %25 = arith.addf %23, %24 : vector<16x64xf32>
    %cst = arith.constant 0.000000e+00 : f32
    %26 = vector.broadcast %cst : f32 to vector<16x64xf32>
    %27 = arith.maximumf %25, %26 : vector<16x64xf32>
    %28 = arith.truncf %27 : vector<16x64xf32> to vector<16x64xbf16>
    %cst_11 = arith.constant dense<0.000000e+00> : vector<16x128xf32>
    %29 = tpu.matmul %28, %3, %cst_11 {dimension_numbers = #tpu.dot_dimension_numbers<[1], [0], [0], [1], [0, 0, 1, 1], [], []>} : vector<16x64xbf16>, vector<64x128xbf16>, vector<16x128xf32> -> vector<16x128xf32>
    %30 = vector.broadcast %4 : vector<1x128xf32> to vector<16x128xf32>
    %31 = arith.addf %29, %30 : vector<16x128xf32>
    %cst_12 = arith.constant 0.000000e+00 : f32
    %32 = vector.broadcast %cst_12 : f32 to vector<16x128xf32>
    %33 = arith.maximumf %31, %32 : vector<16x128xf32>
    %34 = arith.truncf %33 : vector<16x128xf32> to vector<16x128xbf16>
    %c0_13 = arith.constant 0 : index
    %c0_14 = arith.constant 0 : index
    %35 = vector.load %arg7[%c0_13, %c0_14] : memref<128x1024xbf16, #tpu.memory_space<vmem>>, vector<128x256xbf16>
    %cst_15 = arith.constant dense<0.000000e+00> : vector<16x256xf32>
    %36 = tpu.matmul %34, %35, %cst_15 {dimension_numbers = #tpu.dot_dimension_numbers<[1], [0], [0], [1], [0, 0, 1, 1], [], []>} : vector<16x128xbf16>, vector<128x256xbf16>, vector<16x256xf32> -> vector<16x256xf32>
    %c0_16 = arith.constant 0 : index
    %c0_17 = arith.constant 0 : index
    %37 = vector.load %arg8[%c0_16, %c0_17] : memref<1x1024xf32, #tpu.memory_space<vmem>>, vector<1x256xf32>
    %38 = vector.broadcast %37 : vector<1x256xf32> to vector<16x256xf32>
    %39 = arith.addf %36, %38 : vector<16x256xf32>
    %cst_18 = arith.constant 0.000000e+00 : f32
    %40 = vector.broadcast %cst_18 : f32 to vector<16x256xf32>
    %41 = arith.maximumf %39, %40 : vector<16x256xf32>
    %cst_19 = arith.constant dense<0xFF800000> : vector<256xf32>
    %42 = vector.multi_reduction <maximumf>, %41, %cst_19 [0] : vector<16x256xf32> to vector<256xf32>
    %43 = vector.shape_cast %42 : vector<256xf32> to vector<1x256xf32>
    %c0_20 = arith.constant 0 : index
    %c256 = arith.constant 256 : index
    %44 = vector.load %arg7[%c0_20, %c256] : memref<128x1024xbf16, #tpu.memory_space<vmem>>, vector<128x256xbf16>
    %cst_21 = arith.constant dense<0.000000e+00> : vector<16x256xf32>
    %45 = tpu.matmul %34, %44, %cst_21 {dimension_numbers = #tpu.dot_dimension_numbers<[1], [0], [0], [1], [0, 0, 1, 1], [], []>} : vector<16x128xbf16>, vector<128x256xbf16>, vector<16x256xf32> -> vector<16x256xf32>
    %c0_22 = arith.constant 0 : index
    %c256_23 = arith.constant 256 : index
    %46 = vector.load %arg8[%c0_22, %c256_23] : memref<1x1024xf32, #tpu.memory_space<vmem>>, vector<1x256xf32>
    %47 = vector.broadcast %46 : vector<1x256xf32> to vector<16x256xf32>
    %48 = arith.addf %45, %47 : vector<16x256xf32>
    %cst_24 = arith.constant 0.000000e+00 : f32
    %49 = vector.broadcast %cst_24 : f32 to vector<16x256xf32>
    %50 = arith.maximumf %48, %49 : vector<16x256xf32>
    %cst_25 = arith.constant dense<0xFF800000> : vector<256xf32>
    %51 = vector.multi_reduction <maximumf>, %50, %cst_25 [0] : vector<16x256xf32> to vector<256xf32>
    %52 = vector.shape_cast %51 : vector<256xf32> to vector<1x256xf32>
    %c0_26 = arith.constant 0 : index
    %c512 = arith.constant 512 : index
    %53 = vector.load %arg7[%c0_26, %c512] : memref<128x1024xbf16, #tpu.memory_space<vmem>>, vector<128x256xbf16>
    %cst_27 = arith.constant dense<0.000000e+00> : vector<16x256xf32>
    %54 = tpu.matmul %34, %53, %cst_27 {dimension_numbers = #tpu.dot_dimension_numbers<[1], [0], [0], [1], [0, 0, 1, 1], [], []>} : vector<16x128xbf16>, vector<128x256xbf16>, vector<16x256xf32> -> vector<16x256xf32>
    %c0_28 = arith.constant 0 : index
    %c512_29 = arith.constant 512 : index
    %55 = vector.load %arg8[%c0_28, %c512_29] : memref<1x1024xf32, #tpu.memory_space<vmem>>, vector<1x256xf32>
    %56 = vector.broadcast %55 : vector<1x256xf32> to vector<16x256xf32>
    %57 = arith.addf %54, %56 : vector<16x256xf32>
    %cst_30 = arith.constant 0.000000e+00 : f32
    %58 = vector.broadcast %cst_30 : f32 to vector<16x256xf32>
    %59 = arith.maximumf %57, %58 : vector<16x256xf32>
    %cst_31 = arith.constant dense<0xFF800000> : vector<256xf32>
    %60 = vector.multi_reduction <maximumf>, %59, %cst_31 [0] : vector<16x256xf32> to vector<256xf32>
    %61 = vector.shape_cast %60 : vector<256xf32> to vector<1x256xf32>
    %c0_32 = arith.constant 0 : index
    %c768 = arith.constant 768 : index
    %62 = vector.load %arg7[%c0_32, %c768] : memref<128x1024xbf16, #tpu.memory_space<vmem>>, vector<128x256xbf16>
    %cst_33 = arith.constant dense<0.000000e+00> : vector<16x256xf32>
    %63 = tpu.matmul %34, %62, %cst_33 {dimension_numbers = #tpu.dot_dimension_numbers<[1], [0], [0], [1], [0, 0, 1, 1], [], []>} : vector<16x128xbf16>, vector<128x256xbf16>, vector<16x256xf32> -> vector<16x256xf32>
    %c0_34 = arith.constant 0 : index
    %c768_35 = arith.constant 768 : index
    %64 = vector.load %arg8[%c0_34, %c768_35] : memref<1x1024xf32, #tpu.memory_space<vmem>>, vector<1x256xf32>
    %65 = vector.broadcast %64 : vector<1x256xf32> to vector<16x256xf32>
    %66 = arith.addf %63, %65 : vector<16x256xf32>
    %cst_36 = arith.constant 0.000000e+00 : f32
    %67 = vector.broadcast %cst_36 : f32 to vector<16x256xf32>
    %68 = arith.maximumf %66, %67 : vector<16x256xf32>
    %cst_37 = arith.constant dense<0xFF800000> : vector<256xf32>
    %69 = vector.multi_reduction <maximumf>, %68, %cst_37 [0] : vector<16x256xf32> to vector<256xf32>
    %70 = vector.shape_cast %69 : vector<256xf32> to vector<1x256xf32>
    %c0_i32 = arith.constant 0 : i32
    %71 = arith.cmpi eq, %arg1, %c0_i32 : i32
    %72 = arith.extui %71 : i1 to i32
    %c0_i32_38 = arith.constant 0 : i32
    %73 = arith.cmpi ne, %72, %c0_i32_38 : i32
    scf.if %73 {
      %c0_55 = arith.constant 0 : index
      %c0_56 = arith.constant 0 : index
      %98 = vector.load %arg16[%c0_55, %c0_56] : memref<1x1024xf32, #tpu.memory_space<vmem>>, vector<1x256xf32>
      tpu.vector_store %arg16[%c0_55, %c0_56], %43 {strides = array<i32>} : memref<1x1024xf32, #tpu.memory_space<vmem>>, vector<1x256xf32>,
    } else {
    }
    %c0_i32_39 = arith.constant 0 : i32
    %74 = arith.cmpi ne, %arg1, %c0_i32_39 : i32
    %75 = arith.extui %74 : i1 to i32
    %c0_i32_40 = arith.constant 0 : i32
    %76 = arith.cmpi ne, %75, %c0_i32_40 : i32
    scf.if %76 {
      %c0_55 = arith.constant 0 : index
      %c0_56 = arith.constant 0 : index
      %98 = vector.load %arg16[%c0_55, %c0_56] : memref<1x1024xf32, #tpu.memory_space<vmem>>, vector<1x256xf32>
      %99 = arith.maximumf %98, %43 : vector<1x256xf32>
      %c0_57 = arith.constant 0 : index
      %c0_58 = arith.constant 0 : index
      %100 = vector.load %arg16[%c0_57, %c0_58] : memref<1x1024xf32, #tpu.memory_space<vmem>>, vector<1x256xf32>
      tpu.vector_store %arg16[%c0_57, %c0_58], %99 {strides = array<i32>} : memref<1x1024xf32, #tpu.memory_space<vmem>>, vector<1x256xf32>,
    } else {
    }
    %c0_i32_41 = arith.constant 0 : i32
    %77 = arith.cmpi eq, %arg1, %c0_i32_41 : i32
    %78 = arith.extui %77 : i1 to i32
    %c0_i32_42 = arith.constant 0 : i32
    %79 = arith.cmpi ne, %78, %c0_i32_42 : i32
    scf.if %79 {
      %c0_55 = arith.constant 0 : index
      %c256_56 = arith.constant 256 : index
      %98 = vector.load %arg16[%c0_55, %c256_56] : memref<1x1024xf32, #tpu.memory_space<vmem>>, vector<1x256xf32>
      tpu.vector_store %arg16[%c0_55, %c256_56], %52 {strides = array<i32>} : memref<1x1024xf32, #tpu.memory_space<vmem>>, vector<1x256xf32>,
    } else {
    }
    %c0_i32_43 = arith.constant 0 : i32
    %80 = arith.cmpi ne, %arg1, %c0_i32_43 : i32
    %81 = arith.extui %80 : i1 to i32
    %c0_i32_44 = arith.constant 0 : i32
    %82 = arith.cmpi ne, %81, %c0_i32_44 : i32
    scf.if %82 {
      %c0_55 = arith.constant 0 : index
      %c256_56 = arith.constant 256 : index
      %98 = vector.load %arg16[%c0_55, %c256_56] : memref<1x1024xf32, #tpu.memory_space<vmem>>, vector<1x256xf32>
      %99 = arith.maximumf %98, %52 : vector<1x256xf32>
      %c0_57 = arith.constant 0 : index
      %c256_58 = arith.constant 256 : index
      %100 = vector.load %arg16[%c0_57, %c256_58] : memref<1x1024xf32, #tpu.memory_space<vmem>>, vector<1x256xf32>
      tpu.vector_store %arg16[%c0_57, %c256_58], %99 {strides = array<i32>} : memref<1x1024xf32, #tpu.memory_space<vmem>>, vector<1x256xf32>,
    } else {
    }
    %c0_i32_45 = arith.constant 0 : i32
    %83 = arith.cmpi eq, %arg1, %c0_i32_45 : i32
    %84 = arith.extui %83 : i1 to i32
    %c0_i32_46 = arith.constant 0 : i32
    %85 = arith.cmpi ne, %84, %c0_i32_46 : i32
    scf.if %85 {
      %c0_55 = arith.constant 0 : index
      %c512_56 = arith.constant 512 : index
      %98 = vector.load %arg16[%c0_55, %c512_56] : memref<1x1024xf32, #tpu.memory_space<vmem>>, vector<1x256xf32>
      tpu.vector_store %arg16[%c0_55, %c512_56], %61 {strides = array<i32>} : memref<1x1024xf32, #tpu.memory_space<vmem>>, vector<1x256xf32>,
    } else {
    }
    %c0_i32_47 = arith.constant 0 : i32
    %86 = arith.cmpi ne, %arg1, %c0_i32_47 : i32
    %87 = arith.extui %86 : i1 to i32
    %c0_i32_48 = arith.constant 0 : i32
    %88 = arith.cmpi ne, %87, %c0_i32_48 : i32
    scf.if %88 {
      %c0_55 = arith.constant 0 : index
      %c512_56 = arith.constant 512 : index
      %98 = vector.load %arg16[%c0_55, %c512_56] : memref<1x1024xf32, #tpu.memory_space<vmem>>, vector<1x256xf32>
      %99 = arith.maximumf %98, %61 : vector<1x256xf32>
      %c0_57 = arith.constant 0 : index
      %c512_58 = arith.constant 512 : index
      %100 = vector.load %arg16[%c0_57, %c512_58] : memref<1x1024xf32, #tpu.memory_space<vmem>>, vector<1x256xf32>
      tpu.vector_store %arg16[%c0_57, %c512_58], %99 {strides = array<i32>} : memref<1x1024xf32, #tpu.memory_space<vmem>>, vector<1x256xf32>,
    } else {
    }
    %c0_i32_49 = arith.constant 0 : i32
    %89 = arith.cmpi eq, %arg1, %c0_i32_49 : i32
    %90 = arith.extui %89 : i1 to i32
    %c0_i32_50 = arith.constant 0 : i32
    %91 = arith.cmpi ne, %90, %c0_i32_50 : i32
    scf.if %91 {
      %c0_55 = arith.constant 0 : index
      %c768_56 = arith.constant 768 : index
      %98 = vector.load %arg16[%c0_55, %c768_56] : memref<1x1024xf32, #tpu.memory_space<vmem>>, vector<1x256xf32>
      tpu.vector_store %arg16[%c0_55, %c768_56], %70 {strides = array<i32>} : memref<1x1024xf32, #tpu.memory_space<vmem>>, vector<1x256xf32>,
    } else {
    }
    %c0_i32_51 = arith.constant 0 : i32
    %92 = arith.cmpi ne, %arg1, %c0_i32_51 : i32
    %93 = arith.extui %92 : i1 to i32
    %c0_i32_52 = arith.constant 0 : i32
    %94 = arith.cmpi ne, %93, %c0_i32_52 : i32
    scf.if %94 {
      %c0_55 = arith.constant 0 : index
      %c768_56 = arith.constant 768 : index
      %98 = vector.load %arg16[%c0_55, %c768_56] : memref<1x1024xf32, #tpu.memory_space<vmem>>, vector<1x256xf32>
      %99 = arith.maximumf %98, %70 : vector<1x256xf32>
      %c0_57 = arith.constant 0 : index
      %c768_58 = arith.constant 768 : index
      %100 = vector.load %arg16[%c0_57, %c768_58] : memref<1x1024xf32, #tpu.memory_space<vmem>>, vector<1x256xf32>
      tpu.vector_store %arg16[%c0_57, %c768_58], %99 {strides = array<i32>} : memref<1x1024xf32, #tpu.memory_space<vmem>>, vector<1x256xf32>,
    } else {
    }
    %c0_i32_53 = arith.constant 0 : i32
    %95 = arith.cmpi eq, %arg1, %c0_i32_53 : i32
    %96 = arith.extui %95 : i1 to i32
    %c0_i32_54 = arith.constant 0 : i32
    %97 = arith.cmpi ne, %96, %c0_i32_54 : i32
    scf.if %97 {
      %c0_55 = arith.constant 0 : index
      %c0_56 = arith.constant 0 : index
      %98 = vector.load %arg16[%c0_55, %c0_56] : memref<1x1024xf32, #tpu.memory_space<vmem>>, vector<1x1024xf32>
      %c0_57 = arith.constant 0 : index
      %c0_58 = arith.constant 0 : index
      %99 = vector.load %arg9[%c0_57, %c0_58] : memref<1024x512xbf16, #tpu.memory_space<vmem>>, vector<1024x512xbf16>
      %c0_59 = arith.constant 0 : index
      %c0_60 = arith.constant 0 : index
      %100 = vector.load %arg10[%c0_59, %c0_60] : memref<1x512xf32, #tpu.memory_space<vmem>>, vector<1x512xf32>
      %101 = arith.truncf %98 : vector<1x1024xf32> to vector<1x1024xbf16>
      %cst_61 = arith.constant dense<0.000000e+00> : vector<1x512xf32>
      %102 = tpu.matmul %101, %99, %cst_61 {dimension_numbers = #tpu.dot_dimension_numbers<[1], [0], [0], [1], [0, 0, 1, 1], [], []>} : vector<1x1024xbf16>, vector<1024x512xbf16>, vector<1x512xf32> -> vector<1x512xf32>
      %103 = arith.addf %102, %100 : vector<1x512xf32>
      %cst_62 = arith.constant 0.000000e+00 : f32
      %104 = vector.broadcast %cst_62 : f32 to vector<1x512xf32>
      %105 = arith.maximumf %103, %104 : vector<1x512xf32>
      %c0_63 = arith.constant 0 : index
      %c0_64 = arith.constant 0 : index
      %106 = vector.load %arg11[%c0_63, %c0_64] : memref<512x256xbf16, #tpu.memory_space<vmem>>, vector<512x256xbf16>
      %c0_65 = arith.constant 0 : index
      %c0_66 = arith.constant 0 : index
      %107 = vector.load %arg12[%c0_65, %c0_66] : memref<1x256xf32, #tpu.memory_space<vmem>>, vector<1x256xf32>
      %108 = arith.truncf %105 : vector<1x512xf32> to vector<1x512xbf16>
      %cst_67 = arith.constant dense<0.000000e+00> : vector<1x256xf32>
      %109 = tpu.matmul %108, %106, %cst_67 {dimension_numbers = #tpu.dot_dimension_numbers<[1], [0], [0], [1], [0, 0, 1, 1], [], []>} : vector<1x512xbf16>, vector<512x256xbf16>, vector<1x256xf32> -> vector<1x256xf32>
      %110 = arith.addf %109, %107 : vector<1x256xf32>
      %cst_68 = arith.constant 0.000000e+00 : f32
      %111 = vector.broadcast %cst_68 : f32 to vector<1x256xf32>
      %112 = arith.maximumf %110, %111 : vector<1x256xf32>
      %c0_69 = arith.constant 0 : index
      %c0_70 = arith.constant 0 : index
      %113 = vector.load %arg13[%c0_69, %c0_70] : memref<256x128xbf16, #tpu.memory_space<vmem>>, vector<256x128xbf16>
      %c0_71 = arith.constant 0 : index
      %c0_72 = arith.constant 0 : index
      %114 = vector.load %arg14[%c0_71, %c0_72] : memref<1x128xf32, #tpu.memory_space<vmem>>, vector<1x128xf32>
      %115 = arith.truncf %112 : vector<1x256xf32> to vector<1x256xbf16>
      %cst_73 = arith.constant dense<0.000000e+00> : vector<1x128xf32>
      %116 = tpu.matmul %115, %113, %cst_73 {dimension_numbers = #tpu.dot_dimension_numbers<[1], [0], [0], [1], [0, 0, 1, 1], [], []>} : vector<1x256xbf16>, vector<256x128xbf16>, vector<1x128xf32> -> vector<1x128xf32>
      %117 = arith.addf %116, %114 : vector<1x128xf32>
      %c0_74 = arith.constant 0 : index
      %c0_75 = arith.constant 0 : index
      %c0_76 = arith.constant 0 : index
      %118 = vector.load %arg15[%c0_74, %c0_75, %c0_76] : memref<1x1x128xf32, #tpu.memory_space<vmem>>, vector<1x1x128xf32>
      %119 = vector.shape_cast %118 : vector<1x1x128xf32> to vector<1x128xf32>
      %120 = vector.shape_cast %117 : vector<1x128xf32> to vector<1x1x128xf32>
      tpu.vector_store %arg15[%c0_74, %c0_75, %c0_76], %120 {strides = array<i32>} : memref<1x1x128xf32, #tpu.memory_space<vmem>>, vector<1x1x128xf32>,
    } else {
    }
    return
  }
  func.func @transform_0(%arg0: i32, %arg1: i32) -> (i32, i32, i32) {
    %c0_i32 = arith.constant 0 : i32
    %c0_i32_0 = arith.constant 0 : i32
    return %arg0, %arg1, %c0_i32 : i32, i32, i32
  }
  func.func @transform_1(%arg0: i32, %arg1: i32) -> (i32, i32, i32) {
    %c0_i32 = arith.constant 0 : i32
    %c0_i32_0 = arith.constant 0 : i32
    %c0_i32_1 = arith.constant 0 : i32
    %c0_i32_2 = arith.constant 0 : i32
    return %c0_i32, %c0_i32_0, %c0_i32_1 : i32, i32, i32
  }
  func.func @transform_2(%arg0: i32, %arg1: i32) -> (i32, i32) {
    %c0_i32 = arith.constant 0 : i32
    %c0_i32_0 = arith.constant 0 : i32
    %c0_i32_1 = arith.constant 0 : i32
    return %c0_i32, %c0_i32_0 : i32, i32
  }
  func.func @transform_3(%arg0: i32, %arg1: i32) -> (i32, i32) {
    %c0_i32 = arith.constant 0 : i32
    %c0_i32_0 = arith.constant 0 : i32
    %c0_i32_1 = arith.constant 0 : i32
    return %c0_i32, %c0_i32_0 : i32, i32
  }
  func.func @transform_4(%arg0: i32, %arg1: i32) -> (i32, i32) {
    %c0_i32 = arith.constant 0 : i32
    %c0_i32_0 = arith.constant 0 : i32
    %c0_i32_1 = arith.constant 0 : i32
    return %c0_i32, %c0_i32_0 : i32, i32
  }
  func.func @transform_5(%arg0: i32, %arg1: i32) -> (i32, i32) {
    %c0_i32 = arith.constant 0 : i32
    %c0_i32_0 = arith.constant 0 : i32
    %c0_i32_1 = arith.constant 0 : i32
    return %c0_i32, %c0_i32_0 : i32, i32
  }
  func.func @transform_6(%arg0: i32, %arg1: i32) -> (i32, i32) {
    %c0_i32 = arith.constant 0 : i32
    %c0_i32_0 = arith.constant 0 : i32
    %c0_i32_1 = arith.constant 0 : i32
    return %c0_i32, %c0_i32_0 : i32, i32
  }
  func.func @transform_7(%arg0: i32, %arg1: i32) -> (i32, i32) {
    %c0_i32 = arith.constant 0 : i32
    %c0_i32_0 = arith.constant 0 : i32
    %c0_i32_1 = arith.constant 0 : i32
    return %c0_i32, %c0_i32_0 : i32, i32
  }
  func.func @transform_8(%arg0: i32, %arg1: i32) -> (i32, i32) {
    %c0_i32 = arith.constant 0 : i32
    %c0_i32_0 = arith.constant 0 : i32
    %c0_i32_1 = arith.constant 0 : i32
    return %c0_i32, %c0_i32_0 : i32, i32
  }
  func.func @transform_9(%arg0: i32, %arg1: i32) -> (i32, i32) {
    %c0_i32 = arith.constant 0 : i32
    %c0_i32_0 = arith.constant 0 : i32
    %c0_i32_1 = arith.constant 0 : i32
    return %c0_i32, %c0_i32_0 : i32, i32
  }
  func.func @transform_10(%arg0: i32, %arg1: i32) -> (i32, i32) {
    %c0_i32 = arith.constant 0 : i32
    %c0_i32_0 = arith.constant 0 : i32
    %c0_i32_1 = arith.constant 0 : i32
    return %c0_i32, %c0_i32_0 : i32, i32
  }
  func.func @transform_11(%arg0: i32, %arg1: i32) -> (i32, i32) {
    %c0_i32 = arith.constant 0 : i32
    %c0_i32_0 = arith.constant 0 : i32
    %c0_i32_1 = arith.constant 0 : i32
    return %c0_i32, %c0_i32_0 : i32, i32
  }
  func.func @transform_12(%arg0: i32, %arg1: i32) -> (i32, i32) {
    %c0_i32 = arith.constant 0 : i32
    %c0_i32_0 = arith.constant 0 : i32
    %c0_i32_1 = arith.constant 0 : i32
    return %c0_i32, %c0_i32_0 : i32, i32
  }
  func.func @transform_13(%arg0: i32, %arg1: i32) -> (i32, i32, i32) {
    %c0_i32 = arith.constant 0 : i32
    %c0_i32_0 = arith.constant 0 : i32
    %c0_i32_1 = arith.constant 0 : i32
    return %arg0, %c0_i32, %c0_i32_0 : i32, i32, i32
  }
}

module attributes {stable_mosaic.version = 11 : i64} {
  func.func @_trunk_kernel(%arg0: i32, %arg1: i32, %arg2: memref<1x16x3xf32, #tpu.memory_space<vmem>>, %arg3: memref<1x3x64xf32, #tpu.memory_space<vmem>>, %arg4: memref<1x64xf32, #tpu.memory_space<vmem>>, %arg5: memref<64x128xbf16, #tpu.memory_space<vmem>>, %arg6: memref<1x128xf32, #tpu.memory_space<vmem>>, %arg7: memref<128x1024xbf16, #tpu.memory_space<vmem>>, %arg8: memref<1x1024xf32, #tpu.memory_space<vmem>>, %arg9: memref<1024x512xbf16, #tpu.memory_space<vmem>>, %arg10: memref<1x512xf32, #tpu.memory_space<vmem>>, %arg11: memref<1x1x512xf32, #tpu.memory_space<vmem>>, %arg12: memref<1x1024xf32, #tpu.memory_space<vmem>>) attributes {dimension_semantics = [#tpu.dimension_semantics<parallel>, #tpu.dimension_semantics<arbitrary>], iteration_bounds = array<i64: 2, 1>, scalar_prefetch = 0 : i64, scratch_operands = 1 : i64, tpu.core_type = #tpu.core_type<tc>, window_params = [{transform_indices = @transform_0, window_bounds = array<i64: 1, 16, 3>}, {transform_indices = @transform_1, window_bounds = array<i64: 1, 3, 64>}, {pipeline_mode = #tpu.pipeline_mode<synchronous>, transform_indices = @transform_2, window_bounds = array<i64: 1, 64>}, {pipeline_mode = #tpu.pipeline_mode<synchronous>, transform_indices = @transform_3, window_bounds = array<i64: 64, 128>}, {pipeline_mode = #tpu.pipeline_mode<synchronous>, transform_indices = @transform_4, window_bounds = array<i64: 1, 128>}, {pipeline_mode = #tpu.pipeline_mode<synchronous>, transform_indices = @transform_5, window_bounds = array<i64: 128, 1024>}, {pipeline_mode = #tpu.pipeline_mode<synchronous>, transform_indices = @transform_6, window_bounds = array<i64: 1, 1024>}, {pipeline_mode = #tpu.pipeline_mode<synchronous>, transform_indices = @transform_7, window_bounds = array<i64: 1024, 512>}, {pipeline_mode = #tpu.pipeline_mode<synchronous>, transform_indices = @transform_8, window_bounds = array<i64: 1, 512>}, {transform_indices = @transform_9, window_bounds = array<i64: 1, 1, 512>}]} {
    %c0 = arith.constant 0 : index
    %c0_0 = arith.constant 0 : index
    %c0_1 = arith.constant 0 : index
    %0 = vector.load %arg3[%c0, %c0_0, %c0_1] : memref<1x3x64xf32, #tpu.memory_space<vmem>>, vector<1x3x64xf32>
    %1 = vector.shape_cast %0 : vector<1x3x64xf32> to vector<3x64xf32>
    %c0_2 = arith.constant 0 : index
    %c0_3 = arith.constant 0 : index
    %2 = vector.load %arg4[%c0_2, %c0_3] : memref<1x64xf32, #tpu.memory_space<vmem>>, vector<1x64xf32>
    %c0_4 = arith.constant 0 : index
    %c0_5 = arith.constant 0 : index
    %3 = vector.load %arg5[%c0_4, %c0_5] : memref<64x128xbf16, #tpu.memory_space<vmem>>, vector<64x128xbf16>
    %c0_6 = arith.constant 0 : index
    %c0_7 = arith.constant 0 : index
    %4 = vector.load %arg6[%c0_6, %c0_7] : memref<1x128xf32, #tpu.memory_space<vmem>>, vector<1x128xf32>
    %c0_8 = arith.constant 0 : index
    %c0_9 = arith.constant 0 : index
    %c0_10 = arith.constant 0 : index
    %5 = vector.load %arg2[%c0_8, %c0_9, %c0_10] : memref<1x16x3xf32, #tpu.memory_space<vmem>>, vector<1x16x3xf32>
    %6 = vector.shape_cast %5 : vector<1x16x3xf32> to vector<16x3xf32>
    %7 = vector.extract_strided_slice %6 {offsets = [0, 0], sizes = [16, 1], strides = [1, 1]} : vector<16x3xf32> to vector<16x1xf32>
    %8 = vector.extract_strided_slice %1 {offsets = [0, 0], sizes = [1, 64], strides = [1, 1]} : vector<3x64xf32> to vector<1x64xf32>
    %9 = vector.broadcast %7 : vector<16x1xf32> to vector<16x64xf32>
    %10 = vector.broadcast %8 : vector<1x64xf32> to vector<16x64xf32>
    %11 = arith.mulf %9, %10 : vector<16x64xf32>
    %12 = vector.extract_strided_slice %6 {offsets = [0, 1], sizes = [16, 1], strides = [1, 1]} : vector<16x3xf32> to vector<16x1xf32>
    %13 = vector.extract_strided_slice %1 {offsets = [1, 0], sizes = [1, 64], strides = [1, 1]} : vector<3x64xf32> to vector<1x64xf32>
    %14 = vector.broadcast %12 : vector<16x1xf32> to vector<16x64xf32>
    %15 = vector.broadcast %13 : vector<1x64xf32> to vector<16x64xf32>
    %16 = arith.mulf %14, %15 : vector<16x64xf32>
    %17 = arith.addf %11, %16 : vector<16x64xf32>
    %18 = vector.extract_strided_slice %6 {offsets = [0, 2], sizes = [16, 1], strides = [1, 1]} : vector<16x3xf32> to vector<16x1xf32>
    %19 = vector.extract_strided_slice %1 {offsets = [2, 0], sizes = [1, 64], strides = [1, 1]} : vector<3x64xf32> to vector<1x64xf32>
    %20 = vector.broadcast %18 : vector<16x1xf32> to vector<16x64xf32>
    %21 = vector.broadcast %19 : vector<1x64xf32> to vector<16x64xf32>
    %22 = arith.mulf %20, %21 : vector<16x64xf32>
    %23 = arith.addf %17, %22 : vector<16x64xf32>
    %24 = vector.broadcast %2 : vector<1x64xf32> to vector<16x64xf32>
    %25 = arith.addf %23, %24 : vector<16x64xf32>
    %cst = arith.constant 0.000000e+00 : f32
    %26 = vector.broadcast %cst : f32 to vector<16x64xf32>
    %27 = arith.maximumf %25, %26 : vector<16x64xf32>
    %28 = arith.truncf %27 : vector<16x64xf32> to vector<16x64xbf16>
    %cst_11 = arith.constant dense<0.000000e+00> : vector<16x128xf32>
    %29 = tpu.matmul %28, %3, %cst_11 {dimension_numbers = #tpu.dot_dimension_numbers<[1], [0], [0], [1], [0, 0, 1, 1], [], []>} : vector<16x64xbf16>, vector<64x128xbf16>, vector<16x128xf32> -> vector<16x128xf32>
    %30 = vector.broadcast %4 : vector<1x128xf32> to vector<16x128xf32>
    %31 = arith.addf %29, %30 : vector<16x128xf32>
    %cst_12 = arith.constant 0.000000e+00 : f32
    %32 = vector.broadcast %cst_12 : f32 to vector<16x128xf32>
    %33 = arith.maximumf %31, %32 : vector<16x128xf32>
    %34 = arith.truncf %33 : vector<16x128xf32> to vector<16x128xbf16>
    %c0_13 = arith.constant 0 : index
    %c0_14 = arith.constant 0 : index
    %35 = vector.load %arg7[%c0_13, %c0_14] : memref<128x1024xbf16, #tpu.memory_space<vmem>>, vector<128x256xbf16>
    %cst_15 = arith.constant dense<0.000000e+00> : vector<16x256xf32>
    %36 = tpu.matmul %34, %35, %cst_15 {dimension_numbers = #tpu.dot_dimension_numbers<[1], [0], [0], [1], [0, 0, 1, 1], [], []>} : vector<16x128xbf16>, vector<128x256xbf16>, vector<16x256xf32> -> vector<16x256xf32>
    %c0_16 = arith.constant 0 : index
    %c0_17 = arith.constant 0 : index
    %37 = vector.load %arg8[%c0_16, %c0_17] : memref<1x1024xf32, #tpu.memory_space<vmem>>, vector<1x256xf32>
    %38 = vector.broadcast %37 : vector<1x256xf32> to vector<16x256xf32>
    %39 = arith.addf %36, %38 : vector<16x256xf32>
    %cst_18 = arith.constant dense<0xFF800000> : vector<256xf32>
    %40 = vector.multi_reduction <maximumf>, %39, %cst_18 [0] : vector<16x256xf32> to vector<256xf32>
    %41 = vector.shape_cast %40 : vector<256xf32> to vector<1x256xf32>
    %c0_19 = arith.constant 0 : index
    %c256 = arith.constant 256 : index
    %42 = vector.load %arg7[%c0_19, %c256] : memref<128x1024xbf16, #tpu.memory_space<vmem>>, vector<128x256xbf16>
    %cst_20 = arith.constant dense<0.000000e+00> : vector<16x256xf32>
    %43 = tpu.matmul %34, %42, %cst_20 {dimension_numbers = #tpu.dot_dimension_numbers<[1], [0], [0], [1], [0, 0, 1, 1], [], []>} : vector<16x128xbf16>, vector<128x256xbf16>, vector<16x256xf32> -> vector<16x256xf32>
    %c0_21 = arith.constant 0 : index
    %c256_22 = arith.constant 256 : index
    %44 = vector.load %arg8[%c0_21, %c256_22] : memref<1x1024xf32, #tpu.memory_space<vmem>>, vector<1x256xf32>
    %45 = vector.broadcast %44 : vector<1x256xf32> to vector<16x256xf32>
    %46 = arith.addf %43, %45 : vector<16x256xf32>
    %cst_23 = arith.constant dense<0xFF800000> : vector<256xf32>
    %47 = vector.multi_reduction <maximumf>, %46, %cst_23 [0] : vector<16x256xf32> to vector<256xf32>
    %48 = vector.shape_cast %47 : vector<256xf32> to vector<1x256xf32>
    %c0_24 = arith.constant 0 : index
    %c512 = arith.constant 512 : index
    %49 = vector.load %arg7[%c0_24, %c512] : memref<128x1024xbf16, #tpu.memory_space<vmem>>, vector<128x256xbf16>
    %cst_25 = arith.constant dense<0.000000e+00> : vector<16x256xf32>
    %50 = tpu.matmul %34, %49, %cst_25 {dimension_numbers = #tpu.dot_dimension_numbers<[1], [0], [0], [1], [0, 0, 1, 1], [], []>} : vector<16x128xbf16>, vector<128x256xbf16>, vector<16x256xf32> -> vector<16x256xf32>
    %c0_26 = arith.constant 0 : index
    %c512_27 = arith.constant 512 : index
    %51 = vector.load %arg8[%c0_26, %c512_27] : memref<1x1024xf32, #tpu.memory_space<vmem>>, vector<1x256xf32>
    %52 = vector.broadcast %51 : vector<1x256xf32> to vector<16x256xf32>
    %53 = arith.addf %50, %52 : vector<16x256xf32>
    %cst_28 = arith.constant dense<0xFF800000> : vector<256xf32>
    %54 = vector.multi_reduction <maximumf>, %53, %cst_28 [0] : vector<16x256xf32> to vector<256xf32>
    %55 = vector.shape_cast %54 : vector<256xf32> to vector<1x256xf32>
    %c0_29 = arith.constant 0 : index
    %c768 = arith.constant 768 : index
    %56 = vector.load %arg7[%c0_29, %c768] : memref<128x1024xbf16, #tpu.memory_space<vmem>>, vector<128x256xbf16>
    %cst_30 = arith.constant dense<0.000000e+00> : vector<16x256xf32>
    %57 = tpu.matmul %34, %56, %cst_30 {dimension_numbers = #tpu.dot_dimension_numbers<[1], [0], [0], [1], [0, 0, 1, 1], [], []>} : vector<16x128xbf16>, vector<128x256xbf16>, vector<16x256xf32> -> vector<16x256xf32>
    %c0_31 = arith.constant 0 : index
    %c768_32 = arith.constant 768 : index
    %58 = vector.load %arg8[%c0_31, %c768_32] : memref<1x1024xf32, #tpu.memory_space<vmem>>, vector<1x256xf32>
    %59 = vector.broadcast %58 : vector<1x256xf32> to vector<16x256xf32>
    %60 = arith.addf %57, %59 : vector<16x256xf32>
    %cst_33 = arith.constant dense<0xFF800000> : vector<256xf32>
    %61 = vector.multi_reduction <maximumf>, %60, %cst_33 [0] : vector<16x256xf32> to vector<256xf32>
    %62 = vector.shape_cast %61 : vector<256xf32> to vector<1x256xf32>
    %c0_i32 = arith.constant 0 : i32
    %63 = arith.cmpi eq, %arg1, %c0_i32 : i32
    %64 = arith.extui %63 : i1 to i32
    %c0_i32_34 = arith.constant 0 : i32
    %65 = arith.cmpi ne, %64, %c0_i32_34 : i32
    scf.if %65 {
      %c0_51 = arith.constant 0 : index
      %c0_52 = arith.constant 0 : index
      %90 = vector.load %arg12[%c0_51, %c0_52] : memref<1x1024xf32, #tpu.memory_space<vmem>>, vector<1x256xf32>
      tpu.vector_store %arg12[%c0_51, %c0_52], %41 {strides = array<i32>} : memref<1x1024xf32, #tpu.memory_space<vmem>>, vector<1x256xf32>,
    } else {
    }
    %c0_i32_35 = arith.constant 0 : i32
    %66 = arith.cmpi ne, %arg1, %c0_i32_35 : i32
    %67 = arith.extui %66 : i1 to i32
    %c0_i32_36 = arith.constant 0 : i32
    %68 = arith.cmpi ne, %67, %c0_i32_36 : i32
    scf.if %68 {
      %c0_51 = arith.constant 0 : index
      %c0_52 = arith.constant 0 : index
      %90 = vector.load %arg12[%c0_51, %c0_52] : memref<1x1024xf32, #tpu.memory_space<vmem>>, vector<1x256xf32>
      %91 = arith.maximumf %90, %41 : vector<1x256xf32>
      %c0_53 = arith.constant 0 : index
      %c0_54 = arith.constant 0 : index
      %92 = vector.load %arg12[%c0_53, %c0_54] : memref<1x1024xf32, #tpu.memory_space<vmem>>, vector<1x256xf32>
      tpu.vector_store %arg12[%c0_53, %c0_54], %91 {strides = array<i32>} : memref<1x1024xf32, #tpu.memory_space<vmem>>, vector<1x256xf32>,
    } else {
    }
    %c0_i32_37 = arith.constant 0 : i32
    %69 = arith.cmpi eq, %arg1, %c0_i32_37 : i32
    %70 = arith.extui %69 : i1 to i32
    %c0_i32_38 = arith.constant 0 : i32
    %71 = arith.cmpi ne, %70, %c0_i32_38 : i32
    scf.if %71 {
      %c0_51 = arith.constant 0 : index
      %c256_52 = arith.constant 256 : index
      %90 = vector.load %arg12[%c0_51, %c256_52] : memref<1x1024xf32, #tpu.memory_space<vmem>>, vector<1x256xf32>
      tpu.vector_store %arg12[%c0_51, %c256_52], %48 {strides = array<i32>} : memref<1x1024xf32, #tpu.memory_space<vmem>>, vector<1x256xf32>,
    } else {
    }
    %c0_i32_39 = arith.constant 0 : i32
    %72 = arith.cmpi ne, %arg1, %c0_i32_39 : i32
    %73 = arith.extui %72 : i1 to i32
    %c0_i32_40 = arith.constant 0 : i32
    %74 = arith.cmpi ne, %73, %c0_i32_40 : i32
    scf.if %74 {
      %c0_51 = arith.constant 0 : index
      %c256_52 = arith.constant 256 : index
      %90 = vector.load %arg12[%c0_51, %c256_52] : memref<1x1024xf32, #tpu.memory_space<vmem>>, vector<1x256xf32>
      %91 = arith.maximumf %90, %48 : vector<1x256xf32>
      %c0_53 = arith.constant 0 : index
      %c256_54 = arith.constant 256 : index
      %92 = vector.load %arg12[%c0_53, %c256_54] : memref<1x1024xf32, #tpu.memory_space<vmem>>, vector<1x256xf32>
      tpu.vector_store %arg12[%c0_53, %c256_54], %91 {strides = array<i32>} : memref<1x1024xf32, #tpu.memory_space<vmem>>, vector<1x256xf32>,
    } else {
    }
    %c0_i32_41 = arith.constant 0 : i32
    %75 = arith.cmpi eq, %arg1, %c0_i32_41 : i32
    %76 = arith.extui %75 : i1 to i32
    %c0_i32_42 = arith.constant 0 : i32
    %77 = arith.cmpi ne, %76, %c0_i32_42 : i32
    scf.if %77 {
      %c0_51 = arith.constant 0 : index
      %c512_52 = arith.constant 512 : index
      %90 = vector.load %arg12[%c0_51, %c512_52] : memref<1x1024xf32, #tpu.memory_space<vmem>>, vector<1x256xf32>
      tpu.vector_store %arg12[%c0_51, %c512_52], %55 {strides = array<i32>} : memref<1x1024xf32, #tpu.memory_space<vmem>>, vector<1x256xf32>,
    } else {
    }
    %c0_i32_43 = arith.constant 0 : i32
    %78 = arith.cmpi ne, %arg1, %c0_i32_43 : i32
    %79 = arith.extui %78 : i1 to i32
    %c0_i32_44 = arith.constant 0 : i32
    %80 = arith.cmpi ne, %79, %c0_i32_44 : i32
    scf.if %80 {
      %c0_51 = arith.constant 0 : index
      %c512_52 = arith.constant 512 : index
      %90 = vector.load %arg12[%c0_51, %c512_52] : memref<1x1024xf32, #tpu.memory_space<vmem>>, vector<1x256xf32>
      %91 = arith.maximumf %90, %55 : vector<1x256xf32>
      %c0_53 = arith.constant 0 : index
      %c512_54 = arith.constant 512 : index
      %92 = vector.load %arg12[%c0_53, %c512_54] : memref<1x1024xf32, #tpu.memory_space<vmem>>, vector<1x256xf32>
      tpu.vector_store %arg12[%c0_53, %c512_54], %91 {strides = array<i32>} : memref<1x1024xf32, #tpu.memory_space<vmem>>, vector<1x256xf32>,
    } else {
    }
    %c0_i32_45 = arith.constant 0 : i32
    %81 = arith.cmpi eq, %arg1, %c0_i32_45 : i32
    %82 = arith.extui %81 : i1 to i32
    %c0_i32_46 = arith.constant 0 : i32
    %83 = arith.cmpi ne, %82, %c0_i32_46 : i32
    scf.if %83 {
      %c0_51 = arith.constant 0 : index
      %c768_52 = arith.constant 768 : index
      %90 = vector.load %arg12[%c0_51, %c768_52] : memref<1x1024xf32, #tpu.memory_space<vmem>>, vector<1x256xf32>
      tpu.vector_store %arg12[%c0_51, %c768_52], %62 {strides = array<i32>} : memref<1x1024xf32, #tpu.memory_space<vmem>>, vector<1x256xf32>,
    } else {
    }
    %c0_i32_47 = arith.constant 0 : i32
    %84 = arith.cmpi ne, %arg1, %c0_i32_47 : i32
    %85 = arith.extui %84 : i1 to i32
    %c0_i32_48 = arith.constant 0 : i32
    %86 = arith.cmpi ne, %85, %c0_i32_48 : i32
    scf.if %86 {
      %c0_51 = arith.constant 0 : index
      %c768_52 = arith.constant 768 : index
      %90 = vector.load %arg12[%c0_51, %c768_52] : memref<1x1024xf32, #tpu.memory_space<vmem>>, vector<1x256xf32>
      %91 = arith.maximumf %90, %62 : vector<1x256xf32>
      %c0_53 = arith.constant 0 : index
      %c768_54 = arith.constant 768 : index
      %92 = vector.load %arg12[%c0_53, %c768_54] : memref<1x1024xf32, #tpu.memory_space<vmem>>, vector<1x256xf32>
      tpu.vector_store %arg12[%c0_53, %c768_54], %91 {strides = array<i32>} : memref<1x1024xf32, #tpu.memory_space<vmem>>, vector<1x256xf32>,
    } else {
    }
    %c0_i32_49 = arith.constant 0 : i32
    %87 = arith.cmpi eq, %arg1, %c0_i32_49 : i32
    %88 = arith.extui %87 : i1 to i32
    %c0_i32_50 = arith.constant 0 : i32
    %89 = arith.cmpi ne, %88, %c0_i32_50 : i32
    scf.if %89 {
      %c0_51 = arith.constant 0 : index
      %c0_52 = arith.constant 0 : index
      %90 = vector.load %arg12[%c0_51, %c0_52] : memref<1x1024xf32, #tpu.memory_space<vmem>>, vector<1x1024xf32>
      %c0_53 = arith.constant 0 : index
      %c0_54 = arith.constant 0 : index
      %91 = vector.load %arg9[%c0_53, %c0_54] : memref<1024x512xbf16, #tpu.memory_space<vmem>>, vector<1024x512xbf16>
      %c0_55 = arith.constant 0 : index
      %c0_56 = arith.constant 0 : index
      %92 = vector.load %arg10[%c0_55, %c0_56] : memref<1x512xf32, #tpu.memory_space<vmem>>, vector<1x512xf32>
      %93 = arith.truncf %90 : vector<1x1024xf32> to vector<1x1024xbf16>
      %cst_57 = arith.constant dense<0.000000e+00> : vector<1x512xf32>
      %94 = tpu.matmul %93, %91, %cst_57 {dimension_numbers = #tpu.dot_dimension_numbers<[1], [0], [0], [1], [0, 0, 1, 1], [], []>} : vector<1x1024xbf16>, vector<1024x512xbf16>, vector<1x512xf32> -> vector<1x512xf32>
      %95 = arith.addf %94, %92 : vector<1x512xf32>
      %c0_58 = arith.constant 0 : index
      %c0_59 = arith.constant 0 : index
      %c0_60 = arith.constant 0 : index
      %96 = vector.load %arg11[%c0_58, %c0_59, %c0_60] : memref<1x1x512xf32, #tpu.memory_space<vmem>>, vector<1x1x512xf32>
      %97 = vector.shape_cast %96 : vector<1x1x512xf32> to vector<1x512xf32>
      %98 = vector.shape_cast %95 : vector<1x512xf32> to vector<1x1x512xf32>
      tpu.vector_store %arg11[%c0_58, %c0_59, %c0_60], %98 {strides = array<i32>} : memref<1x1x512xf32, #tpu.memory_space<vmem>>, vector<1x1x512xf32>,
    } else {
    }
    return
  }
  func.func @transform_0(%arg0: i32, %arg1: i32) -> (i32, i32, i32) {
    %c0_i32 = arith.constant 0 : i32
    %c0_i32_0 = arith.constant 0 : i32
    return %arg0, %arg1, %c0_i32 : i32, i32, i32
  }
  func.func @transform_1(%arg0: i32, %arg1: i32) -> (i32, i32, i32) {
    %c0_i32 = arith.constant 0 : i32
    %c0_i32_0 = arith.constant 0 : i32
    %c0_i32_1 = arith.constant 0 : i32
    return %arg0, %c0_i32, %c0_i32_0 : i32, i32, i32
  }
  func.func @transform_2(%arg0: i32, %arg1: i32) -> (i32, i32) {
    %c0_i32 = arith.constant 0 : i32
    %c0_i32_0 = arith.constant 0 : i32
    %c0_i32_1 = arith.constant 0 : i32
    return %c0_i32, %c0_i32_0 : i32, i32
  }
  func.func @transform_3(%arg0: i32, %arg1: i32) -> (i32, i32) {
    %c0_i32 = arith.constant 0 : i32
    %c0_i32_0 = arith.constant 0 : i32
    %c0_i32_1 = arith.constant 0 : i32
    return %c0_i32, %c0_i32_0 : i32, i32
  }
  func.func @transform_4(%arg0: i32, %arg1: i32) -> (i32, i32) {
    %c0_i32 = arith.constant 0 : i32
    %c0_i32_0 = arith.constant 0 : i32
    %c0_i32_1 = arith.constant 0 : i32
    return %c0_i32, %c0_i32_0 : i32, i32
  }
  func.func @transform_5(%arg0: i32, %arg1: i32) -> (i32, i32) {
    %c0_i32 = arith.constant 0 : i32
    %c0_i32_0 = arith.constant 0 : i32
    %c0_i32_1 = arith.constant 0 : i32
    return %c0_i32, %c0_i32_0 : i32, i32
  }
  func.func @transform_6(%arg0: i32, %arg1: i32) -> (i32, i32) {
    %c0_i32 = arith.constant 0 : i32
    %c0_i32_0 = arith.constant 0 : i32
    %c0_i32_1 = arith.constant 0 : i32
    return %c0_i32, %c0_i32_0 : i32, i32
  }
  func.func @transform_7(%arg0: i32, %arg1: i32) -> (i32, i32) {
    %c0_i32 = arith.constant 0 : i32
    %c0_i32_0 = arith.constant 0 : i32
    %c0_i32_1 = arith.constant 0 : i32
    return %c0_i32, %c0_i32_0 : i32, i32
  }
  func.func @transform_8(%arg0: i32, %arg1: i32) -> (i32, i32) {
    %c0_i32 = arith.constant 0 : i32
    %c0_i32_0 = arith.constant 0 : i32
    %c0_i32_1 = arith.constant 0 : i32
    return %c0_i32, %c0_i32_0 : i32, i32
  }
  func.func @transform_9(%arg0: i32, %arg1: i32) -> (i32, i32, i32) {
    %c0_i32 = arith.constant 0 : i32
    %c0_i32_0 = arith.constant 0 : i32
    %c0_i32_1 = arith.constant 0 : i32
    return %arg0, %c0_i32, %c0_i32_0 : i32, i32, i32
  }
}

module attributes {stable_mosaic.version = 11 : i64} {
  func.func @_head_kernel(%arg0: i32, %arg1: i32, %arg2: memref<1x16x3xf32, #tpu.memory_space<vmem>>, %arg3: memref<1x3x64xf32, #tpu.memory_space<vmem>>, %arg4: memref<1x64xf32, #tpu.memory_space<vmem>>, %arg5: memref<1x1x512xf32, #tpu.memory_space<vmem>>, %arg6: memref<64x512xbf16, #tpu.memory_space<vmem>>, %arg7: memref<512x256xbf16, #tpu.memory_space<vmem>>, %arg8: memref<1x256xf32, #tpu.memory_space<vmem>>, %arg9: memref<256x128xbf16, #tpu.memory_space<vmem>>, %arg10: memref<1x128xf32, #tpu.memory_space<vmem>>, %arg11: memref<128x128xbf16, #tpu.memory_space<vmem>>, %arg12: memref<1x128xf32, #tpu.memory_space<vmem>>, %arg13: memref<1x16x128xf32, #tpu.memory_space<vmem>>) attributes {dimension_semantics = [#tpu.dimension_semantics<parallel>, #tpu.dimension_semantics<parallel>], iteration_bounds = array<i64: 2, 1>, scalar_prefetch = 0 : i64, scratch_operands = 0 : i64, tpu.core_type = #tpu.core_type<tc>, window_params = [{transform_indices = @transform_0, window_bounds = array<i64: 1, 16, 3>}, {transform_indices = @transform_1, window_bounds = array<i64: 1, 3, 64>}, {pipeline_mode = #tpu.pipeline_mode<synchronous>, transform_indices = @transform_2, window_bounds = array<i64: 1, 64>}, {transform_indices = @transform_3, window_bounds = array<i64: 1, 1, 512>}, {pipeline_mode = #tpu.pipeline_mode<synchronous>, transform_indices = @transform_4, window_bounds = array<i64: 64, 512>}, {pipeline_mode = #tpu.pipeline_mode<synchronous>, transform_indices = @transform_5, window_bounds = array<i64: 512, 256>}, {pipeline_mode = #tpu.pipeline_mode<synchronous>, transform_indices = @transform_6, window_bounds = array<i64: 1, 256>}, {pipeline_mode = #tpu.pipeline_mode<synchronous>, transform_indices = @transform_7, window_bounds = array<i64: 256, 128>}, {pipeline_mode = #tpu.pipeline_mode<synchronous>, transform_indices = @transform_8, window_bounds = array<i64: 1, 128>}, {pipeline_mode = #tpu.pipeline_mode<synchronous>, transform_indices = @transform_9, window_bounds = array<i64: 128, 128>}, {pipeline_mode = #tpu.pipeline_mode<synchronous>, transform_indices = @transform_10, window_bounds = array<i64: 1, 128>}, {transform_indices = @transform_11, window_bounds = array<i64: 1, 16, 128>}]} {
    %c0 = arith.constant 0 : index
    %c0_0 = arith.constant 0 : index
    %c0_1 = arith.constant 0 : index
    %0 = vector.load %arg3[%c0, %c0_0, %c0_1] : memref<1x3x64xf32, #tpu.memory_space<vmem>>, vector<1x3x64xf32>
    %1 = vector.shape_cast %0 : vector<1x3x64xf32> to vector<3x64xf32>
    %c0_2 = arith.constant 0 : index
    %c0_3 = arith.constant 0 : index
    %2 = vector.load %arg4[%c0_2, %c0_3] : memref<1x64xf32, #tpu.memory_space<vmem>>, vector<1x64xf32>
    %c0_4 = arith.constant 0 : index
    %c0_5 = arith.constant 0 : index
    %c0_6 = arith.constant 0 : index
    %3 = vector.load %arg5[%c0_4, %c0_5, %c0_6] : memref<1x1x512xf32, #tpu.memory_space<vmem>>, vector<1x1x512xf32>
    %4 = vector.shape_cast %3 : vector<1x1x512xf32> to vector<1x512xf32>
    %c0_7 = arith.constant 0 : index
    %c0_8 = arith.constant 0 : index
    %5 = vector.load %arg6[%c0_7, %c0_8] : memref<64x512xbf16, #tpu.memory_space<vmem>>, vector<64x512xbf16>
    %c0_9 = arith.constant 0 : index
    %c0_10 = arith.constant 0 : index
    %6 = vector.load %arg7[%c0_9, %c0_10] : memref<512x256xbf16, #tpu.memory_space<vmem>>, vector<512x256xbf16>
    %c0_11 = arith.constant 0 : index
    %c0_12 = arith.constant 0 : index
    %7 = vector.load %arg8[%c0_11, %c0_12] : memref<1x256xf32, #tpu.memory_space<vmem>>, vector<1x256xf32>
    %c0_13 = arith.constant 0 : index
    %c0_14 = arith.constant 0 : index
    %8 = vector.load %arg9[%c0_13, %c0_14] : memref<256x128xbf16, #tpu.memory_space<vmem>>, vector<256x128xbf16>
    %c0_15 = arith.constant 0 : index
    %c0_16 = arith.constant 0 : index
    %9 = vector.load %arg10[%c0_15, %c0_16] : memref<1x128xf32, #tpu.memory_space<vmem>>, vector<1x128xf32>
    %c0_17 = arith.constant 0 : index
    %c0_18 = arith.constant 0 : index
    %10 = vector.load %arg11[%c0_17, %c0_18] : memref<128x128xbf16, #tpu.memory_space<vmem>>, vector<128x128xbf16>
    %c0_19 = arith.constant 0 : index
    %c0_20 = arith.constant 0 : index
    %11 = vector.load %arg12[%c0_19, %c0_20] : memref<1x128xf32, #tpu.memory_space<vmem>>, vector<1x128xf32>
    %c0_21 = arith.constant 0 : index
    %c0_22 = arith.constant 0 : index
    %c0_23 = arith.constant 0 : index
    %12 = vector.load %arg2[%c0_21, %c0_22, %c0_23] : memref<1x16x3xf32, #tpu.memory_space<vmem>>, vector<1x16x3xf32>
    %13 = vector.shape_cast %12 : vector<1x16x3xf32> to vector<16x3xf32>
    %14 = vector.extract_strided_slice %13 {offsets = [0, 0], sizes = [16, 1], strides = [1, 1]} : vector<16x3xf32> to vector<16x1xf32>
    %15 = vector.extract_strided_slice %1 {offsets = [0, 0], sizes = [1, 64], strides = [1, 1]} : vector<3x64xf32> to vector<1x64xf32>
    %16 = vector.broadcast %14 : vector<16x1xf32> to vector<16x64xf32>
    %17 = vector.broadcast %15 : vector<1x64xf32> to vector<16x64xf32>
    %18 = arith.mulf %16, %17 : vector<16x64xf32>
    %19 = vector.extract_strided_slice %13 {offsets = [0, 1], sizes = [16, 1], strides = [1, 1]} : vector<16x3xf32> to vector<16x1xf32>
    %20 = vector.extract_strided_slice %1 {offsets = [1, 0], sizes = [1, 64], strides = [1, 1]} : vector<3x64xf32> to vector<1x64xf32>
    %21 = vector.broadcast %19 : vector<16x1xf32> to vector<16x64xf32>
    %22 = vector.broadcast %20 : vector<1x64xf32> to vector<16x64xf32>
    %23 = arith.mulf %21, %22 : vector<16x64xf32>
    %24 = arith.addf %18, %23 : vector<16x64xf32>
    %25 = vector.extract_strided_slice %13 {offsets = [0, 2], sizes = [16, 1], strides = [1, 1]} : vector<16x3xf32> to vector<16x1xf32>
    %26 = vector.extract_strided_slice %1 {offsets = [2, 0], sizes = [1, 64], strides = [1, 1]} : vector<3x64xf32> to vector<1x64xf32>
    %27 = vector.broadcast %25 : vector<16x1xf32> to vector<16x64xf32>
    %28 = vector.broadcast %26 : vector<1x64xf32> to vector<16x64xf32>
    %29 = arith.mulf %27, %28 : vector<16x64xf32>
    %30 = arith.addf %24, %29 : vector<16x64xf32>
    %31 = vector.broadcast %2 : vector<1x64xf32> to vector<16x64xf32>
    %32 = arith.addf %30, %31 : vector<16x64xf32>
    %cst = arith.constant 0.000000e+00 : f32
    %33 = vector.broadcast %cst : f32 to vector<16x64xf32>
    %34 = arith.maximumf %32, %33 : vector<16x64xf32>
    %35 = arith.truncf %34 : vector<16x64xf32> to vector<16x64xbf16>
    %cst_24 = arith.constant dense<0.000000e+00> : vector<16x512xf32>
    %36 = tpu.matmul %35, %5, %cst_24 {dimension_numbers = #tpu.dot_dimension_numbers<[1], [0], [0], [1], [0, 0, 1, 1], [], []>} : vector<16x64xbf16>, vector<64x512xbf16>, vector<16x512xf32> -> vector<16x512xf32>
    %37 = vector.broadcast %4 : vector<1x512xf32> to vector<16x512xf32>
    %38 = arith.addf %36, %37 : vector<16x512xf32>
    %cst_25 = arith.constant 0.000000e+00 : f32
    %39 = vector.broadcast %cst_25 : f32 to vector<16x512xf32>
    %40 = arith.maximumf %38, %39 : vector<16x512xf32>
    %41 = arith.truncf %40 : vector<16x512xf32> to vector<16x512xbf16>
    %cst_26 = arith.constant dense<0.000000e+00> : vector<16x256xf32>
    %42 = tpu.matmul %41, %6, %cst_26 {dimension_numbers = #tpu.dot_dimension_numbers<[1], [0], [0], [1], [0, 0, 1, 1], [], []>} : vector<16x512xbf16>, vector<512x256xbf16>, vector<16x256xf32> -> vector<16x256xf32>
    %43 = vector.broadcast %7 : vector<1x256xf32> to vector<16x256xf32>
    %44 = arith.addf %42, %43 : vector<16x256xf32>
    %cst_27 = arith.constant 0.000000e+00 : f32
    %45 = vector.broadcast %cst_27 : f32 to vector<16x256xf32>
    %46 = arith.maximumf %44, %45 : vector<16x256xf32>
    %47 = arith.truncf %46 : vector<16x256xf32> to vector<16x256xbf16>
    %cst_28 = arith.constant dense<0.000000e+00> : vector<16x128xf32>
    %48 = tpu.matmul %47, %8, %cst_28 {dimension_numbers = #tpu.dot_dimension_numbers<[1], [0], [0], [1], [0, 0, 1, 1], [], []>} : vector<16x256xbf16>, vector<256x128xbf16>, vector<16x128xf32> -> vector<16x128xf32>
    %49 = vector.broadcast %9 : vector<1x128xf32> to vector<16x128xf32>
    %50 = arith.addf %48, %49 : vector<16x128xf32>
    %cst_29 = arith.constant 0.000000e+00 : f32
    %51 = vector.broadcast %cst_29 : f32 to vector<16x128xf32>
    %52 = arith.maximumf %50, %51 : vector<16x128xf32>
    %53 = arith.truncf %52 : vector<16x128xf32> to vector<16x128xbf16>
    %cst_30 = arith.constant dense<0.000000e+00> : vector<16x128xf32>
    %54 = tpu.matmul %53, %10, %cst_30 {dimension_numbers = #tpu.dot_dimension_numbers<[1], [0], [0], [1], [0, 0, 1, 1], [], []>} : vector<16x128xbf16>, vector<128x128xbf16>, vector<16x128xf32> -> vector<16x128xf32>
    %55 = vector.broadcast %11 : vector<1x128xf32> to vector<16x128xf32>
    %56 = arith.addf %54, %55 : vector<16x128xf32>
    %c0_31 = arith.constant 0 : index
    %c0_32 = arith.constant 0 : index
    %c0_33 = arith.constant 0 : index
    %57 = vector.load %arg13[%c0_31, %c0_32, %c0_33] : memref<1x16x128xf32, #tpu.memory_space<vmem>>, vector<1x16x128xf32>
    %58 = vector.shape_cast %57 : vector<1x16x128xf32> to vector<16x128xf32>
    %59 = vector.shape_cast %56 : vector<16x128xf32> to vector<1x16x128xf32>
    tpu.vector_store %arg13[%c0_31, %c0_32, %c0_33], %59 {strides = array<i32>} : memref<1x16x128xf32, #tpu.memory_space<vmem>>, vector<1x16x128xf32>,
    return
  }
  func.func @transform_0(%arg0: i32, %arg1: i32) -> (i32, i32, i32) {
    %c0_i32 = arith.constant 0 : i32
    %c0_i32_0 = arith.constant 0 : i32
    return %arg0, %arg1, %c0_i32 : i32, i32, i32
  }
  func.func @transform_1(%arg0: i32, %arg1: i32) -> (i32, i32, i32) {
    %c0_i32 = arith.constant 0 : i32
    %c0_i32_0 = arith.constant 0 : i32
    %c0_i32_1 = arith.constant 0 : i32
    return %arg0, %c0_i32, %c0_i32_0 : i32, i32, i32
  }
  func.func @transform_2(%arg0: i32, %arg1: i32) -> (i32, i32) {
    %c0_i32 = arith.constant 0 : i32
    %c0_i32_0 = arith.constant 0 : i32
    %c0_i32_1 = arith.constant 0 : i32
    return %c0_i32, %c0_i32_0 : i32, i32
  }
  func.func @transform_3(%arg0: i32, %arg1: i32) -> (i32, i32, i32) {
    %c0_i32 = arith.constant 0 : i32
    %c0_i32_0 = arith.constant 0 : i32
    %c0_i32_1 = arith.constant 0 : i32
    return %arg0, %c0_i32, %c0_i32_0 : i32, i32, i32
  }
  func.func @transform_4(%arg0: i32, %arg1: i32) -> (i32, i32) {
    %c0_i32 = arith.constant 0 : i32
    %c0_i32_0 = arith.constant 0 : i32
    %c0_i32_1 = arith.constant 0 : i32
    return %c0_i32, %c0_i32_0 : i32, i32
  }
  func.func @transform_5(%arg0: i32, %arg1: i32) -> (i32, i32) {
    %c0_i32 = arith.constant 0 : i32
    %c0_i32_0 = arith.constant 0 : i32
    %c0_i32_1 = arith.constant 0 : i32
    return %c0_i32, %c0_i32_0 : i32, i32
  }
  func.func @transform_6(%arg0: i32, %arg1: i32) -> (i32, i32) {
    %c0_i32 = arith.constant 0 : i32
    %c0_i32_0 = arith.constant 0 : i32
    %c0_i32_1 = arith.constant 0 : i32
    return %c0_i32, %c0_i32_0 : i32, i32
  }
  func.func @transform_7(%arg0: i32, %arg1: i32) -> (i32, i32) {
    %c0_i32 = arith.constant 0 : i32
    %c0_i32_0 = arith.constant 0 : i32
    %c0_i32_1 = arith.constant 0 : i32
    return %c0_i32, %c0_i32_0 : i32, i32
  }
  func.func @transform_8(%arg0: i32, %arg1: i32) -> (i32, i32) {
    %c0_i32 = arith.constant 0 : i32
    %c0_i32_0 = arith.constant 0 : i32
    %c0_i32_1 = arith.constant 0 : i32
    return %c0_i32, %c0_i32_0 : i32, i32
  }
  func.func @transform_9(%arg0: i32, %arg1: i32) -> (i32, i32) {
    %c0_i32 = arith.constant 0 : i32
    %c0_i32_0 = arith.constant 0 : i32
    %c0_i32_1 = arith.constant 0 : i32
    return %c0_i32, %c0_i32_0 : i32, i32
  }
  func.func @transform_10(%arg0: i32, %arg1: i32) -> (i32, i32) {
    %c0_i32 = arith.constant 0 : i32
    %c0_i32_0 = arith.constant 0 : i32
    %c0_i32_1 = arith.constant 0 : i32
    return %c0_i32, %c0_i32_0 : i32, i32
  }
  func.func @transform_11(%arg0: i32, %arg1: i32) -> (i32, i32, i32) {
    %c0_i32 = arith.constant 0 : i32
    %c0_i32_0 = arith.constant 0 : i32
    return %arg0, %arg1, %c0_i32 : i32, i32, i32
  }
}

</mosaic_0001>

<bundles_post_ra>
// kernel: pointnet_forward.3
= control target key start
LH: loop header
LB: loop body
LE: loop exit
PB: predicated region body
PF: predicated region fallthrough
CT: control target
= control target key end

     0   :  { %s6164_s25 = smov 0   ;;  %s6166_s26 = smov 0   ;;  %s8767_s0 = inlined_call_operand.vmem [shape: f32[2,16,3], index: 0, kind: input, shape index: {}]   ;;  %s8768_s1 = inlined_call_operand.vmem [shape: f32[1,3,64], index: 1, kind: input, shape index: {}]   ;;  %s8769_s2 = inlined_call_operand.vmem [shape: f32[1,64], index: 2, kind: input, shape index: {}]   ;;  %s8770_s3 = inlined_call_operand.vmem [shape: bf16[64,128], index: 3, kind: input, shape index: {}]   ;;  %s8771_s4 = inlined_call_operand.vmem [shape: f32[1,128], index: 4, kind: input, shape index: {}]   ;;  %s8772_s5 = inlined_call_operand.vmem [shape: bf16[128,1024], index: 5, kind: input, shape index: {}]   ;;  %s8773_s6 = inlined_call_operand.vmem [shape: f32[1,1024], index: 6, kind: input, shape index: {}]   ;;  %s8774_s7 = inlined_call_operand.vmem [shape: bf16[1024,512], index: 7, kind: input, shape index: {}]   ;;  %s8775_s8 = inlined_call_operand.vmem [shape: f32[1,512], index: 8, kind: input, shape index: {}]   ;;  %s8776_s9 = inlined_call_operand.vmem [shape: bf16[512,256], index: 9, kind: input, shape index: {}]   ;;  %s8777_s10 = inlined_call_operand.vmem [shape: f32[1,256], index: 10, kind: input, shape index: {}]   ;;  %s8778_s11 = inlined_call_operand.vmem [shape: bf16[256,128], index: 11, kind: input, shape index: {}]   ;;  %s8779_s12 = inlined_call_operand.vmem [shape: f32[1,128], index: 12, kind: input, shape index: {}]   ;;  %s8780_s13 = inlined_call_operand.vmem [shape: f32[2,1,128], index: 13, kind: output, shape index: {}]  }
   0x1   :  { %s6168_s27 = smov 0  }
   0x2 LB: > { %s35_s28 = sadd.s32 1, %s6085_s26  ;;  %p4006_p0 = scmp.ge.s32.totalorder %s6089_s27, 1  ;;  %s6089_s27 = sphi %s6168_s27, %s23_s27   ;;  %s6085_s26 = sphi %s6166_s26, %s8784_s26   ;;  %s6081_s25 = sphi %s6164_s25, %s8783_s25  }
   0x3   : > { %p37_p1 = scmp.ge.s32.totalorder %s35_s28, 2  ;;  %p406_p2 = scmp.lt.s32.totalorder %s6089_s27, 3 }
   0x5   : > { %s8786_s28 = smov (%p37_p1, %s35_s28), 0  ;;  %p407_p3 = pnand %p4006_p0, %p406_p2 }
   0x6   : > { %p453_p4 = scmp.lt.s32.totalorder (!%p407_p3), %s6081_s25, 1 }
   0x7   : > { %410 = sbr.rel (%p407_p3) target bundleno = 1103 (0x44f), region = 72 }
   0xc   : > { %v6091_v0 = vmov 1   ;;  %v6092_v1 = vmov 0   ;;  %s8788_s25 = smov (!%p453_p4, %s6081_s25), 1  ;;  %v6093_v2 = vmov 2   ;;  %v5632_v5 = vld [vmem:[%s8770_s3 + $0x18] sm:$0xff]  ;;  %v5631_v6 = vld [vmem:[%s8770_s3 + $0x10] sm:$0xff] }
   0xd   : > { %6061 = vset.pattern.permute.xlu1 %v6091_v0  ;;  %6060 = vset.pattern.permute.xlu0 %v6092_v1  ;;  %s5628_s29 = sshll.u32 %s8788_s25, 4  ;;  %v5630_v7 = vld [vmem:[%s8770_s3 + $0x8] sm:$0xff]  ;;  %v5629_v8 = vld [vmem:[%s8770_s3] sm:$0xff]  ;;  %vm553_vm0 = vcmask 523264   ;;  %vm1173_vm1 = vcmask 1040384   ;;  %s464_s17 = scalar_lea.vmem %s8780_s13, %s8788_s25 }
   0xe   : > { %6062 = vset.pattern.permute.xlu2 %v6093_v2  ;;  %s460_s15 = scalar_lea.vmem %s8767_s0, %s5628_s29  ;;  %561 = vmatpush.bf16.msra.mxu0 %v5632_v5  ;;  %v6203_v9 = vld [vmem:[%s8768_s1] sm:$0x7]  ;;  %v5647_v14 = vld [vmem:[%s8772_s5 + $0x1c4] sm:$0xf]  ;;  %v4148_v17 = vld [vmem:[%s8772_s5 + $0x1c8] sm:$0xf] }
   0xf   : > { %v477_v3 = vld [vmem:[%s460_s15] sm:$0xff]  ;;  %v478_v4 = vld [vmem:[%s460_s15 + $0x8] sm:$0xff]  ;;  %v500_v10 = vperm.slane %v6203_v9, 1  ;;  %v489_v11 = vperm.slane %v6203_v9, 0  ;;  %v513_v57 = vperm.slane %v6203_v9, 2 }
  0x10   : > { %493 = vperm.xlu1 %6061, %v477_v3   ;;  %481 = vperm.xlu0 %6060, %v477_v3   ;;  %v4084_v12 = vld [vmem:[%s8772_s5 + $0x1c0] sm:$0xf]  ;;  %v4086_v16 = vld [vmem:[%s8772_s5 + $0x1e0] sm:$0xf0]  ;;  %v5664_v18 = vld [vmem:[%s8772_s5 + $0x1e4] sm:$0xf0] }
  0x11   : > { %506 = vperm.xlu2 %6062, %v477_v3   ;;  %v5648_v13 = vld [vmem:[%s8772_s5 + $0x1dc] sm:$0xf0]  ;;  %v4089_v19 = vor.u32 %v5647_v14, %v4086_v16  ;;  %v4149_v20 = vor.u32 %v5664_v18, %v4148_v17  ;;  %v5663_v21 = vld [vmem:[%s8772_s5 + $0x1cc] sm:$0xf]  ;;  %v5645_v26 = vld [vmem:[%s8772_s5 + $0x184] sm:$0xf] }
  0x12   : > { %562 = vmatpush.bf16.msra.mxu0 %v5631_v6  ;;  %v4085_v15 = vor.u32 %v5648_v13, %v4084_v12  ;;  %v4150_v22 = vld [vmem:[%s8772_s5 + $0x1e8] sm:$0xf0]  ;;  %v4076_v23 = vld [vmem:[%s8772_s5 + $0x180] sm:$0xf]  ;;  %v4078_v27 = vld [vmem:[%s8772_s5 + $0x1a0] sm:$0xf0] }
  0x13   : > { %v4153_v24 = vor.u32 %v5663_v21, %v4150_v22  ;;  %v5646_v25 = vld [vmem:[%s8772_s5 + $0x19c] sm:$0xf0]  ;;  %690 = vmatpush.bf16.msra.mxu2 %v4089_v19  ;;  %824 = vmatpush.bf16.msra.mxu3 %v4149_v20  ;;  %v4081_v29 = vor.u32 %v5645_v26, %v4078_v27  ;;  %v4140_v30 = vld [vmem:[%s8772_s5 + $0x188] sm:$0xf]  ;;  %v5661_v32 = vld [vmem:[%s8772_s5 + $0x18c] sm:$0xf] }
  0x14   : > { %676 = vmatpush.bf16.msra.mxu1 %v4085_v15  ;;  %v4077_v28 = vor.u32 %v5646_v25, %v4076_v23  ;;  %v5662_v31 = vld [vmem:[%s8772_s5 + $0x1a4] sm:$0xf0]  ;;  %v4142_v34 = vld [vmem:[%s8772_s5 + $0x1a8] sm:$0xf0]  ;;  %v4068_v35 = vld [vmem:[%s8772_s5 + $0x140] sm:$0xf] }
  0x15   : > { %v4141_v33 = vor.u32 %v5662_v31, %v4140_v30  ;;  %v5644_v36 = vld [vmem:[%s8772_s5 + $0x15c] sm:$0xf0]  ;;  %v4145_v37 = vor.u32 %v5661_v32, %v4142_v34  ;;  %v5643_v38 = vld [vmem:[%s8772_s5 + $0x144] sm:$0xf]  ;;  %v4132_v40 = vld [vmem:[%s8772_s5 + $0x148] sm:$0xf] }
  0x16   : > { %563 = vmatpush.bf16.msra.mxu0 %v5630_v7  ;;  %v4070_v39 = vld [vmem:[%s8772_s5 + $0x160] sm:$0xf0]  ;;  %v4069_v41 = vor.u32 %v5644_v36, %v4068_v35  ;;  %v5660_v42 = vld [vmem:[%s8772_s5 + $0x164] sm:$0xf0]  ;;  %v5659_v43 = vld [vmem:[%s8772_s5 + $0x14c] sm:$0xf] }
  0x17   : > { %v4134_v44 = vld [vmem:[%s8772_s5 + $0x168] sm:$0xf0]  ;;  %691 = vmatpush.bf16.msra.mxu2 %v4081_v29  ;;  %825 = vmatpush.bf16.msra.mxu3 %v4141_v33  ;;  %v4073_v46 = vor.u32 %v5643_v38, %v4070_v39  ;;  %v4133_v47 = vor.u32 %v5660_v42, %v4132_v40  ;;  %v4060_v48 = vld [vmem:[%s8772_s5 + $0x100] sm:$0xf]  ;;  %v5641_v50 = vld [vmem:[%s8772_s5 + $0x104] sm:$0xf] }
  0x18   : > { %497 = vperm.xlu1 %6061, %v478_v4   ;;  %486 = vperm.xlu0 %6060, %v478_v4   ;;  %v5642_v49 = vld [vmem:[%s8772_s5 + $0x11c] sm:$0xf0]  ;;  %v4137_v51 = vor.u32 %v5659_v43, %v4134_v44  ;;  %v4062_v52 = vld [vmem:[%s8772_s5 + $0x120] sm:$0xf0]  ;;  %v4124_v53 = vld [vmem:[%s8772_s5 + $0x108] sm:$0xf] }
  0x19   : > { %510 = vperm.xlu2 %6062, %v478_v4   ;;  %677 = vmatpush.bf16.msra.mxu1 %v4077_v28  ;;  %v5658_v54 = vld [vmem:[%s8772_s5 + $0x124] sm:$0xf0]  ;;  %v5657_v55 = vld [vmem:[%s8772_s5 + $0x10c] sm:$0xf]  ;;  %v4061_v60 = vor.u32 %v5642_v49, %v4060_v48  ;;  %v4065_v61 = vor.u32 %v5641_v50, %v4062_v52  ;;  %v4052_v1 = vld [vmem:[%s8772_s5 + $0xc0] sm:$0xf] }
  0x1a   : > { %564 = vmatpush.bf16.msra.mxu0 %v5629_v8  ;;  %v4126_v56 = vld [vmem:[%s8772_s5 + $0x128] sm:$0xf0]  ;;  %v4125_v0 = vor.u32 %v5658_v54, %v4124_v53  ;;  %v5639_v3 = vld [vmem:[%s8772_s5 + $0xc4] sm:$0xf]  ;;  %v4116_v6 = vld [vmem:[%s8772_s5 + $0xc8] sm:$0xf] }
  0x1b   : > { %692 = vmatpush.bf16.msra.mxu2 %v4073_v46  ;;  %826 = vmatpush.bf16.msra.mxu3 %v4133_v47  ;;  %v4129_v4 = vor.u32 %v5657_v55, %v4126_v56  ;;  %v4054_v5 = vld [vmem:[%s8772_s5 + $0xe0] sm:$0xf0]  ;;  %v5656_v7 = vld [vmem:[%s8772_s5 + $0xe4] sm:$0xf0]  ;;  %v5655_v8 = vld [vmem:[%s8772_s5 + $0xcc] sm:$0xf] }
  0x1c   : > { %v4118_v12 = vld [vmem:[%s8772_s5 + $0xe8] sm:$0xf0]  ;;  %v4044_v16 = vld [vmem:[%s8772_s5 + $0x80] sm:$0xf]  ;;  %v4057_v17 = vor.u32 %v5639_v3, %v4054_v5  ;;  %v4117_v18 = vor.u32 %v5656_v7, %v4116_v6  ;;  %v5637_v20 = vld [vmem:[%s8772_s5 + $0x84] sm:$0xf] }
  0x1d   : > { %678 = vmatpush.bf16.msra.mxu1 %v4069_v41  ;;  %v5638_v19 = vld [vmem:[%s8772_s5 + $0x9c] sm:$0xf0]  ;;  %v4046_v21 = vld [vmem:[%s8772_s5 + $0xa0] sm:$0xf0]  ;;  %v4121_v22 = vor.u32 %v5655_v8, %v4118_v12  ;;  %v4108_v23 = vld [vmem:[%s8772_s5 + $0x88] sm:$0xf] }
  0x1e   : > { %838 = vmatpush.bf16.msrb.mxu0 %v4153_v24  ;;  %v5654_v24 = vld [vmem:[%s8772_s5 + $0xa4] sm:$0xf0]  ;;  %v5653_v26 = vld [vmem:[%s8772_s5 + $0x8c] sm:$0xf]  ;;  %v6064_v31 = vld [vmem:[%s8769_s2] ss:$0 sm:$0xff]  ;;  %v4045_v32 = vor.u32 %v5638_v19, %v4044_v16  ;;  %v4049_v33 = vor.u32 %v5637_v20, %v4046_v21 }
  0x1f   : > { %693 = vmatpush.bf16.msra.mxu2 %v4065_v61  ;;  %827 = vmatpush.bf16.msra.mxu3 %v4125_v0  ;;  %v4110_v27 = vld [vmem:[%s8772_s5 + $0xa8] sm:$0xf0]  ;;  %v4109_v36 = vor.u32 %v5654_v24, %v4108_v23  ;;  %v5636_v38 = vld [vmem:[%s8772_s5 + $0x5c] sm:$0xf0]  ;;  %v5635_v39 = vld [vmem:[%s8772_s5 + $0x44] sm:$0xf] }
  0x20   : > { %6063 = vset.pattern.permute.xlu0 %v6093_v2  ;;  %v5640_v2 = vld [vmem:[%s8772_s5 + $0xdc] sm:$0xf0]  ;;  %v4038_v9 = vld [vmem:[%s8772_s5 + $0x60] sm:$0xf0]  ;;  %v5652_v40 = vld [vmem:[%s8772_s5 + $0x64] sm:$0xf0] }
  0x21   : > { %679 = vmatpush.bf16.msra.mxu1 %v4061_v60  ;;  %v4053_v15 = vor.u32 %v5640_v2, %v4052_v1  ;;  %v5651_v43 = vld [vmem:[%s8772_s5 + $0x4c] sm:$0xf]  ;;  %v4041_v48 = vor.u32 %v5635_v39, %v4038_v9  ;;  %v4028_v50 = vld [vmem:[%s8772_s5] sm:$0xf]  ;;  %v5633_v53 = vld [vmem:[%s8772_s5 + $0x4] sm:$0xf] }
  0x22   : > { %839 = vmatpush.bf16.msrb.mxu0 %v4145_v37  ;;  %v4036_v37 = vld [vmem:[%s8772_s5 + $0x40] sm:$0xf]  ;;  %v4102_v44 = vld [vmem:[%s8772_s5 + $0x68] sm:$0xf0]  ;;  %v4030_v54 = vld [vmem:[%s8772_s5 + $0x20] sm:$0xf0] }
  0x23   : > { %694 = vmatpush.bf16.msra.mxu2 %v4057_v17  ;;  %828 = vmatpush.bf16.msra.mxu3 %v4117_v18  ;;  %v4037_v46 = vor.u32 %v5636_v38, %v4036_v37  ;;  %v4105_v52 = vor.u32 %v5651_v43, %v4102_v44  ;;  %v4092_v55 = vld [vmem:[%s8772_s5 + $0x8] sm:$0xf]  ;;  %v4212_v3 = vld [vmem:[%s8772_s5 + $0x1d0] sm:$0xf]  ;;  %v5679_v5 = vld [vmem:[%s8772_s5 + $0x1d4] sm:$0xf] }
  0x24   : > { %v4214_v7 = vld [vmem:[%s8772_s5 + $0x1f0] sm:$0xf0]  ;;  %v4276_v8 = vld [vmem:[%s8772_s5 + $0x1d8] sm:$0xf]  ;;  %v4278_v16 = vld [vmem:[%s8772_s5 + $0x1f8] sm:$0xf0] }
  0x25   : > { %680 = vmatpush.bf16.msra.mxu1 %v4053_v15  ;;  %v5696_v12 = vld [vmem:[%s8772_s5 + $0x1f4] sm:$0xf0]  ;;  %v5695_v15 = vld [vmem:[%s8772_s5 + $0x1dc] sm:$0xf]  ;;  %v4204_v18 = vld [vmem:[%s8772_s5 + $0x190] sm:$0xf] }
  0x26   : > { %840 = vmatpush.bf16.msrb.mxu0 %v4137_v51  ;;  %v5634_v51 = vld [vmem:[%s8772_s5 + $0x1c] sm:$0xf0]  ;;  %v4281_v17 = vor.u32 %v5695_v15, %v4278_v16  ;;  %v5678_v19 = vld [vmem:[%s8772_s5 + $0x1ac] sm:$0xf0]  ;;  %v5677_v20 = vld [vmem:[%s8772_s5 + $0x194] sm:$0xf] }
  0x27   : > { %695 = vmatpush.bf16.msra.mxu2 %v4049_v33  ;;  %829 = vmatpush.bf16.msra.mxu3 %v4109_v36  ;;  %v4029_v60 = vor.u32 %v5634_v51, %v4028_v50  ;;  %v4205_v21 = vor.u32 %v5678_v19, %v4204_v18  ;;  %v4268_v23 = vld [vmem:[%s8772_s5 + $0x198] sm:$0xf]  ;;  %v5691_v39 = vld [vmem:[%s8772_s5 + $0x15c] sm:$0xf]  ;;  %v4190_v43 = vld [vmem:[%s8772_s5 + $0x130] sm:$0xf0] }
  0x28   : > { %v5694_v24 = vld [vmem:[%s8772_s5 + $0x1b4] sm:$0xf0]  ;;  %v4180_v51 = vld [vmem:[%s8772_s5 + $0xd0] sm:$0xf]  ;;  %v5667_v16 = vld [vmem:[%s8772_s5 + $0x54] sm:$0xf] }
  0x29   : > { %681 = vmatpush.bf16.msra.mxu1 %v4045_v32  ;;  %v5675_v32 = vld [vmem:[%s8772_s5 + $0x154] sm:$0xf]  ;;  %v5692_v36 = vld [vmem:[%s8772_s5 + $0x174] sm:$0xf0] }
  0x2a   : > { %841 = vmatpush.bf16.msrb.mxu0 %v4129_v4  ;;  %v5680_v4 = vld [vmem:[%s8772_s5 + $0x1ec] sm:$0xf0]  ;;  %v4252_v44 = vld [vmem:[%s8772_s5 + $0x118] sm:$0xf] }
  0x2b   : > { %696 = vmatpush.bf16.msra.mxu2 %v4041_v48  ;;  %v4213_v6 = vor.u32 %v5680_v4, %v4212_v3  ;;  %v5689_v48 = vld [vmem:[%s8772_s5 + $0x11c] sm:$0xf]  ;;  %v4228_v18 = vld [vmem:[%s8772_s5 + $0x58] sm:$0xf] }
  0x2d   : > { %682 = vmatpush.bf16.msra.mxu1 %v4037_v46 }
  0x2e   : > { %842 = vmatpush.bf16.msrb.mxu0 %v4121_v22  ;;  %v4206_v22 = vld [vmem:[%s8772_s5 + $0x1b0] sm:$0xf0] }
  0x31   : > { %683 = vmatpush.bf16.msra.mxu1 %v4029_v60  ;;  %v5687_v60 = vld [vmem:[%s8772_s5 + $0xdc] sm:$0xf] }
  0x35   : > { %972 = vmatpush.bf16.msrb.mxu1 %v4213_v6  ;;  %v5686_v6 = vld [vmem:[%s8772_s5 + $0xb4] sm:$0xf0] }
  0x39   : > { %973 = vmatpush.bf16.msrb.mxu1 %v4205_v21  ;;  %v5683_v21 = vld [vmem:[%s8772_s5 + $0x5c] sm:$0xf] }
  0x6b   : > { %v507_v45 = vpop.permute.xlu2 %506 }
  0x6c   : > { %v514_v13 = vmul.f32 %v513_v57, %v507_v45 }
  0x73   : > { %v511_v25 = vpop.permute.xlu2 %510 }
  0x74   : > { %v515_v41 = vmul.f32 %v513_v57, %v511_v25  ;;  %v5650_v57 = vld [vmem:[%s8772_s5 + $0x24] sm:$0xf0]  ;;  %v4209_v25 = vor.u32 %v5677_v20, %v4206_v22  ;;  %v5684_v20 = vld [vmem:[%s8772_s5 + $0x74] sm:$0xf0]  ;;  %v4230_v22 = vld [vmem:[%s8772_s5 + $0x78] sm:$0xf0] }
  0x75   : > { %v4093_v0 = vor.u32 %v5650_v57, %v4092_v55  ;;  %v4182_v55 = vld [vmem:[%s8772_s5 + $0xf0] sm:$0xf0]  ;;  %v5688_v57 = vld [vmem:[%s8772_s5 + $0xf4] sm:$0xf0] }
  0x82   : > { %v494_v58 = vpop.permute.xlu1 %493  ;;  %v482_v59 = vpop.permute.xlu0 %481 }
  0x83   : > { %v501_v62 = vmul.f32 %v500_v10, %v494_v58  ;;  %v490_v63 = vmul.f32 %v489_v11, %v482_v59  ;;  %v5649_v58 = vld [vmem:[%s8772_s5 + $0xc] sm:$0xf] }
  0x84   : > { %v4094_v59 = vld [vmem:[%s8772_s5 + $0x28] sm:$0xf0] }
  0x85   : > { %v503_v14 = vadd.f32 %v501_v62, %v490_v63  ;;  %v4033_v63 = vor.u32 %v5633_v53, %v4030_v54  ;;  %v4097_v1 = vor.u32 %v5649_v58, %v4094_v59  ;;  %v5671_v53 = vld [vmem:[%s8772_s5 + $0xd4] sm:$0xf] }
  0x86   : > { %v4185_v58 = vor.u32 %v5671_v53, %v4182_v55  ;;  %v5823_v53 = vld [vmem:[%s8774_s7 + $0x3ec] sm:$0xf0]  ;;  %v4380_v55 = vld [vmem:[%s8774_s7 + $0xc0] sm:$0xf] }
  0x87   : > { %v516_v28 = vadd.f32 %v514_v13, %v503_v14  ;;  %697 = vmatpush.bf16.msra.mxu2 %v4033_v63  ;;  %v4217_v13 = vor.u32 %v5679_v5, %v4214_v7  ;;  %v4277_v14 = vor.u32 %v5696_v12, %v4276_v8  ;;  %v4236_v5 = vld [vmem:[%s8772_s5 + $0x98] sm:$0xf]  ;;  %v5685_v7 = vld [vmem:[%s8772_s5 + $0x9c] sm:$0xf] }
  0x88   : > { %v4237_v8 = vor.u32 %v5686_v6, %v4236_v5  ;;  %v4238_v12 = vld [vmem:[%s8772_s5 + $0xb8] sm:$0xf0]  ;;  %v4492_v5 = vld [vmem:[%s8774_s7 + $0x1a0] sm:$0xf] }
  0x89   : > { %v521_v45 = vadd.f32 %v6064_v31, %v516_v28  ;;  %v4270_v28 = vld [vmem:[%s8772_s5 + $0x1b8] sm:$0xf0]  ;;  %v4241_v15 = vor.u32 %v5685_v7, %v4238_v12  ;;  %v5751_v7 = vld [vmem:[%s8774_s7 + $0x1ac] sm:$0xf0] }
  0x8a   : > { %v498_v29 = vpop.permute.xlu1 %497  ;;  %v487_v30 = vpop.permute.xlu0 %486  ;;  %v5783_v12 = vld [vmem:[%s8774_s7 + $0x2ac] sm:$0xf0] }
  0x8b   : > { %v502_v34 = vmul.f32 %v500_v10, %v498_v29  ;;  %v491_v35 = vmul.f32 %v489_v11, %v487_v30  ;;  %v4113_v10 = vor.u32 %v5653_v26, %v4110_v27  ;;  %v4100_v11 = vld [vmem:[%s8772_s5 + $0x48] sm:$0xf]  ;;  %v523_v61 = vmax.f32 %v521_v45, 0.0  ;;  %986 = vmatpush.bf16.msrb.mxu2 %v4217_v13  ;;  %v5693_v27 = vld [vmem:[%s8772_s5 + $0x19c] sm:$0xf] }
  0x8c   : > { %v4101_v49 = vor.u32 %v5652_v40, %v4100_v11  ;;  %v4269_v26 = vor.u32 %v5694_v24, %v4268_v23  ;;  %v4273_v29 = vor.u32 %v5693_v27, %v4270_v28  ;;  %v4196_v30 = vld [vmem:[%s8772_s5 + $0x150] sm:$0xf]  ;;  %v5690_v45 = vld [vmem:[%s8772_s5 + $0x134] sm:$0xf0]  ;;  %v4229_v24 = vor.u32 %v5684_v20, %v4228_v18  ;;  %v5665_v27 = vld [vmem:[%s8772_s5 + $0x14] sm:$0xf] }
  0x8d   : > { %v504_v42 = vadd.f32 %v502_v34, %v491_v35  ;;  %843 = vmatpush.bf16.msrb.mxu0 %v4113_v10  ;;  %v4198_v34 = vld [vmem:[%s8772_s5 + $0x170] sm:$0xf0]  ;;  %v4260_v35 = vld [vmem:[%s8772_s5 + $0x158] sm:$0xf]  ;;  %v4262_v10 = vld [vmem:[%s8772_s5 + $0x178] sm:$0xf0]  ;;  %v4233_v28 = vor.u32 %v5683_v21, %v4230_v22 }
  0x8e   : > { %830 = vmatpush.bf16.msra.mxu3 %v4101_v49  ;;  %v4201_v37 = vor.u32 %v5675_v32, %v4198_v34  ;;  %v4261_v38 = vor.u32 %v5692_v36, %v4260_v35  ;;  %v4265_v9 = vor.u32 %v5691_v39, %v4262_v10  ;;  %v4188_v11 = vld [vmem:[%s8772_s5 + $0x110] sm:$0xf]  ;;  %v4254_v49 = vld [vmem:[%s8772_s5 + $0x138] sm:$0xf0]  ;;  %v6065_v39 = vld [vmem:[%s8771_s4] ss:$0 sm:$0xff] }
  0x8f   : > { %v517_v47 = vadd.f32 %v515_v41, %v504_v42  ;;  %987 = vmatpush.bf16.msrb.mxu2 %v4209_v25  ;;  %v5674_v40 = vld [vmem:[%s8772_s5 + $0x12c] sm:$0xf0]  ;;  %v5673_v41 = vld [vmem:[%s8772_s5 + $0x114] sm:$0xf]  ;;  %v4257_v50 = vor.u32 %v5689_v48, %v4254_v49  ;;  %v5681_v32 = vld [vmem:[%s8772_s5 + $0x1c] sm:$0xf] }
  0x90   : > { %v4189_v42 = vor.u32 %v5674_v40, %v4188_v11  ;;  %v4193_v46 = vor.u32 %v5673_v41, %v4190_v43  ;;  %v4164_v13 = vld [vmem:[%s8772_s5 + $0x50] sm:$0xf]  ;;  %v4396_v43 = vld [vmem:[%s8774_s7 + $0xe0] sm:$0xf] }
  0x91   : > { %v522_v56 = vadd.f32 %v6064_v31, %v517_v47  ;;  %844 = vmatpush.bf16.msrb.mxu0 %v4105_v52  ;;  %v5676_v31 = vld [vmem:[%s8772_s5 + $0x16c] sm:$0xf0]  ;;  %v4253_v47 = vor.u32 %v5690_v45, %v4252_v44  ;;  %v4652_v48 = vld [vmem:[%s8774_s7 + $0x2e0] sm:$0xf] }
  0x92   : > { %831 = vmatpush.bf16.msra.mxu3 %v4093_v0  ;;  %v4197_v33 = vor.u32 %v5676_v31, %v4196_v30  ;;  %v5672_v52 = vld [vmem:[%s8772_s5 + $0xec] sm:$0xf0]  ;;  %v4220_v30 = vld [vmem:[%s8772_s5 + $0x18] sm:$0xf]  ;;  %v4348_v18 = vld [vmem:[%s8774_s7 + $0x80] sm:$0xf] }
  0x93   : > { %v524_v62 = vmax.f32 %v522_v56, 0.0  ;;  %988 = vmatpush.bf16.msrb.mxu2 %v4201_v37  ;;  %v4181_v54 = vor.u32 %v5672_v52, %v4180_v51  ;;  %v4244_v56 = vld [vmem:[%s8772_s5 + $0xd8] sm:$0xf]  ;;  %v5670_v0 = vld [vmem:[%s8772_s5 + $0xac] sm:$0xf0] }
  0x94   : > { %974 = vmatpush.bf16.msrb.mxu1 %v4197_v33  ;;  %v4245_v59 = vor.u32 %v5688_v57, %v4244_v56  ;;  %v4156_v25 = vld [vmem:[%s8772_s5 + $0x10] sm:$0xf]  ;;  %v5682_v31 = vld [vmem:[%s8772_s5 + $0x34] sm:$0xf0]  ;;  %v4222_v33 = vld [vmem:[%s8772_s5 + $0x38] sm:$0xf0] }
  0x95   : > { %v525_v2 = vpack.c.bf16 %v524_v62, %v523_v61  ;;  %845 = vmatpush.bf16.msrb.mxu0 %v4097_v1  ;;  %v4246_v61 = vld [vmem:[%s8772_s5 + $0xf8] sm:$0xf0]  ;;  %v4172_v62 = vld [vmem:[%s8772_s5 + $0x90] sm:$0xf]  ;;  %v5669_v1 = vld [vmem:[%s8772_s5 + $0x94] sm:$0xf]  ;;  %v4221_v36 = vor.u32 %v5682_v31, %v4220_v30  ;;  %v4225_v37 = vor.u32 %v5681_v32, %v4222_v33 }
  0x96   : > { %1120 = vmatpush.bf16.msrb.mxu3 %v4277_v14  ;;  %v4249_v63 = vor.u32 %v5687_v60, %v4246_v61  ;;  %v4173_v3 = vor.u32 %v5670_v0, %v4172_v62  ;;  %v5668_v14 = vld [vmem:[%s8772_s5 + $0x6c] sm:$0xf0]  ;;  %v4780_v51 = vld [vmem:[%s8774_s7 + $0x3e0] sm:$0xf] }
  0x97   : > { %4025 = vmatmul.msk.bf16.vlgmr.msra.gmra.mxu0 %vm553_vm0, %v525_v2  ;;  %989 = vmatpush.bf16.msrb.mxu2 %v4193_v46  ;;  %v4174_v2 = vld [vmem:[%s8772_s5 + $0xb0] sm:$0xf0]  ;;  %v4165_v19 = vor.u32 %v5668_v14, %v4164_v13  ;;  %v5727_v44 = vld [vmem:[%s8774_s7 + $0xec] sm:$0xf0]  ;;  %v4524_v46 = vld [vmem:[%s8774_s7 + $0x1e0] sm:$0xf]  ;;  %v4493_v13 = vor.u32 %v5751_v7, %v4492_v5 }
  0x98   : > { %975 = vmatpush.bf16.msrb.mxu1 %v4189_v42  ;;  %v4177_v4 = vor.u32 %v5669_v1, %v4174_v2  ;;  %v4397_v45 = vor.u32 %v5727_v44, %v4396_v43  ;;  %v5723_v56 = vld [vmem:[%s8774_s7 + $0xcc] sm:$0xf0]  ;;  %v4508_v57 = vld [vmem:[%s8774_s7 + $0x1c0] sm:$0xf] }
  0x99   : > { %1134 = vmatpush.bf16.msra.mxu0 %v4281_v17  ;;  %v4166_v17 = vld [vmem:[%s8772_s5 + $0x70] sm:$0xf0]  ;;  %v4636_v60 = vld [vmem:[%s8774_s7 + $0x2c0] sm:$0xf]  ;;  %v5787_v61 = vld [vmem:[%s8774_s7 + $0x2cc] sm:$0xf0] }
  0x9a   : > { %1121 = vmatpush.bf16.msrb.mxu3 %v4269_v26  ;;  %v4169_v23 = vor.u32 %v5667_v16, %v4166_v17  ;;  %v5666_v26 = vld [vmem:[%s8772_s5 + $0x2c] sm:$0xf0]  ;;  %v4764_v0 = vld [vmem:[%s8774_s7 + $0x3c0] sm:$0xf] }
  0x9b   : > { %990 = vmatpush.bf16.msrb.mxu2 %v4185_v58  ;;  %v4157_v34 = vor.u32 %v5666_v26, %v4156_v25  ;;  %v4381_v58 = vor.u32 %v5723_v56, %v4380_v55  ;;  %v5819_v1 = vld [vmem:[%s8774_s7 + $0x3cc] sm:$0xf0]  ;;  %v4476_v21 = vld [vmem:[%s8774_s7 + $0x180] sm:$0xf] }
  0x9c   : > { %976 = vmatpush.bf16.msrb.mxu1 %v4181_v54  ;;  %v4781_v54 = vor.u32 %v5823_v53, %v4780_v51  ;;  %v4765_v2 = vor.u32 %v5819_v1, %v4764_v0  ;;  %v5815_v16 = vld [vmem:[%s8774_s7 + $0x3ac] sm:$0xf0]  ;;  %v4732_v26 = vld [vmem:[%s8774_s7 + $0x380] sm:$0xf] }
  0x9d   : > { %1135 = vmatpush.bf16.msra.mxu0 %v4273_v29  ;;  %v4158_v29 = vld [vmem:[%s8772_s5 + $0x30] sm:$0xf0]  ;;  %v5747_v22 = vld [vmem:[%s8774_s7 + $0x18c] sm:$0xf0]  ;;  %v4332_v30 = vld [vmem:[%s8774_s7 + $0x60] sm:$0xf] }
  0x9e   : > { %1122 = vmatpush.bf16.msrb.mxu3 %v4261_v38  ;;  %v4161_v35 = vor.u32 %v5665_v27, %v4158_v29  ;;  %v5779_v25 = vld [vmem:[%s8774_s7 + $0x28c] sm:$0xf0]  ;;  %v4460_v32 = vld [vmem:[%s8774_s7 + $0x160] sm:$0xf] }
  0x9f   : > { %991 = vmatpush.bf16.msrb.mxu2 %v4177_v4  ;;  %v5719_v4 = vld [vmem:[%s8774_s7 + $0xac] sm:$0xf0]  ;;  %v4572_v44 = vld [vmem:[%s8774_s7 + $0x240] sm:$0xf] }
  0xa0   : > { %977 = vmatpush.bf16.msrb.mxu1 %v4173_v3  ;;  %v4364_v3 = vld [vmem:[%s8774_s7 + $0xa0] sm:$0xf]  ;;  %v5811_v27 = vld [vmem:[%s8774_s7 + $0x38c] sm:$0xf0] }
  0xa1   : > { %1136 = vmatpush.bf16.msra.mxu0 %v4265_v9  ;;  %v4365_v6 = vor.u32 %v5719_v4, %v4364_v3  ;;  %v4733_v29 = vor.u32 %v5811_v27, %v4732_v26  ;;  %v5711_v31 = vld [vmem:[%s8774_s7 + $0x6c] sm:$0xf0]  ;;  %v4300_v51 = vld [vmem:[%s8774_s7 + $0x20] sm:$0xf] }
  0xa2   : > { %1123 = vmatpush.bf16.msrb.mxu3 %v4253_v47  ;;  %v5759_v47 = vld [vmem:[%s8774_s7 + $0x1ec] sm:$0xf0]  ;;  %v4333_v33 = vor.u32 %v5711_v31, %v4332_v30  ;;  %v4428_v53 = vld [vmem:[%s8774_s7 + $0x120] sm:$0xf] }
  0xa3   : > { %992 = vmatpush.bf16.msrb.mxu2 %v4169_v23  ;;  %v4525_v49 = vor.u32 %v5759_v47, %v4524_v46  ;;  %v4604_v23 = vld [vmem:[%s8774_s7 + $0x280] sm:$0xf]  ;;  %v5739_v43 = vld [vmem:[%s8774_s7 + $0x14c] sm:$0xf0] }
  0xa4   : > { %978 = vmatpush.bf16.msrb.mxu1 %v4165_v19  ;;  %v5715_v19 = vld [vmem:[%s8774_s7 + $0x8c] sm:$0xf0]  ;;  %v4556_v56 = vld [vmem:[%s8774_s7 + $0x220] sm:$0xf] }
  0xa5   : > { %1137 = vmatpush.bf16.msra.mxu0 %v4257_v50  ;;  %v5791_v50 = vld [vmem:[%s8774_s7 + $0x2ec] sm:$0xf0]  ;;  %v4349_v20 = vor.u32 %v5715_v19, %v4348_v18  ;;  %v4412_v4 = vld [vmem:[%s8774_s7 + $0x100] sm:$0xf] }
  0xa6   : > { %1124 = vmatpush.bf16.msrb.mxu3 %v4245_v59  ;;  %v4653_v52 = vor.u32 %v5791_v50, %v4652_v48  ;;  %v5755_v59 = vld [vmem:[%s8774_s7 + $0x1cc] sm:$0xf0]  ;;  %v4700_v48 = vld [vmem:[%s8774_s7 + $0x340] sm:$0xf] }
  0xa7   : > { %993 = vmatpush.bf16.msrb.mxu2 %v4161_v35  ;;  %v4509_v62 = vor.u32 %v5755_v59, %v4508_v57  ;;  %v4588_v35 = vld [vmem:[%s8774_s7 + $0x260] sm:$0xf]  ;;  %v5735_v55 = vld [vmem:[%s8774_s7 + $0x12c] sm:$0xf0] }
  0xa8   : > { %979 = vmatpush.bf16.msrb.mxu1 %v4157_v34  ;;  %v5743_v34 = vld [vmem:[%s8774_s7 + $0x16c] sm:$0xf0] }
  0xa9   : > { %1138 = vmatpush.bf16.msra.mxu0 %v4249_v63  ;;  %v4637_v63 = vor.u32 %v5787_v61, %v4636_v60  ;;  %v5767_v57 = vld [vmem:[%s8774_s7 + $0x22c] sm:$0xf0]  ;;  %v4684_v60 = vld [vmem:[%s8774_s7 + $0x320] sm:$0xf] }
  0xaa   : > { %1125 = vmatpush.bf16.msrb.mxu3 %v4237_v8  ;;  %v4620_v8 = vld [vmem:[%s8774_s7 + $0x2a0] sm:$0xf]  ;;  %v4557_v59 = vor.u32 %v5767_v57, %v4556_v56  ;;  %v5799_v61 = vld [vmem:[%s8774_s7 + $0x32c] sm:$0xf0] }
  0xab   : > { %v4621_v14 = vor.u32 %v5783_v12, %v4620_v8  ;;  %v4685_v0 = vor.u32 %v5799_v61, %v4684_v60  ;;  %v5699_v3 = vld [vmem:[%s8774_s7 + $0xc] sm:$0xf0]  ;;  %v4540_v8 = vld [vmem:[%s8774_s7 + $0x200] sm:$0xf] }
  0xac   : > { %v5731_v7 = vld [vmem:[%s8774_s7 + $0x10c] sm:$0xf0] }
  0xad   : > { %1139 = vmatpush.bf16.msra.mxu0 %v4241_v15  ;;  %v4748_v15 = vld [vmem:[%s8774_s7 + $0x3a0] sm:$0xf]  ;;  %v5795_v19 = vld [vmem:[%s8774_s7 + $0x30c] sm:$0xf0] }
  0xae   : > { %1126 = vmatpush.bf16.msrb.mxu3 %v4229_v24  ;;  %v4749_v17 = vor.u32 %v5815_v16, %v4748_v15  ;;  %v4477_v24 = vor.u32 %v5747_v22, %v4476_v21  ;;  %v4668_v15 = vld [vmem:[%s8774_s7 + $0x300] sm:$0xf]  ;;  %v6817_v21 = vld [vmem:[%s8773_s6 + $0x4] sm:$0x3]  ;;  %v5887_v27 = vld [vmem:[%s8774_s7 + $0x5ec] sm:$0xf0] }
  0xaf   : > { %v4669_v22 = vor.u32 %v5795_v19, %v4668_v15  ;;  %v5847_v57 = vld [vmem:[%s8774_s7 + $0x4ac] sm:$0xf0] }
  0xb1   : > { %1140 = vmatpush.bf16.msra.mxu0 %v4233_v28  ;;  %v4605_v28 = vor.u32 %v5779_v25, %v4604_v23  ;;  %v5855_v23 = vld [vmem:[%s8774_s7 + $0x4ec] sm:$0xf0]  ;;  %v6828_v25 = vld [vmem:[%s8773_s6 + $0x6] sm:$0x3] }
  0xb2   : > { %1127 = vmatpush.bf16.msrb.mxu3 %v4221_v36  ;;  %v5775_v36 = vld [vmem:[%s8774_s7 + $0x26c] sm:$0xf0] }
  0xb5   : > { %1141 = vmatpush.bf16.msra.mxu0 %v4225_v37  ;;  %v4461_v37 = vor.u32 %v5743_v34, %v4460_v32  ;;  %v5951_v34 = vld [vmem:[%s8774_s7 + $0x7ec] sm:$0xf0] }
 0x114   : > { %v566_v38 = vpop.f32.mrf.mxu0 }
 0x115   : > { %v567_v10 = vadd.f32 %v6065_v39, %v566_v38  ;;  %v4589_v38 = vor.u32 %v5775_v36, %v4588_v35  ;;  %v4892_v35 = vld [vmem:[%s8774_s7 + $0x4c0] sm:$0xf] }
 0x117   : > { %v571_v40 = vmax.f32 %v567_v10, 0.0  ;;  %v5807_v10 = vld [vmem:[%s8774_s7 + $0x36c] sm:$0xf0] }
 0x11c   : > { %v568_v9 = vpop.f32.mrf.mxu0 }
 0x11d   : > { %v569_v11 = vadd.f32 %v6065_v39, %v568_v9  ;;  %v4716_v39 = vld [vmem:[%s8774_s7 + $0x360] sm:$0xf] }
 0x11e   : > { %v4717_v9 = vor.u32 %v5807_v10, %v4716_v39  ;;  %v5851_v39 = vld [vmem:[%s8774_s7 + $0x4cc] sm:$0xf0]  ;;  %v5020_v10 = vld [vmem:[%s8774_s7 + $0x5c0] sm:$0xf] }
 0x11f   : > { %v572_v41 = vmax.f32 %v569_v11, 0.0  ;;  %v4316_v11 = vld [vmem:[%s8774_s7 + $0x40] sm:$0xf] }
 0x121   : > { %v573_v42 = vpack.c.bf16 %v572_v41, %v571_v40  ;;  %v5707_v40 = vld [vmem:[%s8774_s7 + $0x4c] sm:$0xf0]  ;;  %v4444_v41 = vld [vmem:[%s8774_s7 + $0x140] sm:$0xf] }
 0x122   : > { %v4445_v46 = vor.u32 %v5739_v43, %v4444_v41  ;;  %v4893_v41 = vor.u32 %v5851_v39, %v4892_v35  ;;  %v5148_v43 = vld [vmem:[%s8774_s7 + $0x6c0] sm:$0xf]  ;;  %v5939_v35 = vld [vmem:[%s8774_s7 + $0x78c] sm:$0xf0] }
 0x123   : > { %684 = vmatmul.bf16.vlgmr.msra.gmra.mxu1 %v573_v42  ;;  %698 = vmatmul.bf16.vlgmr.msra.gmra.mxu2 %v573_v42 }
 0x124   : > { %832 = vmatmul.bf16.vlgmr.msra.gmra.mxu3 %v573_v42  ;;  %846 = vmatmul.bf16.vlgmr.msrb.gmra.mxu0 %v573_v42 }
 0x125   : > { %2863 = vmatpush.bf16.msra.mxu1 %v4397_v45  ;;  %2876 = vmatpush.bf16.msra.mxu2 %v4525_v49  ;;  %v5771_v45 = vld [vmem:[%s8774_s7 + $0x24c] sm:$0xf0] }
 0x126   : > { %2889 = vmatpush.bf16.msra.mxu3 %v4653_v52  ;;  %2902 = vmatpush.bf16.msrb.mxu0 %v4781_v54  ;;  %v4573_v47 = vor.u32 %v5771_v45, %v4572_v44  ;;  %v5803_v49 = vld [vmem:[%s8774_s7 + $0x34c] sm:$0xf0]  ;;  %v5276_v45 = vld [vmem:[%s8774_s7 + $0x7c0] sm:$0xf] }
 0x127   : > { %v4701_v50 = vor.u32 %v5803_v49, %v4700_v48  ;;  %v5703_v52 = vld [vmem:[%s8774_s7 + $0x2c] sm:$0xf0]  ;;  %v888_v49 = vperm.slane %v6817_v21, 0 }
 0x128   : > { %v4301_v54 = vor.u32 %v5703_v52, %v4300_v51  ;;  %v5915_v44 = vld [vmem:[%s8774_s7 + $0x6cc] sm:$0xf0]  ;;  %v4876_v52 = vld [vmem:[%s8774_s7 + $0x4a0] sm:$0xf] }
 0x129   : > { %2864 = vmatpush.bf16.msra.mxu1 %v4381_v58  ;;  %2877 = vmatpush.bf16.msra.mxu2 %v4509_v62  ;;  %v4429_v58 = vor.u32 %v5735_v55, %v4428_v53  ;;  %v6777_v62 = vld [vmem:[%s8773_s6] sm:$0x3]  ;;  %v5947_v51 = vld [vmem:[%s8774_s7 + $0x7cc] sm:$0xf0]  ;;  %v889_v55 = vperm.slane %v6817_v21, 1  ;;  %v4877_v61 = vor.u32 %v5847_v57, %v4876_v52 }
 0x12a   : > { %2890 = vmatpush.bf16.msra.mxu3 %v4637_v63  ;;  %2903 = vmatpush.bf16.msrb.mxu0 %v4765_v2  ;;  %v6782_v63 = vld [vmem:[%s8773_s6 + $0x2] sm:$0x3]  ;;  %v592_v12 = vperm.slane %v6777_v62, 0  ;;  %v5277_v56 = vor.u32 %v5947_v51, %v5276_v45  ;;  %v5871_v45 = vld [vmem:[%s8774_s7 + $0x56c] sm:$0xf0] }
 0x12b   : > { %v4284_v2 = vld [vmem:[%s8774_s7] sm:$0xf]  ;;  %v741_v16 = vperm.slane %v6782_v63, 1  ;;  %v5903_v52 = vld [vmem:[%s8774_s7 + $0x66c] sm:$0xf0] }
 0x12c   : > { %v5100_v51 = vld [vmem:[%s8774_s7 + $0x660] sm:$0xf] }
 0x12d   : > { %2865 = vmatpush.bf16.msra.mxu1 %v4365_v6  ;;  %2878 = vmatpush.bf16.msra.mxu2 %v4493_v13  ;;  %v4285_v6 = vor.u32 %v5699_v3, %v4284_v2  ;;  %v4413_v13 = vor.u32 %v5731_v7, %v4412_v4  ;;  %v5911_v4 = vld [vmem:[%s8774_s7 + $0x6ac] sm:$0xf0] }
 0x12e   : > { %2891 = vmatpush.bf16.msra.mxu3 %v4621_v14  ;;  %2904 = vmatpush.bf16.msrb.mxu0 %v4749_v17  ;;  %v5763_v14 = vld [vmem:[%s8774_s7 + $0x20c] sm:$0xf0]  ;;  %v593_v17 = vperm.slane %v6777_v62, 1 }
 0x12f   : > { %v4541_v18 = vor.u32 %v5763_v14, %v4540_v8  ;;  %v5843_v14 = vld [vmem:[%s8774_s7 + $0x48c] sm:$0xf0] }
 0x131   : > { %2866 = vmatpush.bf16.msra.mxu1 %v4349_v20  ;;  %2879 = vmatpush.bf16.msra.mxu2 %v4477_v24  ;;  %v4908_v20 = vld [vmem:[%s8774_s7 + $0x4e0] sm:$0xf] }
 0x132   : > { %2892 = vmatpush.bf16.msra.mxu3 %v4605_v28  ;;  %2905 = vmatpush.bf16.msrb.mxu0 %v4733_v29  ;;  %v5036_v24 = vld [vmem:[%s8774_s7 + $0x5e0] sm:$0xf]  ;;  %v4909_v26 = vor.u32 %v5855_v23, %v4908_v20  ;;  %v5919_v29 = vld [vmem:[%s8774_s7 + $0x6ec] sm:$0xf0] }
 0x133   : > { %980 = vmatmul.bf16.vlgmr.msrb.gmra.mxu1 %v573_v42  ;;  %994 = vmatmul.bf16.vlgmr.msrb.gmra.mxu2 %v573_v42  ;;  %v5164_v28 = vld [vmem:[%s8774_s7 + $0x6e0] sm:$0xf]  ;;  %v5037_v31 = vor.u32 %v5887_v27, %v5036_v24 }
 0x134   : > { %1128 = vmatmul.bf16.vlgmr.msrb.gmra.mxu3 %v573_v42  ;;  %1142 = vmatmul.bf16.vlgmr.msra.gmra.mxu0 %v573_v42  ;;  %v4317_v42 = vor.u32 %v5707_v40, %v4316_v11  ;;  %v5165_v32 = vor.u32 %v5919_v29, %v5164_v28  ;;  %v4988_v20 = vld [vmem:[%s8774_s7 + $0x580] sm:$0xf]  ;;  %v1036_v28 = vperm.slane %v6828_v25, 0 }
 0x135   : > { %2867 = vmatpush.bf16.msra.mxu1 %v4333_v33  ;;  %2880 = vmatpush.bf16.msra.mxu2 %v4461_v37  ;;  %v5292_v33 = vld [vmem:[%s8774_s7 + $0x7e0] sm:$0xf] }
 0x136   : > { %2893 = vmatpush.bf16.msra.mxu3 %v4589_v38  ;;  %2906 = vmatpush.bf16.msrb.mxu0 %v4717_v9  ;;  %v5293_v38 = vor.u32 %v5951_v34, %v5292_v33  ;;  %v5883_v9 = vld [vmem:[%s8774_s7 + $0x5cc] sm:$0xf0]  ;;  %v5116_v23 = vld [vmem:[%s8774_s7 + $0x680] sm:$0xf] }
 0x139   : > { %2868 = vmatpush.bf16.msra.mxu1 %v4317_v42  ;;  %2881 = vmatpush.bf16.msra.mxu2 %v4445_v46  ;;  %v5021_v42 = vor.u32 %v5883_v9, %v5020_v10  ;;  %v740_v46 = vperm.slane %v6782_v63, 0  ;;  %v5879_v63 = vld [vmem:[%s8774_s7 + $0x5ac] sm:$0xf0]  ;;  %v4844_v9 = vld [vmem:[%s8774_s7 + $0x460] sm:$0xf] }
 0x13a   : > { %2894 = vmatpush.bf16.msra.mxu3 %v4573_v47  ;;  %2907 = vmatpush.bf16.msrb.mxu0 %v4701_v50  ;;  %v5149_v50 = vor.u32 %v5915_v44, %v5148_v43  ;;  %v4972_v44 = vld [vmem:[%s8774_s7 + $0x560] sm:$0xf] }
 0x13b   : > { %v4973_v57 = vor.u32 %v5871_v45, %v4972_v44 }
 0x13d   : > { %2869 = vmatpush.bf16.msra.mxu1 %v4301_v54  ;;  %2882 = vmatpush.bf16.msra.mxu2 %v4429_v58  ;;  %v1037_v54 = vperm.slane %v6828_v25, 1  ;;  %v5004_v58 = vld [vmem:[%s8774_s7 + $0x5a0] sm:$0xf] }
 0x13e   : > { %2895 = vmatpush.bf16.msra.mxu3 %v4557_v59  ;;  %2908 = vmatpush.bf16.msrb.mxu0 %v4685_v0  ;;  %v5132_v0 = vld [vmem:[%s8774_s7 + $0x6a0] sm:$0xf]  ;;  %v5005_v3 = vor.u32 %v5879_v63, %v5004_v58  ;;  %v5101_v58 = vor.u32 %v5903_v52, %v5100_v51 }
 0x13f   : > { %v5133_v8 = vor.u32 %v5911_v4, %v5132_v0 }
 0x141   : > { %2870 = vmatpush.bf16.msra.mxu1 %v4285_v6  ;;  %2883 = vmatpush.bf16.msra.mxu2 %v4413_v13  ;;  %v4860_v13 = vld [vmem:[%s8774_s7 + $0x480] sm:$0xf] }
 0x142   : > { %2896 = vmatpush.bf16.msra.mxu3 %v4541_v18  ;;  %2909 = vmatpush.bf16.msrb.mxu0 %v4669_v22  ;;  %v5875_v22 = vld [vmem:[%s8774_s7 + $0x58c] sm:$0xf0]  ;;  %v4861_v29 = vor.u32 %v5843_v14, %v4860_v13 }
 0x143   : > { %v4989_v62 = vor.u32 %v5875_v22, %v4988_v20  ;;  %v5899_v20 = vld [vmem:[%s8774_s7 + $0x64c] sm:$0xf0] }
 0x145   : > { %2915 = vmatpush.bf16.msrb.mxu1 %v4909_v26  ;;  %2928 = vmatpush.bf16.msrb.mxu2 %v5037_v31  ;;  %v5244_v31 = vld [vmem:[%s8774_s7 + $0x780] sm:$0xf] }
 0x146   : > { %2941 = vmatpush.bf16.msrb.mxu3 %v5165_v32  ;;  %2954 = vmatpush.bf16.msra.mxu0 %v5293_v38  ;;  %v5245_v10 = vor.u32 %v5939_v35, %v5244_v31  ;;  %v5931_v31 = vld [vmem:[%s8774_s7 + $0x74c] sm:$0xf0]  ;;  %v4812_v35 = vld [vmem:[%s8774_s7 + $0x420] sm:$0xf] }
 0x149   : > { %2916 = vmatpush.bf16.msrb.mxu1 %v4893_v41  ;;  %2929 = vmatpush.bf16.msrb.mxu2 %v5021_v42 }
 0x14a   : > { %2942 = vmatpush.bf16.msrb.mxu3 %v5149_v50  ;;  %2955 = vmatpush.bf16.msra.mxu0 %v5277_v56 }
 0x14d   : > { %2917 = vmatpush.bf16.msrb.mxu1 %v4877_v61  ;;  %2930 = vmatpush.bf16.msrb.mxu2 %v5005_v3  ;;  %v5835_v3 = vld [vmem:[%s8774_s7 + $0x44c] sm:$0xf0] }
 0x14e   : > { %2943 = vmatpush.bf16.msrb.mxu3 %v5133_v8  ;;  %v4956_v8 = vld [vmem:[%s8774_s7 + $0x540] sm:$0xf] }
 0x151   : > { %2918 = vmatpush.bf16.msrb.mxu1 %v4861_v29  ;;  %2931 = vmatpush.bf16.msrb.mxu2 %v4989_v62 }
 0x155   : > { %2932 = vmatpush.bf16.msrb.mxu2 %v4973_v57  ;;  %v4796_v57 = vld [vmem:[%s8774_s7 + $0x400] sm:$0xf] }
 0x1a0   : > { %v685_v1 = vpop.f32.mrf.mxu1 }
 0x1a1   : > { %v847_v5 = vpop.f32.mrf.mxu0  ;;  %v686_v36 = vadd.f32 %v685_v1, %v592_v12 }
 0x1a2   : > { %v848_v11 = vadd.f32 %v847_v5, %v741_v16  ;;  %v5260_v5 = vld [vmem:[%s8774_s7 + $0x7a0] sm:$0xf] }
 0x1a3   : > { %v704_v59 = vmax.f32 %v686_v36, 0.0 }
 0x1a4   : > { %v853_v1 = vmax.f32 %v848_v11, 0.0  ;;  %v5839_v11 = vld [vmem:[%s8774_s7 + $0x46c] sm:$0xf0] }
 0x1a5   : > { %v4845_v50 = vor.u32 %v5839_v11, %v4844_v9  ;;  %v5863_v9 = vld [vmem:[%s8774_s7 + $0x52c] sm:$0xf0] }
 0x1a6   : > { %v699_v30 = vpop.f32.mrf.mxu2 }
 0x1a7   : > { %v833_v37 = vpop.f32.mrf.mxu3  ;;  %v700_v6 = vadd.f32 %v699_v30, %v593_v17  ;;  %v5907_v30 = vld [vmem:[%s8774_s7 + $0x68c] sm:$0xf0]  ;;  %2919 = vmatpush.bf16.msrb.mxu1 %v4845_v50 }
 0x1a8   : > { %v687_v40 = vpop.f32.mrf.mxu1  ;;  %v834_v15 = vadd.f32 %v833_v37, %v740_v46  ;;  %v5927_v50 = vld [vmem:[%s8774_s7 + $0x72c] sm:$0xf0] }
 0x1a9   : > { %v688_v47 = vadd.f32 %v687_v40, %v592_v12  ;;  %v849_v48 = vpop.f32.mrf.mxu0  ;;  %v5943_v12 = vld [vmem:[%s8774_s7 + $0x7ac] sm:$0xf0]  ;;  %v705_v36 = vmax.f32 %v700_v6, 0.0 }
 0x1aa   : > { %v850_v53 = vadd.f32 %v849_v48, %v741_v16  ;;  %v5261_v19 = vor.u32 %v5943_v12, %v5260_v5  ;;  %v852_v40 = vmax.f32 %v834_v15, 0.0  ;;  %v1176_v48 = vlaneseq  ;;  %v5867_v12 = vld [vmem:[%s8774_s7 + $0x54c] sm:$0xf0] }
 0x1ab   : > { %v706_v60 = vmax.f32 %v688_v47, 0.0 }
 0x1ac   : > { %v855_v2 = vmax.f32 %v850_v53, 0.0  ;;  %2956 = vmatpush.bf16.msra.mxu0 %v5261_v19  ;;  %v5084_v19 = vld [vmem:[%s8774_s7 + $0x640] sm:$0xf]  ;;  %vm6981_vm2 = vcmp.lt.s32.totalorder %v1176_v48, 256 }
 0x1ad   : > { %v708_v7 = vmax.f32 %v704_v59, %v706_v60  ;;  %v5228_v59 = vld [vmem:[%s8774_s7 + $0x760] sm:$0xf]  ;;  %v5935_v60 = vld [vmem:[%s8774_s7 + $0x76c] sm:$0xf0]  ;;  %v5085_v29 = vor.u32 %v5899_v20, %v5084_v19 }
 0x1ae   : > { %v863_v16 = vmax.f32 %v853_v1, %v855_v2  ;;  %v701_v18 = vpop.f32.mrf.mxu2  ;;  %v5229_v1 = vor.u32 %v5935_v60, %v5228_v59  ;;  %v4828_v2 = vld [vmem:[%s8774_s7 + $0x440] sm:$0xf] }
 0x1af   : > { %v709_v24 = vrot.slane %v708_v7, 4  ;;  %v702_v26 = vadd.f32 %v701_v18, %v593_v17  ;;  %v835_v27 = vpop.f32.mrf.mxu3  ;;  %v5117_v17 = vor.u32 %v5907_v30, %v5116_v23  ;;  %v4829_v18 = vor.u32 %v5835_v3, %v4828_v2  ;;  %v5212_v30 = vld [vmem:[%s8774_s7 + $0x740] sm:$0xf]  ;;  %v5859_v2 = vld [vmem:[%s8774_s7 + $0x50c] sm:$0xf0] }
 0x1b0   : > { %v864_v32 = vrot.slane %v863_v16, 4  ;;  %v836_v33 = vadd.f32 %v835_v27, %v740_v46  ;;  %v981_v34 = vpop.f32.mrf.mxu1  ;;  %2957 = vmatpush.bf16.msra.mxu0 %v5245_v10  ;;  %v4957_v27 = vor.u32 %v5867_v12, %v4956_v8  ;;  %v5196_v48 = vld [vmem:[%s8774_s7 + $0x720] sm:$0xf]  ;;  %v5891_v12 = vld [vmem:[%s8774_s7 + $0x60c] sm:$0xf0] }
 0x1b1   : > { %v710_v37 = vmax.f32 %v708_v7, %v709_v24  ;;  %v707_v38 = vmax.f32 %v702_v26, 0.0  ;;  %v1143_v39 = vpop.f32.mrf.mxu0  ;;  %v6934_v43 = vadd.f32 %v981_v34, %v888_v49  ;;  %2944 = vmatpush.bf16.msrb.mxu3 %v5117_v17  ;;  %2920 = vmatpush.bf16.msrb.mxu1 %v4829_v18  ;;  %v5052_v8 = vld [vmem:[%s8774_s7 + $0x600] sm:$0xf]  ;;  %v5789_v23 = vld [vmem:[%s8774_s7 + $0x2e4] sm:$0xf] }
 0x1b2   : > { %v865_v41 = vmax.f32 %v863_v16, %v864_v32  ;;  %v854_v42 = vmax.f32 %v836_v33, 0.0  ;;  %v6956_v0 = vadd.f32 %v1143_v39, %v1037_v54  ;;  %2933 = vmatpush.bf16.msrb.mxu2 %v4957_v27  ;;  %v5053_v21 = vor.u32 %v5891_v12, %v5052_v8 }
 0x1b3   : > { %v711_v46 = vrot.slane %v710_v37, 2  ;;  %v715_v47 = vmax.f32 %v705_v36, %v707_v38  ;;  %v1000_v6 = vmax.f32 %v6934_v43, 0.0  ;;  %v5831_v36 = vld [vmem:[%s8774_s7 + $0x42c] sm:$0xf0]  ;;  %v5068_v43 = vld [vmem:[%s8774_s7 + $0x620] sm:$0xf] }
 0x1b4   : > { %v866_v53 = vrot.slane %v865_v41, 2  ;;  %v856_v56 = vmax.f32 %v852_v40, %v854_v42  ;;  %v1149_v33 = vmax.f32 %v6956_v0, 0.0  ;;  %2958 = vmatpush.bf16.msra.mxu0 %v5229_v1  ;;  %v4813_v42 = vor.u32 %v5831_v36, %v4812_v35  ;;  %v4924_v1 = vld [vmem:[%s8774_s7 + $0x500] sm:$0xf] }
 0x1b5   : > { %v712_v61 = vmax.f32 %v710_v37, %v711_v46  ;;  %v716_v63 = vrot.slane %v715_v47, 4  ;;  %2945 = vmatpush.bf16.msrb.mxu3 %v5101_v58  ;;  %v5827_v58 = vld [vmem:[%s8774_s7 + $0x40c] sm:$0xf0] }
 0x1b6   : > { %v867_v4 = vmax.f32 %v865_v41, %v866_v53  ;;  %v857_v5 = vrot.slane %v856_v56, 4  ;;  %v995_v7 = vpop.f32.mrf.mxu2  ;;  %v5213_v41 = vor.u32 %v5931_v31, %v5212_v30  ;;  %v4797_v0 = vor.u32 %v5827_v58, %v4796_v57  ;;  %2921 = vmatpush.bf16.msrb.mxu1 %v4813_v42  ;;  %v5821_v57 = vld [vmem:[%s8774_s7 + $0x3e4] sm:$0xf] }
 0x1b7   : > { %v713_v13 = vrot.slane %v712_v61, 1  ;;  %v717_v14 = vmax.f32 %v715_v47, %v716_v63  ;;  %v6973_v15 = vadd.f32 %v995_v7, %v889_v55  ;;  %v1129_v16 = vpop.f32.mrf.mxu3  ;;  %v4925_v7 = vor.u32 %v5859_v2, %v4924_v1 }
 0x1b8   : > { %v868_v22 = vrot.slane %v867_v4, 1  ;;  %v858_v24 = vmax.f32 %v856_v56, %v857_v5  ;;  %v983_v26 = vpop.f32.mrf.mxu1  ;;  %v6994_v34 = vadd.f32 %v1129_v16, %v1036_v28  ;;  %2959 = vmatpush.bf16.msra.mxu0 %v5213_v41  ;;  %v5197_v56 = vor.u32 %v5927_v50, %v5196_v48  ;;  %v5923_v16 = vld [vmem:[%s8774_s7 + $0x70c] sm:$0xf0]  ;;  %v5725_v48 = vld [vmem:[%s8774_s7 + $0xe4] sm:$0xf] }
 0x1b9   : > { %v718_v32 = vrot.slane %v717_v14, 2  ;;  %v984_v62 = vadd.f32 %v983_v26, %v888_v49  ;;  %v1145_v17 = vpop.f32.mrf.mxu0  ;;  %v714_v37 = vmax.f32 %v712_v61, %v713_v13  ;;  %v4940_v49 = vld [vmem:[%s8774_s7 + $0x520] sm:$0xf]  ;;  %v1001_v45 = vmax.f32 %v6973_v15, 0.0  ;;  %2946 = vmatpush.bf16.msrb.mxu3 %v5085_v29  ;;  %v4398_v50 = vld [vmem:[%s8774_s7 + $0xf0] sm:$0xf0] }
 0x1ba   : > { %v869_v38 = vmax.f32 %v867_v4, %v868_v22  ;;  %v859_v39 = vrot.slane %v858_v24, 2  ;;  %v1146_v10 = vadd.f32 %v1145_v17, %v1037_v54  ;;  %v5895_v54 = vld [vmem:[%s8774_s7 + $0x62c] sm:$0xf0]  ;;  %v4941_v47 = vor.u32 %v5863_v9, %v4940_v49  ;;  %2922 = vmatpush.bf16.msrb.mxu1 %v4797_v0 }
 0x1bb   : > { %v719_v11 = vmax.f32 %v717_v14, %v718_v32  ;;  %v1002_v40 = vmax.f32 %v984_v62, 0.0  ;;  %v5069_v53 = vor.u32 %v5895_v54, %v5068_v43  ;;  %v1148_v25 = vmax.f32 %v6994_v34, 0.0 }
 0x1bc   : > { %v860_v44 = vmax.f32 %v858_v24, %v859_v39  ;;  %v1151_v46 = vmax.f32 %v1146_v10, 0.0  ;;  %v1203_v59 = vrot.slane %v869_v38, 7  ;;  %2934 = vmatpush.bf16.msrb.mxu2 %v4941_v47  ;;  %2960 = vmatpush.bf16.msra.mxu0 %v5197_v56  ;;  %v4654_v56 = vld [vmem:[%s8774_s7 + $0x2f0] sm:$0xf0]  ;;  %v4401_v0 = vor.u32 %v5725_v48, %v4398_v50  ;;  %v5773_v50 = vld [vmem:[%s8774_s7 + $0x264] sm:$0xf] }
 0x1bd   : > { %v720_v51 = vrot.slane %v719_v11, 1  ;;  %v1004_v52 = vmax.f32 %v1000_v6, %v1002_v40  ;;  %2947 = vmatpush.bf16.msrb.mxu3 %v5069_v53  ;;  %v4657_v8 = vor.u32 %v5789_v23, %v4654_v56  ;;  %v4718_v23 = vld [vmem:[%s8774_s7 + $0x370] sm:$0xf0] }
 0x1be   : > { %v861_v60 = vrot.slane %v860_v44, 1  ;;  %v1159_v61 = vmax.f32 %v1149_v33, %v1151_v46  ;;  %v997_v63 = vpop.f32.mrf.mxu2 }
 0x1bf   : > { %v721_v3 = vmax.f32 %v719_v11, %v720_v51  ;;  %v1005_v4 = vrot.slane %v1004_v52, 4  ;;  %v998_v5 = vadd.f32 %v997_v63, %v889_v55  ;;  %v1131_v6 = vpop.f32.mrf.mxu3  ;;  %v5180_v55 = vld [vmem:[%s8774_s7 + $0x700] sm:$0xf]  ;;  %v5757_v51 = vld [vmem:[%s8774_s7 + $0x1e4] sm:$0xf] }
 0x1c0   : > { %v862_v13 = vmax.f32 %v860_v44, %v861_v60  ;;  %v1160_v14 = vrot.slane %v1159_v61, 4  ;;  %v1132_v15 = vadd.f32 %v1131_v6, %v1036_v28  ;;  %v5181_v22 = vor.u32 %v5923_v16, %v5180_v55  ;;  %2935 = vmatpush.bf16.msrb.mxu2 %v4925_v7  ;;  %v4782_v63 = vld [vmem:[%s8774_s7 + $0x3f0] sm:$0xf0]  ;;  %v5721_v6 = vld [vmem:[%s8774_s7 + $0xc4] sm:$0xf] }
 0x1c1   : > { %v1172_v18 = vrot.slane %v721_v3, 7  ;;  %v1006_v19 = vmax.f32 %v1004_v52, %v1005_v4  ;;  %v1003_v20 = vmax.f32 %v998_v5, 0.0  ;;  %2948 = vmatpush.bf16.msrb.mxu3 %v5053_v21  ;;  %v4526_v52 = vld [vmem:[%s8774_s7 + $0x1f0] sm:$0xf0]  ;;  %v4785_v12 = vor.u32 %v5821_v57, %v4782_v63  ;;  %v5817_v55 = vld [vmem:[%s8774_s7 + $0x3c4] sm:$0xf] }
 0x1c2   : > { %v1205_v24 = vsel %vm1173_vm1, %v862_v13, %v1203_v59  ;;  %v1161_v28 = vmax.f32 %v1159_v61, %v1160_v14  ;;  %v1150_v26 = vmax.f32 %v1132_v15, 0.0  ;;  %2961 = vmatpush.bf16.msra.mxu0 %v5181_v22  ;;  %v4529_v1 = vor.u32 %v5757_v51, %v4526_v52  ;;  %v4382_v7 = vld [vmem:[%s8774_s7 + $0xd0] sm:$0xf0]  ;;  %v5753_v13 = vld [vmem:[%s8774_s7 + $0x1c4] sm:$0xf] }
 0x1c3   : > { %v1174_v27 = vsel %vm1173_vm1, %v714_v37, %v1172_v18  ;;  %1211 = vst.msk [vmem:[#allocation2 + $0x2] sm:$0x3] %vm6981_vm2, %v1205_v24  ;;  %v1011_v29 = vmax.f32 %v1001_v45, %v1003_v20  ;;  %v1007_v32 = vrot.slane %v1006_v19, 2  ;;  %v4510_v14 = vld [vmem:[%s8774_s7 + $0x1d0] sm:$0xf0]  ;;  %v4385_v18 = vor.u32 %v5721_v6, %v4382_v7 }
 0x1c4   : > { %1180 = vst.msk [vmem:[#allocation2] sm:$0x3] %vm6981_vm2, %v1174_v27  ;;  %v1162_v30 = vrot.slane %v1161_v28, 2  ;;  %v1152_v31 = vmax.f32 %v1148_v25, %v1150_v26  ;;  %v5785_v15 = vld [vmem:[%s8774_s7 + $0x2c4] sm:$0xf] }
 0x1c5   : > { %v1012_v33 = vrot.slane %v1011_v29, 4  ;;  %v1008_v37 = vmax.f32 %v1006_v19, %v1007_v32  ;;  %v4638_v21 = vld [vmem:[%s8774_s7 + $0x2d0] sm:$0xf0]  ;;  %v4513_v19 = vor.u32 %v5753_v13, %v4510_v14  ;;  %v5717_v20 = vld [vmem:[%s8774_s7 + $0xa4] sm:$0xf] }
 0x1c6   : > { %v1163_v34 = vmax.f32 %v1161_v28, %v1162_v30  ;;  %v1153_v62 = vrot.slane %v1152_v31, 4  ;;  %v4766_v16 = vld [vmem:[%s8774_s7 + $0x3d0] sm:$0xf0]  ;;  %v4641_v24 = vor.u32 %v5785_v15, %v4638_v21  ;;  %v5749_v28 = vld [vmem:[%s8774_s7 + $0x1a4] sm:$0xf] }
 0x1c7   : > { %v1013_v17 = vmax.f32 %v1011_v29, %v1012_v33  ;;  %v1009_v11 = vrot.slane %v1008_v37, 1  ;;  %v4366_v22 = vld [vmem:[%s8774_s7 + $0xb0] sm:$0xf0]  ;;  %v4769_v25 = vor.u32 %v5817_v55, %v4766_v16  ;;  %v5781_v27 = vld [vmem:[%s8774_s7 + $0x2a4] sm:$0xf] }
 0x1c8   : > { %v1164_v35 = vrot.slane %v1163_v34, 1  ;;  %v1154_v36 = vmax.f32 %v1152_v31, %v1153_v62  ;;  %v4494_v26 = vld [vmem:[%s8774_s7 + $0x1b0] sm:$0xf0]  ;;  %v5813_v30 = vld [vmem:[%s8774_s7 + $0x3a4] sm:$0xf]  ;;  %v4369_v32 = vor.u32 %v5717_v20, %v4366_v22 }
 0x1c9   : > { %v1014_v38 = vrot.slane %v1013_v17, 2  ;;  %v1010_v44 = vmax.f32 %v1008_v37, %v1009_v11  ;;  %v4622_v29 = vld [vmem:[%s8774_s7 + $0x2b0] sm:$0xf0]  ;;  %v4497_v33 = vor.u32 %v5749_v28, %v4494_v26  ;;  %v5805_v52 = vld [vmem:[%s8774_s7 + $0x364] sm:$0xf] }
 0x1ca   : > { %v1155_v39 = vrot.slane %v1154_v36, 2  ;;  %v1165_v49 = vmax.f32 %v1163_v34, %v1164_v35  ;;  %v4750_v31 = vld [vmem:[%s8774_s7 + $0x3b0] sm:$0xf0]  ;;  %v5713_v34 = vld [vmem:[%s8774_s7 + $0x84] sm:$0xf] }
 0x1cb   : > { %v1015_v10 = vmax.f32 %v1013_v17, %v1014_v38  ;;  %v4350_v62 = vld [vmem:[%s8774_s7 + $0x90] sm:$0xf0]  ;;  %v4625_v17 = vor.u32 %v5781_v27, %v4622_v29  ;;  %v4753_v35 = vor.u32 %v5813_v30, %v4750_v31  ;;  %v5777_v38 = vld [vmem:[%s8774_s7 + $0x284] sm:$0xf] }
 0x1cc   : > { %v1156_v9 = vmax.f32 %v1154_v36, %v1155_v39  ;;  %v1263_v43 = vrot.slane %v1165_v49, 7  ;;  %v5745_v36 = vld [vmem:[%s8774_s7 + $0x184] sm:$0xf]  ;;  %v4478_v37 = vld [vmem:[%s8774_s7 + $0x190] sm:$0xf0] }
 0x1cd   : > { %v1016_v40 = vrot.slane %v1015_v10, 1  ;;  %v4606_v39 = vld [vmem:[%s8774_s7 + $0x290] sm:$0xf0]  ;;  %v5737_v6 = vld [vmem:[%s8774_s7 + $0x144] sm:$0xf] }
 0x1ce   : > { %v1157_v41 = vrot.slane %v1156_v9, 1  ;;  %v4734_v49 = vld [vmem:[%s8774_s7 + $0x390] sm:$0xf0]  ;;  %v5801_v13 = vld [vmem:[%s8774_s7 + $0x344] sm:$0xf] }
 0x1cf   : > { %v1017_v42 = vmax.f32 %v1015_v10, %v1016_v40  ;;  %v5809_v10 = vld [vmem:[%s8774_s7 + $0x384] sm:$0xf]  ;;  %v4334_v11 = vld [vmem:[%s8774_s7 + $0x70] sm:$0xf0]  ;;  %v4353_v40 = vor.u32 %v5713_v34, %v4350_v62 }
 0x1d0   : > { %v1158_v54 = vmax.f32 %v1156_v9, %v1157_v41  ;;  %v5709_v9 = vld [vmem:[%s8774_s7 + $0x64] sm:$0xf]  ;;  %v4481_v41 = vor.u32 %v5745_v36, %v4478_v37  ;;  %v4590_v51 = vld [vmem:[%s8774_s7 + $0x270] sm:$0xf0] }
 0x1d1   : > { %v1233_v45 = vrot.slane %v1017_v42, 7  ;;  %v4337_v56 = vor.u32 %v5709_v9, %v4334_v11  ;;  %v4446_v7 = vld [vmem:[%s8774_s7 + $0x150] sm:$0xf0]  ;;  %v5701_v55 = vld [vmem:[%s8774_s7 + $0x24] sm:$0xf] }
 0x1d2   : > { %v1265_v46 = vsel %vm1173_vm1, %v1158_v54, %v1263_v43  ;;  %v5741_v54 = vld [vmem:[%s8774_s7 + $0x164] sm:$0xf]  ;;  %v4702_v14 = vld [vmem:[%s8774_s7 + $0x350] sm:$0xf0]  ;;  %v4449_v21 = vor.u32 %v5737_v6, %v4446_v7 }
 0x1d3   : > { %v1235_v47 = vsel %vm1173_vm1, %v1010_v44, %v1233_v45  ;;  %1271 = vst.msk [vmem:[#allocation2 + $0x6] sm:$0x3] %vm6981_vm2, %v1265_v46  ;;  %v4462_v44 = vld [vmem:[%s8774_s7 + $0x170] sm:$0xf0]  ;;  %v4609_v45 = vor.u32 %v5777_v38, %v4606_v39  ;;  %v4737_v46 = vor.u32 %v5809_v10, %v4734_v49  ;;  %v5733_v20 = vld [vmem:[%s8774_s7 + $0x124] sm:$0xf] }
 0x1d4   : > { %1241 = vst.msk [vmem:[#allocation2 + $0x4] sm:$0x3] %vm6981_vm2, %v1235_v47  ;;  %v4465_v57 = vor.u32 %v5741_v54, %v4462_v44  ;;  %v4302_v16 = vld [vmem:[%s8774_s7 + $0x30] sm:$0xf0]  ;;  %v5797_v28 = vld [vmem:[%s8774_s7 + $0x324] sm:$0xf] }
 0x1d5   : > { %v4430_v22 = vld [vmem:[%s8774_s7 + $0x130] sm:$0xf0]  ;;  %v5697_v27 = vld [vmem:[%s8774_s7 + $0x4] sm:$0xf]  ;;  %v4305_v29 = vor.u32 %v5701_v55, %v4302_v16 }
 0x1d6   : > { %v4686_v26 = vld [vmem:[%s8774_s7 + $0x330] sm:$0xf0]  ;;  %v4433_v30 = vor.u32 %v5733_v20, %v4430_v22  ;;  %v5793_v36 = vld [vmem:[%s8774_s7 + $0x304] sm:$0xf] }
 0x1d7   : > { %v4286_v31 = vld [vmem:[%s8774_s7 + $0x10] sm:$0xf0]  ;;  %v4689_v62 = vor.u32 %v5797_v28, %v4686_v26  ;;  %v5853_v38 = vld [vmem:[%s8774_s7 + $0x4e4] sm:$0xf] }
 0x1d8   : > { %v4670_v37 = vld [vmem:[%s8774_s7 + $0x310] sm:$0xf0]  ;;  %v5885_v10 = vld [vmem:[%s8774_s7 + $0x5e4] sm:$0xf]  ;;  %v4289_v11 = vor.u32 %v5697_v27, %v4286_v31 }
 0x1d9   : > { %v4910_v39 = vld [vmem:[%s8774_s7 + $0x4f0] sm:$0xf0]  ;;  %v5917_v9 = vld [vmem:[%s8774_s7 + $0x6e4] sm:$0xf]  ;;  %v4673_v44 = vor.u32 %v5793_v36, %v4670_v37 }
 0x1da   : > { %v5038_v49 = vld [vmem:[%s8774_s7 + $0x5f0] sm:$0xf0]  ;;  %v5845_v6 = vld [vmem:[%s8774_s7 + $0x4a4] sm:$0xf] }
 0x1db   : > { %v7081_v53 = vld [vmem:[#allocation2] sm:$0xff]  ;;  %v4878_v7 = vld [vmem:[%s8774_s7 + $0x4b0] sm:$0xf0] }
 0x1dc   : > { %v1550_v58 = vperm.slane %v7081_v53, 0  ;;  %v1551_v59 = vperm.slane %v7081_v53, 1  ;;  %v1552_v60 = vperm.slane %v7081_v53, 2  ;;  %v1553_v61 = vperm.slane %v7081_v53, 3  ;;  %v5941_v55 = vld [vmem:[%s8774_s7 + $0x7a4] sm:$0xf] }
 0x1dd   : > { %v1554_v42 = vperm.slane %v7081_v53, 4  ;;  %v1555_v43 = vperm.slane %v7081_v53, 5  ;;  %v1556_v47 = vperm.slane %v7081_v53, 6  ;;  %v1557_v48 = vperm.slane %v7081_v53, 7  ;;  %v5262_v16 = vld [vmem:[%s8774_s7 + $0x7b0] sm:$0xf0] }
 0x1de   : > { %v7096_v2 = vpack.c.bf16 %v1550_v58, %v1550_v58  ;;  %v7098_v3 = vpack.c.bf16 %v1551_v59, %v1551_v59  ;;  %v7100_v4 = vpack.c.bf16 %v1552_v60, %v1552_v60  ;;  %v7102_v5 = vpack.c.bf16 %v1553_v61, %v1553_v61  ;;  %v5705_v60 = vld [vmem:[%s8774_s7 + $0x44] sm:$0xf]  ;;  %v4318_v61 = vld [vmem:[%s8774_s7 + $0x50] sm:$0xf0] }
 0x1df   : > { %v7208_v53 = vpack.c.bf16 %v1554_v42, %v1554_v42  ;;  %v7210_v58 = vpack.c.bf16 %v1555_v43, %v1555_v43  ;;  %v4593_v59 = vor.u32 %v5773_v50, %v4590_v51  ;;  %v7218_v63 = vpack.c.bf16 %v1556_v47, %v1556_v47  ;;  %v5949_v42 = vld [vmem:[%s8774_s7 + $0x7e4] sm:$0xf]  ;;  %v5294_v43 = vld [vmem:[%s8774_s7 + $0x7f0] sm:$0xf0] }
 0x1e0   : > { %2871 = vmatmul.bf16.vlgmr.msra.gmra.mxu1 %v7096_v2  ;;  %2884 = vmatmul.bf16.vlgmr.msra.gmra.mxu2 %v7098_v3  ;;  %v4321_v15 = vor.u32 %v5705_v60, %v4318_v61  ;;  %v5849_v47 = vld [vmem:[%s8774_s7 + $0x4c4] sm:$0xf]  ;;  %v5297_v51 = vor.u32 %v5949_v42, %v5294_v43  ;;  %v5278_v60 = vld [vmem:[%s8774_s7 + $0x7d0] sm:$0xf0] }
 0x1e1   : > { %2897 = vmatmul.bf16.vlgmr.msra.gmra.mxu3 %v7100_v4  ;;  %2910 = vmatmul.bf16.vlgmr.msrb.gmra.mxu0 %v7102_v5  ;;  %v5841_v20 = vld [vmem:[%s8774_s7 + $0x484] sm:$0xf]  ;;  %v4862_v22 = vld [vmem:[%s8774_s7 + $0x490] sm:$0xf0] }
 0x1e2   : > { %2967 = vmatpush.bf16.msra.mxu1 %v4401_v0  ;;  %2980 = vmatpush.bf16.msra.mxu2 %v4529_v1  ;;  %v7220_v0 = vpack.c.bf16 %v1557_v48, %v1557_v48  ;;  %v4721_v1 = vor.u32 %v5805_v52, %v4718_v23  ;;  %v4894_v48 = vld [vmem:[%s8774_s7 + $0x4d0] sm:$0xf0]  ;;  %v5881_v52 = vld [vmem:[%s8774_s7 + $0x5c4] sm:$0xf] }
 0x1e3   : > { %2993 = vmatpush.bf16.msra.mxu3 %v4657_v8  ;;  %3006 = vmatpush.bf16.msrb.mxu0 %v4785_v12  ;;  %v5769_v8 = vld [vmem:[%s8774_s7 + $0x244] sm:$0xf]  ;;  %v4574_v12 = vld [vmem:[%s8774_s7 + $0x250] sm:$0xf0]  ;;  %v4897_v61 = vor.u32 %v5849_v47, %v4894_v48 }
 0x1e4   : > { %v5022_v23 = vld [vmem:[%s8774_s7 + $0x5d0] sm:$0xf0]  ;;  %v5873_v28 = vld [vmem:[%s8774_s7 + $0x584] sm:$0xf] }
 0x1e5   : > { %v4990_v26 = vld [vmem:[%s8774_s7 + $0x590] sm:$0xf0]  ;;  %v5905_v27 = vld [vmem:[%s8774_s7 + $0x684] sm:$0xf] }
 0x1e6   : > { %2968 = vmatpush.bf16.msra.mxu1 %v4385_v18  ;;  %2981 = vmatpush.bf16.msra.mxu2 %v4513_v19  ;;  %v4577_v18 = vor.u32 %v5769_v8, %v4574_v12  ;;  %v4705_v19 = vor.u32 %v5801_v13, %v4702_v14  ;;  %v5877_v13 = vld [vmem:[%s8774_s7 + $0x5a4] sm:$0xf]  ;;  %v5006_v14 = vld [vmem:[%s8774_s7 + $0x5b0] sm:$0xf0] }
 0x1e7   : > { %2994 = vmatpush.bf16.msra.mxu3 %v4641_v24  ;;  %3007 = vmatpush.bf16.msrb.mxu0 %v4769_v25  ;;  %v5765_v24 = vld [vmem:[%s8774_s7 + $0x224] sm:$0xf]  ;;  %v4558_v25 = vld [vmem:[%s8774_s7 + $0x230] sm:$0xf0] }
 0x1e8   : > { %v4561_v34 = vor.u32 %v5765_v24, %v4558_v25  ;;  %v5265_v25 = vor.u32 %v5941_v55, %v5262_v16  ;;  %v5246_v31 = vld [vmem:[%s8774_s7 + $0x790] sm:$0xf0]  ;;  %v5869_v36 = vld [vmem:[%s8774_s7 + $0x564] sm:$0xf] }
 0x1e9   : > { %v4974_v37 = vld [vmem:[%s8774_s7 + $0x570] sm:$0xf0]  ;;  %v5929_v47 = vld [vmem:[%s8774_s7 + $0x744] sm:$0xf] }
 0x1ea   : > { %2969 = vmatpush.bf16.msra.mxu1 %v4369_v32  ;;  %2982 = vmatpush.bf16.msra.mxu2 %v4497_v33  ;;  %v5729_v32 = vld [vmem:[%s8774_s7 + $0x104] sm:$0xf]  ;;  %v4414_v33 = vld [vmem:[%s8774_s7 + $0x110] sm:$0xf0] }
 0x1eb   : > { %2995 = vmatpush.bf16.msra.mxu3 %v4625_v17  ;;  %3008 = vmatpush.bf16.msrb.mxu0 %v4753_v35  ;;  %v5761_v17 = vld [vmem:[%s8774_s7 + $0x204] sm:$0xf]  ;;  %v4542_v35 = vld [vmem:[%s8774_s7 + $0x210] sm:$0xf0] }
 0x1ec   : > { %v4545_v54 = vor.u32 %v5761_v17, %v4542_v35  ;;  %v5214_v48 = vld [vmem:[%s8774_s7 + $0x750] sm:$0xf0] }
 0x1ee   : > { %2970 = vmatpush.bf16.msra.mxu1 %v4353_v40  ;;  %2983 = vmatpush.bf16.msra.mxu2 %v4481_v41  ;;  %v4417_v40 = vor.u32 %v5729_v32, %v4414_v33  ;;  %v5166_v41 = vld [vmem:[%s8774_s7 + $0x6f0] sm:$0xf0]  ;;  %v4865_v32 = vor.u32 %v5841_v20, %v4862_v22  ;;  %v4993_v33 = vor.u32 %v5873_v28, %v4990_v26  ;;  %v5921_v20 = vld [vmem:[%s8774_s7 + $0x704] sm:$0xf]  ;;  %v4532_v28 = vld [vmem:[%s8774_s7 + $0x1e8] sm:$0xf] }
 0x1ef   : > { %2996 = vmatpush.bf16.msra.mxu3 %v4609_v45  ;;  %3009 = vmatpush.bf16.msrb.mxu0 %v4737_v46  ;;  %v4913_v45 = vor.u32 %v5853_v38, %v4910_v39  ;;  %v5041_v46 = vor.u32 %v5885_v10, %v5038_v49  ;;  %v5169_v50 = vor.u32 %v5917_v9, %v5166_v41  ;;  %v5901_v38 = vld [vmem:[%s8774_s7 + $0x664] sm:$0xf]  ;;  %v5102_v39 = vld [vmem:[%s8774_s7 + $0x670] sm:$0xf0]  ;;  %v5760_v26 = vld [vmem:[%s8774_s7 + $0x1f4] sm:$0xf0] }
 0x1f0   : > { %2923 = vmatmul.bf16.vlgmr.msrb.gmra.mxu1 %v7208_v53  ;;  %2936 = vmatmul.bf16.vlgmr.msrb.gmra.mxu2 %v7210_v58  ;;  %v5933_v10 = vld [vmem:[%s8774_s7 + $0x764] sm:$0xf]  ;;  %v5230_v49 = vld [vmem:[%s8774_s7 + $0x770] sm:$0xf0]  ;;  %v5105_v42 = vor.u32 %v5901_v38, %v5102_v39 }
 0x1f1   : > { %2949 = vmatmul.bf16.vlgmr.msrb.gmra.mxu3 %v7218_v63  ;;  %2962 = vmatmul.bf16.vlgmr.msra.gmra.mxu0 %v7220_v0  ;;  %v4830_v41 = vld [vmem:[%s8774_s7 + $0x450] sm:$0xf0]  ;;  %v5233_v43 = vor.u32 %v5933_v10, %v5230_v49  ;;  %v4516_v10 = vld [vmem:[%s8774_s7 + $0x1c8] sm:$0xf]  ;;  %v5756_v49 = vld [vmem:[%s8774_s7 + $0x1d4] sm:$0xf0] }
 0x1f2   : > { %2971 = vmatpush.bf16.msra.mxu1 %v4337_v56  ;;  %2984 = vmatpush.bf16.msra.mxu2 %v4465_v57  ;;  %v5913_v56 = vld [vmem:[%s8774_s7 + $0x6c4] sm:$0xf]  ;;  %v5150_v57 = vld [vmem:[%s8774_s7 + $0x6d0] sm:$0xf0] }
 0x1f3   : > { %2997 = vmatpush.bf16.msra.mxu3 %v4593_v59  ;;  %3010 = vmatpush.bf16.msrb.mxu0 %v4721_v1  ;;  %v5945_v59 = vld [vmem:[%s8774_s7 + $0x7c4] sm:$0xf]  ;;  %v5025_v1 = vor.u32 %v5881_v52, %v5022_v23  ;;  %v5153_v8 = vor.u32 %v5913_v56, %v5150_v57  ;;  %v4814_v23 = vld [vmem:[%s8774_s7 + $0x430] sm:$0xf0]  ;;  %v5217_v57 = vor.u32 %v5929_v47, %v5214_v48  ;;  %v4500_v47 = vld [vmem:[%s8774_s7 + $0x1a8] sm:$0xf] }
 0x1f4   : > { %v5281_v12 = vor.u32 %v5945_v59, %v5278_v60  ;;  %v5829_v52 = vld [vmem:[%s8774_s7 + $0x424] sm:$0xf]  ;;  %v4942_v60 = vld [vmem:[%s8774_s7 + $0x530] sm:$0xf0]  ;;  %v5752_v48 = vld [vmem:[%s8774_s7 + $0x1b4] sm:$0xf0] }
 0x1f5   : > { %v5861_v59 = vld [vmem:[%s8774_s7 + $0x524] sm:$0xf]  ;;  %v5182_v22 = vld [vmem:[%s8774_s7 + $0x710] sm:$0xf0] }
 0x1f6   : > { %2972 = vmatpush.bf16.msra.mxu1 %v4321_v15  ;;  %2985 = vmatpush.bf16.msra.mxu2 %v4449_v21  ;;  %v5909_v15 = vld [vmem:[%s8774_s7 + $0x6a4] sm:$0xf]  ;;  %v5134_v21 = vld [vmem:[%s8774_s7 + $0x6b0] sm:$0xf0] }
 0x1f7   : > { %2998 = vmatpush.bf16.msra.mxu3 %v4577_v18  ;;  %3011 = vmatpush.bf16.msrb.mxu0 %v4705_v19  ;;  %v4881_v18 = vor.u32 %v5845_v6, %v4878_v7  ;;  %v5009_v19 = vor.u32 %v5877_v13, %v5006_v14  ;;  %v5137_v24 = vor.u32 %v5909_v15, %v5134_v21  ;;  %v5925_v6 = vld [vmem:[%s8774_s7 + $0x724] sm:$0xf]  ;;  %v5198_v7 = vld [vmem:[%s8774_s7 + $0x730] sm:$0xf0] }
 0x1f8   : > { %v4945_v13 = vor.u32 %v5861_v59, %v4942_v60  ;;  %v4798_v14 = vld [vmem:[%s8774_s7 + $0x410] sm:$0xf0]  ;;  %v5857_v15 = vld [vmem:[%s8774_s7 + $0x504] sm:$0xf]  ;;  %v5201_v16 = vor.u32 %v5925_v6, %v5198_v7  ;;  %v4356_v59 = vld [vmem:[%s8774_s7 + $0x88] sm:$0xf] }
 0x1f9   : > { %v4926_v21 = vld [vmem:[%s8774_s7 + $0x510] sm:$0xf0]  ;;  %v5716_v60 = vld [vmem:[%s8774_s7 + $0x94] sm:$0xf0]  ;;  %v4484_v6 = vld [vmem:[%s8774_s7 + $0x188] sm:$0xf] }
 0x1fa   : > { %2973 = vmatpush.bf16.msra.mxu1 %v4305_v29  ;;  %2986 = vmatpush.bf16.msra.mxu2 %v4433_v30  ;;  %v5118_v29 = vld [vmem:[%s8774_s7 + $0x690] sm:$0xf0]  ;;  %v5937_v30 = vld [vmem:[%s8774_s7 + $0x784] sm:$0xf]  ;;  %v5748_v7 = vld [vmem:[%s8774_s7 + $0x194] sm:$0xf0] }
 0x1fb   : > { %2999 = vmatpush.bf16.msra.mxu3 %v4561_v34  ;;  %3012 = vmatpush.bf16.msrb.mxu0 %v4689_v62  ;;  %v5837_v34 = vld [vmem:[%s8774_s7 + $0x464] sm:$0xf]  ;;  %v4846_v62 = vld [vmem:[%s8774_s7 + $0x470] sm:$0xf0]  ;;  %v5121_v17 = vor.u32 %v5905_v27, %v5118_v29  ;;  %v5249_v35 = vor.u32 %v5937_v30, %v5246_v31  ;;  %v4660_v27 = vld [vmem:[%s8774_s7 + $0x2e8] sm:$0xf]  ;;  %v4929_v30 = vor.u32 %v5857_v15, %v4926_v21 }
 0x1fc   : > { %v4849_v9 = vor.u32 %v5837_v34, %v4846_v62  ;;  %v5792_v31 = vld [vmem:[%s8774_s7 + $0x2f4] sm:$0xf0]  ;;  %v5185_v62 = vor.u32 %v5921_v20, %v5182_v22  ;;  %v4357_v15 = vor.u32 %v5716_v60, %v4356_v59  ;;  %v4485_v21 = vor.u32 %v5748_v7, %v4484_v6  ;;  %v4468_v20 = vld [vmem:[%s8774_s7 + $0x168] sm:$0xf] }
 0x1fd   : > { %v4661_v38 = vor.u32 %v5792_v31, %v4660_v27  ;;  %v5744_v22 = vld [vmem:[%s8774_s7 + $0x174] sm:$0xf0]  ;;  %v4676_v59 = vld [vmem:[%s8774_s7 + $0x308] sm:$0xf] }
 0x1fe   : > { %2974 = vmatpush.bf16.msra.mxu1 %v4289_v11  ;;  %2987 = vmatpush.bf16.msra.mxu2 %v4417_v40  ;;  %v4977_v11 = vor.u32 %v5869_v36, %v4974_v37  ;;  %v5833_v40 = vld [vmem:[%s8774_s7 + $0x444] sm:$0xf]  ;;  %v4388_v36 = vld [vmem:[%s8774_s7 + $0xc8] sm:$0xf]  ;;  %v5724_v37 = vld [vmem:[%s8774_s7 + $0xd4] sm:$0xf0] }
 0x1ff   : > { %3000 = vmatpush.bf16.msra.mxu3 %v4545_v54  ;;  %3013 = vmatpush.bf16.msrb.mxu0 %v4673_v44  ;;  %v5865_v54 = vld [vmem:[%s8774_s7 + $0x544] sm:$0xf]  ;;  %v4958_v44 = vld [vmem:[%s8774_s7 + $0x550] sm:$0xf0]  ;;  %v5708_v31 = vld [vmem:[%s8774_s7 + $0x54] sm:$0xf0] }
 0x200   : > { %v5796_v60 = vld [vmem:[%s8774_s7 + $0x314] sm:$0xf0]  ;;  %v5044_v6 = vld [vmem:[%s8774_s7 + $0x5e8] sm:$0xf] }
 0x201   : > { %2975 = vmatmul.bf16.vlgmr.msra.gmra.mxu1 %v7096_v2  ;;  %2988 = vmatmul.bf16.vlgmr.msra.gmra.mxu2 %v7098_v3  ;;  %v5888_v7 = vld [vmem:[%s8774_s7 + $0x5f4] sm:$0xf0] }
 0x202   : > { %3019 = vmatpush.bf16.msrb.mxu1 %v4913_v45  ;;  %3032 = vmatpush.bf16.msrb.mxu2 %v5041_v46  ;;  %v5897_v45 = vld [vmem:[%s8774_s7 + $0x644] sm:$0xf]  ;;  %v5086_v46 = vld [vmem:[%s8774_s7 + $0x650] sm:$0xf0] }
 0x203   : > { %3045 = vmatpush.bf16.msrb.mxu3 %v5169_v50  ;;  %3058 = vmatpush.bf16.msra.mxu0 %v5297_v51  ;;  %v4833_v50 = vor.u32 %v5833_v40, %v4830_v41  ;;  %v4961_v51 = vor.u32 %v5865_v54, %v4958_v44  ;;  %v5089_v56 = vor.u32 %v5897_v45, %v5086_v46  ;;  %v4772_v40 = vld [vmem:[%s8774_s7 + $0x3c8] sm:$0xf]  ;;  %v5820_v41 = vld [vmem:[%s8774_s7 + $0x3d4] sm:$0xf0] }
 0x204   : > { %3001 = vmatmul.bf16.vlgmr.msra.gmra.mxu3 %v7100_v4  ;;  %3014 = vmatmul.bf16.vlgmr.msrb.gmra.mxu0 %v7102_v5  ;;  %v4372_v54 = vld [vmem:[%s8774_s7 + $0xa8] sm:$0xf]  ;;  %v5720_v44 = vld [vmem:[%s8774_s7 + $0xb4] sm:$0xf0]  ;;  %v4773_v46 = vor.u32 %v5820_v41, %v4772_v40 }
 0x205   : > { %v4436_v40 = vld [vmem:[%s8774_s7 + $0x128] sm:$0xf]  ;;  %v5736_v41 = vld [vmem:[%s8774_s7 + $0x134] sm:$0xf0] }
 0x206   : > { %3020 = vmatpush.bf16.msrb.mxu1 %v4897_v61  ;;  %3033 = vmatpush.bf16.msrb.mxu2 %v5025_v1  ;;  %v5893_v61 = vld [vmem:[%s8774_s7 + $0x624] sm:$0xf]  ;;  %v5070_v1 = vld [vmem:[%s8774_s7 + $0x630] sm:$0xf0] }
 0x207   : > { %3046 = vmatpush.bf16.msrb.mxu3 %v5153_v8  ;;  %3059 = vmatpush.bf16.msra.mxu0 %v5281_v12  ;;  %v5825_v8 = vld [vmem:[%s8774_s7 + $0x404] sm:$0xf]  ;;  %v4817_v12 = vor.u32 %v5829_v52, %v4814_v23  ;;  %v5073_v55 = vor.u32 %v5893_v61, %v5070_v1  ;;  %v4756_v52 = vld [vmem:[%s8774_s7 + $0x3a8] sm:$0xf]  ;;  %v5816_v23 = vld [vmem:[%s8774_s7 + $0x3b4] sm:$0xf0] }
 0x208   : > { %v4801_v29 = vor.u32 %v5825_v8, %v4798_v14  ;;  %v4757_v1 = vor.u32 %v5816_v23, %v4756_v52  ;;  %v4612_v8 = vld [vmem:[%s8774_s7 + $0x288] sm:$0xf]  ;;  %v5812_v14 = vld [vmem:[%s8774_s7 + $0x394] sm:$0xf0] }
 0x20a   : > { %3021 = vmatpush.bf16.msrb.mxu1 %v4881_v18  ;;  %3034 = vmatpush.bf16.msrb.mxu2 %v5009_v19  ;;  %v5889_v18 = vld [vmem:[%s8774_s7 + $0x604] sm:$0xf]  ;;  %v5054_v19 = vld [vmem:[%s8774_s7 + $0x610] sm:$0xf0] }
 0x20b   : > { %3047 = vmatpush.bf16.msrb.mxu3 %v5137_v24  ;;  %3060 = vmatpush.bf16.msra.mxu0 %v5265_v25  ;;  %v4404_v24 = vld [vmem:[%s8774_s7 + $0xe8] sm:$0xf]  ;;  %v5728_v25 = vld [vmem:[%s8774_s7 + $0xf4] sm:$0xf0]  ;;  %v5057_v34 = vor.u32 %v5889_v18, %v5054_v19 }
 0x20e   : > { %3022 = vmatpush.bf16.msrb.mxu1 %v4865_v32  ;;  %3035 = vmatpush.bf16.msrb.mxu2 %v4993_v33  ;;  %v4788_v32 = vld [vmem:[%s8774_s7 + $0x3e8] sm:$0xf]  ;;  %v5824_v33 = vld [vmem:[%s8774_s7 + $0x3f4] sm:$0xf0] }
 0x20f   : > { %3048 = vmatpush.bf16.msrb.mxu3 %v5121_v17  ;;  %3061 = vmatpush.bf16.msra.mxu0 %v5249_v35  ;;  %v4405_v17 = vor.u32 %v5728_v25, %v4404_v24  ;;  %v4533_v35 = vor.u32 %v5760_v26, %v4532_v28  ;;  %v4789_v39 = vor.u32 %v5824_v33, %v4788_v32  ;;  %v4596_v24 = vld [vmem:[%s8774_s7 + $0x268] sm:$0xf]  ;;  %v5776_v25 = vld [vmem:[%s8774_s7 + $0x274] sm:$0xf0] }
 0x210   : > { %v4724_v28 = vld [vmem:[%s8774_s7 + $0x368] sm:$0xf]  ;;  %v5808_v26 = vld [vmem:[%s8774_s7 + $0x374] sm:$0xf0]  ;;  %v4597_v32 = vor.u32 %v5776_v25, %v4596_v24 }
 0x211   : > { %v4725_v33 = vor.u32 %v5808_v26, %v4724_v28  ;;  %v5028_v28 = vld [vmem:[%s8774_s7 + $0x5c8] sm:$0xf]  ;;  %v5884_v26 = vld [vmem:[%s8774_s7 + $0x5d4] sm:$0xf0] }
 0x212   : > { %3023 = vmatpush.bf16.msrb.mxu1 %v4849_v9  ;;  %3036 = vmatpush.bf16.msrb.mxu2 %v4977_v11  ;;  %v4644_v9 = vld [vmem:[%s8774_s7 + $0x2c8] sm:$0xf]  ;;  %v5788_v11 = vld [vmem:[%s8774_s7 + $0x2d4] sm:$0xf0] }
 0x213   : > { %3049 = vmatpush.bf16.msrb.mxu3 %v5105_v42  ;;  %3062 = vmatpush.bf16.msra.mxu0 %v5233_v43  ;;  %v4389_v42 = vor.u32 %v5724_v37, %v4388_v36  ;;  %v4517_v43 = vor.u32 %v5756_v49, %v4516_v10  ;;  %v4645_v45 = vor.u32 %v5788_v11, %v4644_v9  ;;  %v4708_v36 = vld [vmem:[%s8774_s7 + $0x348] sm:$0xf]  ;;  %v5804_v37 = vld [vmem:[%s8774_s7 + $0x354] sm:$0xf0] }
 0x214   : > { %v4308_v10 = vld [vmem:[%s8774_s7 + $0x28] sm:$0xf]  ;;  %v5704_v49 = vld [vmem:[%s8774_s7 + $0x34] sm:$0xf0]  ;;  %v4709_v11 = vor.u32 %v5804_v37, %v4708_v36 }
 0x215   : > { %v5012_v36 = vld [vmem:[%s8774_s7 + $0x5a8] sm:$0xf]  ;;  %v5880_v37 = vld [vmem:[%s8774_s7 + $0x5b4] sm:$0xf0] }
 0x216   : > { %3024 = vmatpush.bf16.msrb.mxu1 %v4833_v50  ;;  %3037 = vmatpush.bf16.msrb.mxu2 %v4961_v51  ;;  %v4628_v50 = vld [vmem:[%s8774_s7 + $0x2a8] sm:$0xf]  ;;  %v5784_v51 = vld [vmem:[%s8774_s7 + $0x2b4] sm:$0xf0] }
 0x217   : > { %3050 = vmatpush.bf16.msrb.mxu3 %v5089_v56  ;;  %3063 = vmatpush.bf16.msra.mxu0 %v5217_v57  ;;  %v4373_v56 = vor.u32 %v5720_v44, %v4372_v54  ;;  %v4501_v57 = vor.u32 %v5752_v48, %v4500_v47  ;;  %v4629_v61 = vor.u32 %v5784_v51, %v4628_v50  ;;  %v4692_v54 = vld [vmem:[%s8774_s7 + $0x328] sm:$0xf]  ;;  %v5800_v44 = vld [vmem:[%s8774_s7 + $0x334] sm:$0xf0] }
 0x218   : > { %v4437_v47 = vor.u32 %v5736_v41, %v4436_v40  ;;  %v5700_v48 = vld [vmem:[%s8774_s7 + $0x14] sm:$0xf0]  ;;  %v4420_v50 = vld [vmem:[%s8774_s7 + $0x108] sm:$0xf]  ;;  %v4693_v23 = vor.u32 %v5800_v44, %v4692_v54 }
 0x219   : > { %v5732_v51 = vld [vmem:[%s8774_s7 + $0x114] sm:$0xf0]  ;;  %v4868_v40 = vld [vmem:[%s8774_s7 + $0x488] sm:$0xf] }
 0x21a   : > { %3025 = vmatpush.bf16.msrb.mxu1 %v4817_v12  ;;  %3038 = vmatpush.bf16.msrb.mxu2 %v4945_v13  ;;  %v5780_v12 = vld [vmem:[%s8774_s7 + $0x294] sm:$0xf0]  ;;  %v4740_v13 = vld [vmem:[%s8774_s7 + $0x388] sm:$0xf] }
 0x21b   : > { %3051 = vmatpush.bf16.msrb.mxu3 %v5073_v55  ;;  %3064 = vmatpush.bf16.msra.mxu0 %v5201_v16  ;;  %v4340_v55 = vld [vmem:[%s8774_s7 + $0x68] sm:$0xf]  ;;  %v5712_v16 = vld [vmem:[%s8774_s7 + $0x74] sm:$0xf0]  ;;  %v4613_v18 = vor.u32 %v5780_v12, %v4612_v8  ;;  %v4741_v19 = vor.u32 %v5812_v14, %v4740_v13  ;;  %v4421_v13 = vor.u32 %v5732_v51, %v4420_v50 }
 0x21c   : > { %v4341_v27 = vor.u32 %v5712_v16, %v4340_v55  ;;  %v5172_v8 = vld [vmem:[%s8774_s7 + $0x6e8] sm:$0xf]  ;;  %v5920_v14 = vld [vmem:[%s8774_s7 + $0x6f4] sm:$0xf0]  ;;  %v4677_v16 = vor.u32 %v5796_v60, %v4676_v59 }
 0x21d   : > { %v5173_v24 = vor.u32 %v5920_v14, %v5172_v8  ;;  %v5844_v41 = vld [vmem:[%s8774_s7 + $0x494] sm:$0xf0]  ;;  %v4996_v54 = vld [vmem:[%s8774_s7 + $0x588] sm:$0xf] }
 0x21e   : > { %3026 = vmatpush.bf16.msrb.mxu1 %v4801_v29  ;;  %3039 = vmatpush.bf16.msrb.mxu2 %v4929_v30  ;;  %v4469_v29 = vor.u32 %v5744_v22, %v4468_v20  ;;  %v4324_v30 = vld [vmem:[%s8774_s7 + $0x48] sm:$0xf]  ;;  %v5852_v22 = vld [vmem:[%s8774_s7 + $0x4d4] sm:$0xf0]  ;;  %v4869_v50 = vor.u32 %v5844_v41, %v4868_v40 }
 0x21f   : > { %3052 = vmatpush.bf16.msrb.mxu3 %v5057_v34  ;;  %3065 = vmatpush.bf16.msra.mxu0 %v5185_v62  ;;  %v4452_v34 = vld [vmem:[%s8774_s7 + $0x148] sm:$0xf]  ;;  %v5740_v62 = vld [vmem:[%s8774_s7 + $0x154] sm:$0xf0] }
 0x220   : > { %v4900_v20 = vld [vmem:[%s8774_s7 + $0x4c8] sm:$0xf]  ;;  %v5876_v44 = vld [vmem:[%s8774_s7 + $0x594] sm:$0xf0] }
 0x221   : > { %3027 = vmatmul.bf16.vlgmr.msrb.gmra.mxu1 %v7208_v53  ;;  %3040 = vmatmul.bf16.vlgmr.msrb.gmra.mxu2 %v7210_v58  ;;  %v4997_v51 = vor.u32 %v5876_v44, %v4996_v54  ;;  %v4980_v59 = vld [vmem:[%s8774_s7 + $0x568] sm:$0xf]  ;;  %v5872_v60 = vld [vmem:[%s8774_s7 + $0x574] sm:$0xf0]  ;;  %v5758_v54 = vld [vmem:[%s8774_s7 + $0x1ec] sm:$0xf] }
 0x222   : > { %3071 = vmatpush.bf16.msra.mxu1 %v4405_v17  ;;  %3084 = vmatpush.bf16.msra.mxu2 %v4533_v35  ;;  %v4580_v17 = vld [vmem:[%s8774_s7 + $0x248] sm:$0xf]  ;;  %v5772_v35 = vld [vmem:[%s8774_s7 + $0x254] sm:$0xf0]  ;;  %v4534_v44 = vld [vmem:[%s8774_s7 + $0x1f8] sm:$0xf0] }
 0x223   : > { %3097 = vmatpush.bf16.msra.mxu3 %v4661_v38  ;;  %3110 = vmatpush.bf16.msrb.mxu0 %v4789_v39  ;;  %v4325_v38 = vor.u32 %v5708_v31, %v4324_v30  ;;  %v4453_v39 = vor.u32 %v5740_v62, %v4452_v34  ;;  %v4581_v9 = vor.u32 %v5772_v35, %v4580_v17  ;;  %v5284_v30 = vld [vmem:[%s8774_s7 + $0x7c8] sm:$0xf]  ;;  %v5948_v31 = vld [vmem:[%s8774_s7 + $0x7d4] sm:$0xf0] }
 0x224   : > { %3053 = vmatmul.bf16.vlgmr.msrb.gmra.mxu3 %v7218_v63  ;;  %3066 = vmatmul.bf16.vlgmr.msra.gmra.mxu0 %v7220_v0  ;;  %v4884_v34 = vld [vmem:[%s8774_s7 + $0x4a8] sm:$0xf]  ;;  %v5848_v62 = vld [vmem:[%s8774_s7 + $0x4b4] sm:$0xf0]  ;;  %v5285_v35 = vor.u32 %v5948_v31, %v5284_v30 }
 0x225   : > { %v5836_v14 = vld [vmem:[%s8774_s7 + $0x454] sm:$0xf0]  ;;  %v4948_v30 = vld [vmem:[%s8774_s7 + $0x528] sm:$0xf] }
 0x226   : > { %3072 = vmatpush.bf16.msra.mxu1 %v4389_v42  ;;  %3085 = vmatpush.bf16.msra.mxu2 %v4517_v43  ;;  %v4564_v42 = vld [vmem:[%s8774_s7 + $0x228] sm:$0xf]  ;;  %v5768_v43 = vld [vmem:[%s8774_s7 + $0x234] sm:$0xf0] }
 0x227   : > { %3098 = vmatpush.bf16.msra.mxu3 %v4645_v45  ;;  %3111 = vmatpush.bf16.msrb.mxu0 %v4773_v46  ;;  %v4292_v45 = vld [vmem:[%s8774_s7 + $0x8] sm:$0xf]  ;;  %v4309_v46 = vor.u32 %v5704_v49, %v4308_v10  ;;  %v4565_v52 = vor.u32 %v5768_v43, %v4564_v42  ;;  %v5944_v49 = vld [vmem:[%s8774_s7 + $0x7b4] sm:$0xf0] }
 0x228   : > { %v4293_v12 = vor.u32 %v5700_v48, %v4292_v45  ;;  %v5268_v10 = vld [vmem:[%s8774_s7 + $0x7a8] sm:$0xf]  ;;  %v5940_v48 = vld [vmem:[%s8774_s7 + $0x794] sm:$0xf0] }
 0x229   : > { %v5269_v43 = vor.u32 %v5944_v49, %v5268_v10  ;;  %v5124_v45 = vld [vmem:[%s8774_s7 + $0x688] sm:$0xf]  ;;  %v5864_v31 = vld [vmem:[%s8774_s7 + $0x534] sm:$0xf0] }
 0x22a   : > { %3073 = vmatpush.bf16.msra.mxu1 %v4373_v56  ;;  %3086 = vmatpush.bf16.msra.mxu2 %v4501_v57  ;;  %v4548_v56 = vld [vmem:[%s8774_s7 + $0x208] sm:$0xf]  ;;  %v5764_v57 = vld [vmem:[%s8774_s7 + $0x214] sm:$0xf0] }
 0x22b   : > { %3099 = vmatpush.bf16.msra.mxu3 %v4629_v61  ;;  %3112 = vmatpush.bf16.msrb.mxu0 %v4757_v1  ;;  %v4916_v61 = vld [vmem:[%s8774_s7 + $0x4e8] sm:$0xf]  ;;  %v5856_v1 = vld [vmem:[%s8774_s7 + $0x4f4] sm:$0xf0]  ;;  %v4549_v55 = vor.u32 %v5764_v57, %v4548_v56 }
 0x22c   : > { %v5188_v40 = vld [vmem:[%s8774_s7 + $0x708] sm:$0xf]  ;;  %v5924_v41 = vld [vmem:[%s8774_s7 + $0x714] sm:$0xf0] }
 0x22e   : > { %3074 = vmatpush.bf16.msra.mxu1 %v4357_v15  ;;  %3087 = vmatpush.bf16.msra.mxu2 %v4485_v21  ;;  %v5300_v15 = vld [vmem:[%s8774_s7 + $0x7e8] sm:$0xf]  ;;  %v5952_v21 = vld [vmem:[%s8774_s7 + $0x7f4] sm:$0xf0] }
 0x22f   : > { %3100 = vmatpush.bf16.msra.mxu3 %v4613_v18  ;;  %3113 = vmatpush.bf16.msrb.mxu0 %v4741_v19  ;;  %v4917_v18 = vor.u32 %v5856_v1, %v4916_v61  ;;  %v5045_v19 = vor.u32 %v5888_v7, %v5044_v6  ;;  %v5301_v25 = vor.u32 %v5952_v21, %v5300_v15  ;;  %v5108_v61 = vld [vmem:[%s8774_s7 + $0x668] sm:$0xf]  ;;  %v5904_v1 = vld [vmem:[%s8774_s7 + $0x674] sm:$0xf0] }
 0x230   : > { %v5236_v6 = vld [vmem:[%s8774_s7 + $0x768] sm:$0xf]  ;;  %v5936_v7 = vld [vmem:[%s8774_s7 + $0x774] sm:$0xf0]  ;;  %v5109_v15 = vor.u32 %v5904_v1, %v5108_v61 }
 0x231   : > { %v5237_v21 = vor.u32 %v5936_v7, %v5236_v6  ;;  %v5754_v6 = vld [vmem:[%s8774_s7 + $0x1cc] sm:$0xf]  ;;  %v4518_v7 = vld [vmem:[%s8774_s7 + $0x1d8] sm:$0xf0] }
 0x232   : > { %3075 = vmatpush.bf16.msra.mxu1 %v4341_v27  ;;  %3088 = vmatpush.bf16.msra.mxu2 %v4469_v29  ;;  %v5156_v27 = vld [vmem:[%s8774_s7 + $0x6c8] sm:$0xf]  ;;  %v5916_v29 = vld [vmem:[%s8774_s7 + $0x6d4] sm:$0xf0] }
 0x233   : > { %3101 = vmatpush.bf16.msra.mxu3 %v4597_v32  ;;  %3114 = vmatpush.bf16.msrb.mxu0 %v4725_v33  ;;  %v4901_v32 = vor.u32 %v5852_v22, %v4900_v20  ;;  %v5029_v33 = vor.u32 %v5884_v26, %v5028_v28  ;;  %v5157_v17 = vor.u32 %v5916_v29, %v5156_v27  ;;  %v5220_v20 = vld [vmem:[%s8774_s7 + $0x748] sm:$0xf]  ;;  %v5932_v22 = vld [vmem:[%s8774_s7 + $0x754] sm:$0xf0] }
 0x234   : > { %v4820_v28 = vld [vmem:[%s8774_s7 + $0x428] sm:$0xf]  ;;  %v5832_v26 = vld [vmem:[%s8774_s7 + $0x434] sm:$0xf0]  ;;  %v5221_v29 = vor.u32 %v5932_v22, %v5220_v20  ;;  %v4502_v22 = vld [vmem:[%s8774_s7 + $0x1b8] sm:$0xf0] }
 0x236   : > { %3076 = vmatpush.bf16.msra.mxu1 %v4325_v38  ;;  %3089 = vmatpush.bf16.msra.mxu2 %v4453_v39  ;;  %v5140_v38 = vld [vmem:[%s8774_s7 + $0x6a8] sm:$0xf]  ;;  %v5912_v39 = vld [vmem:[%s8774_s7 + $0x6b4] sm:$0xf0] }
 0x237   : > { %3102 = vmatpush.bf16.msra.mxu3 %v4581_v9  ;;  %3115 = vmatpush.bf16.msrb.mxu0 %v4709_v11  ;;  %v4885_v9 = vor.u32 %v5848_v62, %v4884_v34  ;;  %v5013_v11 = vor.u32 %v5880_v37, %v5012_v36  ;;  %v5141_v42 = vor.u32 %v5912_v39, %v5140_v38  ;;  %v5204_v34 = vld [vmem:[%s8774_s7 + $0x728] sm:$0xf]  ;;  %v5928_v62 = vld [vmem:[%s8774_s7 + $0x734] sm:$0xf0] }
 0x238   : > { %v4949_v36 = vor.u32 %v5864_v31, %v4948_v30  ;;  %v5828_v37 = vld [vmem:[%s8774_s7 + $0x414] sm:$0xf0]  ;;  %v4932_v38 = vld [vmem:[%s8774_s7 + $0x508] sm:$0xf]  ;;  %v5205_v49 = vor.u32 %v5928_v62, %v5204_v34  ;;  %v5714_v34 = vld [vmem:[%s8774_s7 + $0x8c] sm:$0xf] }
 0x239   : > { %v5860_v39 = vld [vmem:[%s8774_s7 + $0x514] sm:$0xf0]  ;;  %v4358_v62 = vld [vmem:[%s8774_s7 + $0x98] sm:$0xf0] }
 0x23a   : > { %3077 = vmatpush.bf16.msra.mxu1 %v4309_v46  ;;  %3090 = vmatpush.bf16.msra.mxu2 %v4437_v47  ;;  %v5908_v46 = vld [vmem:[%s8774_s7 + $0x694] sm:$0xf0]  ;;  %v5252_v47 = vld [vmem:[%s8774_s7 + $0x788] sm:$0xf] }
 0x23b   : > { %3103 = vmatpush.bf16.msra.mxu3 %v4565_v52  ;;  %3116 = vmatpush.bf16.msrb.mxu0 %v4693_v23  ;;  %v4852_v52 = vld [vmem:[%s8774_s7 + $0x468] sm:$0xf]  ;;  %v5840_v23 = vld [vmem:[%s8774_s7 + $0x474] sm:$0xf0]  ;;  %v5125_v56 = vor.u32 %v5908_v46, %v5124_v45  ;;  %v5253_v57 = vor.u32 %v5940_v48, %v5252_v47  ;;  %v5790_v45 = vld [vmem:[%s8774_s7 + $0x2ec] sm:$0xf]  ;;  %v4933_v47 = vor.u32 %v5860_v39, %v4932_v38 }
 0x23c   : > { %v4853_v8 = vor.u32 %v5840_v23, %v4852_v52  ;;  %v4662_v48 = vld [vmem:[%s8774_s7 + $0x2f8] sm:$0xf0]  ;;  %v5189_v23 = vor.u32 %v5924_v41, %v5188_v40  ;;  %v5778_v38 = vld [vmem:[%s8774_s7 + $0x28c] sm:$0xf] }
 0x23d   : > { %v4665_v61 = vor.u32 %v5790_v45, %v4662_v48  ;;  %v4614_v39 = vld [vmem:[%s8774_s7 + $0x298] sm:$0xf0]  ;;  %v5710_v41 = vld [vmem:[%s8774_s7 + $0x6c] sm:$0xf] }
 0x23e   : > { %3078 = vmatpush.bf16.msra.mxu1 %v4293_v12  ;;  %3091 = vmatpush.bf16.msra.mxu2 %v4421_v13  ;;  %v4981_v12 = vor.u32 %v5872_v60, %v4980_v59  ;;  %v4836_v13 = vld [vmem:[%s8774_s7 + $0x448] sm:$0xf]  ;;  %v5722_v59 = vld [vmem:[%s8774_s7 + $0xcc] sm:$0xf]  ;;  %v4390_v60 = vld [vmem:[%s8774_s7 + $0xd8] sm:$0xf0] }
 0x23f   : > { %3104 = vmatpush.bf16.msra.mxu3 %v4549_v55  ;;  %3117 = vmatpush.bf16.msrb.mxu0 %v4677_v16  ;;  %v4964_v55 = vld [vmem:[%s8774_s7 + $0x548] sm:$0xf]  ;;  %v5868_v16 = vld [vmem:[%s8774_s7 + $0x554] sm:$0xf0]  ;;  %v5742_v45 = vld [vmem:[%s8774_s7 + $0x16c] sm:$0xf] }
 0x241   : > { %3079 = vmatmul.bf16.vlgmr.msra.gmra.mxu1 %v7096_v2  ;;  %3092 = vmatmul.bf16.vlgmr.msra.gmra.mxu2 %v7098_v3 }
 0x242   : > { %3123 = vmatpush.bf16.msrb.mxu1 %v4917_v18  ;;  %3136 = vmatpush.bf16.msrb.mxu2 %v5045_v19  ;;  %v5092_v18 = vld [vmem:[%s8774_s7 + $0x648] sm:$0xf]  ;;  %v5900_v19 = vld [vmem:[%s8774_s7 + $0x654] sm:$0xf0] }
 0x243   : > { %3149 = vmatpush.bf16.msrb.mxu3 %v5173_v24  ;;  %3162 = vmatpush.bf16.msra.mxu0 %v5301_v25  ;;  %v4837_v24 = vor.u32 %v5836_v14, %v4836_v13  ;;  %v4965_v25 = vor.u32 %v5868_v16, %v4964_v55  ;;  %v5093_v27 = vor.u32 %v5900_v19, %v5092_v18  ;;  %v5818_v13 = vld [vmem:[%s8774_s7 + $0x3cc] sm:$0xf]  ;;  %v4774_v14 = vld [vmem:[%s8774_s7 + $0x3d8] sm:$0xf0] }
 0x244   : > { %3105 = vmatmul.bf16.vlgmr.msra.gmra.mxu3 %v7100_v4  ;;  %3118 = vmatmul.bf16.vlgmr.msrb.gmra.mxu0 %v7102_v5  ;;  %v5718_v55 = vld [vmem:[%s8774_s7 + $0xac] sm:$0xf]  ;;  %v4374_v16 = vld [vmem:[%s8774_s7 + $0xb8] sm:$0xf0]  ;;  %v4777_v20 = vor.u32 %v5818_v13, %v4774_v14 }
 0x245   : > { %v5750_v18 = vld [vmem:[%s8774_s7 + $0x1ac] sm:$0xf]  ;;  %v4377_v30 = vor.u32 %v5718_v55, %v4374_v16  ;;  %v4454_v13 = vld [vmem:[%s8774_s7 + $0x158] sm:$0xf0] }
 0x246   : > { %3124 = vmatpush.bf16.msrb.mxu1 %v4901_v32  ;;  %3137 = vmatpush.bf16.msrb.mxu2 %v5029_v33  ;;  %v5076_v32 = vld [vmem:[%s8774_s7 + $0x628] sm:$0xf]  ;;  %v5896_v33 = vld [vmem:[%s8774_s7 + $0x634] sm:$0xf0]  ;;  %v4505_v31 = vor.u32 %v5750_v18, %v4502_v22  ;;  %v5770_v14 = vld [vmem:[%s8774_s7 + $0x24c] sm:$0xf] }
 0x247   : > { %3150 = vmatpush.bf16.msrb.mxu3 %v5157_v17  ;;  %3163 = vmatpush.bf16.msra.mxu0 %v5285_v35  ;;  %v4804_v17 = vld [vmem:[%s8774_s7 + $0x408] sm:$0xf]  ;;  %v4821_v35 = vor.u32 %v5832_v26, %v4820_v28  ;;  %v5077_v10 = vor.u32 %v5896_v33, %v5076_v32  ;;  %v4630_v28 = vld [vmem:[%s8774_s7 + $0x2b8] sm:$0xf0]  ;;  %v5814_v26 = vld [vmem:[%s8774_s7 + $0x3ac] sm:$0xf] }
 0x248   : > { %v4805_v46 = vor.u32 %v5828_v37, %v4804_v17  ;;  %v4486_v37 = vld [vmem:[%s8774_s7 + $0x198] sm:$0xf0] }
 0x249   : > { %v4710_v55 = vld [vmem:[%s8774_s7 + $0x358] sm:$0xf0] }
 0x24a   : > { %3125 = vmatpush.bf16.msrb.mxu1 %v4885_v9  ;;  %3138 = vmatpush.bf16.msrb.mxu2 %v5013_v11  ;;  %v5060_v9 = vld [vmem:[%s8774_s7 + $0x608] sm:$0xf]  ;;  %v5892_v11 = vld [vmem:[%s8774_s7 + $0x614] sm:$0xf0]  ;;  %v4310_v22 = vld [vmem:[%s8774_s7 + $0x38] sm:$0xf0] }
 0x24b   : > { %3151 = vmatpush.bf16.msrb.mxu3 %v5141_v42  ;;  %3164 = vmatpush.bf16.msra.mxu0 %v5269_v43  ;;  %v5726_v42 = vld [vmem:[%s8774_s7 + $0xec] sm:$0xf]  ;;  %v4406_v43 = vld [vmem:[%s8774_s7 + $0xf8] sm:$0xf0]  ;;  %v5061_v52 = vor.u32 %v5892_v11, %v5060_v9  ;;  %v4361_v11 = vor.u32 %v5714_v34, %v4358_v62 }
 0x24c   : > { %v4694_v34 = vld [vmem:[%s8774_s7 + $0x338] sm:$0xf0] }
 0x24e   : > { %3126 = vmatpush.bf16.msrb.mxu1 %v4869_v50  ;;  %3139 = vmatpush.bf16.msrb.mxu2 %v4997_v51  ;;  %v5822_v50 = vld [vmem:[%s8774_s7 + $0x3ec] sm:$0xf]  ;;  %v4790_v51 = vld [vmem:[%s8774_s7 + $0x3f8] sm:$0xf0] }
 0x24f   : > { %3152 = vmatpush.bf16.msrb.mxu3 %v5125_v56  ;;  %3165 = vmatpush.bf16.msra.mxu0 %v5253_v57  ;;  %v4409_v56 = vor.u32 %v5726_v42, %v4406_v43  ;;  %v4537_v57 = vor.u32 %v5758_v54, %v4534_v44  ;;  %v4793_v1 = vor.u32 %v5822_v50, %v4790_v51  ;;  %v4342_v42 = vld [vmem:[%s8774_s7 + $0x78] sm:$0xf0] }
 0x250   : > { %v4617_v43 = vor.u32 %v5778_v38, %v4614_v39  ;;  %v4598_v51 = vld [vmem:[%s8774_s7 + $0x278] sm:$0xf0]  ;;  %v5730_v39 = vld [vmem:[%s8774_s7 + $0x10c] sm:$0xf] }
 0x251   : > { %v4294_v38 = vld [vmem:[%s8774_s7 + $0x18] sm:$0xf0] }
 0x252   : > { %3127 = vmatpush.bf16.msrb.mxu1 %v4853_v8  ;;  %3140 = vmatpush.bf16.msrb.mxu2 %v4981_v12  ;;  %v5786_v8 = vld [vmem:[%s8774_s7 + $0x2cc] sm:$0xf]  ;;  %v4646_v12 = vld [vmem:[%s8774_s7 + $0x2d8] sm:$0xf0] }
 0x253   : > { %3153 = vmatpush.bf16.msrb.mxu3 %v5109_v15  ;;  %3166 = vmatpush.bf16.msra.mxu0 %v5237_v21  ;;  %v4393_v15 = vor.u32 %v5722_v59, %v4390_v60  ;;  %v4521_v21 = vor.u32 %v5754_v6, %v4518_v7  ;;  %v4649_v19 = vor.u32 %v5786_v8, %v4646_v12  ;;  %v4326_v6 = vld [vmem:[%s8774_s7 + $0x58] sm:$0xf0]  ;;  %v5738_v12 = vld [vmem:[%s8774_s7 + $0x14c] sm:$0xf] }
 0x254   : > { %v4345_v59 = vor.u32 %v5710_v41, %v4342_v42  ;;  %v5794_v41 = vld [vmem:[%s8774_s7 + $0x30c] sm:$0xf]  ;;  %v4678_v42 = vld [vmem:[%s8774_s7 + $0x318] sm:$0xf0] }
 0x256   : > { %3128 = vmatpush.bf16.msrb.mxu1 %v4837_v24  ;;  %3141 = vmatpush.bf16.msrb.mxu2 %v4965_v25  ;;  %v5782_v24 = vld [vmem:[%s8774_s7 + $0x2ac] sm:$0xf]  ;;  %v7946_v25 = vld [vmem:[%s8775_s8] sm:$0xf] }
 0x257   : > { %3154 = vmatpush.bf16.msrb.mxu3 %v5093_v27  ;;  %3167 = vmatpush.bf16.msra.mxu0 %v5221_v29  ;;  %v4758_v27 = vld [vmem:[%s8774_s7 + $0x3b8] sm:$0xf0]  ;;  %v2855_v32 = vperm.slane %v7946_v25, 0  ;;  %v4633_v17 = vor.u32 %v5782_v24, %v4630_v28 }
 0x25a   : > { %3129 = vmatpush.bf16.msrb.mxu1 %v4821_v35  ;;  %3142 = vmatpush.bf16.msrb.mxu2 %v4949_v36  ;;  %v4761_v35 = vor.u32 %v5814_v26, %v4758_v27  ;;  %v5746_v36 = vld [vmem:[%s8774_s7 + $0x18c] sm:$0xf] }
 0x25b   : > { %3155 = vmatpush.bf16.msrb.mxu3 %v5077_v10  ;;  %3168 = vmatpush.bf16.msra.mxu0 %v5205_v49  ;;  %v5810_v10 = vld [vmem:[%s8774_s7 + $0x38c] sm:$0xf]  ;;  %v4742_v49 = vld [vmem:[%s8774_s7 + $0x398] sm:$0xf0]  ;;  %v4489_v40 = vor.u32 %v5746_v36, %v4486_v37 }
 0x25c   : > { %v4745_v54 = vor.u32 %v5810_v10, %v4742_v49  ;;  %v5734_v27 = vld [vmem:[%s8774_s7 + $0x12c] sm:$0xf]  ;;  %v4422_v10 = vld [vmem:[%s8774_s7 + $0x118] sm:$0xf0] }
 0x25d   : > { %v2872_v29 = vpop.f32.mrf.mxu1 }
 0x25e   : > { %3130 = vmatpush.bf16.msrb.mxu1 %v4805_v46  ;;  %3143 = vmatpush.bf16.msrb.mxu2 %v4933_v47  ;;  %v2911_v33 = vpop.f32.mrf.mxu0  ;;  %v2873_v9 = vadd.f32 %v2872_v29, %v2855_v32  ;;  %v4470_v46 = vld [vmem:[%s8774_s7 + $0x178] sm:$0xf0]  ;;  %v5774_v47 = vld [vmem:[%s8774_s7 + $0x26c] sm:$0xf] }
 0x25f   : > { %3156 = vmatpush.bf16.msrb.mxu3 %v5061_v52  ;;  %3169 = vmatpush.bf16.msra.mxu0 %v5189_v23  ;;  %v5806_v52 = vld [vmem:[%s8774_s7 + $0x36c] sm:$0xf]  ;;  %v4726_v23 = vld [vmem:[%s8774_s7 + $0x378] sm:$0xf0]  ;;  %v4473_v60 = vor.u32 %v5742_v45, %v4470_v46  ;;  %v4601_v7 = vor.u32 %v5774_v47, %v4598_v51 }
 0x260   : > { %v4729_v8 = vor.u32 %v5806_v52, %v4726_v23  ;;  %v4438_v29 = vld [vmem:[%s8774_s7 + $0x138] sm:$0xf0]  ;;  %v5918_v46 = vld [vmem:[%s8774_s7 + $0x6ec] sm:$0xf] }
 0x261   : > { %3131 = vmatmul.bf16.vlgmr.msrb.gmra.mxu1 %v7208_v53  ;;  %3144 = vmatmul.bf16.vlgmr.msrb.gmra.mxu2 %v7210_v58  ;;  %v4566_v32 = vld [vmem:[%s8774_s7 + $0x238] sm:$0xf0]  ;;  %v4441_v36 = vor.u32 %v5734_v27, %v4438_v29  ;;  %v5950_v52 = vld [vmem:[%s8774_s7 + $0x7ec] sm:$0xf] }
 0x262   : > { %3175 = vmatpush.bf16.msra.mxu1 %v4409_v56  ;;  %3188 = vmatpush.bf16.msra.mxu2 %v4537_v57  ;;  %v5046_v45 = vld [vmem:[%s8774_s7 + $0x5f8] sm:$0xf0]  ;;  %v5846_v27 = vld [vmem:[%s8774_s7 + $0x4ac] sm:$0xf] }
 0x263   : > { %3201 = vmatpush.bf16.msra.mxu3 %v4665_v61  ;;  %3214 = vmatpush.bf16.msrb.mxu0 %v4793_v1  ;;  %v2885_v44 = vpop.f32.mrf.mxu2  ;;  %v5706_v1 = vld [vmem:[%s8774_s7 + $0x4c] sm:$0xf]  ;;  %v5174_v51 = vld [vmem:[%s8774_s7 + $0x6f8] sm:$0xf0] }
 0x264   : > { %3157 = vmatmul.bf16.vlgmr.msrb.gmra.mxu3 %v7218_v63  ;;  %3170 = vmatmul.bf16.vlgmr.msra.gmra.mxu0 %v7220_v0  ;;  %v2886_v48 = vadd.f32 %v2885_v44, %v2873_v9  ;;  %v2898_v50 = vpop.f32.mrf.mxu3  ;;  %v4329_v18 = vor.u32 %v5706_v1, %v4326_v6  ;;  %v5886_v44 = vld [vmem:[%s8774_s7 + $0x5ec] sm:$0xf]  ;;  %v5302_v23 = vld [vmem:[%s8774_s7 + $0x7f8] sm:$0xf0] }
 0x265   : > { %v2874_v56 = vpop.f32.mrf.mxu1  ;;  %v4886_v29 = vld [vmem:[%s8774_s7 + $0x4b8] sm:$0xf0] }
 0x266   : > { %3176 = vmatpush.bf16.msra.mxu1 %v4393_v15  ;;  %3189 = vmatpush.bf16.msra.mxu2 %v4521_v21  ;;  %v2899_v57 = vadd.f32 %v2898_v50, %v2886_v48  ;;  %v2913_v61 = vpop.f32.mrf.mxu0  ;;  %v4582_v15 = vld [vmem:[%s8774_s7 + $0x258] sm:$0xf0]  ;;  %v5802_v21 = vld [vmem:[%s8774_s7 + $0x34c] sm:$0xf]  ;;  %v4425_v50 = vor.u32 %v5730_v39, %v4422_v10 }
 0x267   : > { %3202 = vmatpush.bf16.msra.mxu3 %v4649_v19  ;;  %3215 = vmatpush.bf16.msrb.mxu0 %v4777_v20  ;;  %v4457_v19 = vor.u32 %v5738_v12, %v4454_v13  ;;  %v5702_v20 = vld [vmem:[%s8774_s7 + $0x2c] sm:$0xf]  ;;  %v4585_v24 = vor.u32 %v5770_v14, %v4582_v15  ;;  %v4713_v28 = vor.u32 %v5802_v21, %v4710_v55  ;;  %v5030_v21 = vld [vmem:[%s8774_s7 + $0x5d8] sm:$0xf0] }
 0x268   : > { %v2912_v16 = vadd.f32 %v2911_v33, %v2899_v57  ;;  %v5798_v33 = vld [vmem:[%s8774_s7 + $0x32c] sm:$0xf]  ;;  %v4681_v57 = vor.u32 %v5794_v41, %v4678_v42  ;;  %v5049_v61 = vor.u32 %v5886_v44, %v5046_v45  ;;  %v5177_v12 = vor.u32 %v5918_v46, %v5174_v51  ;;  %v4870_v39 = vld [vmem:[%s8774_s7 + $0x498] sm:$0xf0] }
 0x269   : > { %v4697_v9 = vor.u32 %v5798_v33, %v4694_v34  ;;  %v5305_v13 = vor.u32 %v5950_v52, %v5302_v23  ;;  %v5882_v15 = vld [vmem:[%s8774_s7 + $0x5cc] sm:$0xf]  ;;  %v5014_v33 = vld [vmem:[%s8774_s7 + $0x5b8] sm:$0xf0] }
 0x26a   : > { %3177 = vmatpush.bf16.msra.mxu1 %v4377_v30  ;;  %3190 = vmatpush.bf16.msra.mxu2 %v4505_v31  ;;  %v5766_v30 = vld [vmem:[%s8774_s7 + $0x22c] sm:$0xf]  ;;  %v5254_v41 = vld [vmem:[%s8774_s7 + $0x798] sm:$0xf0] }
 0x26b   : > { %3203 = vmatpush.bf16.msra.mxu3 %v4633_v17  ;;  %3216 = vmatpush.bf16.msrb.mxu0 %v4761_v35  ;;  %v2887_v26 = vpop.f32.mrf.mxu2  ;;  %v5698_v17 = vld [vmem:[%s8774_s7 + $0xc] sm:$0xf]  ;;  %v4313_v35 = vor.u32 %v5702_v20, %v4310_v22  ;;  %v4569_v49 = vor.u32 %v5766_v30, %v4566_v32  ;;  %v5286_v22 = vld [vmem:[%s8774_s7 + $0x7d8] sm:$0xf0] }
 0x26c   : > { %v2900_v31 = vpop.f32.mrf.mxu3  ;;  %v4297_v48 = vor.u32 %v5698_v17, %v4294_v38  ;;  %v5914_v55 = vld [vmem:[%s8774_s7 + $0x6cc] sm:$0xf]  ;;  %v5033_v26 = vor.u32 %v5882_v15, %v5030_v21  ;;  %v4854_v46 = vld [vmem:[%s8774_s7 + $0x478] sm:$0xf0] }
 0x26d   : > { %v2924_v62 = vpop.f32.mrf.mxu1  ;;  %v5946_v20 = vld [vmem:[%s8774_s7 + $0x7cc] sm:$0xf]  ;;  %v4982_v51 = vld [vmem:[%s8774_s7 + $0x578] sm:$0xf0] }
 0x26e   : > { %3178 = vmatpush.bf16.msra.mxu1 %v4361_v11  ;;  %3191 = vmatpush.bf16.msra.mxu2 %v4489_v40  ;;  %v2963_v37 = vpop.f32.mrf.mxu0  ;;  %v5762_v11 = vld [vmem:[%s8774_s7 + $0x20c] sm:$0xf]  ;;  %v4550_v40 = vld [vmem:[%s8774_s7 + $0x218] sm:$0xf0]  ;;  %v2925_v47 = vadd.f32 %v2924_v62, %v2912_v16  ;;  %v5289_v31 = vor.u32 %v5946_v20, %v5286_v22 }
 0x26f   : > { %3204 = vmatpush.bf16.msra.mxu3 %v4617_v43  ;;  %3217 = vmatpush.bf16.msrb.mxu0 %v4745_v54  ;;  %v5854_v43 = vld [vmem:[%s8774_s7 + $0x4ec] sm:$0xf]  ;;  %v4918_v54 = vld [vmem:[%s8774_s7 + $0x4f8] sm:$0xf0]  ;;  %v4553_v56 = vor.u32 %v5762_v11, %v4550_v40 }
 0x270   : > { %v5878_v32 = vld [vmem:[%s8774_s7 + $0x5ac] sm:$0xf]  ;;  %v5142_v62 = vld [vmem:[%s8774_s7 + $0x6b8] sm:$0xf0] }
 0x271   : > { %v5910_v34 = vld [vmem:[%s8774_s7 + $0x6ac] sm:$0xf]  ;;  %v5126_v11 = vld [vmem:[%s8774_s7 + $0x698] sm:$0xf0] }
 0x272   : > { %3179 = vmatpush.bf16.msra.mxu1 %v4345_v59  ;;  %3192 = vmatpush.bf16.msra.mxu2 %v4473_v60  ;;  %v4921_v60 = vor.u32 %v5854_v43, %v4918_v54  ;;  %v5942_v17 = vld [vmem:[%s8774_s7 + $0x7ac] sm:$0xf]  ;;  %v5145_v10 = vor.u32 %v5910_v34, %v5142_v62  ;;  %v5110_v23 = vld [vmem:[%s8774_s7 + $0x678] sm:$0xf0] }
 0x273   : > { %3205 = vmatpush.bf16.msra.mxu3 %v4601_v7  ;;  %3218 = vmatpush.bf16.msrb.mxu0 %v4729_v8  ;;  %v2937_v59 = vpop.f32.mrf.mxu2  ;;  %v5850_v7 = vld [vmem:[%s8774_s7 + $0x4cc] sm:$0xf]  ;;  %v4902_v8 = vld [vmem:[%s8774_s7 + $0x4d8] sm:$0xf0] }
 0x274   : > { %v2938_v1 = vadd.f32 %v2937_v59, %v2925_v47  ;;  %v2950_v6 = vpop.f32.mrf.mxu3  ;;  %v5842_v38 = vld [vmem:[%s8774_s7 + $0x48c] sm:$0xf]  ;;  %v5094_v21 = vld [vmem:[%s8774_s7 + $0x658] sm:$0xf0] }
 0x275   : > { %v2926_v14 = vpop.f32.mrf.mxu1  ;;  %v5938_v40 = vld [vmem:[%s8774_s7 + $0x78c] sm:$0xf]  ;;  %v4873_v54 = vor.u32 %v5842_v38, %v4870_v39  ;;  %v5206_v62 = vld [vmem:[%s8774_s7 + $0x738] sm:$0xf0] }
 0x276   : > { %3180 = vmatpush.bf16.msra.mxu1 %v4329_v18  ;;  %3193 = vmatpush.bf16.msra.mxu2 %v4457_v19  ;;  %v2951_v16 = vadd.f32 %v2950_v6, %v2938_v1  ;;  %v2965_v18 = vpop.f32.mrf.mxu0  ;;  %v5158_v19 = vld [vmem:[%s8774_s7 + $0x6d8] sm:$0xf0]  ;;  %v5838_v45 = vld [vmem:[%s8774_s7 + $0x46c] sm:$0xf] }
 0x277   : > { %3206 = vmatpush.bf16.msra.mxu3 %v4585_v24  ;;  %3219 = vmatpush.bf16.msrb.mxu0 %v4713_v28  ;;  %v4905_v28 = vor.u32 %v5850_v7, %v4902_v8  ;;  %v5161_v30 = vor.u32 %v5914_v55, %v5158_v19  ;;  %v5902_v52 = vld [vmem:[%s8774_s7 + $0x66c] sm:$0xf]  ;;  %v4857_v59 = vor.u32 %v5838_v45, %v4854_v46  ;;  %v4838_v1 = vld [vmem:[%s8774_s7 + $0x458] sm:$0xf0] }
 0x278   : > { %v8130_v24 = vadd.f32 %v2963_v37, %v2951_v16  ;;  %v5113_v6 = vor.u32 %v5902_v52, %v5110_v23  ;;  %v5898_v14 = vld [vmem:[%s8774_s7 + $0x64c] sm:$0xf]  ;;  %v5222_v16 = vld [vmem:[%s8774_s7 + $0x758] sm:$0xf0]  ;;  %v5356_v23 = vld [vmem:[%s8776_s9 + $0x60] sm:$0xf] }
 0x279   : > { %v5930_v55 = vld [vmem:[%s8774_s7 + $0x74c] sm:$0xf] }
 0x27a   : > { %3181 = vmatpush.bf16.msra.mxu1 %v4313_v35  ;;  %3194 = vmatpush.bf16.msra.mxu2 %v4441_v36  ;;  %v5270_v35 = vld [vmem:[%s8774_s7 + $0x7b8] sm:$0xf0]  ;;  %v5926_v34 = vld [vmem:[%s8774_s7 + $0x72c] sm:$0xf] }
 0x27b   : > { %3207 = vmatpush.bf16.msra.mxu3 %v4569_v49  ;;  %3220 = vmatpush.bf16.msrb.mxu0 %v4697_v9  ;;  %v2939_v36 = vpop.f32.mrf.mxu2  ;;  %v4998_v49 = vld [vmem:[%s8774_s7 + $0x598] sm:$0xf0]  ;;  %v5906_v9 = vld [vmem:[%s8774_s7 + $0x68c] sm:$0xf]  ;;  %v5209_v38 = vor.u32 %v5926_v34, %v5206_v62 }
 0x27c   : > { %v2952_v37 = vpop.f32.mrf.mxu3  ;;  %v5129_v47 = vor.u32 %v5906_v9, %v5126_v11  ;;  %v5826_v36 = vld [vmem:[%s8774_s7 + $0x40c] sm:$0xf]  ;;  %v5190_v11 = vld [vmem:[%s8774_s7 + $0x718] sm:$0xf0] }
 0x27d   : > { %v5922_v9 = vld [vmem:[%s8774_s7 + $0x70c] sm:$0xf] }
 0x27e   : > { %3182 = vmatpush.bf16.msra.mxu1 %v4297_v48  ;;  %3195 = vmatpush.bf16.msra.mxu2 %v4425_v50  ;;  %v8184_v42 = vpop.f32.mrf.mxu1  ;;  %v5257_v48 = vor.u32 %v5938_v40, %v5254_v41  ;;  %v5870_v50 = vld [vmem:[%s8774_s7 + $0x56c] sm:$0xf]  ;;  %v5364_v40 = vld [vmem:[%s8776_s9 + $0x70] sm:$0xf]  ;;  %v5968_v41 = vld [vmem:[%s8776_s9 + $0x74] sm:$0xf0] }
 0x27f   : > { %3208 = vmatpush.bf16.msra.mxu3 %v4553_v56  ;;  %3221 = vmatpush.bf16.msrb.mxu0 %v4681_v57  ;;  %v5934_v56 = vld [vmem:[%s8774_s7 + $0x76c] sm:$0xf]  ;;  %v5238_v57 = vld [vmem:[%s8774_s7 + $0x778] sm:$0xf0] }
 0x280   : > { %v5241_v7 = vor.u32 %v5934_v56, %v5238_v57  ;;  %v5966_v56 = vld [vmem:[%s8776_s9 + $0x64] sm:$0xf0]  ;;  %v5420_v57 = vld [vmem:[%s8776_s9 + $0xe0] sm:$0xf] }
 0x281   : > { %3183 = vmatmul.bf16.vlgmr.msra.gmra.mxu1 %v7096_v2  ;;  %3196 = vmatmul.bf16.vlgmr.msra.gmra.mxu2 %v7098_v3  ;;  %v4889_v2 = vor.u32 %v5846_v27, %v4886_v29  ;;  %v5017_v3 = vor.u32 %v5878_v32, %v5014_v33  ;;  %v8186_v43 = vpop.f32.mrf.mxu0  ;;  %v5097_v27 = vor.u32 %v5898_v14, %v5094_v21  ;;  %v5894_v32 = vld [vmem:[%s8774_s7 + $0x62c] sm:$0xf]  ;;  %v5078_v33 = vld [vmem:[%s8774_s7 + $0x638] sm:$0xf0]  ;;  %v5340_v14 = vld [vmem:[%s8776_s9 + $0x40] sm:$0xf] }
 0x282   : > { %3227 = vmatpush.bf16.msrb.mxu1 %v4921_v60  ;;  %3240 = vmatpush.bf16.msrb.mxu2 %v5049_v61  ;;  %v4985_v60 = vor.u32 %v5870_v50, %v4982_v51  ;;  %v5834_v61 = vld [vmem:[%s8774_s7 + $0x44c] sm:$0xf]  ;;  %v5225_v29 = vor.u32 %v5930_v55, %v5222_v16  ;;  %v5081_v37 = vor.u32 %v5894_v32, %v5078_v33  ;;  %v2856_v50 = vperm.slane %v7946_v25, 1  ;;  %v5962_v21 = vld [vmem:[%s8776_s9 + $0x44] sm:$0xf0] }
 0x283   : > { %3253 = vmatpush.bf16.msrb.mxu3 %v5177_v12  ;;  %3266 = vmatpush.bf16.msra.mxu0 %v5305_v13  ;;  %v5866_v12 = vld [vmem:[%s8774_s7 + $0x54c] sm:$0xf]  ;;  %v4966_v13 = vld [vmem:[%s8774_s7 + $0x558] sm:$0xf0]  ;;  %v4841_v20 = vor.u32 %v5834_v61, %v4838_v1  ;;  %v5365_v51 = vor.u32 %v5968_v41, %v5364_v40  ;;  %v5357_v61 = vor.u32 %v5966_v56, %v5356_v23  ;;  %v5492_v16 = vld [vmem:[%s8776_s9 + $0x170] sm:$0xf] }
 0x284   : > { %3209 = vmatmul.bf16.vlgmr.msra.gmra.mxu3 %v7100_v4  ;;  %3222 = vmatmul.bf16.vlgmr.msrb.gmra.mxu0 %v7102_v5  ;;  %v5273_v4 = vor.u32 %v5942_v17, %v5270_v35  ;;  %v5874_v5 = vld [vmem:[%s8774_s7 + $0x58c] sm:$0xf]  ;;  %v8218_v8 = vpop.f32.mrf.mxu2  ;;  %v4969_v22 = vor.u32 %v5866_v12, %v4966_v13  ;;  %v5980_v12 = vld [vmem:[%s8776_s9 + $0xd4] sm:$0xf0]  ;;  %v5484_v32 = vld [vmem:[%s8776_s9 + $0x160] sm:$0xf] }
 0x285   : > { %v5001_v44 = vor.u32 %v5874_v5, %v4998_v49  ;;  %v5062_v5 = vld [vmem:[%s8774_s7 + $0x618] sm:$0xf0]  ;;  %v5998_v33 = vld [vmem:[%s8776_s9 + $0x164] sm:$0xf0] }
 0x286   : > { %3228 = vmatpush.bf16.msrb.mxu1 %v4905_v28  ;;  %3241 = vmatpush.bf16.msrb.mxu2 %v5033_v26  ;;  %v2978_v18 = vpop.f32.mrf.mxu1  ;;  %v5830_v28 = vld [vmem:[%s8774_s7 + $0x42c] sm:$0xf]  ;;  %v4822_v26 = vld [vmem:[%s8774_s7 + $0x438] sm:$0xf0] }
 0x287   : > { %3254 = vmatpush.bf16.msrb.mxu3 %v5161_v30  ;;  %3267 = vmatpush.bf16.msra.mxu0 %v5289_v31  ;;  %v8229_v15 = vpop.f32.mrf.mxu3  ;;  %v5862_v30 = vld [vmem:[%s8774_s7 + $0x52c] sm:$0xf]  ;;  %v4950_v31 = vld [vmem:[%s8774_s7 + $0x538] sm:$0xf0]  ;;  %v4825_v17 = vor.u32 %v5830_v28, %v4822_v26  ;;  %v6000_v18 = vld [vmem:[%s8776_s9 + $0x174] sm:$0xf0] }
 0x288   : > { %v4953_v35 = vor.u32 %v5862_v30, %v4950_v31  ;;  %v5332_v28 = vld [vmem:[%s8776_s9 + $0x30] sm:$0xf]  ;;  %v5493_v26 = vor.u32 %v6000_v18, %v5492_v16  ;;  %v5358_v16 = vld [vmem:[%s8776_s9 + $0x68] sm:$0xf0] }
 0x289   : > { %v3017_v19 = vpop.f32.mrf.mxu0  ;;  %v5422_v18 = vld [vmem:[%s8776_s9 + $0xe8] sm:$0xf0] }
 0x28a   : > { %3229 = vmatpush.bf16.msrb.mxu1 %v4889_v2  ;;  %3242 = vmatpush.bf16.msrb.mxu2 %v5017_v3  ;;  %v4806_v2 = vld [vmem:[%s8774_s7 + $0x418] sm:$0xf0]  ;;  %v5858_v3 = vld [vmem:[%s8774_s7 + $0x50c] sm:$0xf] }
 0x28b   : > { %3255 = vmatpush.bf16.msrb.mxu3 %v5145_v10  ;;  %3268 = vmatpush.bf16.msra.mxu0 %v5273_v4  ;;  %v4934_v10 = vld [vmem:[%s8774_s7 + $0x518] sm:$0xf0]  ;;  %v5890_v4 = vld [vmem:[%s8774_s7 + $0x60c] sm:$0xf]  ;;  %v4809_v45 = vor.u32 %v5826_v36, %v4806_v2  ;;  %v5958_v36 = vld [vmem:[%s8776_s9 + $0x24] sm:$0xf0] }
 0x28c   : > { %v2991_v39 = vpop.f32.mrf.mxu2  ;;  %v4937_v46 = vor.u32 %v5858_v3, %v4934_v10  ;;  %v5388_v2 = vld [vmem:[%s8776_s9 + $0xa0] sm:$0xf]  ;;  %v5974_v3 = vld [vmem:[%s8776_s9 + $0xa4] sm:$0xf0]  ;;  %v5476_v10 = vld [vmem:[%s8776_s9 + $0x150] sm:$0xf] }
 0x28e   : > { %3230 = vmatpush.bf16.msrb.mxu1 %v4873_v54  ;;  %3243 = vmatpush.bf16.msrb.mxu2 %v5001_v44  ;;  %v5428_v54 = vld [vmem:[%s8776_s9 + $0xf0] sm:$0xf]  ;;  %v5984_v44 = vld [vmem:[%s8776_s9 + $0xf4] sm:$0xf0] }
 0x28f   : > { %3256 = vmatpush.bf16.msrb.mxu3 %v5129_v47  ;;  %3269 = vmatpush.bf16.msra.mxu0 %v5257_v48  ;;  %v3004_v49 = vpop.f32.mrf.mxu3  ;;  %v5065_v47 = vor.u32 %v5890_v4, %v5062_v5  ;;  %v5193_v48 = vor.u32 %v5922_v9, %v5190_v11  ;;  %v5429_v52 = vor.u32 %v5984_v44, %v5428_v54  ;;  %v5996_v4 = vld [vmem:[%s8776_s9 + $0x154] sm:$0xf0]  ;;  %v5316_v11 = vld [vmem:[%s8776_s9 + $0x10] sm:$0xf] }
 0x290   : > { %v5389_v9 = vor.u32 %v5974_v3, %v5388_v2  ;;  %v5477_v40 = vor.u32 %v5996_v4, %v5476_v10  ;;  %v5956_v54 = vld [vmem:[%s8776_s9 + $0x14] sm:$0xf0]  ;;  %v5380_v44 = vld [vmem:[%s8776_s9 + $0x90] sm:$0xf]  ;;  %v5977_v2 = vld [vmem:[%s8776_s9 + $0xc4] sm:$0xf] }
 0x291   : > { %v5406_v3 = vld [vmem:[%s8776_s9 + $0xc8] sm:$0xf0]  ;;  %v5999_v10 = vld [vmem:[%s8776_s9 + $0x174] sm:$0xf]  ;;  %v5494_v4 = vld [vmem:[%s8776_s9 + $0x178] sm:$0xf0] }
 0x292   : > { %3231 = vmatpush.bf16.msrb.mxu1 %v4857_v59  ;;  %3244 = vmatpush.bf16.msrb.mxu2 %v4985_v60  ;;  %v5982_v59 = vld [vmem:[%s8776_s9 + $0xe4] sm:$0xf0]  ;;  %v2977_v60 = vadd.f32 %v8184_v42, %v2856_v50  ;;  %v5412_v42 = vld [vmem:[%s8776_s9 + $0xd0] sm:$0xf] }
 0x293   : > { %3257 = vmatpush.bf16.msrb.mxu3 %v5113_v6  ;;  %3270 = vmatpush.bf16.msra.mxu0 %v5241_v7  ;;  %v5421_v1 = vor.u32 %v5982_v59, %v5420_v57  ;;  %v5348_v6 = vld [vmem:[%s8776_s9 + $0x50] sm:$0xf]  ;;  %v5964_v7 = vld [vmem:[%s8776_s9 + $0x54] sm:$0xf0]  ;;  %v5372_v59 = vld [vmem:[%s8776_s9 + $0x80] sm:$0xf] }
 0x294   : > { %v2990_v13 = vadd.f32 %v8218_v8, %v2977_v60  ;;  %v5404_v8 = vld [vmem:[%s8776_s9 + $0xc0] sm:$0xf]  ;;  %v5970_v60 = vld [vmem:[%s8776_s9 + $0x84] sm:$0xf0] }
 0x296   : > { %3232 = vmatpush.bf16.msrb.mxu1 %v4841_v20  ;;  %3245 = vmatpush.bf16.msrb.mxu2 %v4969_v22  ;;  %v5341_v20 = vor.u32 %v5962_v21, %v5340_v14  ;;  %v5373_v14 = vor.u32 %v5970_v60, %v5372_v59 }
 0x297   : > { %3258 = vmatpush.bf16.msrb.mxu3 %v5097_v27  ;;  %3271 = vmatpush.bf16.msra.mxu0 %v5225_v29  ;;  %v5396_v27 = vld [vmem:[%s8776_s9 + $0xb0] sm:$0xf]  ;;  %v5976_v29 = vld [vmem:[%s8776_s9 + $0xb4] sm:$0xf0] }
 0x298   : > { %v5397_v62 = vor.u32 %v5976_v29, %v5396_v27 }
 0x29a   : > { %3233 = vmatpush.bf16.msrb.mxu1 %v4825_v17  ;;  %3246 = vmatpush.bf16.msrb.mxu2 %v4953_v35  ;;  %v5324_v17 = vld [vmem:[%s8776_s9 + $0x20] sm:$0xf]  ;;  %v5485_v35 = vor.u32 %v5998_v33, %v5484_v32  ;;  %v5350_v32 = vld [vmem:[%s8776_s9 + $0x58] sm:$0xf0]  ;;  %v5979_v33 = vld [vmem:[%s8776_s9 + $0xd4] sm:$0xf] }
 0x29b   : > { %3259 = vmatpush.bf16.msrb.mxu3 %v5081_v37  ;;  %3272 = vmatpush.bf16.msra.mxu0 %v5209_v38  ;;  %v5325_v49 = vor.u32 %v5958_v36, %v5324_v17  ;;  %v5342_v36 = vld [vmem:[%s8776_s9 + $0x48] sm:$0xf0] }
 0x29e   : > { %3234 = vmatpush.bf16.msrb.mxu1 %v4809_v45  ;;  %3247 = vmatpush.bf16.msrb.mxu2 %v4937_v46  ;;  %v3028_v55 = vpop.f32.mrf.mxu1  ;;  %v5972_v45 = vld [vmem:[%s8776_s9 + $0x94] sm:$0xf0]  ;;  %v5468_v46 = vld [vmem:[%s8776_s9 + $0x140] sm:$0xf] }
 0x29f   : > { %3260 = vmatpush.bf16.msrb.mxu3 %v5065_v47  ;;  %3273 = vmatpush.bf16.msra.mxu0 %v5193_v48  ;;  %v5994_v47 = vld [vmem:[%s8776_s9 + $0x144] sm:$0xf0]  ;;  %v5317_v48 = vor.u32 %v5956_v54, %v5316_v11  ;;  %v5381_v50 = vor.u32 %v5972_v45, %v5380_v44  ;;  %v5959_v11 = vld [vmem:[%s8776_s9 + $0x34] sm:$0xf]  ;;  %v5334_v54 = vld [vmem:[%s8776_s9 + $0x38] sm:$0xf0] }
 0x2a0   : > { %v5469_v23 = vor.u32 %v5994_v47, %v5468_v46  ;;  %v5975_v44 = vld [vmem:[%s8776_s9 + $0xb4] sm:$0xf]  ;;  %v5398_v45 = vld [vmem:[%s8776_s9 + $0xb8] sm:$0xf0]  ;;  %v5997_v46 = vld [vmem:[%s8776_s9 + $0x164] sm:$0xf] }
 0x2a1   : > { %3235 = vmatmul.bf16.vlgmr.msrb.gmra.mxu1 %v7208_v53  ;;  %3248 = vmatmul.bf16.vlgmr.msrb.gmra.mxu2 %v7210_v58  ;;  %v5349_v53 = vor.u32 %v5964_v7, %v5348_v6  ;;  %v5413_v58 = vor.u32 %v5980_v12, %v5412_v42  ;;  %v3067_v19 = vpop.f32.mrf.mxu0  ;;  %v5366_v6 = vld [vmem:[%s8776_s9 + $0x78] sm:$0xf0]  ;;  %v5983_v7 = vld [vmem:[%s8776_s9 + $0xf4] sm:$0xf]  ;;  %v5460_v12 = vld [vmem:[%s8776_s9 + $0x130] sm:$0xf] }
 0x2a2   : > { %3677 = vmatpush.bf16.msra.mxu1 %v5365_v51  ;;  %3690 = vmatpush.bf16.msra.mxu2 %v5429_v52  ;;  %v5308_v51 = vld [vmem:[%s8776_s9] sm:$0xf]  ;;  %v5954_v52 = vld [vmem:[%s8776_s9 + $0x4] sm:$0xf0]  ;;  %v5430_v42 = vld [vmem:[%s8776_s9 + $0xf8] sm:$0xf0] }
 0x2a3   : > { %3261 = vmatmul.bf16.vlgmr.msrb.gmra.mxu3 %v7218_v63  ;;  %3274 = vmatmul.bf16.vlgmr.msra.gmra.mxu0 %v7220_v0  ;;  %v5978_v63 = vld [vmem:[%s8776_s9 + $0xc4] sm:$0xf0]  ;;  %v3003_v0 = vadd.f32 %v8229_v15, %v2990_v13  ;;  %v5960_v15 = vld [vmem:[%s8776_s9 + $0x34] sm:$0xf0]  ;;  %v5486_v47 = vld [vmem:[%s8776_s9 + $0x168] sm:$0xf0] }
 0x2a4   : > { %v5405_v22 = vor.u32 %v5978_v63, %v5404_v8  ;;  %3703 = vmatpush.bf16.msra.mxu3 %v5493_v26  ;;  %v5333_v31 = vor.u32 %v5960_v15, %v5332_v28  ;;  %v5992_v13 = vld [vmem:[%s8776_s9 + $0x134] sm:$0xf0]  ;;  %v5444_v15 = vld [vmem:[%s8776_s9 + $0x110] sm:$0xf] }
 0x2a5   : > { %v3016_v30 = vadd.f32 %v8186_v43, %v3003_v0  ;;  %v3041_v43 = vpop.f32.mrf.mxu2  ;;  %v5461_v21 = vor.u32 %v5992_v13, %v5460_v12  ;;  %v5433_v0 = vor.u32 %v5983_v7, %v5430_v42  ;;  %v5988_v26 = vld [vmem:[%s8776_s9 + $0x114] sm:$0xf0]  ;;  %v5955_v12 = vld [vmem:[%s8776_s9 + $0x14] sm:$0xf] }
 0x2a6   : > { %3678 = vmatpush.bf16.msra.mxu1 %v5357_v61  ;;  %3691 = vmatpush.bf16.msra.mxu2 %v5421_v1  ;;  %v3030_v39 = vpop.f32.mrf.mxu1  ;;  %v5967_v61 = vld [vmem:[%s8776_s9 + $0x74] sm:$0xf] }
 0x2a7   : > { %v3029_v34 = vadd.f32 %v3028_v55, %v3016_v30  ;;  %v3054_v38 = vpop.f32.mrf.mxu3  ;;  %v5369_v63 = vor.u32 %v5967_v61, %v5366_v6  ;;  %v5965_v55 = vld [vmem:[%s8776_s9 + $0x64] sm:$0xf]  ;;  %v5995_v61 = vld [vmem:[%s8776_s9 + $0x154] sm:$0xf] }
 0x2a8   : > { %3704 = vmatpush.bf16.msra.mxu3 %v5485_v35  ;;  %v5361_v29 = vor.u32 %v5965_v55, %v5358_v16  ;;  %v5953_v16 = vld [vmem:[%s8776_s9 + $0x4] sm:$0xf] }
 0x2a9   : > { %v3042_v37 = vadd.f32 %v3041_v43, %v3029_v34  ;;  %v3069_v5 = vpop.f32.mrf.mxu0  ;;  %v5414_v34 = vld [vmem:[%s8776_s9 + $0xd8] sm:$0xf0]  ;;  %v5961_v43 = vld [vmem:[%s8776_s9 + $0x44] sm:$0xf] }
 0x2aa   : > { %3679 = vmatpush.bf16.msra.mxu1 %v5349_v53  ;;  %3692 = vmatpush.bf16.msra.mxu2 %v5413_v58  ;;  %v3279_v53 = vmax.f32 %v8130_v24, 0.0  ;;  %v5309_v58 = vor.u32 %v5954_v52, %v5308_v51  ;;  %v5981_v24 = vld [vmem:[%s8776_s9 + $0xe4] sm:$0xf]  ;;  %v5417_v35 = vor.u32 %v5979_v33, %v5414_v34  ;;  %v5489_v52 = vor.u32 %v5997_v46, %v5486_v47  ;;  %v5454_v34 = vld [vmem:[%s8776_s9 + $0x128] sm:$0xf0] }
 0x2ab   : > { %v3055_v41 = vadd.f32 %v3054_v38, %v3042_v37  ;;  %v5425_v30 = vor.u32 %v5981_v24, %v5422_v18  ;;  %v5436_v37 = vld [vmem:[%s8776_s9 + $0x100] sm:$0xf]  ;;  %v5986_v38 = vld [vmem:[%s8776_s9 + $0x104] sm:$0xf0]  ;;  %v5957_v51 = vld [vmem:[%s8776_s9 + $0x24] sm:$0xf] }
 0x2ac   : > { %3705 = vmatpush.bf16.msra.mxu3 %v5477_v40  ;;  %v5437_v39 = vor.u32 %v5986_v38, %v5436_v37  ;;  %v5497_v40 = vor.u32 %v5999_v10, %v5494_v4  ;;  %v5310_v18 = vld [vmem:[%s8776_s9 + $0x8] sm:$0xf0]  ;;  %v6012_v46 = vld [vmem:[%s8776_s9 + $0x1d4] sm:$0xf0] }
 0x2ad   : > { %v3068_v56 = vadd.f32 %v3067_v19, %v3055_v41  ;;  %v3043_v57 = vpop.f32.mrf.mxu2  ;;  %v5452_v19 = vld [vmem:[%s8776_s9 + $0x120] sm:$0xf]  ;;  %v5438_v37 = vld [vmem:[%s8776_s9 + $0x108] sm:$0xf0] }
 0x2ae   : > { %3680 = vmatpush.bf16.msra.mxu1 %v5341_v20  ;;  %3693 = vmatpush.bf16.msra.mxu2 %v5405_v22  ;;  %v5990_v20 = vld [vmem:[%s8776_s9 + $0x124] sm:$0xf0]  ;;  %v8454_v22 = vpack.c.bf16 %v3279_v53, %v3279_v53  ;;  %v5390_v57 = vld [vmem:[%s8776_s9 + $0xa8] sm:$0xf0] }
 0x2af   : > { %v3056_v1 = vpop.f32.mrf.mxu3  ;;  %v3280_v8 = vmax.f32 %v3068_v56, 0.0  ;;  %v5453_v28 = vor.u32 %v5990_v20, %v5452_v19  ;;  %v5973_v56 = vld [vmem:[%s8776_s9 + $0xa4] sm:$0xf]  ;;  %v5374_v20 = vld [vmem:[%s8776_s9 + $0x88] sm:$0xf0] }
 0x2b0   : > { %3706 = vmatpush.bf16.msra.mxu3 %v5469_v23  ;;  %v5326_v23 = vld [vmem:[%s8776_s9 + $0x28] sm:$0xf0]  ;;  %v5478_v1 = vld [vmem:[%s8776_s9 + $0x158] sm:$0xf0]  ;;  %v5393_v42 = vor.u32 %v5973_v56, %v5390_v57  ;;  %v5969_v19 = vld [vmem:[%s8776_s9 + $0x84] sm:$0xf] }
 0x2b1   : > { %v8462_v27 = vpack.c.bf16 %v3280_v8, %v3280_v8  ;;  %v5329_v7 = vor.u32 %v5957_v51, %v5326_v23  ;;  %v5481_v13 = vor.u32 %v5995_v61, %v5478_v1  ;;  %v5993_v8 = vld [vmem:[%s8776_s9 + $0x144] sm:$0xf]  ;;  %v6010_v56 = vld [vmem:[%s8776_s9 + $0x1c4] sm:$0xf0]  ;;  %v5524_v61 = vld [vmem:[%s8776_s9 + $0x1b0] sm:$0xf] }
 0x2b2   : > { %3681 = vmatpush.bf16.msra.mxu1 %v5333_v31  ;;  %3694 = vmatpush.bf16.msra.mxu2 %v5397_v62  ;;  %v5963_v31 = vld [vmem:[%s8776_s9 + $0x54] sm:$0xf]  ;;  %v5445_v62 = vor.u32 %v5988_v26, %v5444_v15  ;;  %v6008_v1 = vld [vmem:[%s8776_s9 + $0x1b4] sm:$0xf0] }
 0x2b3   : > { %v5353_v17 = vor.u32 %v5963_v31, %v5350_v32  ;;  %v5991_v26 = vld [vmem:[%s8776_s9 + $0x134] sm:$0xf]  ;;  %v5313_v31 = vor.u32 %v5953_v16, %v5310_v18  ;;  %v5377_v32 = vor.u32 %v5969_v19, %v5374_v20 }
 0x2b4   : > { %3707 = vmatpush.bf16.msra.mxu3 %v5461_v21  ;;  %v5382_v21 = vld [vmem:[%s8776_s9 + $0x98] sm:$0xf0]  ;;  %v6015_v16 = vld [vmem:[%s8776_s9 + $0x1f4] sm:$0xf] }
 0x2b6   : > { %3682 = vmatpush.bf16.msra.mxu1 %v5325_v49  ;;  %3695 = vmatpush.bf16.msra.mxu2 %v5389_v9  ;;  %v5345_v49 = vor.u32 %v5961_v43, %v5342_v36  ;;  %v5409_v9 = vor.u32 %v5977_v2, %v5406_v3  ;;  %v5446_v43 = vld [vmem:[%s8776_s9 + $0x118] sm:$0xf0] }
 0x2b8   : > { %3708 = vmatpush.bf16.msra.mxu3 %v5453_v28 }
 0x2ba   : > { %3683 = vmatpush.bf16.msra.mxu1 %v5317_v48  ;;  %3696 = vmatpush.bf16.msra.mxu2 %v5381_v50  ;;  %v5337_v48 = vor.u32 %v5959_v11, %v5334_v54  ;;  %v5401_v50 = vor.u32 %v5975_v44, %v5398_v45  ;;  %v5540_v45 = vld [vmem:[%s8776_s9 + $0x1d0] sm:$0xf] }
 0x2bc   : > { %3709 = vmatpush.bf16.msra.mxu3 %v5445_v62 }
 0x2be   : > { %3684 = vmatpush.bf16.msra.mxu1 %v5309_v58  ;;  %3697 = vmatpush.bf16.msra.mxu2 %v5373_v14  ;;  %v8502_v5 = vpop.f32.mrf.mxu1  ;;  %v5318_v58 = vld [vmem:[%s8776_s9 + $0x18] sm:$0xf0]  ;;  %v5971_v14 = vld [vmem:[%s8776_s9 + $0x94] sm:$0xf] }
 0x2bf   : > { %v5385_v55 = vor.u32 %v5971_v14, %v5382_v21  ;;  %v5508_v14 = vld [vmem:[%s8776_s9 + $0x190] sm:$0xf]  ;;  %v6004_v21 = vld [vmem:[%s8776_s9 + $0x194] sm:$0xf0] }
 0x2c0   : > { %3710 = vmatpush.bf16.msra.mxu3 %v5437_v39  ;;  %v5556_v39 = vld [vmem:[%s8776_s9 + $0x1f0] sm:$0xf] }
 0x2c1   : > { %3685 = vmatmul.bf16.vlgmr.msra.gmra.mxu1 %v8454_v22  ;;  %3698 = vmatmul.bf16.vlgmr.msra.gmra.mxu2 %v8462_v27  ;;  %v8507_v41 = vpop.f32.mrf.mxu0 }
 0x2c2   : > { %3729 = vmatpush.bf16.msrb.mxu1 %v5369_v63  ;;  %3742 = vmatpush.bf16.msrb.mxu2 %v5433_v0  ;;  %v5470_v63 = vld [vmem:[%s8776_s9 + $0x148] sm:$0xf0]  ;;  %v5321_v0 = vor.u32 %v5955_v12, %v5318_v58  ;;  %v6006_v12 = vld [vmem:[%s8776_s9 + $0x1a4] sm:$0xf0] }
 0x2c3   : > { %v5473_v24 = vor.u32 %v5993_v8, %v5470_v63  ;;  %v5509_v8 = vor.u32 %v6004_v21, %v5508_v14  ;;  %v5500_v63 = vld [vmem:[%s8776_s9 + $0x180] sm:$0xf] }
 0x2c4   : > { %3755 = vmatpush.bf16.msrb.mxu3 %v5497_v40  ;;  %v3093_v59 = vpop.f32.mrf.mxu2 }
 0x2c6   : > { %3730 = vmatpush.bf16.msrb.mxu1 %v5361_v29  ;;  %3743 = vmatpush.bf16.msrb.mxu2 %v5425_v30  ;;  %v3082_v6 = vpop.f32.mrf.mxu1  ;;  %v5462_v29 = vld [vmem:[%s8776_s9 + $0x138] sm:$0xf0]  ;;  %v5989_v30 = vld [vmem:[%s8776_s9 + $0x124] sm:$0xf] }
 0x2c7   : > { %v3106_v60 = vpop.f32.mrf.mxu3  ;;  %v5465_v33 = vor.u32 %v5991_v26, %v5462_v29  ;;  %v5457_v62 = vor.u32 %v5989_v30, %v5454_v34  ;;  %v6011_v29 = vld [vmem:[%s8776_s9 + $0x1d4] sm:$0xf]  ;;  %v5542_v30 = vld [vmem:[%s8776_s9 + $0x1d8] sm:$0xf0] }
 0x2c8   : > { %3756 = vmatpush.bf16.msrb.mxu3 %v5489_v52 }
 0x2c9   : > { %v3121_v53 = vpop.f32.mrf.mxu0 }
 0x2ca   : > { %3731 = vmatpush.bf16.msrb.mxu1 %v5353_v17  ;;  %3744 = vmatpush.bf16.msrb.mxu2 %v5417_v35  ;;  %v2857_v17 = vperm.slane %v7946_v25, 2  ;;  %v5987_v35 = vld [vmem:[%s8776_s9 + $0x114] sm:$0xf]  ;;  %v5985_v25 = vld [vmem:[%s8776_s9 + $0x104] sm:$0xf] }
 0x2cb   : > { %v5449_v36 = vor.u32 %v5987_v35, %v5446_v43  ;;  %v5441_v38 = vor.u32 %v5985_v25, %v5438_v37  ;;  %v5534_v35 = vld [vmem:[%s8776_s9 + $0x1c8] sm:$0xf0]  ;;  %v6005_v37 = vld [vmem:[%s8776_s9 + $0x1a4] sm:$0xf] }
 0x2cc   : > { %3757 = vmatpush.bf16.msrb.mxu3 %v5481_v13  ;;  %v3095_v28 = vpop.f32.mrf.mxu2  ;;  %v3081_v2 = vadd.f32 %v8502_v5, %v2857_v17  ;;  %v6009_v17 = vld [vmem:[%s8776_s9 + $0x1c4] sm:$0xf] }
 0x2cd   : > { %v6013_v28 = vld [vmem:[%s8776_s9 + $0x1e4] sm:$0xf]  ;;  %v5537_v43 = vor.u32 %v6009_v17, %v5534_v35  ;;  %v6030_v17 = vld [vmem:[%s8778_s11 + $0x68] sm:$0xff] }
 0x2ce   : > { %3732 = vmatpush.bf16.msrb.mxu1 %v5345_v49  ;;  %3745 = vmatpush.bf16.msrb.mxu2 %v5409_v9  ;;  %v3094_v3 = vadd.f32 %v3093_v59, %v3081_v2  ;;  %v5548_v49 = vld [vmem:[%s8776_s9 + $0x1e0] sm:$0xf]  ;;  %v6014_v9 = vld [vmem:[%s8776_s9 + $0x1e4] sm:$0xf0]  ;;  %v5526_v2 = vld [vmem:[%s8776_s9 + $0x1b8] sm:$0xf0] }
 0x2cf   : > { %v3108_v15 = vpop.f32.mrf.mxu3  ;;  %v5549_v40 = vor.u32 %v6014_v9, %v5548_v49 }
 0x2d0   : > { %3758 = vmatpush.bf16.msrb.mxu3 %v5473_v24  ;;  %v5558_v24 = vld [vmem:[%s8776_s9 + $0x1f8] sm:$0xf0]  ;;  %v5550_v15 = vld [vmem:[%s8776_s9 + $0x1e8] sm:$0xf0] }
 0x2d1   : > { %v5561_v18 = vor.u32 %v6015_v16, %v5558_v24  ;;  %v5553_v26 = vor.u32 %v6013_v28, %v5550_v15  ;;  %v6023_v28 = vld [vmem:[%s8778_s11 + $0x30] sm:$0xff] }
 0x2d2   : > { %3733 = vmatpush.bf16.msrb.mxu1 %v5337_v48  ;;  %3746 = vmatpush.bf16.msrb.mxu2 %v5401_v50  ;;  %v5541_v50 = vor.u32 %v6012_v46, %v5540_v45  ;;  %v6031_v15 = vld [vmem:[%s8778_s11 + $0x70] sm:$0xff] }
 0x2d4   : > { %3759 = vmatpush.bf16.msrb.mxu3 %v5465_v33 }
 0x2d6   : > { %3734 = vmatpush.bf16.msrb.mxu1 %v5329_v7  ;;  %3747 = vmatpush.bf16.msrb.mxu2 %v5393_v42  ;;  %v5525_v7 = vor.u32 %v6008_v1, %v5524_v61  ;;  %v5516_v42 = vld [vmem:[%s8776_s9 + $0x1a0] sm:$0xf] }
 0x2d7   : > { %v5517_v58 = vor.u32 %v6006_v12, %v5516_v42 }
 0x2d8   : > { %3760 = vmatpush.bf16.msrb.mxu3 %v5457_v62 }
 0x2da   : > { %3735 = vmatpush.bf16.msrb.mxu1 %v5321_v0  ;;  %3748 = vmatpush.bf16.msrb.mxu2 %v5385_v55  ;;  %v6002_v0 = vld [vmem:[%s8776_s9 + $0x184] sm:$0xf0] }
 0x2db   : > { %v5501_v55 = vor.u32 %v6002_v0, %v5500_v63 }
 0x2dc   : > { %3761 = vmatpush.bf16.msrb.mxu3 %v5449_v36  ;;  %v6007_v36 = vld [vmem:[%s8776_s9 + $0x1b4] sm:$0xf] }
 0x2dd   : > { %v5529_v25 = vor.u32 %v6007_v36, %v5526_v2  ;;  %v6029_v36 = vld [vmem:[%s8778_s11 + $0x60] sm:$0xff]  ;;  %v6028_v2 = vld [vmem:[%s8778_s11 + $0x58] sm:$0xff] }
 0x2de   : > { %3736 = vmatpush.bf16.msrb.mxu1 %v5313_v31  ;;  %3749 = vmatpush.bf16.msrb.mxu2 %v5377_v32  ;;  %v3132_v4 = vpop.f32.mrf.mxu1  ;;  %v5545_v32 = vor.u32 %v6011_v29, %v5542_v30  ;;  %v6021_v30 = vld [vmem:[%s8778_s11 + $0x20] sm:$0xff] }
 0x2e0   : > { %3762 = vmatpush.bf16.msrb.mxu3 %v5441_v38  ;;  %v5518_v38 = vld [vmem:[%s8776_s9 + $0x1a8] sm:$0xf0] }
 0x2e1   : > { %3737 = vmatmul.bf16.vlgmr.msrb.gmra.mxu1 %v8454_v22  ;;  %3750 = vmatmul.bf16.vlgmr.msrb.gmra.mxu2 %v8462_v27  ;;  %v6016_v22 = vld [vmem:[%s8776_s9 + $0x1f4] sm:$0xf0]  ;;  %v3107_v27 = vadd.f32 %v3106_v60, %v3094_v3  ;;  %v3171_v5 = vpop.f32.mrf.mxu0 }
 0x2e2   : > { %v5557_v10 = vor.u32 %v6016_v22, %v5556_v39  ;;  %v5521_v22 = vor.u32 %v6005_v37, %v5518_v38  ;;  %v6025_v37 = vld [vmem:[%s8778_s11 + $0x40] sm:$0xff] }
 0x2e3   : > { %v3120_v11 = vadd.f32 %v8507_v41, %v3107_v27  ;;  %v5532_v41 = vld [vmem:[%s8776_s9 + $0x1c0] sm:$0xf]  ;;  %v6003_v27 = vld [vmem:[%s8776_s9 + $0x194] sm:$0xf] }
 0x2e4   : > { %3716 = vmatpush.bf16.msrb.mxu0 %v5557_v10  ;;  %v3145_v44 = vpop.f32.mrf.mxu2  ;;  %v5533_v59 = vor.u32 %v6010_v56, %v5532_v41  ;;  %v5510_v10 = vld [vmem:[%s8776_s9 + $0x198] sm:$0xf0] }
 0x2e5   : > { %v3133_v54 = vadd.f32 %v3132_v4, %v3120_v11  ;;  %v6066_v4 = vld [vmem:[%s8775_s8] sm:$0xf]  ;;  %v5513_v49 = vor.u32 %v6003_v27, %v5510_v10 }
 0x2e6   : > { %v3134_v51 = vpop.f32.mrf.mxu1 }
 0x2e7   : > { %v3146_v47 = vadd.f32 %v3145_v44, %v3133_v54  ;;  %v3158_v48 = vpop.f32.mrf.mxu3  ;;  %v5502_v54 = vld [vmem:[%s8776_s9 + $0x188] sm:$0xf0] }
 0x2e8   : > { %3717 = vmatpush.bf16.msrb.mxu0 %v5549_v40  ;;  %v6001_v40 = vld [vmem:[%s8776_s9 + $0x184] sm:$0xf] }
 0x2e9   : > { %v3159_v52 = vadd.f32 %v3158_v48, %v3146_v47  ;;  %v3173_v23 = vpop.f32.mrf.mxu0  ;;  %v5505_v44 = vor.u32 %v6001_v40, %v5502_v54 }
 0x2eb   : > { %v3172_v57 = vadd.f32 %v3171_v5, %v3159_v52  ;;  %v2858_v5 = vperm.slane %v6066_v4, 3 }
 0x2ec   : > { %3718 = vmatpush.bf16.msrb.mxu0 %v5541_v50  ;;  %v3147_v6 = vpop.f32.mrf.mxu2 }
 0x2ed   : > { %v3281_v60 = vmax.f32 %v3172_v57, 0.0 }
 0x2ef   : > { %v3350_v13 = vpack.c.bf16 %v3281_v60, %v3281_v60  ;;  %v3160_v53 = vpop.f32.mrf.mxu3 }
 0x2f0   : > { %3719 = vmatpush.bf16.msrb.mxu0 %v5533_v59 }
 0x2f1   : > { %3711 = vmatmul.bf16.vlgmr.msra.gmra.mxu3 %v3350_v13 }
 0x2f4   : > { %3720 = vmatpush.bf16.msrb.mxu0 %v5525_v7  ;;  %v3347_v7 = vld [vmem:[%s8777_s10] sm:$0x3] }
 0x2f5   : > { %v3673_v12 = vperm.slane %v3347_v7, 0  ;;  %v3674_v63 = vperm.slane %v3347_v7, 1 }
 0x2f8   : > { %3721 = vmatpush.bf16.msrb.mxu0 %v5517_v58 }
 0x2fc   : > { %3722 = vmatpush.bf16.msrb.mxu0 %v5509_v8 }
 0x2fe   : > { %v3184_v19 = vpop.f32.mrf.mxu1 }
 0x2ff   : > { %v3185_v9 = vadd.f32 %v3184_v19, %v2858_v5  ;;  %v6024_v19 = vld [vmem:[%s8778_s11 + $0x38] sm:$0xff] }
 0x300   : > { %3723 = vmatpush.bf16.msrb.mxu0 %v5501_v55  ;;  %3914 = vmatpush.bf16.msra.mxu1 %v6024_v19 }
 0x301   : > { %v3223_v20 = vpop.f32.mrf.mxu0  ;;  %3763 = vmatmul.bf16.vlgmr.msrb.gmra.mxu3 %v3350_v13 }
 0x304   : > { %3768 = vmatpush.bf16.msra.mxu0 %v5561_v18  ;;  %v3197_v31 = vpop.f32.mrf.mxu2  ;;  %3915 = vmatpush.bf16.msra.mxu1 %v6023_v28 }
 0x305   : > { %v3198_v11 = vadd.f32 %v3197_v31, %v3185_v9  ;;  %v6020_v31 = vld [vmem:[%s8778_s11 + $0x18] sm:$0xff] }
 0x306   : > { %v3186_v34 = vpop.f32.mrf.mxu1 }
 0x307   : > { %v3210_v33 = vpop.f32.mrf.mxu3 }
 0x308   : > { %3769 = vmatpush.bf16.msra.mxu0 %v5553_v26  ;;  %v3211_v45 = vadd.f32 %v3210_v33, %v3198_v11  ;;  %v6022_v26 = vld [vmem:[%s8778_s11 + $0x28] sm:$0xff]  ;;  %v6019_v33 = vld [vmem:[%s8778_s11 + $0x10] sm:$0xff] }
 0x309   : > { %v3225_v62 = vpop.f32.mrf.mxu0  ;;  %3916 = vmatpush.bf16.msra.mxu1 %v6022_v26 }
 0x30a   : > { %v3224_v48 = vadd.f32 %v3223_v20, %v3211_v45  ;;  %v6032_v20 = vld [vmem:[%s8778_s11 + $0x78] sm:$0xff]  ;;  %v6018_v62 = vld [vmem:[%s8778_s11 + $0x8] sm:$0xff] }
 0x30b   : > { %3927 = vmatpush.bf16.msra.mxu2 %v6032_v20 }
 0x30c   : > { %3770 = vmatpush.bf16.msra.mxu0 %v5545_v32  ;;  %v3199_v3 = vpop.f32.mrf.mxu2 }
 0x30d   : > { %3917 = vmatpush.bf16.msra.mxu1 %v6021_v30  ;;  %v6027_v3 = vld [vmem:[%s8778_s11 + $0x50] sm:$0xff] }
 0x30f   : > { %v3212_v39 = vpop.f32.mrf.mxu3  ;;  %3928 = vmatpush.bf16.msra.mxu2 %v6031_v15 }
 0x310   : > { %3771 = vmatpush.bf16.msra.mxu0 %v5537_v43  ;;  %v6017_v43 = vld [vmem:[%s8778_s11] sm:$0xff] }
 0x311   : > { %3918 = vmatpush.bf16.msra.mxu1 %v6020_v31 }
 0x313   : > { %3929 = vmatpush.bf16.msra.mxu2 %v6030_v17 }
 0x314   : > { %3772 = vmatpush.bf16.msra.mxu0 %v5529_v25  ;;  %v6026_v25 = vld [vmem:[%s8778_s11 + $0x48] sm:$0xff] }
 0x315   : > { %3919 = vmatpush.bf16.msra.mxu1 %v6019_v33 }
 0x317   : > { %3930 = vmatpush.bf16.msra.mxu2 %v6029_v36 }
 0x318   : > { %3773 = vmatpush.bf16.msra.mxu0 %v5521_v22 }
 0x319   : > { %3920 = vmatpush.bf16.msra.mxu1 %v6018_v62 }
 0x31b   : > { %3931 = vmatpush.bf16.msra.mxu2 %v6028_v2 }
 0x31c   : > { %3774 = vmatpush.bf16.msra.mxu0 %v5513_v49 }
 0x31d   : > { %3921 = vmatpush.bf16.msra.mxu1 %v6017_v43 }
 0x31e   : > { %v3236_v46 = vpop.f32.mrf.mxu1 }
 0x31f   : > { %v3237_v50 = vadd.f32 %v3236_v46, %v3224_v48  ;;  %3932 = vmatpush.bf16.msra.mxu2 %v6027_v3  ;;  %v3815_v46 = vld [vmem:[%s8779_s12] sm:$0x1] }
 0x320   : > { %3775 = vmatpush.bf16.msra.mxu0 %v5505_v44  ;;  %v3275_v47 = vpop.f32.mrf.mxu0 }
 0x323   : > { %3933 = vmatpush.bf16.msra.mxu2 %v6026_v25 }
 0x324   : > { %v3249_v51 = vpop.f32.mrf.mxu2 }
 0x325   : > { %v3250_v52 = vadd.f32 %v3249_v51, %v3237_v50 }
 0x326   : > { %v3262_v23 = vpop.f32.mrf.mxu3  ;;  %v3238_v41 = vpop.f32.mrf.mxu1 }
 0x327   : > { %v3263_v56 = vadd.f32 %v3262_v23, %v3250_v52  ;;  %3934 = vmatpush.bf16.msra.mxu2 %v6025_v37 }
 0x328   : > { %v3277_v57 = vpop.f32.mrf.mxu0 }
 0x329   : > { %v3276_v59 = vadd.f32 %v3275_v47, %v3263_v56 }
 0x32b   : > { %v3282_v60 = vmax.f32 %v3276_v59, 0.0 }
 0x32c   : > { %v3251_v61 = vpop.f32.mrf.mxu2 }
 0x32d   : > { %v3351_v1 = vpack.c.bf16 %v3282_v60, %v3282_v60 }
 0x32e   : > { %v3264_v6 = vpop.f32.mrf.mxu3 }
 0x32f   : > { %3724 = vmatmul.bf16.vlgmr.msrb.gmra.mxu0 %v3351_v1 }
 0x33e   : > { %v3686_v42 = vpop.f32.mrf.mxu1 }
 0x33f   : > { %3776 = vmatmul.bf16.vlgmr.msra.gmra.mxu0 %v3351_v1  ;;  %v3687_v13 = vadd.f32 %v3686_v42, %v3673_v12 }
 0x344   : > { %v3699_v53 = vpop.f32.mrf.mxu2 }
 0x345   : > { %v3700_v58 = vadd.f32 %v3699_v53, %v3687_v13 }
 0x346   : > { %v3688_v14 = vpop.f32.mrf.mxu1 }
 0x34c   : > { %v3701_v21 = vpop.f32.mrf.mxu2 }
 0x35e   : > { %v3738_v8 = vpop.f32.mrf.mxu1 }
 0x35f   : > { %v3739_v0 = vadd.f32 %v3738_v8, %v3674_v63 }
 0x364   : > { %v3751_v55 = vpop.f32.mrf.mxu2 }
 0x365   : > { %v3752_v16 = vadd.f32 %v3751_v55, %v3739_v0 }
 0x366   : > { %v3740_v24 = vpop.f32.mrf.mxu1 }
 0x36c   : > { %v3753_v18 = vpop.f32.mrf.mxu2 }
 0x374   : > { %v3712_v29 = vpop.f32.mrf.mxu3 }
 0x375   : > { %v3713_v38 = vadd.f32 %v3712_v29, %v3700_v58 }
 0x37c   : > { %v3714_v32 = vpop.f32.mrf.mxu3 }
 0x384   : > { %v3764_v34 = vpop.f32.mrf.mxu3 }
 0x385   : > { %v3765_v5 = vadd.f32 %v3764_v34, %v3752_v16 }
 0x38c   : > { %v3766_v35 = vpop.f32.mrf.mxu3 }
 0x3ac   : > { %v3725_v39 = vpop.f32.mrf.mxu0 }
 0x3ad   : > { %v3726_v22 = vadd.f32 %v3725_v39, %v3713_v38 }
 0x3af   : > { %v3781_v27 = vmax.f32 %v3726_v22, 0.0 }
 0x3b1   : > { %v3816_v10 = vpack.c.bf16 %v3781_v27, %v3781_v27 }
 0x3b3   : > { %3922 = vmatmul.bf16.vlgmr.msra.gmra.mxu1 %v3816_v10 }
 0x3b4   : > { %v3727_v4 = vpop.f32.mrf.mxu0 }
 0x3bc   : > { %v3777_v49 = vpop.f32.mrf.mxu0 }
 0x3bd   : > { %v3778_v9 = vadd.f32 %v3777_v49, %v3765_v5 }
 0x3bf   : > { %v3782_v11 = vmax.f32 %v3778_v9, 0.0 }
 0x3c1   : > { %v3817_v40 = vpack.c.bf16 %v3782_v11, %v3782_v11 }
 0x3c3   : > { %3935 = vmatmul.bf16.vlgmr.msra.gmra.mxu2 %v3817_v40 }
 0x3c4   : > { %v3779_v54 = vpop.f32.mrf.mxu0 }
 0x430   : > { %v3923_v44 = vpop.f32.mrf.mxu1 }
 0x431   : > { %v3924_v47 = vadd.f32 %v3923_v44, %v3815_v46 }
 0x438   : > { %v3925_v45 = vpop.f32.mrf.mxu1 }
 0x446   : > { %v3936_v48 = vpop.f32.mrf.mxu2 }
 0x447   : > { %v3937_v50 = vadd.f32 %v3936_v48, %v3924_v47 }
 0x449   : > { %3940 = vst [vmem:[%s464_s17] sm:$0x1] %v3937_v50 }
 0x44e   : > { %v3938_v51 = vpop.f32.mrf.mxu2 }
 0x44f PF: > { %s23_s27 = sadd.s32 1, %s6089_s27   ;;  %s8783_s25 = smov %s6085_s26 }
 0x450   : > { %p20_p5 = scmp.ge.s32.totalorder %s23_s27, 4   ;;  %s8784_s26 = smov %s8786_s28 }
 0x452   :  { %22 = sbr.rel (!%p20_p5) target bundleno = 2 (0x2), region = 138 }

// kernel: pointnet_forward.5
= control target key start
LH: loop header
LB: loop body
LE: loop exit
PB: predicated region body
PF: predicated region fallthrough
CT: control target
= control target key end

     0   :  { %s2994_s0 = inlined_call_operand.vmem [shape: f32[2,16,3], index: 0, kind: input, shape index: {}]   ;;  %s2995_s1 = inlined_call_operand.vmem [shape: f32[2,3,64], index: 1, kind: input, shape index: {}]   ;;  %s2996_s2 = inlined_call_operand.vmem [shape: f32[1,64], index: 2, kind: input, shape index: {}]   ;;  %s2997_s3 = inlined_call_operand.vmem [shape: f32[2,1,512], index: 3, kind: input, shape index: {}]   ;;  %s2998_s4 = inlined_call_operand.vmem [shape: bf16[64,512], index: 4, kind: input, shape index: {}]   ;;  %s2999_s5 = inlined_call_operand.vmem [shape: bf16[512,256], index: 5, kind: input, shape index: {}]   ;;  %s3000_s6 = inlined_call_operand.vmem [shape: f32[1,256], index: 6, kind: input, shape index: {}]   ;;  %s3001_s7 = inlined_call_operand.vmem [shape: bf16[256,128], index: 7, kind: input, shape index: {}]   ;;  %s3002_s8 = inlined_call_operand.vmem [shape: f32[1,128], index: 8, kind: input, shape index: {}]   ;;  %s3003_s9 = inlined_call_operand.vmem [shape: bf16[128,128], index: 9, kind: input, shape index: {}]   ;;  %s3004_s10 = inlined_call_operand.vmem [shape: f32[1,128], index: 10, kind: input, shape index: {}]   ;;  %s3005_s11 = inlined_call_operand.hbm [shape: f32[2,16,128], index: 11, kind: output, shape index: {}]  }
   0x1   :  { %3008 = sst [smem:[#allocation8_spill]] %s2994_s0 }
   0x2   :  { %16 = vsyncpa [#allocation3], 0 }
   0x3   :  { %18 = vsyncpa [#allocation3 + $0x1], 0  ;;  %s2309_s17 = smov 0   ;;  %s2311_s18 = smov 0  }
   0x4   :  { %s2313_s19 = smov 0   ;;  %s2315_s20 = smov 0  }
   0x5   :  { %s2317_s21 = smov 0   ;;  %s2319_s22 = smov 0  }
   0x6 LB: > { %3009 = sst [smem:[#allocation5_spill]] %s2238_s21  ;;  %s1556_s23 = sadd.s32 4294967295, %s2242_s22   ;;  %s2242_s22 = sphi %s2319_s22, %s24_s22   ;;  %s2238_s21 = sphi %s2317_s21, %s3017_s21   ;;  %s2234_s20 = sphi %s2315_s20, %s3016_s20   ;;  %s2230_s19 = sphi %s2313_s19, %s3020_s19   ;;  %s2226_s18 = sphi %s2311_s18, %s3019_s18   ;;  %s2222_s17 = sphi %s2309_s17, %s3018_s17  }
   0x7   : > { %s1557_s24 = sadd.s32 4294967294, %s2242_s22   ;;  %s36_s25 = sadd.s32 1, %s2238_s21 }
   0x8   : > { %s293_s26 = sadd.s32 1, %s2230_s19  ;;  %p38_p0 = scmp.ge.s32.totalorder %s36_s25, 2 }
   0x9   : > { %p303_p1 = scmp.ne.s32.totalorder %s2230_s19, %s2226_s18  ;;  %p304_p2 = scmp.eq.s32.totalorder %s1556_s23, 1 }
   0xa   : > { %p309_p3 = scmp.ne.s32.totalorder %s2226_s18, %s2222_s17  ;;  %s3022_s25 = smov (%p38_p0, %s36_s25), 0 }
   0xb   : > { %3010 = sst [smem:[#allocation6_spill]] %s3022_s25  ;;  %p2349_p4 = por %p304_p2, %p303_p1 }
   0xc   : > { %p310_p5 = scmp.eq.s32.totalorder %s1557_s24, 1  ;;  %s288_s28 = ssub.s32 %s2238_s21, %s3022_s25 }
   0xd   : > { %p1560_p6 = scmp.ge.s32.totalorder %s2242_s22, 1  ;;  %p291_p7 = scmp.eq.s32.totalorder %s288_s28, 0 }
   0xe   : > { %p2356_p8 = por %p310_p5, %p309_p3  ;;  %p379_p9 = scmp.lt.s32.totalorder %s2242_s22, 3 }
   0xf   : > { %s2362_s30 = scalar_select %p291_p7, %s2230_s19, %s293_s26  }
  0x10   : > { %p380_p10 = pnand %p1560_p6, %p379_p9 }
  0x11   : > { %3013 = sst [smem:[#allocation7_spill]] %s2362_s30  ;;  %p432_p11 = scmp.lt.s32.totalorder (!%p380_p10), %s2234_s20, 1 }
  0x12   : > { %383 = sbr.rel (%p380_p10) target bundleno = 773 (0x305), region = 64  ;;  %s3014_s0 = sld [smem:[#allocation8_spill]] (!%p380_p10) }
  0x13   : > { %s428_s14 = sand.u32 (!%p380_p10), 1, %s2226_s18  }
  0x14   : > { %s1436_s24 = scalar_lea.sflag (!%p380_p10), [#allocation3], %s428_s14 }
  0x17   : > { %v2244_v0 = vmov 1   ;;  %v2245_v1 = vmov 0   ;;  %s2366_s12 = scalar_select %p432_p11, %s2234_s20, 1  ;;  %v2246_v2 = vmov 2   ;;  %v1616_v5 = vld [vmem:[%s2998_s4 + $0x60] sm:$0xf] }
  0x18   : > { %2158 = vset.pattern.permute.xlu1 %v2244_v0  ;;  %2157 = vset.pattern.permute.xlu0 %v2245_v1  ;;  %v2006_v6 = vld [vmem:[%s2998_s4 + $0x6c] sm:$0xf0]  ;;  %v2004_v7 = vld [vmem:[%s2998_s4 + $0x64] sm:$0xf]  ;;  %v1618_v9 = vld [vmem:[%s2998_s4 + $0x70] sm:$0xf0] }
  0x19   : > { %2159 = vset.pattern.permute.xlu2 %v2246_v2  ;;  %s1991_s13 = sshll.u32 %s2366_s12, 4  ;;  %v1617_v8 = vor.u32 %v2006_v6, %v1616_v5  ;;  %v1624_v10 = vld [vmem:[%s2998_s4 + $0x68] sm:$0xf]  ;;  %v2007_v11 = vld [vmem:[%s2998_s4 + $0x74] sm:$0xf0]  ;;  %v1621_v12 = vor.u32 %v2004_v7, %v1618_v9  ;;  %s1564_s28 = sshll.u32 %s2366_s12, 2 }
  0x1a   : > { %s439_s16 = scalar_lea.vmem %s3014_s0, %s1991_s13  ;;  %v1625_v13 = vor.u32 %v2007_v11, %v1624_v10  ;;  %v1600_v14 = vld [vmem:[%s2998_s4 + $0x40] sm:$0xf]  ;;  %v2002_v15 = vld [vmem:[%s2998_s4 + $0x4c] sm:$0xf0]  ;;  %v2000_v16 = vld [vmem:[%s2998_s4 + $0x44] sm:$0xf]  ;;  %s444_s30 = scalar_lea.vmem %s2995_s1, %s1564_s28 }
  0x1b   : > { %v585_v3 = vld [vmem:[%s439_s16] sm:$0xff]  ;;  %v586_v4 = vld [vmem:[%s439_s16 + $0x8] sm:$0xff]  ;;  %731 = vmatpush.bf16.msra.mxu3 %v1617_v8  ;;  %745 = vmatpush.bf16.msra.mxu1 %v1621_v12  ;;  %v1601_v17 = vor.u32 %v2002_v15, %v1600_v14  ;;  %v1602_v18 = vld [vmem:[%s2998_s4 + $0x50] sm:$0xf0]  ;;  %vm723_vm0 = vcmask 523264   ;;  %s1561_s0 = sshll.u32 %s428_s14, 4 }
  0x1c   : > { %601 = vperm.xlu1 %2158, %v585_v3   ;;  %589 = vperm.xlu0 %2157, %v585_v3   ;;  %v1608_v19 = vld [vmem:[%s2998_s4 + $0x48] sm:$0xf]  ;;  %v2003_v20 = vld [vmem:[%s2998_s4 + $0x54] sm:$0xf0]  ;;  %v1605_v21 = vor.u32 %v2000_v16, %v1602_v18  ;;  %v1584_v23 = vld [vmem:[%s2998_s4 + $0x20] sm:$0xf] }
  0x1d   : > { %614 = vperm.xlu2 %2159, %v585_v3   ;;  %759 = vmatpush.bf16.msra.mxu2 %v1625_v13  ;;  %v1609_v22 = vor.u32 %v2003_v20, %v1608_v19  ;;  %v1998_v24 = vld [vmem:[%s2998_s4 + $0x2c] sm:$0xf0]  ;;  %v1996_v25 = vld [vmem:[%s2998_s4 + $0x24] sm:$0xf]  ;;  %v1586_v27 = vld [vmem:[%s2998_s4 + $0x30] sm:$0xf0] }
  0x1e   : > { %v1585_v26 = vor.u32 %v1998_v24, %v1584_v23  ;;  %v1592_v28 = vld [vmem:[%s2998_s4 + $0x28] sm:$0xf]  ;;  %v1999_v29 = vld [vmem:[%s2998_s4 + $0x34] sm:$0xf0]  ;;  %v1589_v30 = vor.u32 %v1996_v25, %v1586_v27  ;;  %v1568_v32 = vld [vmem:[%s2998_s4] sm:$0xf] }
  0x1f   : > { %732 = vmatpush.bf16.msra.mxu3 %v1601_v17  ;;  %746 = vmatpush.bf16.msra.mxu1 %v1605_v21  ;;  %v1593_v31 = vor.u32 %v1999_v29, %v1592_v28  ;;  %v1994_v33 = vld [vmem:[%s2998_s4 + $0xc] sm:$0xf0]  ;;  %v1992_v34 = vld [vmem:[%s2998_s4 + $0x4] sm:$0xf]  ;;  %v1570_v36 = vld [vmem:[%s2998_s4 + $0x10] sm:$0xf0] }
  0x20   : > { %v1569_v35 = vor.u32 %v1994_v33, %v1568_v32  ;;  %v1576_v37 = vld [vmem:[%s2998_s4 + $0x8] sm:$0xf]  ;;  %v1995_v38 = vld [vmem:[%s2998_s4 + $0x14] sm:$0xf0]  ;;  %v1573_v39 = vor.u32 %v1992_v34, %v1570_v36  ;;  %v2005_v41 = vld [vmem:[%s2998_s4 + $0x6c] sm:$0xf] }
  0x21   : > { %760 = vmatpush.bf16.msra.mxu2 %v1609_v22  ;;  %v1577_v40 = vor.u32 %v1995_v38, %v1576_v37  ;;  %v1626_v42 = vld [vmem:[%s2998_s4 + $0x78] sm:$0xf0]  ;;  %v2001_v44 = vld [vmem:[%s2998_s4 + $0x4c] sm:$0xf]  ;;  %v451_v49 = vld [vmem:[%s444_s30] sm:$0x7]  ;;  %s448_s30 = scalar_lea.vmem %s2997_s3, %s1564_s28 }
  0x22   : > { %v1629_v43 = vor.u32 %v2005_v41, %v1626_v42  ;;  %v1610_v45 = vld [vmem:[%s2998_s4 + $0x58] sm:$0xf0]  ;;  %v1997_v47 = vld [vmem:[%s2998_s4 + $0x2c] sm:$0xf]  ;;  %v608_v54 = vperm.slane %v451_v49, 1  ;;  %v597_v55 = vperm.slane %v451_v49, 0 }
  0x23   : > { %733 = vmatpush.bf16.msra.mxu3 %v1585_v26  ;;  %747 = vmatpush.bf16.msra.mxu1 %v1589_v30  ;;  %v1613_v46 = vor.u32 %v2001_v44, %v1610_v45  ;;  %v1594_v48 = vld [vmem:[%s2998_s4 + $0x38] sm:$0xf0]  ;;  %v1993_v51 = vld [vmem:[%s2998_s4 + $0xc] sm:$0xf]  ;;  %v621_v59 = vperm.slane %v451_v49, 2  ;;  %s2096_s12 = sshll.u32 %s2234_s20, 4 }
  0x24   : > { %605 = vperm.xlu1 %2158, %v586_v4   ;;  %594 = vperm.xlu0 %2157, %v586_v4   ;;  %v1597_v50 = vor.u32 %v1997_v47, %v1594_v48  ;;  %v1578_v52 = vld [vmem:[%s2998_s4 + $0x18] sm:$0xf0]  ;;  %v1756_v0 = vld [vmem:[%s2999_s5 + $0xf0] sm:$0xf]  ;;  %v2039_v1 = vld [vmem:[%s2999_s5 + $0xf4] sm:$0xf0]  ;;  %s1449_s16 = scalar_lea.hbm %s3005_s11, %s2096_s12 }
  0x25   : > { %618 = vperm.xlu2 %2159, %v586_v4   ;;  %761 = vmatpush.bf16.msra.mxu2 %v1593_v31  ;;  %v1581_v56 = vor.u32 %v1993_v51, %v1578_v52  ;;  %v1757_v3 = vor.u32 %v2039_v1, %v1756_v0  ;;  %v2037_v4 = vld [vmem:[%s2999_s5 + $0xe4] sm:$0xf0]  ;;  %v1692_v5 = vld [vmem:[%s2999_s5 + $0x70] sm:$0xf]  ;;  %v2023_v6 = vld [vmem:[%s2999_s5 + $0x74] sm:$0xf0] }
  0x26   : > { %v2161_v7 = vld [vmem:[%s2996_s2] ss:$0 sm:$0xff]  ;;  %v1693_v9 = vor.u32 %v2023_v6, %v1692_v5  ;;  %v1820_v10 = vld [vmem:[%s2999_s5 + $0x170] sm:$0xf]  ;;  %v2055_v11 = vld [vmem:[%s2999_s5 + $0x174] sm:$0xf0] }
  0x27   : > { %734 = vmatpush.bf16.msra.mxu3 %v1569_v35  ;;  %748 = vmatpush.bf16.msra.mxu1 %v1573_v39  ;;  %v1821_v15 = vor.u32 %v2055_v11, %v1820_v10  ;;  %v1740_v16 = vld [vmem:[%s2999_s5 + $0xd0] sm:$0xf]  ;;  %v1684_v17 = vld [vmem:[%s2999_s5 + $0x60] sm:$0xf]  ;;  %v2021_v18 = vld [vmem:[%s2999_s5 + $0x64] sm:$0xf0] }
  0x28   : > { %1120 = vmatpush.bf16.msra.mxu0 %v1693_v9  ;;  %v2035_v22 = vld [vmem:[%s2999_s5 + $0xd4] sm:$0xf0]  ;;  %v1812_v23 = vld [vmem:[%s2999_s5 + $0x160] sm:$0xf]  ;;  %v2053_v24 = vld [vmem:[%s2999_s5 + $0x164] sm:$0xf0]  ;;  %v1685_v25 = vor.u32 %v2021_v18, %v1684_v17 }
  0x29   : > { %762 = vmatpush.bf16.msra.mxu2 %v1577_v40  ;;  %v1813_v26 = vor.u32 %v2053_v24, %v1812_v23  ;;  %v1676_v27 = vld [vmem:[%s2999_s5 + $0x50] sm:$0xf]  ;;  %v2019_v30 = vld [vmem:[%s2999_s5 + $0x54] sm:$0xf0]  ;;  %v1741_v33 = vor.u32 %v2035_v22, %v1740_v16  ;;  %v1732_v36 = vld [vmem:[%s2999_s5 + $0xc0] sm:$0xf] }
  0x2a   : > { %v1804_v31 = vld [vmem:[%s2999_s5 + $0x150] sm:$0xf]  ;;  %v2051_v32 = vld [vmem:[%s2999_s5 + $0x154] sm:$0xf0]  ;;  %v2033_v37 = vld [vmem:[%s2999_s5 + $0xc4] sm:$0xf0]  ;;  %v1677_v38 = vor.u32 %v2019_v30, %v1676_v27 }
  0x2b   : > { %773 = vmatpush.bf16.msrb.mxu3 %v1629_v43  ;;  %1134 = vmatpush.bf16.msrb.mxu1 %v1757_v3  ;;  %v1805_v39 = vor.u32 %v2051_v32, %v1804_v31  ;;  %v1668_v41 = vld [vmem:[%s2999_s5 + $0x40] sm:$0xf]  ;;  %v2017_v42 = vld [vmem:[%s2999_s5 + $0x44] sm:$0xf0]  ;;  %v1733_v44 = vor.u32 %v2033_v37, %v1732_v36  ;;  %v2071_v47 = vld [vmem:[%s2999_s5 + $0x1f4] sm:$0xf0] }
  0x2c   : > { %2160 = vset.pattern.permute.xlu0 %v2246_v2  ;;  %v1748_v2 = vld [vmem:[%s2999_s5 + $0xe0] sm:$0xf]  ;;  %1121 = vmatpush.bf16.msra.mxu0 %v1685_v25  ;;  %v2049_v45 = vld [vmem:[%s2999_s5 + $0x144] sm:$0xf0]  ;;  %v2031_v51 = vld [vmem:[%s2999_s5 + $0xb4] sm:$0xf0]  ;;  %v1669_v52 = vor.u32 %v2017_v42, %v1668_v41 }
  0x2d   : > { %v1749_v14 = vor.u32 %v2037_v4, %v1748_v2  ;;  %1148 = vmatpush.bf16.msrb.mxu2 %v1821_v15  ;;  %v1796_v43 = vld [vmem:[%s2999_s5 + $0x140] sm:$0xf]  ;;  %v2029_v0 = vld [vmem:[%s2999_s5 + $0xa4] sm:$0xf0]  ;;  %v1708_v9 = vld [vmem:[%s2999_s5 + $0x90] sm:$0xf] }
  0x2e   : > { %v1652_v3 = vld [vmem:[%s2999_s5 + $0x20] sm:$0xf]  ;;  %v2013_v4 = vld [vmem:[%s2999_s5 + $0x24] sm:$0xf0]  ;;  %v2027_v10 = vld [vmem:[%s2999_s5 + $0x94] sm:$0xf0] }
  0x2f   : > { %774 = vmatpush.bf16.msrb.mxu3 %v1613_v46  ;;  %1135 = vmatpush.bf16.msrb.mxu1 %v1749_v14  ;;  %v1884_v46 = vld [vmem:[%s2999_s5 + $0x1f0] sm:$0xf]  ;;  %v1653_v11 = vor.u32 %v2013_v4, %v1652_v3  ;;  %v1700_v14 = vld [vmem:[%s2999_s5 + $0x80] sm:$0xf]  ;;  %v2025_v15 = vld [vmem:[%s2999_s5 + $0x84] sm:$0xf0] }
  0x30   : > { %1122 = vmatpush.bf16.msra.mxu0 %v1677_v38  ;;  %v1701_v16 = vor.u32 %v2025_v15, %v1700_v14  ;;  %v2038_v17 = vld [vmem:[%s2999_s5 + $0xf4] sm:$0xf]  ;;  %v1758_v18 = vld [vmem:[%s2999_s5 + $0xf8] sm:$0xf0]  ;;  %v1772_v22 = vld [vmem:[%s2999_s5 + $0x110] sm:$0xf] }
  0x31   : > { %1149 = vmatpush.bf16.msrb.mxu2 %v1813_v26  ;;  %v2043_v24 = vld [vmem:[%s2999_s5 + $0x114] sm:$0xf0]  ;;  %v1868_v25 = vld [vmem:[%s2999_s5 + $0x1d0] sm:$0xf]  ;;  %v1750_v30 = vld [vmem:[%s2999_s5 + $0xe8] sm:$0xf0] }
  0x32   : > { %v2067_v26 = vld [vmem:[%s2999_s5 + $0x1d4] sm:$0xf0]  ;;  %v1773_v27 = vor.u32 %v2043_v24, %v1772_v22  ;;  %v1636_v32 = vld [vmem:[%s2999_s5] sm:$0xf]  ;;  %v2041_v36 = vld [vmem:[%s2999_s5 + $0x104] sm:$0xf0] }
  0x33   : > { %775 = vmatpush.bf16.msrb.mxu3 %v1597_v50  ;;  %1136 = vmatpush.bf16.msrb.mxu1 %v1741_v33  ;;  %v1724_v50 = vld [vmem:[%s2999_s5 + $0xb0] sm:$0xf]  ;;  %v2009_v33 = vld [vmem:[%s2999_s5 + $0x4] sm:$0xf0]  ;;  %v1860_v37 = vld [vmem:[%s2999_s5 + $0x1c0] sm:$0xf] }
  0x34   : > { %1123 = vmatpush.bf16.msra.mxu0 %v1669_v52  ;;  %v2065_v38 = vld [vmem:[%s2999_s5 + $0x1c4] sm:$0xf0]  ;;  %v2022_v41 = vld [vmem:[%s2999_s5 + $0x74] sm:$0xf]  ;;  %v1694_v42 = vld [vmem:[%s2999_s5 + $0x78] sm:$0xf0] }
  0x35   : > { %1150 = vmatpush.bf16.msrb.mxu2 %v1805_v39  ;;  %v2020_v52 = vld [vmem:[%s2999_s5 + $0x64] sm:$0xf]  ;;  %v2050_v3 = vld [vmem:[%s2999_s5 + $0x154] sm:$0xf]  ;;  %v1670_v14 = vld [vmem:[%s2999_s5 + $0x48] sm:$0xf0] }
  0x36   : > { %v2048_v15 = vld [vmem:[%s2999_s5 + $0x144] sm:$0xf]  ;;  %v1828_v22 = vld [vmem:[%s2999_s5 + $0x180] sm:$0xf]  ;;  %s1452_s25 = sshll.u32 %s1449_s16, 4  ;;  %s2184_s13 = scalar_lea.hbm %s3005_s11, 32  ;;  %s1453_s25 = int_to_ptr.hbm [resolvable:$true] %s1452_s25 }
  0x37   : > { %776 = vmatpush.bf16.msrb.mxu3 %v1581_v56  ;;  %v2015_v56 = vld [vmem:[%s2999_s5 + $0x34] sm:$0xf0]  ;;  %1137 = vmatpush.bf16.msrb.mxu1 %v1733_v44  ;;  %v2054_v44 = vld [vmem:[%s2999_s5 + $0x174] sm:$0xf]  ;;  %s2178_s26 = sshra.s32 %s1453_s25, 4  ;;  %s2179_s26 = int_to_ptr.hbm [resolvable:$true] %s2178_s26 }
  0x38   : > { %s2180_s21 = scalar_lea.hbm %s2179_s26, 16  ;;  %p2185_p1 = scmp.lt.s32.totalorder %s2179_s26, %s3005_s11 }
  0x39   : > { %p2181_p12 = scmp.ne.s32.totalorder %s2179_s26, %s2180_s21  ;;  %p2186_p2 = scmp.lt.s32.totalorder %s2184_s13, %s2180_s21 }
  0x3b   : > { %p2182_p13 = pnand %p2181_p12, %p2349_p4  ;;  %p2187_p3 = por %p2186_p2, %p2185_p1 }
  0x3d   : > { %p2183_p0 = pneg %p2182_p13 }
  0x3f   : > { %p2188_p5 = pnand %p2187_p3, %p2183_p0 }
  0x77   : > { %v615_v53 = vpop.permute.xlu2 %614 }
  0x78   : > { %v622_v62 = vmul.f32 %v621_v59, %v615_v53 }
  0x7f   : > { %v619_v8 = vpop.permute.xlu2 %618 }
  0x80   : > { %v623_v28 = vmul.f32 %v621_v59, %v619_v8  ;;  %v1725_v59 = vor.u32 %v2031_v51, %v1724_v50  ;;  %v2045_v8 = vld [vmem:[%s2999_s5 + $0x124] sm:$0xf0]  ;;  %v2063_v51 = vld [vmem:[%s2999_s5 + $0x1b4] sm:$0xf0] }
  0x82   : > { %1138 = vmatpush.bf16.msrb.mxu1 %v1725_v59  ;;  %v2032_v59 = vld [vmem:[%s2999_s5 + $0xc4] sm:$0xf] }
  0x8e   : > { %v602_v57 = vpop.permute.xlu1 %601  ;;  %v590_v58 = vpop.permute.xlu0 %589 }
  0x8f   : > { %v609_v60 = vmul.f32 %v608_v54, %v602_v57  ;;  %v598_v61 = vmul.f32 %v597_v55, %v590_v58  ;;  %v1788_v57 = vld [vmem:[%s2999_s5 + $0x130] sm:$0xf]  ;;  %v1885_v58 = vor.u32 %v2071_v47, %v1884_v46  ;;  %v2034_v47 = vld [vmem:[%s2999_s5 + $0xd4] sm:$0xf] }
  0x91   : > { %v611_v63 = vadd.f32 %v609_v60, %v598_v61  ;;  %v2047_v60 = vld [vmem:[%s2999_s5 + $0x134] sm:$0xf0]  ;;  %v1876_v61 = vld [vmem:[%s2999_s5 + $0x1e0] sm:$0xf] }
  0x92   : > { %v1789_v2 = vor.u32 %v2047_v60, %v1788_v57  ;;  %v1814_v57 = vld [vmem:[%s2999_s5 + $0x168] sm:$0xf0] }
  0x93   : > { %v624_v19 = vadd.f32 %v622_v62, %v611_v63  ;;  %v2069_v62 = vld [vmem:[%s2999_s5 + $0x1e4] sm:$0xf0]  ;;  %v1716_v63 = vld [vmem:[%s2999_s5 + $0xa0] sm:$0xf]  ;;  %v1734_v60 = vld [vmem:[%s2999_s5 + $0xc8] sm:$0xf0] }
  0x94   : > { %v1877_v5 = vor.u32 %v2069_v62, %v1876_v61  ;;  %v1717_v6 = vor.u32 %v2029_v0, %v1716_v63  ;;  %v1737_v61 = vor.u32 %v2032_v59, %v1734_v60  ;;  %v1844_v62 = vld [vmem:[%s2999_s5 + $0x1a0] sm:$0xf]  ;;  %v2061_v63 = vld [vmem:[%s2999_s5 + $0x1a4] sm:$0xf0]  ;;  %v2008_v60 = vld [vmem:[%s2999_s5 + $0x4] sm:$0xf] }
  0x95   : > { %v629_v34 = vadd.f32 %v2161_v7, %v624_v19  ;;  %v1761_v19 = vor.u32 %v2038_v17, %v1758_v18  ;;  %v1845_v0 = vor.u32 %v2061_v63, %v1844_v62  ;;  %v1798_v17 = vld [vmem:[%s2999_s5 + $0x148] sm:$0xf0]  ;;  %v2040_v62 = vld [vmem:[%s2999_s5 + $0x104] sm:$0xf] }
  0x96   : > { %v606_v12 = vpop.permute.xlu1 %605  ;;  %v595_v13 = vpop.permute.xlu0 %594  ;;  %1139 = vmatpush.bf16.msrb.mxu1 %v1717_v6  ;;  %v1801_v18 = vor.u32 %v2048_v15, %v1798_v17 }
  0x97   : > { %v610_v20 = vmul.f32 %v608_v54, %v606_v12  ;;  %v599_v21 = vmul.f32 %v597_v55, %v595_v13  ;;  %v631_v48 = vmax.f32 %v629_v34, 0.0  ;;  %v1797_v54 = vor.u32 %v2049_v45, %v1796_v43  ;;  %v1660_v55 = vld [vmem:[%s2999_s5 + $0x30] sm:$0xf]  ;;  %v1764_v34 = vld [vmem:[%s2999_s5 + $0x100] sm:$0xf] }
  0x98   : > { %v1661_v1 = vor.u32 %v2015_v56, %v1660_v55  ;;  %v1709_v13 = vor.u32 %v2027_v10, %v1708_v9  ;;  %v1765_v39 = vor.u32 %v2041_v36, %v1764_v34  ;;  %v1697_v43 = vor.u32 %v2022_v41, %v1694_v42  ;;  %v1822_v45 = vld [vmem:[%s2999_s5 + $0x178] sm:$0xf0]  ;;  %v2052_v56 = vld [vmem:[%s2999_s5 + $0x164] sm:$0xf]  ;;  %v1836_v10 = vld [vmem:[%s2999_s5 + $0x190] sm:$0xf] }
  0x99   : > { %v612_v29 = vadd.f32 %v610_v20, %v599_v21  ;;  %1151 = vmatpush.bf16.msrb.mxu2 %v1797_v54  ;;  %v1644_v20 = vld [vmem:[%s2999_s5 + $0x10] sm:$0xf]  ;;  %v2011_v21 = vld [vmem:[%s2999_s5 + $0x14] sm:$0xf0]  ;;  %v1825_v46 = vor.u32 %v2054_v44, %v1822_v45  ;;  %v2026_v34 = vld [vmem:[%s2999_s5 + $0x94] sm:$0xf] }
  0x9a   : > { %1124 = vmatpush.bf16.msra.mxu0 %v1661_v1  ;;  %1140 = vmatpush.bf16.msrb.mxu1 %v1709_v13  ;;  %v1645_v23 = vor.u32 %v2011_v21, %v1644_v20  ;;  %v2018_v1 = vld [vmem:[%s2999_s5 + $0x54] sm:$0xf]  ;;  %v2016_v13 = vld [vmem:[%s2999_s5 + $0x44] sm:$0xf]  ;;  %v1718_v20 = vld [vmem:[%s2999_s5 + $0xa8] sm:$0xf0] }
  0x9b   : > { %v625_v35 = vadd.f32 %v623_v28, %v612_v29  ;;  %v1869_v28 = vor.u32 %v2067_v26, %v1868_v25  ;;  %v2036_v29 = vld [vmem:[%s2999_s5 + $0xe4] sm:$0xf]  ;;  %v2014_v25 = vld [vmem:[%s2999_s5 + $0x34] sm:$0xf]  ;;  %v1662_v26 = vld [vmem:[%s2999_s5 + $0x38] sm:$0xf0] }
  0x9c   : > { %v1753_v31 = vor.u32 %v2036_v29, %v1750_v30  ;;  %v1790_v29 = vld [vmem:[%s2999_s5 + $0x138] sm:$0xf0]  ;;  %v2070_v30 = vld [vmem:[%s2999_s5 + $0x1f4] sm:$0xf]  ;;  %v1782_v41 = vld [vmem:[%s2999_s5 + $0x128] sm:$0xf0] }
  0x9d   : > { %v630_v40 = vadd.f32 %v2161_v7, %v625_v35  ;;  %v1780_v7 = vld [vmem:[%s2999_s5 + $0x120] sm:$0xf]  ;;  %1152 = vmatpush.bf16.msrb.mxu2 %v1789_v2  ;;  %v1637_v35 = vor.u32 %v2009_v33, %v1636_v32  ;;  %v1678_v2 = vld [vmem:[%s2999_s5 + $0x58] sm:$0xf0]  ;;  %v2068_v42 = vld [vmem:[%s2999_s5 + $0x1e4] sm:$0xf] }
  0x9e   : > { %v1781_v12 = vor.u32 %v2045_v8, %v1780_v7  ;;  %1125 = vmatpush.bf16.msra.mxu0 %v1653_v11  ;;  %1141 = vmatpush.bf16.msrb.mxu1 %v1701_v16  ;;  %v1681_v4 = vor.u32 %v2018_v1, %v1678_v2  ;;  %v2030_v7 = vld [vmem:[%s2999_s5 + $0xb4] sm:$0xf]  ;;  %v1726_v8 = vld [vmem:[%s2999_s5 + $0xb8] sm:$0xf0]  ;;  %v2059_v11 = vld [vmem:[%s2999_s5 + $0x194] sm:$0xf0]  ;;  %v1673_v16 = vor.u32 %v2016_v13, %v1670_v14 }
  0x9f   : > { %v632_v49 = vmax.f32 %v630_v40, 0.0  ;;  %v1861_v40 = vor.u32 %v2065_v38, %v1860_v37  ;;  %v1729_v9 = vor.u32 %v2030_v7, %v1726_v8  ;;  %v2012_v37 = vld [vmem:[%s2999_s5 + $0x24] sm:$0xf]  ;;  %v1654_v38 = vld [vmem:[%s2999_s5 + $0x28] sm:$0xf0] }
  0xa0   : > { %v2064_v1 = vld [vmem:[%s2999_s5 + $0x1c4] sm:$0xf]  ;;  %v1862_v2 = vld [vmem:[%s2999_s5 + $0x1c8] sm:$0xf0]  ;;  %v1854_v7 = vld [vmem:[%s2999_s5 + $0x1b8] sm:$0xf0] }
  0xa1   : > { %v633_v53 = vpack.c.bf16 %v632_v49, %v631_v48  ;;  %1153 = vmatpush.bf16.msrb.mxu2 %v1781_v12  ;;  %v1742_v48 = vld [vmem:[%s2999_s5 + $0xd8] sm:$0xf0]  ;;  %v1852_v49 = vld [vmem:[%s2999_s5 + $0x1b0] sm:$0xf]  ;;  %v1837_v12 = vor.u32 %v2059_v11, %v1836_v10  ;;  %v2060_v10 = vld [vmem:[%s2999_s5 + $0x1a4] sm:$0xf] }
  0xa2   : > { %1126 = vmatpush.bf16.msra.mxu0 %v1645_v23  ;;  %v1745_v50 = vor.u32 %v2034_v47, %v1742_v48  ;;  %v1853_v54 = vor.u32 %v2063_v51, %v1852_v49  ;;  %v2057_v23 = vld [vmem:[%s2999_s5 + $0x184] sm:$0xf0]  ;;  %v1702_v47 = vld [vmem:[%s2999_s5 + $0x88] sm:$0xf0]  ;;  %v2010_v49 = vld [vmem:[%s2999_s5 + $0x14] sm:$0xf] }
  0xa3   : > { %1630 = vmatmul.msk.bf16.vlgmr.msra.gmra.mxu3 %vm723_vm0, %v633_v53  ;;  %1631 = vmatmul.msk.bf16.vlgmr.msra.gmra.mxu1 %vm723_vm0, %v633_v53  ;;  %v1829_v24 = vor.u32 %v2057_v23, %v1828_v22  ;;  %v2042_v51 = vld [vmem:[%s2999_s5 + $0x114] sm:$0xf]  ;;  %v1846_v11 = vld [vmem:[%s2999_s5 + $0x1a8] sm:$0xf0] }
  0xa4   : > { %1632 = vmatmul.msk.bf16.vlgmr.msra.gmra.mxu2 %vm723_vm0, %v633_v53  ;;  %1162 = vmatpush.bf16.msra.mxu3 %v1885_v58  ;;  %v1817_v58 = vor.u32 %v2052_v56, %v1814_v57  ;;  %v1849_v15 = vor.u32 %v2060_v10, %v1846_v11 }
  0xa5   : > { %1190 = vmatpush.bf16.msra.mxu1 %v1761_v19  ;;  %1154 = vmatpush.bf16.msrb.mxu2 %v1773_v27  ;;  %v2028_v19 = vld [vmem:[%s2999_s5 + $0xa4] sm:$0xf]  ;;  %v2046_v27 = vld [vmem:[%s2999_s5 + $0x134] sm:$0xf] }
  0xa6   : > { %1127 = vmatpush.bf16.msra.mxu0 %v1637_v35  ;;  %v1721_v21 = vor.u32 %v2028_v19, %v1718_v20  ;;  %v1793_v32 = vor.u32 %v2046_v27, %v1790_v29  ;;  %v1710_v35 = vld [vmem:[%s2999_s5 + $0x98] sm:$0xf0]  ;;  %v1830_v27 = vld [vmem:[%s2999_s5 + $0x188] sm:$0xf0] }
  0xa7   : > { %v1713_v36 = vor.u32 %v2026_v34, %v1710_v35  ;;  %v1838_v19 = vld [vmem:[%s2999_s5 + $0x198] sm:$0xf0] }
  0xa8   : > { %1163 = vmatpush.bf16.msra.mxu3 %v1877_v5  ;;  %v1806_v5 = vld [vmem:[%s2999_s5 + $0x158] sm:$0xf0] }
  0xa9   : > { %1191 = vmatpush.bf16.msra.mxu1 %v1753_v31  ;;  %1155 = vmatpush.bf16.msrb.mxu2 %v1765_v39  ;;  %v1809_v6 = vor.u32 %v2050_v3, %v1806_v5  ;;  %v1886_v31 = vld [vmem:[%s2999_s5 + $0x1f8] sm:$0xf0]  ;;  %v2044_v39 = vld [vmem:[%s2999_s5 + $0x124] sm:$0xf] }
  0xaa   : > { %1176 = vmatpush.bf16.msrb.mxu0 %v1697_v43  ;;  %v1889_v33 = vor.u32 %v2070_v30, %v1886_v31  ;;  %v1878_v43 = vld [vmem:[%s2999_s5 + $0x1e8] sm:$0xf0]  ;;  %v1785_v44 = vor.u32 %v2044_v39, %v1782_v41 }
  0xab   : > { %v1881_v45 = vor.u32 %v2068_v42, %v1878_v43 }
  0xac   : > { %1164 = vmatpush.bf16.msra.mxu3 %v1869_v28  ;;  %v1665_v28 = vor.u32 %v2014_v25, %v1662_v26  ;;  %v2056_v26 = vld [vmem:[%s2999_s5 + $0x184] sm:$0xf] }
  0xad   : > { %1204 = vmatpush.bf16.msra.mxu2 %v1825_v46  ;;  %1192 = vmatpush.bf16.msra.mxu1 %v1745_v50  ;;  %v2024_v46 = vld [vmem:[%s2999_s5 + $0x84] sm:$0xf]  ;;  %v1646_v50 = vld [vmem:[%s2999_s5 + $0x18] sm:$0xf0] }
  0xae   : > { %v1705_v48 = vor.u32 %v2024_v46, %v1702_v47 }
  0xb0   : > { %1165 = vmatpush.bf16.msra.mxu3 %v1861_v40  ;;  %v1657_v40 = vor.u32 %v2012_v37, %v1654_v38 }
  0xb1   : > { %1205 = vmatpush.bf16.msra.mxu2 %v1817_v58  ;;  %1193 = vmatpush.bf16.msra.mxu1 %v1737_v61  ;;  %v2828_v58 = vld [vmem:[%s448_s30] sm:$0xf]  ;;  %v1638_v61 = vld [vmem:[%s2999_s5 + $0x8] sm:$0xf0]  ;;  %s430_s30 = scalar_lea.vmem [#allocation2], %s1561_s0 }
  0xb2   : > { %v1641_v63 = vor.u32 %v2008_v60, %v1638_v61  ;;  %v636_v5 = vperm.slane %v2828_v58, 1  ;;  %v637_v20 = vperm.slane %v2828_v58, 2  ;;  %v638_v41 = vperm.slane %v2828_v58, 3  ;;  %v2083_v60 = vld [vmem:[%s3001_s7 + $0x58] sm:$0xff]  ;;  %s1450_s23 = sshll.u32 %s430_s30, 4  ;;  %s1451_s23 = int_to_ptr.vmem [resolvable:$true] %s1450_s23 }
  0xb3   : > { %1633 = vmatmul.msk.bf16.vlgmr.msrb.gmra.mxu3 %vm723_vm0, %v633_v53  ;;  %v1686_v53 = vld [vmem:[%s2999_s5 + $0x68] sm:$0xf0] }
  0xb4   : > { %v1689_v55 = vor.u32 %v2020_v52, %v1686_v53  ;;  %1166 = vmatpush.bf16.msra.mxu3 %v1853_v54  ;;  %v1649_v52 = vor.u32 %v2010_v49, %v1646_v50  ;;  %v1774_v53 = vld [vmem:[%s2999_s5 + $0x118] sm:$0xf0]  ;;  %v2066_v54 = vld [vmem:[%s2999_s5 + $0x1d4] sm:$0xf]  ;;  %v2077_v50 = vld [vmem:[%s3001_s7 + $0x28] sm:$0xff] }
  0xb5   : > { %1206 = vmatpush.bf16.msra.mxu2 %v1809_v6  ;;  %1194 = vmatpush.bf16.msra.mxu1 %v1729_v9  ;;  %v1777_v56 = vor.u32 %v2042_v51, %v1774_v53  ;;  %v2062_v6 = vld [vmem:[%s2999_s5 + $0x1b4] sm:$0xf]  ;;  %v2076_v51 = vld [vmem:[%s3001_s7 + $0x20] sm:$0xff]  ;;  %v2087_v53 = vld [vmem:[%s3001_s7 + $0x78] sm:$0xff] }
  0xb6   : > { %1177 = vmatpush.bf16.msrb.mxu0 %v1689_v55  ;;  %v1870_v55 = vld [vmem:[%s2999_s5 + $0x1d8] sm:$0xf0]  ;;  %v1857_v8 = vor.u32 %v2062_v6, %v1854_v7  ;;  %v2078_v49 = vld [vmem:[%s3001_s7 + $0x30] sm:$0xff] }
  0xb7   : > { %v1873_v57 = vor.u32 %v2066_v54, %v1870_v55  ;;  %v2074_v54 = vld [vmem:[%s3001_s7 + $0x10] sm:$0xff] }
  0xb8   : > { %1167 = vmatpush.bf16.msra.mxu3 %v1845_v0  ;;  %v1766_v0 = vld [vmem:[%s2999_s5 + $0x108] sm:$0xf0]  ;;  %v2086_v55 = vld [vmem:[%s3001_s7 + $0x70] sm:$0xff] }
  0xb9   : > { %1207 = vmatpush.bf16.msra.mxu2 %v1801_v18  ;;  %1195 = vmatpush.bf16.msra.mxu1 %v1721_v21  ;;  %v1769_v3 = vor.u32 %v2040_v62, %v1766_v0  ;;  %v2058_v18 = vld [vmem:[%s2999_s5 + $0x194] sm:$0xf] }
  0xba   : > { %1178 = vmatpush.bf16.msrb.mxu0 %v1681_v4  ;;  %v1865_v4 = vor.u32 %v2064_v1, %v1862_v2  ;;  %v1841_v23 = vor.u32 %v2058_v18, %v1838_v19  ;;  %v2082_v62 = vld [vmem:[%s3001_s7 + $0x50] sm:$0xff]  ;;  %v2081_v1 = vld [vmem:[%s3001_s7 + $0x48] sm:$0xff]  ;;  %v534_v2 = vld [vmem:[%s3000_s6] sm:$0x3] }
  0xbc   : > { %1168 = vmatpush.bf16.msra.mxu3 %v1837_v12 }
  0xbd   : > { %1208 = vmatpush.bf16.msra.mxu2 %v1793_v32  ;;  %1196 = vmatpush.bf16.msra.mxu1 %v1713_v36 }
  0xbe   : > { %1179 = vmatpush.bf16.msrb.mxu0 %v1673_v16  ;;  %v635_v16 = vperm.slane %v2828_v58, 0  ;;  %v2072_v58 = vld [vmem:[%s3001_s7] sm:$0xff] }
  0xc0   : > { %1169 = vmatpush.bf16.msra.mxu3 %v1829_v24 }
  0xc1   : > { %1209 = vmatpush.bf16.msra.mxu2 %v1785_v44  ;;  %1197 = vmatpush.bf16.msra.mxu1 %v1705_v48  ;;  %v2079_v48 = vld [vmem:[%s3001_s7 + $0x38] sm:$0xff] }
  0xc2   : > { %1180 = vmatpush.bf16.msrb.mxu0 %v1665_v28 }
  0xc4   : > { %1218 = vmatpush.bf16.msrb.mxu3 %v1889_v33  ;;  %v1833_v33 = vor.u32 %v2056_v26, %v1830_v27 }
  0xc5   : > { %1210 = vmatpush.bf16.msra.mxu2 %v1777_v56  ;;  %v2073_v56 = vld [vmem:[%s3001_s7 + $0x8] sm:$0xff] }
  0xc6   : > { %1181 = vmatpush.bf16.msrb.mxu0 %v1657_v40 }
  0xc8   : > { %1219 = vmatpush.bf16.msrb.mxu3 %v1881_v45 }
  0xc9   : > { %1211 = vmatpush.bf16.msra.mxu2 %v1769_v3 }
  0xca   : > { %1182 = vmatpush.bf16.msrb.mxu0 %v1649_v52  ;;  %v2075_v52 = vld [vmem:[%s3001_s7 + $0x18] sm:$0xff] }
  0xcc   : > { %1220 = vmatpush.bf16.msrb.mxu3 %v1873_v57  ;;  %v2085_v57 = vld [vmem:[%s3001_s7 + $0x68] sm:$0xff] }
  0xce   : > { %1183 = vmatpush.bf16.msrb.mxu0 %v1641_v63 }
  0xd0   : > { %1221 = vmatpush.bf16.msrb.mxu3 %v1865_v4  ;;  %v796_v4 = vperm.slane %v534_v2, 0 }
  0xd4   : > { %1222 = vmatpush.bf16.msrb.mxu3 %v1857_v8 }
  0xd8   : > { %1223 = vmatpush.bf16.msrb.mxu3 %v1849_v15 }
  0xdc   : > { %1224 = vmatpush.bf16.msrb.mxu3 %v1841_v23 }
  0xe0   : > { %1225 = vmatpush.bf16.msrb.mxu3 %v1833_v33 }
 0x120   : > { %v750_v59 = vpop.f32.mrf.mxu1 }
 0x121   : > { %v751_v12 = vadd.f32 %v750_v59, %v636_v5  ;;  %v2084_v59 = vld [vmem:[%s3001_s7 + $0x60] sm:$0xff] }
 0x123   : > { %v784_v21 = vmax.f32 %v751_v12, 0.0 }
 0x126   : > { %v736_v9 = vpop.f32.mrf.mxu3 }
 0x127   : > { %v764_v13 = vpop.f32.mrf.mxu2  ;;  %v737_v24 = vadd.f32 %v736_v9, %v635_v16 }
 0x128   : > { %v752_v14 = vpop.f32.mrf.mxu1  ;;  %v765_v28 = vadd.f32 %v764_v13, %v637_v20 }
 0x129   : > { %v753_v17 = vadd.f32 %v752_v14, %v636_v5  ;;  %v783_v34 = vmax.f32 %v737_v24, 0.0  ;;  %v2080_v5 = vld [vmem:[%s3001_s7 + $0x40] sm:$0xff] }
 0x12a   : > { %v785_v36 = vmax.f32 %v765_v28, 0.0 }
 0x12b   : > { %v788_v22 = vmax.f32 %v753_v17, 0.0 }
 0x12d   : > { %v792_v25 = vpack.c.bf16 %v788_v22, %v784_v21  ;;  %v797_v21 = vperm.slane %v534_v2, 1 }
 0x12e   : > { %v738_v29 = vpop.f32.mrf.mxu3 }
 0x12f   : > { %v739_v30 = vadd.f32 %v738_v29, %v635_v16  ;;  %v766_v31 = vpop.f32.mrf.mxu2  ;;  %1142 = vmatmul.bf16.vlgmr.msrb.gmra.mxu1 %v792_v25 }
 0x130   : > { %v767_v32 = vadd.f32 %v766_v31, %v637_v20  ;;  %1351 = vmatpush.bf16.msrb.mxu1 %v2087_v53 }
 0x131   : > { %v787_v35 = vmax.f32 %v739_v30, 0.0 }
 0x132   : > { %v789_v37 = vmax.f32 %v767_v32, 0.0 }
 0x133   : > { %v791_v38 = vpack.c.bf16 %v787_v35, %v783_v34 }
 0x134   : > { %v793_v39 = vpack.c.bf16 %v789_v37, %v785_v36  ;;  %1352 = vmatpush.bf16.msrb.mxu1 %v2086_v55 }
 0x135   : > { %1128 = vmatmul.bf16.vlgmr.msra.gmra.mxu0 %v791_v38 }
 0x136   : > { %1156 = vmatmul.bf16.vlgmr.msrb.gmra.mxu2 %v793_v39  ;;  %v778_v40 = vpop.f32.mrf.mxu3  ;;  %1337 = vmatpush.bf16.msra.mxu0 %v2079_v48  ;;  %v2088_v48 = vld [vmem:[%s3003_s9] sm:$0xff] }
 0x137   : > { %v779_v42 = vadd.f32 %v778_v40, %v638_v41 }
 0x138   : > { %1353 = vmatpush.bf16.msrb.mxu1 %v2085_v57 }
 0x139   : > { %v786_v45 = vmax.f32 %v779_v42, 0.0  ;;  %v2094_v42 = vld [vmem:[%s3003_s9 + $0x30] sm:$0xff] }
 0x13a   : > { %1338 = vmatpush.bf16.msra.mxu0 %v2078_v49 }
 0x13c   : > { %1354 = vmatpush.bf16.msrb.mxu1 %v2084_v59 }
 0x13e   : > { %v780_v43 = vpop.f32.mrf.mxu3  ;;  %1339 = vmatpush.bf16.msra.mxu0 %v2077_v50 }
 0x13f   : > { %v781_v44 = vadd.f32 %v780_v43, %v638_v41  ;;  %1198 = vmatmul.bf16.vlgmr.msra.gmra.mxu1 %v792_v25  ;;  %v2095_v41 = vld [vmem:[%s3003_s9 + $0x38] sm:$0xff]  ;;  %v2093_v43 = vld [vmem:[%s3003_s9 + $0x28] sm:$0xff] }
 0x140   : > { %1355 = vmatpush.bf16.msrb.mxu1 %v2083_v60  ;;  %1419 = vmatpush.bf16.msrb.mxu2 %v2095_v41 }
 0x141   : > { %v790_v46 = vmax.f32 %v781_v44, 0.0  ;;  %v2092_v44 = vld [vmem:[%s3003_s9 + $0x20] sm:$0xff] }
 0x142   : > { %1340 = vmatpush.bf16.msra.mxu0 %v2076_v51  ;;  %v2162_v51 = vld [vmem:[%s3002_s8] ss:$0 sm:$0xff] }
 0x143   : > { %v794_v47 = vpack.c.bf16 %v790_v46, %v786_v45  ;;  %v2091_v45 = vld [vmem:[%s3003_s9 + $0x18] sm:$0xff]  ;;  %v2090_v46 = vld [vmem:[%s3003_s9 + $0x10] sm:$0xff] }
 0x144   : > { %1356 = vmatpush.bf16.msrb.mxu1 %v2082_v62  ;;  %1420 = vmatpush.bf16.msrb.mxu2 %v2094_v42 }
 0x145   : > { %1170 = vmatmul.bf16.vlgmr.msra.gmra.mxu3 %v794_v47  ;;  %1184 = vmatmul.bf16.vlgmr.msrb.gmra.mxu0 %v791_v38 }
 0x146   : > { %1212 = vmatmul.bf16.vlgmr.msra.gmra.mxu2 %v793_v39  ;;  %1341 = vmatpush.bf16.msra.mxu0 %v2075_v52 }
 0x148   : > { %1357 = vmatpush.bf16.msrb.mxu1 %v2081_v1  ;;  %1421 = vmatpush.bf16.msrb.mxu2 %v2093_v43 }
 0x14a   : > { %1342 = vmatpush.bf16.msra.mxu0 %v2074_v54 }
 0x14c   : > { %1358 = vmatpush.bf16.msrb.mxu1 %v2080_v5  ;;  %1422 = vmatpush.bf16.msrb.mxu2 %v2092_v44 }
 0x14e   : > { %1343 = vmatpush.bf16.msra.mxu0 %v2073_v56 }
 0x150   : > { %1423 = vmatpush.bf16.msrb.mxu2 %v2091_v45 }
 0x152   : > { %1344 = vmatpush.bf16.msra.mxu0 %v2072_v58 }
 0x154   : > { %1424 = vmatpush.bf16.msrb.mxu2 %v2090_v46 }
 0x155   : > { %1226 = vmatmul.bf16.vlgmr.msrb.gmra.mxu3 %v794_v47  ;;  %v2089_v47 = vld [vmem:[%s3003_s9 + $0x8] sm:$0xff] }
 0x158   : > { %1425 = vmatpush.bf16.msrb.mxu2 %v2089_v47 }
 0x15c   : > { %1426 = vmatpush.bf16.msrb.mxu2 %v2088_v48 }
 0x1ac   : > { %v1143_v63 = vpop.f32.mrf.mxu1 }
 0x1b2   : > { %v1129_v61 = vpop.f32.mrf.mxu0 }
 0x1b3   : > { %v1130_v6 = vadd.f32 %v1129_v61, %v796_v4  ;;  %v2163_v61 = vld [vmem:[%s3004_s10] ss:$0 sm:$0xff] }
 0x1b4   : > { %v1145_v7 = vpop.f32.mrf.mxu1 }
 0x1b5   : > { %v1144_v11 = vadd.f32 %v1143_v63, %v1130_v6 }
 0x1b9   : > { %v1157_v0 = vpop.f32.mrf.mxu2 }
 0x1ba   : > { %v1131_v3 = vpop.f32.mrf.mxu0  ;;  %v1158_v13 = vadd.f32 %v1157_v0, %v1144_v11 }
 0x1bb   : > { %v1132_v10 = vadd.f32 %v1131_v3, %v796_v4 }
 0x1bc   : > { %v1199_v19 = vpop.f32.mrf.mxu1 }
 0x1bd   : > { %v1146_v14 = vadd.f32 %v1145_v7, %v1132_v10 }
 0x1c1   : > { %v1159_v8 = vpop.f32.mrf.mxu2 }
 0x1c2   : > { %v1185_v12 = vpop.f32.mrf.mxu0  ;;  %v1160_v15 = vadd.f32 %v1159_v8, %v1146_v14 }
 0x1c3   : > { %v1186_v26 = vadd.f32 %v1185_v12, %v797_v21 }
 0x1c4   : > { %v1201_v30 = vpop.f32.mrf.mxu1 }
 0x1c5   : > { %v1200_v29 = vadd.f32 %v1199_v19, %v1186_v26 }
 0x1c8   : > { %v1171_v9 = vpop.f32.mrf.mxu3 }
 0x1c9   : > { %v1172_v16 = vadd.f32 %v1171_v9, %v1158_v13  ;;  %v1213_v20 = vpop.f32.mrf.mxu2 }
 0x1ca   : > { %v1187_v25 = vpop.f32.mrf.mxu0  ;;  %v1214_v32 = vadd.f32 %v1213_v20, %v1200_v29 }
 0x1cb   : > { %v1232_v22 = vmax.f32 %v1172_v16, 0.0  ;;  %v1188_v28 = vadd.f32 %v1187_v25, %v797_v21 }
 0x1cd   : > { %v1202_v33 = vadd.f32 %v1201_v30, %v1188_v28 }
 0x1d0   : > { %v1173_v17 = vpop.f32.mrf.mxu3 }
 0x1d1   : > { %v1174_v18 = vadd.f32 %v1173_v17, %v1160_v15  ;;  %v1215_v31 = vpop.f32.mrf.mxu2 }
 0x1d2   : > { %v1216_v34 = vadd.f32 %v1215_v31, %v1202_v33 }
 0x1d3   : > { %v1234_v23 = vmax.f32 %v1174_v18, 0.0 }
 0x1d5   : > { %v1236_v24 = vpack.c.bf16 %v1234_v23, %v1232_v22 }
 0x1d7   : > { %1345 = vmatmul.bf16.vlgmr.msra.gmra.mxu0 %v1236_v24 }
 0x1d8   : > { %v1227_v27 = vpop.f32.mrf.mxu3 }
 0x1d9   : > { %v1228_v35 = vadd.f32 %v1227_v27, %v1214_v32 }
 0x1db   : > { %v1233_v38 = vmax.f32 %v1228_v35, 0.0 }
 0x1e0   : > { %v1229_v36 = vpop.f32.mrf.mxu3 }
 0x1e1   : > { %v1230_v37 = vadd.f32 %v1229_v36, %v1216_v34 }
 0x1e3   : > { %v1235_v39 = vmax.f32 %v1230_v37, 0.0 }
 0x1e5   : > { %v1237_v40 = vpack.c.bf16 %v1235_v39, %v1233_v38 }
 0x1e7   : > { %1359 = vmatmul.bf16.vlgmr.msrb.gmra.mxu1 %v1237_v40 }
 0x254   : > { %v1346_v49 = vpop.f32.mrf.mxu0 }
 0x255   : > { %v1347_v53 = vadd.f32 %v2162_v51, %v1346_v49 }
 0x25c   : > { %v1348_v52 = vpop.f32.mrf.mxu0 }
 0x25d   : > { %v1349_v54 = vadd.f32 %v2162_v51, %v1348_v52 }
 0x264   : > { %v1360_v50 = vpop.f32.mrf.mxu1 }
 0x265   : > { %v1361_v55 = vadd.f32 %v1360_v50, %v1347_v53 }
 0x267   : > { %v1365_v58 = vmax.f32 %v1361_v55, 0.0 }
 0x26c   : > { %v1362_v56 = vpop.f32.mrf.mxu1 }
 0x26d   : > { %v1363_v57 = vadd.f32 %v1362_v56, %v1349_v54 }
 0x26f   : > { %v1366_v59 = vmax.f32 %v1363_v57, 0.0 }
 0x271   : > { %v1367_v60 = vpack.c.bf16 %v1366_v59, %v1365_v58 }
 0x273   : > { %1427 = vmatmul.bf16.vlgmr.msrb.gmra.mxu2 %v1367_v60 }
 0x2f6   : > { %v1428_v62 = vpop.f32.mrf.mxu2 }
 0x2f7   : > { %v1429_v63 = vadd.f32 %v2163_v61, %v1428_v62 }
 0x2f9   : > { %1433 = vst [vmem:[%s430_s30] sm:$0xff] %v1429_v63 }
 0x2fe   : > { %v1430_v0 = vpop.f32.mrf.mxu2 }
 0x2ff   : > { %v1431_v1 = vadd.f32 %v2163_v61, %v1430_v0 }
 0x301   : > { %1434 = vst [vmem:[%s430_s30 + $0x8] sm:$0xff] %v1431_v1 }
 0x302   : > { %2191 = shalt.err (!%p2188_p5)
}
 0x303   : > { %s2247_s14 = smov 128   ;;  %s2248_s30 = smov 8  }
 0x304   : > { %2097 = dma.vmem_to_hbm [thread:$0]  (%p2349_p4), %s1451_s23, 256, %s1453_s25, %s1436_s24, %s2247_s14, %s2247_s14, %s2248_s30  }
 0x305 PF: > { %p2103_p6 = scmp.ge.s32.totalorder %s2242_s22, 2  ;;  %s1467_s28 = sand.u32 1, %s2222_s17  }
 0x306   : > { %s1468_s16 = scalar_lea.sflag [#allocation3], %s1467_s28 }
 0x307   : > { %p2100_p7 = pnand %p2103_p6, %p2356_p8 }
 0x309   : > { %p2101_p9 = pneg %p2100_p7 }
 0x30b   : > { %2217 = dma.done.wait (%p2101_p9), %s1468_s16, 256  }
 0x30c   : > { %2219 = vsyncadd (%p2101_p9), %s1468_s16, 4294967040  ;;  %s24_s22 = sadd.s32 1, %s2242_s22   ;;  %s3015_s26 = sld [smem:[#allocation7_spill]] }
 0x30d   : > { %p21_p10 = scmp.ge.s32.totalorder %s24_s22, 4   ;;  %s3016_s20 = sld [smem:[#allocation5_spill]] }
 0x30e   : > { %s3017_s21 = sld [smem:[#allocation6_spill]]  ;;  %s3018_s17 = smov %s2226_s18 }
 0x30f   : > { %s3019_s18 = smov %s2230_s19  ;;  %23 = sbr.rel (!%p21_p10) target bundleno = 6 (0x6), region = 105 }
 0x312   : > { %s3020_s19 = smov %s3015_s26 }
 0x314   :  { %1474 = vsyncpa [#allocation3], 1 }
 0x315   :  { %1476 = vsyncpa [#allocation3 + $0x1], 1 }

// kernel: pointnet_forward.4
= control target key start
LH: loop header
LB: loop body
LE: loop exit
PB: predicated region body
PF: predicated region fallthrough
CT: control target
= control target key end

     0   :  { %s5015_s30 = smov 0   ;;  %s5017_s10 = smov 0   ;;  %s7138_s0 = inlined_call_operand.vmem [shape: f32[2,16,3], index: 0, kind: input, shape index: {}]   ;;  %s7139_s1 = inlined_call_operand.vmem [shape: f32[2,3,64], index: 1, kind: input, shape index: {}]   ;;  %s7140_s2 = inlined_call_operand.vmem [shape: f32[1,64], index: 2, kind: input, shape index: {}]   ;;  %s7141_s3 = inlined_call_operand.vmem [shape: bf16[64,128], index: 3, kind: input, shape index: {}]   ;;  %s7142_s4 = inlined_call_operand.vmem [shape: f32[1,128], index: 4, kind: input, shape index: {}]   ;;  %s7143_s5 = inlined_call_operand.vmem [shape: bf16[128,1024], index: 5, kind: input, shape index: {}]   ;;  %s7144_s6 = inlined_call_operand.vmem [shape: f32[1,1024], index: 6, kind: input, shape index: {}]   ;;  %s7145_s7 = inlined_call_operand.vmem [shape: bf16[1024,512], index: 7, kind: input, shape index: {}]   ;;  %s7146_s8 = inlined_call_operand.vmem [shape: f32[1,512], index: 8, kind: input, shape index: {}]   ;;  %s7147_s9 = inlined_call_operand.vmem [shape: f32[2,1,512], index: 9, kind: output, shape index: {}]  }
   0x1   :  { %s5019_s11 = smov 0  }
   0x2 LB: > { %s31_s12 = sadd.s32 1, %s4956_s10  ;;  %p3276_p0 = scmp.ge.s32.totalorder %s4960_s11, 1  ;;  %s4960_s11 = sphi %s5019_s11, %s19_s11   ;;  %s4956_s10 = sphi %s5017_s10, %s7151_s10   ;;  %s4952_s30 = sphi %s5015_s30, %s7150_s30  }
   0x3   : > { %p33_p1 = scmp.ge.s32.totalorder %s31_s12, 2  ;;  %p315_p2 = scmp.lt.s32.totalorder %s4960_s11, 3 }
   0x5   : > { %s7153_s12 = smov (%p33_p1, %s31_s12), 0  ;;  %p316_p3 = pnand %p3276_p0, %p315_p2 }
   0x6   : > { %p359_p4 = scmp.lt.s32.totalorder (!%p316_p3), %s4952_s30, 1 }
   0x7   : > { %319 = sbr.rel (%p316_p3) target bundleno = 814 (0x32e), region = 56 }
   0xc   : > { %v4962_v0 = vmov 1   ;;  %v4963_v1 = vmov 0   ;;  %s7155_s30 = smov (!%p359_p4, %s4952_s30), 1  ;;  %v4964_v2 = vmov 2   ;;  %v4584_v5 = vld [vmem:[%s7141_s3 + $0x18] sm:$0xff]  ;;  %v4583_v6 = vld [vmem:[%s7141_s3 + $0x10] sm:$0xff] }
   0xd   : > { %4933 = vset.pattern.permute.xlu1 %v4962_v0  ;;  %4932 = vset.pattern.permute.xlu0 %v4963_v1  ;;  %s4580_s13 = sshll.u32 %s7155_s30, 4  ;;  %s3279_s21 = sshll.u32 %s7155_s30, 2  ;;  %v4582_v7 = vld [vmem:[%s7141_s3 + $0x8] sm:$0xff]  ;;  %v4581_v8 = vld [vmem:[%s7141_s3] sm:$0xff]  ;;  %vm464_vm0 = vcmask 523264   ;;  %vm1068_vm1 = vcmask 1040384  }
   0xe   : > { %4934 = vset.pattern.permute.xlu2 %v4964_v2  ;;  %s366_s16 = scalar_lea.vmem %s7138_s0, %s4580_s13  ;;  %472 = vmatpush.bf16.msra.mxu0 %v4584_v5  ;;  %s371_s26 = scalar_lea.vmem %s7139_s1, %s3279_s21  ;;  %v3356_v12 = vld [vmem:[%s7143_s5 + $0x1c0] sm:$0xf]  ;;  %v4599_v14 = vld [vmem:[%s7143_s5 + $0x1c4] sm:$0xf]  ;;  %v3420_v17 = vld [vmem:[%s7143_s5 + $0x1c8] sm:$0xf] }
   0xf   : > { %v388_v3 = vld [vmem:[%s366_s16] sm:$0xff]  ;;  %v389_v4 = vld [vmem:[%s366_s16 + $0x8] sm:$0xff]  ;;  %vm3183_vm3 = vcmask 1042434   ;;  %vm3185_vm4 = vcmask 1041408   ;;  %s375_s29 = scalar_lea.vmem %s7147_s9, %s3279_s21 }
  0x10   : > { %404 = vperm.xlu1 %4933, %v388_v3   ;;  %392 = vperm.xlu0 %4932, %v388_v3   ;;  %v5057_v9 = vld [vmem:[%s371_s26] sm:$0x7]  ;;  %v3358_v16 = vld [vmem:[%s7143_s5 + $0x1e0] sm:$0xf0]  ;;  %v4616_v18 = vld [vmem:[%s7143_s5 + $0x1e4] sm:$0xf0] }
  0x11   : > { %417 = vperm.xlu2 %4934, %v388_v3   ;;  %v411_v10 = vperm.slane %v5057_v9, 1  ;;  %v400_v11 = vperm.slane %v5057_v9, 0  ;;  %v4600_v13 = vld [vmem:[%s7143_s5 + $0x1dc] sm:$0xf0]  ;;  %v3361_v19 = vor.u32 %v4599_v14, %v3358_v16  ;;  %v3421_v20 = vor.u32 %v4616_v18, %v3420_v17  ;;  %v4615_v21 = vld [vmem:[%s7143_s5 + $0x1cc] sm:$0xf] }
  0x12   : > { %473 = vmatpush.bf16.msra.mxu0 %v4583_v6  ;;  %v3357_v15 = vor.u32 %v4600_v13, %v3356_v12  ;;  %v3422_v22 = vld [vmem:[%s7143_s5 + $0x1e8] sm:$0xf0]  ;;  %v3348_v23 = vld [vmem:[%s7143_s5 + $0x180] sm:$0xf]  ;;  %v4597_v26 = vld [vmem:[%s7143_s5 + $0x184] sm:$0xf] }
  0x13   : > { %v3425_v24 = vor.u32 %v4615_v21, %v3422_v22  ;;  %v4598_v25 = vld [vmem:[%s7143_s5 + $0x19c] sm:$0xf0]  ;;  %v3350_v27 = vld [vmem:[%s7143_s5 + $0x1a0] sm:$0xf0]  ;;  %601 = vmatpush.bf16.msra.mxu2 %v3361_v19  ;;  %731 = vmatpush.bf16.msra.mxu3 %v3421_v20  ;;  %v3412_v30 = vld [vmem:[%s7143_s5 + $0x188] sm:$0xf] }
  0x14   : > { %587 = vmatpush.bf16.msra.mxu1 %v3357_v15  ;;  %v3349_v28 = vor.u32 %v4598_v25, %v3348_v23  ;;  %v3353_v29 = vor.u32 %v4597_v26, %v3350_v27  ;;  %v4614_v31 = vld [vmem:[%s7143_s5 + $0x1a4] sm:$0xf0]  ;;  %v4613_v32 = vld [vmem:[%s7143_s5 + $0x18c] sm:$0xf]  ;;  %v3340_v35 = vld [vmem:[%s7143_s5 + $0x140] sm:$0xf] }
  0x15   : > { %v3413_v33 = vor.u32 %v4614_v31, %v3412_v30  ;;  %v3414_v34 = vld [vmem:[%s7143_s5 + $0x1a8] sm:$0xf0]  ;;  %v4596_v36 = vld [vmem:[%s7143_s5 + $0x15c] sm:$0xf0]  ;;  %v4595_v38 = vld [vmem:[%s7143_s5 + $0x144] sm:$0xf] }
  0x16   : > { %474 = vmatpush.bf16.msra.mxu0 %v4582_v7  ;;  %v3417_v37 = vor.u32 %v4613_v32, %v3414_v34  ;;  %v3342_v39 = vld [vmem:[%s7143_s5 + $0x160] sm:$0xf0]  ;;  %v3404_v40 = vld [vmem:[%s7143_s5 + $0x148] sm:$0xf]  ;;  %v3341_v41 = vor.u32 %v4596_v36, %v3340_v35  ;;  %v4611_v43 = vld [vmem:[%s7143_s5 + $0x14c] sm:$0xf] }
  0x17   : > { %v4612_v42 = vld [vmem:[%s7143_s5 + $0x164] sm:$0xf0]  ;;  %v3406_v44 = vld [vmem:[%s7143_s5 + $0x168] sm:$0xf0]  ;;  %602 = vmatpush.bf16.msra.mxu2 %v3353_v29  ;;  %732 = vmatpush.bf16.msra.mxu3 %v3413_v33  ;;  %v3345_v46 = vor.u32 %v4595_v38, %v3342_v39  ;;  %v3332_v48 = vld [vmem:[%s7143_s5 + $0x100] sm:$0xf] }
  0x18   : > { %408 = vperm.xlu1 %4933, %v389_v4   ;;  %397 = vperm.xlu0 %4932, %v389_v4   ;;  %v3405_v47 = vor.u32 %v4612_v42, %v3404_v40  ;;  %v4594_v49 = vld [vmem:[%s7143_s5 + $0x11c] sm:$0xf0]  ;;  %v4593_v50 = vld [vmem:[%s7143_s5 + $0x104] sm:$0xf]  ;;  %v3409_v51 = vor.u32 %v4611_v43, %v3406_v44  ;;  %v3396_v53 = vld [vmem:[%s7143_s5 + $0x108] sm:$0xf] }
  0x19   : > { %421 = vperm.xlu2 %4934, %v389_v4   ;;  %588 = vmatpush.bf16.msra.mxu1 %v3349_v28  ;;  %v3334_v52 = vld [vmem:[%s7143_s5 + $0x120] sm:$0xf0]  ;;  %v4610_v54 = vld [vmem:[%s7143_s5 + $0x124] sm:$0xf0]  ;;  %v4609_v55 = vld [vmem:[%s7143_s5 + $0x10c] sm:$0xf]  ;;  %v3333_v60 = vor.u32 %v4594_v49, %v3332_v48 }
  0x1a   : > { %475 = vmatpush.bf16.msra.mxu0 %v4581_v8  ;;  %v3398_v56 = vld [vmem:[%s7143_s5 + $0x128] sm:$0xf0]  ;;  %v424_v57 = vperm.slane %v5057_v9, 2  ;;  %v3337_v61 = vor.u32 %v4593_v50, %v3334_v52  ;;  %v3397_v0 = vor.u32 %v4610_v54, %v3396_v53  ;;  %v3324_v1 = vld [vmem:[%s7143_s5 + $0xc0] sm:$0xf] }
  0x1b   : > { %603 = vmatpush.bf16.msra.mxu2 %v3345_v46  ;;  %733 = vmatpush.bf16.msra.mxu3 %v3405_v47  ;;  %v4591_v3 = vld [vmem:[%s7143_s5 + $0xc4] sm:$0xf]  ;;  %v3401_v4 = vor.u32 %v4609_v55, %v3398_v56  ;;  %v3388_v6 = vld [vmem:[%s7143_s5 + $0xc8] sm:$0xf]  ;;  %v4607_v8 = vld [vmem:[%s7143_s5 + $0xcc] sm:$0xf] }
  0x1c   : > { %v3326_v5 = vld [vmem:[%s7143_s5 + $0xe0] sm:$0xf0]  ;;  %v4608_v7 = vld [vmem:[%s7143_s5 + $0xe4] sm:$0xf0]  ;;  %v3390_v12 = vld [vmem:[%s7143_s5 + $0xe8] sm:$0xf0] }
  0x1d   : > { %589 = vmatpush.bf16.msra.mxu1 %v3341_v41  ;;  %v3316_v16 = vld [vmem:[%s7143_s5 + $0x80] sm:$0xf]  ;;  %v3329_v17 = vor.u32 %v4591_v3, %v3326_v5  ;;  %v3389_v18 = vor.u32 %v4608_v7, %v3388_v6  ;;  %v4589_v20 = vld [vmem:[%s7143_s5 + $0x84] sm:$0xf]  ;;  %v3393_v22 = vor.u32 %v4607_v8, %v3390_v12  ;;  %v3380_v23 = vld [vmem:[%s7143_s5 + $0x88] sm:$0xf] }
  0x1e   : > { %745 = vmatpush.bf16.msrb.mxu0 %v3425_v24  ;;  %v4590_v19 = vld [vmem:[%s7143_s5 + $0x9c] sm:$0xf0]  ;;  %v3318_v21 = vld [vmem:[%s7143_s5 + $0xa0] sm:$0xf0]  ;;  %v4606_v24 = vld [vmem:[%s7143_s5 + $0xa4] sm:$0xf0] }
  0x1f   : > { %604 = vmatpush.bf16.msra.mxu2 %v3337_v61  ;;  %734 = vmatpush.bf16.msra.mxu3 %v3397_v0  ;;  %v4605_v26 = vld [vmem:[%s7143_s5 + $0x8c] sm:$0xf]  ;;  %v4936_v31 = vld [vmem:[%s7140_s2] ss:$0 sm:$0xff]  ;;  %v3317_v32 = vor.u32 %v4590_v19, %v3316_v16  ;;  %v3321_v33 = vor.u32 %v4589_v20, %v3318_v21  ;;  %v3381_v36 = vor.u32 %v4606_v24, %v3380_v23  ;;  %v4587_v39 = vld [vmem:[%s7143_s5 + $0x44] sm:$0xf] }
  0x20   : > { %4935 = vset.pattern.permute.xlu0 %v4964_v2  ;;  %v4592_v2 = vld [vmem:[%s7143_s5 + $0xdc] sm:$0xf0]  ;;  %v3382_v27 = vld [vmem:[%s7143_s5 + $0xa8] sm:$0xf0]  ;;  %v3310_v9 = vld [vmem:[%s7143_s5 + $0x60] sm:$0xf0] }
  0x21   : > { %590 = vmatpush.bf16.msra.mxu1 %v3333_v60  ;;  %v3325_v15 = vor.u32 %v4592_v2, %v3324_v1  ;;  %v4588_v38 = vld [vmem:[%s7143_s5 + $0x5c] sm:$0xf0]  ;;  %v4604_v40 = vld [vmem:[%s7143_s5 + $0x64] sm:$0xf0]  ;;  %v4603_v43 = vld [vmem:[%s7143_s5 + $0x4c] sm:$0xf]  ;;  %v3313_v48 = vor.u32 %v4587_v39, %v3310_v9 }
  0x22   : > { %746 = vmatpush.bf16.msrb.mxu0 %v3417_v37  ;;  %v3308_v37 = vld [vmem:[%s7143_s5 + $0x40] sm:$0xf]  ;;  %v3374_v44 = vld [vmem:[%s7143_s5 + $0x68] sm:$0xf0]  ;;  %v4585_v53 = vld [vmem:[%s7143_s5 + $0x4] sm:$0xf] }
  0x23   : > { %605 = vmatpush.bf16.msra.mxu2 %v3329_v17  ;;  %735 = vmatpush.bf16.msra.mxu3 %v3389_v18  ;;  %v3309_v46 = vor.u32 %v4588_v38, %v3308_v37  ;;  %v3300_v50 = vld [vmem:[%s7143_s5] sm:$0xf]  ;;  %v3377_v52 = vor.u32 %v4603_v43, %v3374_v44  ;;  %v3302_v54 = vld [vmem:[%s7143_s5 + $0x20] sm:$0xf0]  ;;  %v3364_v55 = vld [vmem:[%s7143_s5 + $0x8] sm:$0xf] }
  0x24   : > { %v3484_v3 = vld [vmem:[%s7143_s5 + $0x1d0] sm:$0xf]  ;;  %v4631_v5 = vld [vmem:[%s7143_s5 + $0x1d4] sm:$0xf]  ;;  %v3548_v8 = vld [vmem:[%s7143_s5 + $0x1d8] sm:$0xf] }
  0x25   : > { %591 = vmatpush.bf16.msra.mxu1 %v3325_v15  ;;  %v3486_v7 = vld [vmem:[%s7143_s5 + $0x1f0] sm:$0xf0]  ;;  %v4648_v12 = vld [vmem:[%s7143_s5 + $0x1f4] sm:$0xf0]  ;;  %v4647_v15 = vld [vmem:[%s7143_s5 + $0x1dc] sm:$0xf] }
  0x26   : > { %747 = vmatpush.bf16.msrb.mxu0 %v3409_v51  ;;  %v4586_v51 = vld [vmem:[%s7143_s5 + $0x1c] sm:$0xf0]  ;;  %v3550_v16 = vld [vmem:[%s7143_s5 + $0x1f8] sm:$0xf0]  ;;  %v3476_v18 = vld [vmem:[%s7143_s5 + $0x190] sm:$0xf] }
  0x27   : > { %606 = vmatpush.bf16.msra.mxu2 %v3321_v33  ;;  %736 = vmatpush.bf16.msra.mxu3 %v3381_v36  ;;  %v3301_v60 = vor.u32 %v4586_v51, %v3300_v50  ;;  %v3553_v17 = vor.u32 %v4647_v15, %v3550_v16  ;;  %v4630_v19 = vld [vmem:[%s7143_s5 + $0x1ac] sm:$0xf0]  ;;  %v4629_v20 = vld [vmem:[%s7143_s5 + $0x194] sm:$0xf]  ;;  %v3540_v23 = vld [vmem:[%s7143_s5 + $0x198] sm:$0xf] }
  0x28   : > { %v3477_v21 = vor.u32 %v4630_v19, %v3476_v18  ;;  %v4646_v24 = vld [vmem:[%s7143_s5 + $0x1b4] sm:$0xf0]  ;;  %v4643_v39 = vld [vmem:[%s7143_s5 + $0x15c] sm:$0xf]  ;;  %v3462_v43 = vld [vmem:[%s7143_s5 + $0x130] sm:$0xf0] }
  0x29   : > { %592 = vmatpush.bf16.msra.mxu1 %v3317_v32  ;;  %v4627_v32 = vld [vmem:[%s7143_s5 + $0x154] sm:$0xf]  ;;  %v4644_v36 = vld [vmem:[%s7143_s5 + $0x174] sm:$0xf0]  ;;  %v3452_v51 = vld [vmem:[%s7143_s5 + $0xd0] sm:$0xf] }
  0x2a   : > { %748 = vmatpush.bf16.msrb.mxu0 %v3401_v4  ;;  %v4632_v4 = vld [vmem:[%s7143_s5 + $0x1ec] sm:$0xf0]  ;;  %v3524_v44 = vld [vmem:[%s7143_s5 + $0x118] sm:$0xf]  ;;  %v4619_v16 = vld [vmem:[%s7143_s5 + $0x54] sm:$0xf] }
  0x2b   : > { %607 = vmatpush.bf16.msra.mxu2 %v3313_v48  ;;  %v3485_v6 = vor.u32 %v4632_v4, %v3484_v3  ;;  %v4641_v48 = vld [vmem:[%s7143_s5 + $0x11c] sm:$0xf]  ;;  %v3500_v18 = vld [vmem:[%s7143_s5 + $0x58] sm:$0xf] }
  0x2d   : > { %593 = vmatpush.bf16.msra.mxu1 %v3309_v46 }
  0x2e   : > { %749 = vmatpush.bf16.msrb.mxu0 %v3393_v22  ;;  %v3478_v22 = vld [vmem:[%s7143_s5 + $0x1b0] sm:$0xf0] }
  0x31   : > { %594 = vmatpush.bf16.msra.mxu1 %v3301_v60  ;;  %v4639_v60 = vld [vmem:[%s7143_s5 + $0xdc] sm:$0xf] }
  0x35   : > { %875 = vmatpush.bf16.msrb.mxu1 %v3485_v6  ;;  %v4638_v6 = vld [vmem:[%s7143_s5 + $0xb4] sm:$0xf0] }
  0x39   : > { %876 = vmatpush.bf16.msrb.mxu1 %v3477_v21  ;;  %v4635_v21 = vld [vmem:[%s7143_s5 + $0x5c] sm:$0xf] }
  0x6b   : > { %v418_v45 = vpop.permute.xlu2 %417 }
  0x6c   : > { %v425_v13 = vmul.f32 %v424_v57, %v418_v45 }
  0x73   : > { %v422_v25 = vpop.permute.xlu2 %421 }
  0x74   : > { %v426_v41 = vmul.f32 %v424_v57, %v422_v25  ;;  %v4602_v57 = vld [vmem:[%s7143_s5 + $0x24] sm:$0xf0]  ;;  %v3481_v25 = vor.u32 %v4629_v20, %v3478_v22  ;;  %v4636_v20 = vld [vmem:[%s7143_s5 + $0x74] sm:$0xf0]  ;;  %v3502_v22 = vld [vmem:[%s7143_s5 + $0x78] sm:$0xf0] }
  0x75   : > { %v3365_v0 = vor.u32 %v4602_v57, %v3364_v55  ;;  %v3454_v55 = vld [vmem:[%s7143_s5 + $0xf0] sm:$0xf0]  ;;  %v4640_v57 = vld [vmem:[%s7143_s5 + $0xf4] sm:$0xf0] }
  0x82   : > { %v405_v58 = vpop.permute.xlu1 %404  ;;  %v393_v59 = vpop.permute.xlu0 %392 }
  0x83   : > { %v412_v62 = vmul.f32 %v411_v10, %v405_v58  ;;  %v401_v63 = vmul.f32 %v400_v11, %v393_v59  ;;  %v4601_v58 = vld [vmem:[%s7143_s5 + $0xc] sm:$0xf] }
  0x84   : > { %v3366_v59 = vld [vmem:[%s7143_s5 + $0x28] sm:$0xf0] }
  0x85   : > { %v414_v14 = vadd.f32 %v412_v62, %v401_v63  ;;  %v3305_v63 = vor.u32 %v4585_v53, %v3302_v54  ;;  %v3369_v1 = vor.u32 %v4601_v58, %v3366_v59  ;;  %v4623_v53 = vld [vmem:[%s7143_s5 + $0xd4] sm:$0xf] }
  0x86   : > { %v3457_v58 = vor.u32 %v4623_v53, %v3454_v55  ;;  %v4775_v53 = vld [vmem:[%s7145_s7 + $0x3ec] sm:$0xf0]  ;;  %v3652_v55 = vld [vmem:[%s7145_s7 + $0xc0] sm:$0xf] }
  0x87   : > { %v427_v28 = vadd.f32 %v425_v13, %v414_v14  ;;  %608 = vmatpush.bf16.msra.mxu2 %v3305_v63  ;;  %v3489_v13 = vor.u32 %v4631_v5, %v3486_v7  ;;  %v3549_v14 = vor.u32 %v4648_v12, %v3548_v8  ;;  %v3508_v5 = vld [vmem:[%s7143_s5 + $0x98] sm:$0xf]  ;;  %v4637_v7 = vld [vmem:[%s7143_s5 + $0x9c] sm:$0xf] }
  0x88   : > { %v3509_v8 = vor.u32 %v4638_v6, %v3508_v5  ;;  %v3510_v12 = vld [vmem:[%s7143_s5 + $0xb8] sm:$0xf0]  ;;  %v3764_v5 = vld [vmem:[%s7145_s7 + $0x1a0] sm:$0xf] }
  0x89   : > { %v432_v45 = vadd.f32 %v4936_v31, %v427_v28  ;;  %v3542_v28 = vld [vmem:[%s7143_s5 + $0x1b8] sm:$0xf0]  ;;  %v3513_v15 = vor.u32 %v4637_v7, %v3510_v12  ;;  %v4703_v7 = vld [vmem:[%s7145_s7 + $0x1ac] sm:$0xf0] }
  0x8a   : > { %v409_v29 = vpop.permute.xlu1 %408  ;;  %v398_v30 = vpop.permute.xlu0 %397  ;;  %v4735_v12 = vld [vmem:[%s7145_s7 + $0x2ac] sm:$0xf0] }
  0x8b   : > { %v413_v34 = vmul.f32 %v411_v10, %v409_v29  ;;  %v402_v35 = vmul.f32 %v400_v11, %v398_v30  ;;  %v3385_v10 = vor.u32 %v4605_v26, %v3382_v27  ;;  %v3372_v11 = vld [vmem:[%s7143_s5 + $0x48] sm:$0xf]  ;;  %v434_v61 = vmax.f32 %v432_v45, 0.0  ;;  %889 = vmatpush.bf16.msrb.mxu2 %v3489_v13  ;;  %v4645_v27 = vld [vmem:[%s7143_s5 + $0x19c] sm:$0xf] }
  0x8c   : > { %v3373_v49 = vor.u32 %v4604_v40, %v3372_v11  ;;  %v3541_v26 = vor.u32 %v4646_v24, %v3540_v23  ;;  %v3545_v29 = vor.u32 %v4645_v27, %v3542_v28  ;;  %v3468_v30 = vld [vmem:[%s7143_s5 + $0x150] sm:$0xf]  ;;  %v4642_v45 = vld [vmem:[%s7143_s5 + $0x134] sm:$0xf0]  ;;  %v3501_v24 = vor.u32 %v4636_v20, %v3500_v18  ;;  %v4617_v27 = vld [vmem:[%s7143_s5 + $0x14] sm:$0xf] }
  0x8d   : > { %v415_v42 = vadd.f32 %v413_v34, %v402_v35  ;;  %750 = vmatpush.bf16.msrb.mxu0 %v3385_v10  ;;  %v3470_v34 = vld [vmem:[%s7143_s5 + $0x170] sm:$0xf0]  ;;  %v3532_v35 = vld [vmem:[%s7143_s5 + $0x158] sm:$0xf]  ;;  %v3534_v10 = vld [vmem:[%s7143_s5 + $0x178] sm:$0xf0]  ;;  %v3505_v28 = vor.u32 %v4635_v21, %v3502_v22 }
  0x8e   : > { %737 = vmatpush.bf16.msra.mxu3 %v3373_v49  ;;  %v3473_v37 = vor.u32 %v4627_v32, %v3470_v34  ;;  %v3533_v38 = vor.u32 %v4644_v36, %v3532_v35  ;;  %v3537_v9 = vor.u32 %v4643_v39, %v3534_v10  ;;  %v3460_v11 = vld [vmem:[%s7143_s5 + $0x110] sm:$0xf]  ;;  %v3526_v49 = vld [vmem:[%s7143_s5 + $0x138] sm:$0xf0]  ;;  %v4937_v39 = vld [vmem:[%s7142_s4] ss:$0 sm:$0xff] }
  0x8f   : > { %v428_v47 = vadd.f32 %v426_v41, %v415_v42  ;;  %890 = vmatpush.bf16.msrb.mxu2 %v3481_v25  ;;  %v4626_v40 = vld [vmem:[%s7143_s5 + $0x12c] sm:$0xf0]  ;;  %v4625_v41 = vld [vmem:[%s7143_s5 + $0x114] sm:$0xf]  ;;  %v3529_v50 = vor.u32 %v4641_v48, %v3526_v49  ;;  %v4633_v32 = vld [vmem:[%s7143_s5 + $0x1c] sm:$0xf] }
  0x90   : > { %v3461_v42 = vor.u32 %v4626_v40, %v3460_v11  ;;  %v3465_v46 = vor.u32 %v4625_v41, %v3462_v43  ;;  %v3436_v13 = vld [vmem:[%s7143_s5 + $0x50] sm:$0xf]  ;;  %v3668_v43 = vld [vmem:[%s7145_s7 + $0xe0] sm:$0xf] }
  0x91   : > { %v433_v56 = vadd.f32 %v4936_v31, %v428_v47  ;;  %751 = vmatpush.bf16.msrb.mxu0 %v3377_v52  ;;  %v4628_v31 = vld [vmem:[%s7143_s5 + $0x16c] sm:$0xf0]  ;;  %v3525_v47 = vor.u32 %v4642_v45, %v3524_v44  ;;  %v3796_v45 = vld [vmem:[%s7145_s7 + $0x1e0] sm:$0xf] }
  0x92   : > { %738 = vmatpush.bf16.msra.mxu3 %v3365_v0  ;;  %v3469_v33 = vor.u32 %v4628_v31, %v3468_v30  ;;  %v4624_v52 = vld [vmem:[%s7143_s5 + $0xec] sm:$0xf0]  ;;  %v3492_v30 = vld [vmem:[%s7143_s5 + $0x18] sm:$0xf]  ;;  %v3924_v48 = vld [vmem:[%s7145_s7 + $0x2e0] sm:$0xf] }
  0x93   : > { %v435_v62 = vmax.f32 %v433_v56, 0.0  ;;  %891 = vmatpush.bf16.msrb.mxu2 %v3473_v37  ;;  %v3453_v54 = vor.u32 %v4624_v52, %v3452_v51  ;;  %v3516_v56 = vld [vmem:[%s7143_s5 + $0xd8] sm:$0xf]  ;;  %v4622_v0 = vld [vmem:[%s7143_s5 + $0xac] sm:$0xf0] }
  0x94   : > { %877 = vmatpush.bf16.msrb.mxu1 %v3469_v33  ;;  %v3517_v59 = vor.u32 %v4640_v57, %v3516_v56  ;;  %v3428_v25 = vld [vmem:[%s7143_s5 + $0x10] sm:$0xf]  ;;  %v4634_v31 = vld [vmem:[%s7143_s5 + $0x34] sm:$0xf0]  ;;  %v3494_v33 = vld [vmem:[%s7143_s5 + $0x38] sm:$0xf0] }
  0x95   : > { %v436_v2 = vpack.c.bf16 %v435_v62, %v434_v61  ;;  %752 = vmatpush.bf16.msrb.mxu0 %v3369_v1  ;;  %v3518_v61 = vld [vmem:[%s7143_s5 + $0xf8] sm:$0xf0]  ;;  %v3444_v62 = vld [vmem:[%s7143_s5 + $0x90] sm:$0xf]  ;;  %v4621_v1 = vld [vmem:[%s7143_s5 + $0x94] sm:$0xf]  ;;  %v3493_v36 = vor.u32 %v4634_v31, %v3492_v30  ;;  %v3497_v37 = vor.u32 %v4633_v32, %v3494_v33 }
  0x96   : > { %1019 = vmatpush.bf16.msrb.mxu3 %v3549_v14  ;;  %v3521_v63 = vor.u32 %v4639_v60, %v3518_v61  ;;  %v3445_v3 = vor.u32 %v4622_v0, %v3444_v62  ;;  %v4620_v14 = vld [vmem:[%s7143_s5 + $0x6c] sm:$0xf0]  ;;  %v4052_v52 = vld [vmem:[%s7145_s7 + $0x3e0] sm:$0xf] }
  0x97   : > { %3297 = vmatmul.msk.bf16.vlgmr.msra.gmra.mxu0 %vm464_vm0, %v436_v2  ;;  %892 = vmatpush.bf16.msrb.mxu2 %v3465_v46  ;;  %v3446_v2 = vld [vmem:[%s7143_s5 + $0xb0] sm:$0xf0]  ;;  %v3437_v19 = vor.u32 %v4620_v14, %v3436_v13  ;;  %v4679_v44 = vld [vmem:[%s7145_s7 + $0xec] sm:$0xf0]  ;;  %v3908_v60 = vld [vmem:[%s7145_s7 + $0x2c0] sm:$0xf]  ;;  %v3765_v13 = vor.u32 %v4703_v7, %v3764_v5 }
  0x98   : > { %878 = vmatpush.bf16.msrb.mxu1 %v3461_v42  ;;  %v3449_v4 = vor.u32 %v4621_v1, %v3446_v2  ;;  %v3669_v46 = vor.u32 %v4679_v44, %v3668_v43  ;;  %v4743_v49 = vld [vmem:[%s7145_s7 + $0x2ec] sm:$0xf0]  ;;  %v3620_v18 = vld [vmem:[%s7145_s7 + $0x80] sm:$0xf] }
  0x99   : > { %1033 = vmatpush.bf16.msra.mxu0 %v3553_v17  ;;  %v3438_v17 = vld [vmem:[%s7143_s5 + $0x70] sm:$0xf0]  ;;  %v3925_v51 = vor.u32 %v4743_v49, %v3924_v48  ;;  %v4675_v56 = vld [vmem:[%s7145_s7 + $0xcc] sm:$0xf0]  ;;  %v3748_v20 = vld [vmem:[%s7145_s7 + $0x180] sm:$0xf] }
  0x9a   : > { %1020 = vmatpush.bf16.msrb.mxu3 %v3541_v26  ;;  %v3441_v23 = vor.u32 %v4619_v16, %v3438_v17  ;;  %v4618_v26 = vld [vmem:[%s7143_s5 + $0x2c] sm:$0xf0]  ;;  %v3653_v57 = vor.u32 %v4675_v56, %v3652_v55  ;;  %v3604_v30 = vld [vmem:[%s7145_s7 + $0x60] sm:$0xf] }
  0x9b   : > { %893 = vmatpush.bf16.msrb.mxu2 %v3457_v58  ;;  %v3429_v34 = vor.u32 %v4618_v26, %v3428_v25  ;;  %v3780_v58 = vld [vmem:[%s7145_s7 + $0x1c0] sm:$0xf]  ;;  %v4739_v62 = vld [vmem:[%s7145_s7 + $0x2cc] sm:$0xf0] }
  0x9c   : > { %879 = vmatpush.bf16.msrb.mxu1 %v3453_v54  ;;  %v4053_v54 = vor.u32 %v4775_v53, %v4052_v52  ;;  %v4771_v0 = vld [vmem:[%s7145_s7 + $0x3cc] sm:$0xf0]  ;;  %v3909_v1 = vor.u32 %v4739_v62, %v3908_v60  ;;  %v3732_v32 = vld [vmem:[%s7145_s7 + $0x160] sm:$0xf] }
  0x9d   : > { %1034 = vmatpush.bf16.msra.mxu0 %v3545_v29  ;;  %v3430_v29 = vld [vmem:[%s7143_s5 + $0x30] sm:$0xf0]  ;;  %v4767_v16 = vld [vmem:[%s7145_s7 + $0x3ac] sm:$0xf0]  ;;  %v3844_v44 = vld [vmem:[%s7145_s7 + $0x240] sm:$0xf] }
  0x9e   : > { %1021 = vmatpush.bf16.msrb.mxu3 %v3533_v38  ;;  %v3433_v35 = vor.u32 %v4617_v27, %v3430_v29  ;;  %v4699_v22 = vld [vmem:[%s7145_s7 + $0x18c] sm:$0xf0]  ;;  %v4004_v27 = vld [vmem:[%s7145_s7 + $0x380] sm:$0xf] }
  0x9f   : > { %894 = vmatpush.bf16.msrb.mxu2 %v3449_v4  ;;  %v4671_v4 = vld [vmem:[%s7145_s7 + $0xac] sm:$0xf0]  ;;  %v3700_v53 = vld [vmem:[%s7145_s7 + $0x120] sm:$0xf] }
  0xa0   : > { %880 = vmatpush.bf16.msrb.mxu1 %v3445_v3  ;;  %v3636_v3 = vld [vmem:[%s7145_s7 + $0xa0] sm:$0xf]  ;;  %v4731_v25 = vld [vmem:[%s7145_s7 + $0x28c] sm:$0xf0] }
  0xa1   : > { %1035 = vmatpush.bf16.msra.mxu0 %v3537_v9  ;;  %v3637_v6 = vor.u32 %v4671_v4, %v3636_v3  ;;  %v4663_v31 = vld [vmem:[%s7145_s7 + $0x6c] sm:$0xf0]  ;;  %v3828_v56 = vld [vmem:[%s7145_s7 + $0x220] sm:$0xf] }
  0xa2   : > { %1022 = vmatpush.bf16.msrb.mxu3 %v3525_v47  ;;  %v4711_v47 = vld [vmem:[%s7145_s7 + $0x1ec] sm:$0xf0]  ;;  %v3605_v33 = vor.u32 %v4663_v31, %v3604_v30  ;;  %v3956_v60 = vld [vmem:[%s7145_s7 + $0x320] sm:$0xf] }
  0xa3   : > { %895 = vmatpush.bf16.msrb.mxu2 %v3441_v23  ;;  %v3749_v23 = vor.u32 %v4699_v22, %v3748_v20  ;;  %v4691_v43 = vld [vmem:[%s7145_s7 + $0x14c] sm:$0xf0]  ;;  %v5631_v62 = vld [vmem:[%s7144_s6] sm:$0x3] }
  0xa4   : > { %881 = vmatpush.bf16.msrb.mxu1 %v3437_v19  ;;  %v4667_v19 = vld [vmem:[%s7145_s7 + $0x8c] sm:$0xf0]  ;;  %v3684_v3 = vld [vmem:[%s7145_s7 + $0x100] sm:$0xf]  ;;  %v503_v7 = vperm.slane %v5631_v62, 0 }
  0xa5   : > { %1036 = vmatpush.bf16.msra.mxu0 %v3529_v50  ;;  %v3797_v50 = vor.u32 %v4711_v47, %v3796_v45  ;;  %v3621_v21 = vor.u32 %v4667_v19, %v3620_v18  ;;  %v3972_v47 = vld [vmem:[%s7145_s7 + $0x340] sm:$0xf]  ;;  %v4755_v48 = vld [vmem:[%s7145_s7 + $0x34c] sm:$0xf0] }
  0xa6   : > { %1023 = vmatpush.bf16.msrb.mxu3 %v3517_v59  ;;  %v4707_v59 = vld [vmem:[%s7145_s7 + $0x1cc] sm:$0xf0]  ;;  %v4180_v19 = vld [vmem:[%s7145_s7 + $0x4e0] sm:$0xf] }
  0xa7   : > { %896 = vmatpush.bf16.msrb.mxu2 %v3433_v35  ;;  %v3781_v61 = vor.u32 %v4707_v59, %v3780_v58  ;;  %v3860_v35 = vld [vmem:[%s7145_s7 + $0x260] sm:$0xf]  ;;  %v4655_v52 = vld [vmem:[%s7145_s7 + $0x2c] sm:$0xf0] }
  0xa8   : > { %882 = vmatpush.bf16.msrb.mxu1 %v3429_v34  ;;  %v4695_v34 = vld [vmem:[%s7145_s7 + $0x16c] sm:$0xf0] }
  0xa9   : > { %1037 = vmatpush.bf16.msra.mxu0 %v3521_v63  ;;  %v4036_v63 = vld [vmem:[%s7145_s7 + $0x3c0] sm:$0xf]  ;;  %v4687_v55 = vld [vmem:[%s7145_s7 + $0x12c] sm:$0xf0] }
  0xaa   : > { %1024 = vmatpush.bf16.msrb.mxu3 %v3509_v8  ;;  %v4037_v2 = vor.u32 %v4771_v0, %v4036_v63  ;;  %v3892_v8 = vld [vmem:[%s7145_s7 + $0x2a0] sm:$0xf]  ;;  %v3701_v58 = vor.u32 %v4687_v55, %v3700_v53  ;;  %v4683_v5 = vld [vmem:[%s7145_s7 + $0x10c] sm:$0xf0] }
  0xab   : > { %v3893_v14 = vor.u32 %v4735_v12, %v3892_v8  ;;  %v5636_v63 = vld [vmem:[%s7144_s6 + $0x2] sm:$0x3]  ;;  %v4747_v18 = vld [vmem:[%s7145_s7 + $0x30c] sm:$0xf0] }
  0xac   : > { %v648_v12 = vperm.slane %v5636_v63, 1  ;;  %v4807_v20 = vld [vmem:[%s7145_s7 + $0x4ec] sm:$0xf0] }
  0xad   : > { %1038 = vmatpush.bf16.msra.mxu0 %v3513_v15  ;;  %v4020_v15 = vld [vmem:[%s7145_s7 + $0x3a0] sm:$0xf]  ;;  %v4181_v22 = vor.u32 %v4807_v20, %v4180_v19 }
  0xae   : > { %1025 = vmatpush.bf16.msrb.mxu3 %v3501_v24  ;;  %v4021_v17 = vor.u32 %v4767_v16, %v4020_v15  ;;  %v3876_v24 = vld [vmem:[%s7145_s7 + $0x280] sm:$0xf] }
  0xaf   : > { %v3877_v26 = vor.u32 %v4731_v25, %v3876_v24  ;;  %v3940_v15 = vld [vmem:[%s7145_s7 + $0x300] sm:$0xf]  ;;  %v4839_v24 = vld [vmem:[%s7145_s7 + $0x5ec] sm:$0xf0] }
  0xb0   : > { %v4436_v25 = vld [vmem:[%s7145_s7 + $0x6e0] sm:$0xf] }
  0xb1   : > { %1039 = vmatpush.bf16.msra.mxu0 %v3505_v28  ;;  %v4763_v28 = vld [vmem:[%s7145_s7 + $0x38c] sm:$0xf0] }
  0xb2   : > { %1026 = vmatpush.bf16.msrb.mxu3 %v3493_v36  ;;  %v4005_v29 = vor.u32 %v4763_v28, %v4004_v27  ;;  %v4727_v36 = vld [vmem:[%s7145_s7 + $0x26c] sm:$0xf0]  ;;  %v4564_v28 = vld [vmem:[%s7145_s7 + $0x7e0] sm:$0xf] }
  0xb3   : > { %v4871_v27 = vld [vmem:[%s7145_s7 + $0x6ec] sm:$0xf0] }
  0xb4   : > { %v4437_v30 = vor.u32 %v4871_v27, %v4436_v25  ;;  %v4116_v25 = vld [vmem:[%s7145_s7 + $0x460] sm:$0xf] }
  0xb5   : > { %1040 = vmatpush.bf16.msra.mxu0 %v3497_v37  ;;  %v3733_v37 = vor.u32 %v4695_v34, %v3732_v32  ;;  %v4164_v32 = vld [vmem:[%s7145_s7 + $0x4c0] sm:$0xf] }
  0xb6   : > { %v4292_v34 = vld [vmem:[%s7145_s7 + $0x5c0] sm:$0xf] }
  0xb7   : > { %v4244_v27 = vld [vmem:[%s7145_s7 + $0x560] sm:$0xf] }
 0x114   : > { %v477_v38 = vpop.f32.mrf.mxu0 }
 0x115   : > { %v478_v10 = vadd.f32 %v4937_v39, %v477_v38  ;;  %v3861_v38 = vor.u32 %v4727_v36, %v3860_v35  ;;  %v4835_v36 = vld [vmem:[%s7145_s7 + $0x5cc] sm:$0xf0] }
 0x117   : > { %v482_v40 = vmax.f32 %v478_v10, 0.0  ;;  %v4759_v10 = vld [vmem:[%s7145_s7 + $0x36c] sm:$0xf0] }
 0x11c   : > { %v479_v9 = vpop.f32.mrf.mxu0 }
 0x11d   : > { %v480_v11 = vadd.f32 %v4937_v39, %v479_v9  ;;  %v3988_v39 = vld [vmem:[%s7145_s7 + $0x360] sm:$0xf] }
 0x11e   : > { %v3989_v9 = vor.u32 %v4759_v10, %v3988_v39  ;;  %v504_v39 = vperm.slane %v5631_v62, 1 }
 0x11f   : > { %v483_v41 = vmax.f32 %v480_v11, 0.0  ;;  %v3588_v11 = vld [vmem:[%s7145_s7 + $0x40] sm:$0xf] }
 0x121   : > { %v484_v42 = vpack.c.bf16 %v483_v41, %v482_v40  ;;  %v4659_v40 = vld [vmem:[%s7145_s7 + $0x4c] sm:$0xf0] }
 0x122   : > { %v3589_v41 = vor.u32 %v4659_v40, %v3588_v11  ;;  %v4548_v40 = vld [vmem:[%s7145_s7 + $0x7c0] sm:$0xf] }
 0x123   : > { %595 = vmatmul.bf16.vlgmr.msra.gmra.mxu1 %v484_v42  ;;  %609 = vmatmul.bf16.vlgmr.msra.gmra.mxu2 %v484_v42 }
 0x124   : > { %739 = vmatmul.bf16.vlgmr.msra.gmra.mxu3 %v484_v42  ;;  %753 = vmatmul.bf16.vlgmr.msrb.gmra.mxu0 %v484_v42 }
 0x125   : > { %2758 = vmatpush.bf16.msra.mxu1 %v3669_v46  ;;  %2771 = vmatpush.bf16.msra.mxu2 %v3797_v50  ;;  %v4723_v46 = vld [vmem:[%s7145_s7 + $0x24c] sm:$0xf0]  ;;  %v3973_v50 = vor.u32 %v4755_v48, %v3972_v47 }
 0x126   : > { %2784 = vmatpush.bf16.msra.mxu3 %v3925_v51  ;;  %2797 = vmatpush.bf16.msrb.mxu0 %v4053_v54  ;;  %v3845_v49 = vor.u32 %v4723_v46, %v3844_v44  ;;  %v3572_v51 = vld [vmem:[%s7145_s7 + $0x20] sm:$0xf] }
 0x127   : > { %v3573_v54 = vor.u32 %v4655_v52, %v3572_v51  ;;  %v4148_v44 = vld [vmem:[%s7145_s7 + $0x4a0] sm:$0xf]  ;;  %v4863_v51 = vld [vmem:[%s7145_s7 + $0x6ac] sm:$0xf0] }
 0x128   : > { %v4276_v46 = vld [vmem:[%s7145_s7 + $0x5a0] sm:$0xf] }
 0x129   : > { %2759 = vmatpush.bf16.msra.mxu1 %v3653_v57  ;;  %2772 = vmatpush.bf16.msra.mxu2 %v3781_v61  ;;  %v4719_v57 = vld [vmem:[%s7145_s7 + $0x22c] sm:$0xf0] }
 0x12a   : > { %2785 = vmatpush.bf16.msra.mxu3 %v3909_v1  ;;  %2798 = vmatpush.bf16.msrb.mxu0 %v4037_v2  ;;  %v3829_v59 = vor.u32 %v4719_v57, %v3828_v56  ;;  %v4751_v61 = vld [vmem:[%s7145_s7 + $0x32c] sm:$0xf0]  ;;  %v3556_v1 = vld [vmem:[%s7145_s7] sm:$0xf] }
 0x12b   : > { %v3957_v0 = vor.u32 %v4751_v61, %v3956_v60  ;;  %v4651_v2 = vld [vmem:[%s7145_s7 + $0xc] sm:$0xf0]  ;;  %v4532_v57 = vld [vmem:[%s7145_s7 + $0x7a0] sm:$0xf] }
 0x12c   : > { %v3557_v4 = vor.u32 %v4651_v2, %v3556_v1  ;;  %v4132_v1 = vld [vmem:[%s7145_s7 + $0x480] sm:$0xf]  ;;  %v4795_v2 = vld [vmem:[%s7145_s7 + $0x48c] sm:$0xf0] }
 0x12d   : > { %2760 = vmatpush.bf16.msra.mxu1 %v3637_v6  ;;  %2773 = vmatpush.bf16.msra.mxu2 %v3765_v13  ;;  %v3812_v6 = vld [vmem:[%s7145_s7 + $0x200] sm:$0xf]  ;;  %v3685_v13 = vor.u32 %v4683_v5, %v3684_v3  ;;  %v4827_v5 = vld [vmem:[%s7145_s7 + $0x58c] sm:$0xf0] }
 0x12e   : > { %2786 = vmatpush.bf16.msra.mxu3 %v3893_v14  ;;  %2799 = vmatpush.bf16.msrb.mxu0 %v4021_v17  ;;  %v4715_v14 = vld [vmem:[%s7145_s7 + $0x20c] sm:$0xf0]  ;;  %v4260_v3 = vld [vmem:[%s7145_s7 + $0x580] sm:$0xf] }
 0x12f   : > { %v3813_v17 = vor.u32 %v4715_v14, %v3812_v6  ;;  %v4388_v6 = vld [vmem:[%s7145_s7 + $0x680] sm:$0xf]  ;;  %v4891_v14 = vld [vmem:[%s7145_s7 + $0x78c] sm:$0xf0] }
 0x131   : > { %2761 = vmatpush.bf16.msra.mxu1 %v3621_v21  ;;  %2774 = vmatpush.bf16.msra.mxu2 %v3749_v23  ;;  %v3941_v21 = vor.u32 %v4747_v18, %v3940_v15  ;;  %v4308_v23 = vld [vmem:[%s7145_s7 + $0x5e0] sm:$0xf]  ;;  %v5770_v18 = vld [vmem:[%s7144_s6 + $0x6] sm:$0x3] }
 0x132   : > { %2787 = vmatpush.bf16.msra.mxu3 %v3877_v26  ;;  %2800 = vmatpush.bf16.msrb.mxu0 %v4005_v29  ;;  %v4309_v26 = vor.u32 %v4839_v24, %v4308_v23  ;;  %v4903_v29 = vld [vmem:[%s7145_s7 + $0x7ec] sm:$0xf0] }
 0x133   : > { %883 = vmatmul.bf16.vlgmr.msrb.gmra.mxu1 %v484_v42  ;;  %897 = vmatmul.bf16.vlgmr.msrb.gmra.mxu2 %v484_v42  ;;  %v4565_v31 = vor.u32 %v4903_v29, %v4564_v28 }
 0x134   : > { %1027 = vmatmul.bf16.vlgmr.msrb.gmra.mxu3 %v484_v42  ;;  %1041 = vmatmul.bf16.vlgmr.msra.gmra.mxu0 %v484_v42  ;;  %v3716_v42 = vld [vmem:[%s7145_s7 + $0x140] sm:$0xf] }
 0x135   : > { %2762 = vmatpush.bf16.msra.mxu1 %v3605_v33  ;;  %2775 = vmatpush.bf16.msra.mxu2 %v3733_v37  ;;  %v3717_v45 = vor.u32 %v4691_v43, %v3716_v42  ;;  %v4803_v33 = vld [vmem:[%s7145_s7 + $0x4cc] sm:$0xf0]  ;;  %v4420_v37 = vld [vmem:[%s7145_s7 + $0x6c0] sm:$0xf] }
 0x136   : > { %2788 = vmatpush.bf16.msra.mxu3 %v3861_v38  ;;  %2801 = vmatpush.bf16.msrb.mxu0 %v3989_v9  ;;  %v4165_v35 = vor.u32 %v4803_v33, %v4164_v32  ;;  %v4867_v38 = vld [vmem:[%s7145_s7 + $0x6cc] sm:$0xf0]  ;;  %v4293_v9 = vor.u32 %v4835_v36, %v4292_v34  ;;  %v4372_v34 = vld [vmem:[%s7145_s7 + $0x660] sm:$0xf] }
 0x137   : > { %v4421_v11 = vor.u32 %v4867_v38, %v4420_v37  ;;  %v4823_v33 = vld [vmem:[%s7145_s7 + $0x56c] sm:$0xf0] }
 0x139   : > { %2763 = vmatpush.bf16.msra.mxu1 %v3589_v41  ;;  %2776 = vmatpush.bf16.msra.mxu2 %v3717_v45  ;;  %v4899_v41 = vld [vmem:[%s7145_s7 + $0x7cc] sm:$0xf0] }
 0x13a   : > { %2789 = vmatpush.bf16.msra.mxu3 %v3845_v49  ;;  %2802 = vmatpush.bf16.msrb.mxu0 %v3973_v50  ;;  %v4549_v43 = vor.u32 %v4899_v41, %v4548_v40  ;;  %v4799_v45 = vld [vmem:[%s7145_s7 + $0x4ac] sm:$0xf0]  ;;  %v4404_v50 = vld [vmem:[%s7145_s7 + $0x6a0] sm:$0xf] }
 0x13b   : > { %v4149_v48 = vor.u32 %v4799_v45, %v4148_v44  ;;  %v4831_v49 = vld [vmem:[%s7145_s7 + $0x5ac] sm:$0xf0]  ;;  %v4405_v61 = vor.u32 %v4863_v51, %v4404_v50 }
 0x13c   : > { %v4277_v56 = vor.u32 %v4831_v49, %v4276_v46  ;;  %v4787_v44 = vld [vmem:[%s7145_s7 + $0x44c] sm:$0xf0]  ;;  %v936_v46 = vperm.slane %v5770_v18, 1 }
 0x13d   : > { %2764 = vmatpush.bf16.msra.mxu1 %v3573_v54  ;;  %2777 = vmatpush.bf16.msra.mxu2 %v3701_v58  ;;  %v4895_v58 = vld [vmem:[%s7145_s7 + $0x7ac] sm:$0xf0] }
 0x13e   : > { %2790 = vmatpush.bf16.msra.mxu3 %v3829_v59  ;;  %2803 = vmatpush.bf16.msrb.mxu0 %v3957_v0  ;;  %v647_v59 = vperm.slane %v5636_v63, 0  ;;  %v4533_v62 = vor.u32 %v4895_v58, %v4532_v57  ;;  %v4133_v63 = vor.u32 %v4795_v2, %v4132_v1  ;;  %v4819_v49 = vld [vmem:[%s7145_s7 + $0x54c] sm:$0xf0]  ;;  %v935_v58 = vperm.slane %v5770_v18, 0 }
 0x141   : > { %2765 = vmatpush.bf16.msra.mxu1 %v3557_v4  ;;  %2778 = vmatpush.bf16.msra.mxu2 %v3685_v13  ;;  %v4516_v13 = vld [vmem:[%s7145_s7 + $0x780] sm:$0xf] }
 0x142   : > { %2791 = vmatpush.bf16.msra.mxu3 %v3813_v17  ;;  %2804 = vmatpush.bf16.msrb.mxu0 %v3941_v21  ;;  %v5765_v17 = vld [vmem:[%s7144_s6 + $0x4] sm:$0x3]  ;;  %v4517_v20 = vor.u32 %v4891_v14, %v4516_v13  ;;  %v4212_v13 = vld [vmem:[%s7145_s7 + $0x520] sm:$0xf]  ;;  %v4815_v14 = vld [vmem:[%s7145_s7 + $0x52c] sm:$0xf0] }
 0x143   : > { %v791_v41 = vperm.slane %v5765_v17, 0  ;;  %v792_v57 = vperm.slane %v5765_v17, 1 }
 0x145   : > { %2810 = vmatpush.bf16.msrb.mxu1 %v4181_v22  ;;  %2823 = vmatpush.bf16.msrb.mxu2 %v4309_v26  ;;  %v4791_v26 = vld [vmem:[%s7145_s7 + $0x46c] sm:$0xf0] }
 0x146   : > { %2836 = vmatpush.bf16.msrb.mxu3 %v4437_v30  ;;  %2849 = vmatpush.bf16.msra.mxu0 %v4565_v31  ;;  %v4117_v32 = vor.u32 %v4791_v26, %v4116_v25 }
 0x149   : > { %2811 = vmatpush.bf16.msrb.mxu1 %v4165_v35  ;;  %2824 = vmatpush.bf16.msrb.mxu2 %v4293_v9  ;;  %v4855_v35 = vld [vmem:[%s7145_s7 + $0x66c] sm:$0xf0] }
 0x14a   : > { %2837 = vmatpush.bf16.msrb.mxu3 %v4421_v11  ;;  %2850 = vmatpush.bf16.msra.mxu0 %v4549_v43  ;;  %v4887_v9 = vld [vmem:[%s7145_s7 + $0x76c] sm:$0xf0]  ;;  %v4100_v43 = vld [vmem:[%s7145_s7 + $0x440] sm:$0xf] }
 0x14d   : > { %2812 = vmatpush.bf16.msrb.mxu1 %v4149_v48  ;;  %2825 = vmatpush.bf16.msrb.mxu2 %v4277_v56  ;;  %v4228_v48 = vld [vmem:[%s7145_s7 + $0x540] sm:$0xf] }
 0x14e   : > { %2838 = vmatpush.bf16.msrb.mxu3 %v4405_v61  ;;  %2851 = vmatpush.bf16.msra.mxu0 %v4533_v62  ;;  %v4883_v61 = vld [vmem:[%s7145_s7 + $0x74c] sm:$0xf0] }
 0x151   : > { %2813 = vmatpush.bf16.msrb.mxu1 %v4133_v63  ;;  %v4783_v63 = vld [vmem:[%s7145_s7 + $0x42c] sm:$0xf0] }
 0x152   : > { %2852 = vmatpush.bf16.msra.mxu0 %v4517_v20 }
 0x155   : > { %2814 = vmatpush.bf16.msrb.mxu1 %v4117_v32 }
 0x1a0   : > { %v596_v8 = vpop.f32.mrf.mxu1 }
 0x1a1   : > { %v754_v16 = vpop.f32.mrf.mxu0  ;;  %v597_v52 = vadd.f32 %v596_v8, %v503_v7 }
 0x1a2   : > { %v755_v53 = vadd.f32 %v754_v16, %v648_v12 }
 0x1a6   : > { %v610_v10 = vpop.f32.mrf.mxu2 }
 0x1a7   : > { %v740_v42 = vpop.f32.mrf.mxu3  ;;  %v611_v21 = vadd.f32 %v610_v10, %v504_v39  ;;  %v4500_v10 = vld [vmem:[%s7145_s7 + $0x760] sm:$0xf] }
 0x1a8   : > { %v598_v47 = vpop.f32.mrf.mxu1  ;;  %v741_v28 = vadd.f32 %v740_v42, %v647_v59  ;;  %v4373_v42 = vor.u32 %v4855_v35, %v4372_v34  ;;  %v4779_v35 = vld [vmem:[%s7145_s7 + $0x40c] sm:$0xf0] }
 0x1a9   : > { %v599_v54 = vadd.f32 %v598_v47, %v503_v7  ;;  %v756_v55 = vpop.f32.mrf.mxu0  ;;  %v4859_v7 = vld [vmem:[%s7145_s7 + $0x68c] sm:$0xf0]  ;;  %v4501_v47 = vor.u32 %v4887_v9, %v4500_v10  ;;  %v4324_v9 = vld [vmem:[%s7145_s7 + $0x600] sm:$0xf] }
 0x1aa   : > { %v757_v60 = vadd.f32 %v756_v55, %v648_v12  ;;  %v4261_v12 = vor.u32 %v4827_v5, %v4260_v3  ;;  %v4389_v19 = vor.u32 %v4859_v7, %v4388_v6  ;;  %v4851_v55 = vld [vmem:[%s7145_s7 + $0x64c] sm:$0xf0]  ;;  %v1071_v6 = vlaneseq }
 0x1ab   : > { %v615_v0 = vmax.f32 %v597_v52, %v599_v54  ;;  %v4356_v54 = vld [vmem:[%s7145_s7 + $0x640] sm:$0xf]  ;;  %2853 = vmatpush.bf16.msra.mxu0 %v4501_v47  ;;  %v4811_v10 = vld [vmem:[%s7145_s7 + $0x50c] sm:$0xf0] }
 0x1ac   : > { %v766_v4 = vmax.f32 %v755_v53, %v757_v60  ;;  %2826 = vmatpush.bf16.msrb.mxu2 %v4261_v12  ;;  %2839 = vmatpush.bf16.msrb.mxu3 %v4389_v19  ;;  %v4101_v53 = vor.u32 %v4787_v44, %v4100_v43  ;;  %v4484_v60 = vld [vmem:[%s7145_s7 + $0x740] sm:$0xf]  ;;  %v4357_v2 = vor.u32 %v4851_v55, %v4356_v54  ;;  %vm5860_vm2 = vcmp.lt.s32.totalorder %v1071_v6, 256  ;;  %v4843_v43 = vld [vmem:[%s7145_s7 + $0x60c] sm:$0xf0] }
 0x1ad   : > { %v616_v8 = vrot.slane %v615_v0, 4  ;;  %v4485_v3 = vor.u32 %v4883_v61, %v4484_v60  ;;  %v4452_v44 = vld [vmem:[%s7145_s7 + $0x700] sm:$0xf]  ;;  %vm3190_vm5 = vcmp.lt.s32.totalorder %v1071_v6, 512 }
 0x1ae   : > { %v767_v15 = vrot.slane %v766_v4, 4  ;;  %v612_v16 = vpop.f32.mrf.mxu2  ;;  %2815 = vmatpush.bf16.msrb.mxu1 %v4101_v53  ;;  %v4325_v53 = vor.u32 %v4843_v43, %v4324_v9 }
 0x1af   : > { %v617_v22 = vmax.f32 %v615_v0, %v616_v8  ;;  %v613_v23 = vadd.f32 %v612_v16, %v504_v39  ;;  %v742_v24 = vpop.f32.mrf.mxu3  ;;  %v4245_v39 = vor.u32 %v4823_v33, %v4244_v27  ;;  %v4213_v27 = vor.u32 %v4815_v14, %v4212_v13  ;;  %2854 = vmatpush.bf16.msra.mxu0 %v4485_v3 }
 0x1b0   : > { %v768_v29 = vmax.f32 %v766_v4, %v767_v15  ;;  %v743_v30 = vadd.f32 %v742_v24, %v647_v59  ;;  %v884_v31 = vpop.f32.mrf.mxu1  ;;  %v4229_v59 = vor.u32 %v4819_v49, %v4228_v48  ;;  %2840 = vmatpush.bf16.msrb.mxu3 %v4373_v42  ;;  %v4084_v4 = vld [vmem:[%s7145_s7 + $0x420] sm:$0xf]  ;;  %v4875_v49 = vld [vmem:[%s7145_s7 + $0x70c] sm:$0xf0] }
 0x1b1   : > { %v618_v36 = vrot.slane %v617_v22, 2  ;;  %v622_v37 = vmax.f32 %v611_v21, %v613_v23  ;;  %v1042_v38 = vpop.f32.mrf.mxu0  ;;  %2827 = vmatpush.bf16.msrb.mxu2 %v4245_v39  ;;  %v885_v7 = vadd.f32 %v884_v31, %v791_v41  ;;  %v4085_v21 = vor.u32 %v4783_v63, %v4084_v4  ;;  %v4847_v23 = vld [vmem:[%s7145_s7 + $0x62c] sm:$0xf0]  ;;  %v4068_v31 = vld [vmem:[%s7145_s7 + $0x400] sm:$0xf] }
 0x1b2   : > { %v769_v11 = vrot.slane %v768_v29, 2  ;;  %v759_v40 = vmax.f32 %v741_v28, %v743_v30  ;;  %v1043_v8 = vadd.f32 %v1042_v38, %v936_v46  ;;  %v4879_v30 = vld [vmem:[%s7145_s7 + $0x72c] sm:$0xf0]  ;;  %v4069_v42 = vor.u32 %v4779_v35, %v4068_v31  ;;  %v4677_v31 = vld [vmem:[%s7145_s7 + $0xe4] sm:$0xf] }
 0x1b3   : > { %v623_v45 = vrot.slane %v622_v37, 4  ;;  %v619_v50 = vmax.f32 %v617_v22, %v618_v36  ;;  %v4340_v22 = vld [vmem:[%s7145_s7 + $0x620] sm:$0xf]  ;;  %2816 = vmatpush.bf16.msrb.mxu1 %v4085_v21  ;;  %v4453_v54 = vor.u32 %v4875_v49, %v4452_v44  ;;  %v4741_v35 = vld [vmem:[%s7145_s7 + $0x2e4] sm:$0xf] }
 0x1b4   : > { %v770_v51 = vmax.f32 %v768_v29, %v769_v11  ;;  %v760_v52 = vrot.slane %v759_v40, 4  ;;  %v4341_v28 = vor.u32 %v4847_v23, %v4340_v22  ;;  %v4468_v29 = vld [vmem:[%s7145_s7 + $0x720] sm:$0xf]  ;;  %2841 = vmatpush.bf16.msrb.mxu3 %v4357_v2  ;;  %v4773_v38 = vld [vmem:[%s7145_s7 + $0x3e4] sm:$0xf] }
 0x1b5   : > { %v624_v56 = vmax.f32 %v622_v37, %v623_v45  ;;  %v620_v15 = vrot.slane %v619_v50, 1  ;;  %2828 = vmatpush.bf16.msrb.mxu2 %v4229_v59  ;;  %v4469_v34 = vor.u32 %v4879_v30, %v4468_v29  ;;  %v4196_v36 = vld [vmem:[%s7145_s7 + $0x500] sm:$0xf] }
 0x1b6   : > { %v771_v62 = vrot.slane %v770_v51, 1  ;;  %v761_v0 = vmax.f32 %v759_v40, %v760_v52  ;;  %v5824_v1 = vpop.f32.mrf.mxu2  ;;  %v4197_v48 = vor.u32 %v4811_v10, %v4196_v36 }
 0x1b7   : > { %v625_v5 = vrot.slane %v624_v56, 2  ;;  %v1028_v12 = vpop.f32.mrf.mxu3  ;;  %v621_v11 = vmax.f32 %v619_v50, %v620_v15  ;;  %2855 = vmatpush.bf16.msra.mxu0 %v4469_v34  ;;  %2817 = vmatpush.bf16.msrb.mxu1 %v4069_v42  ;;  %v3798_v34 = vld [vmem:[%s7145_s7 + $0x1f0] sm:$0xf0] }
 0x1b8   : > { %v772_v16 = vmax.f32 %v770_v51, %v771_v62  ;;  %v762_v19 = vrot.slane %v761_v0, 2  ;;  %v886_v20 = vpop.f32.mrf.mxu1  ;;  %2842 = vmatpush.bf16.msrb.mxu3 %v4341_v28 }
 0x1b9   : > { %v626_v24 = vmax.f32 %v624_v56, %v625_v5  ;;  %v887_v25 = vadd.f32 %v886_v20, %v791_v41  ;;  %v1044_v26 = vpop.f32.mrf.mxu0  ;;  %2829 = vmatpush.bf16.msrb.mxu2 %v4213_v27  ;;  %v899_v56 = vadd.f32 %v5824_v1, %v792_v57 }
 0x1ba   : > { %v763_v32 = vmax.f32 %v761_v0, %v762_v19  ;;  %v1045_v33 = vadd.f32 %v1044_v26, %v936_v46  ;;  %v1098_v45 = vrot.slane %v772_v16, 7  ;;  %v1029_v0 = vadd.f32 %v1028_v12, %v935_v58 }
 0x1bb   : > { %v627_v37 = vrot.slane %v626_v24, 1  ;;  %v903_v39 = vmax.f32 %v885_v7, %v887_v25  ;;  %2856 = vmatpush.bf16.msra.mxu0 %v4453_v54  ;;  %v3910_v54 = vld [vmem:[%s7145_s7 + $0x2d0] sm:$0xf0] }
 0x1bc   : > { %v764_v40 = vrot.slane %v763_v32, 1  ;;  %v1054_v41 = vmax.f32 %v1043_v8, %v1045_v33  ;;  %2843 = vmatpush.bf16.msrb.mxu3 %v4325_v53  ;;  %v4709_v33 = vld [vmem:[%s7145_s7 + $0x1e4] sm:$0xf] }
 0x1bd   : > { %v628_v46 = vmax.f32 %v626_v24, %v627_v37  ;;  %v904_v47 = vrot.slane %v903_v39, 4  ;;  %2830 = vmatpush.bf16.msrb.mxu2 %v4197_v48  ;;  %v3926_v37 = vld [vmem:[%s7145_s7 + $0x2f0] sm:$0xf0]  ;;  %v3801_v42 = vor.u32 %v4709_v33, %v3798_v34  ;;  %v4737_v53 = vld [vmem:[%s7145_s7 + $0x2c4] sm:$0xf] }
 0x1be   : > { %v765_v50 = vmax.f32 %v763_v32, %v764_v40  ;;  %v1055_v51 = vrot.slane %v1054_v41, 4  ;;  %v900_v52 = vpop.f32.mrf.mxu2  ;;  %v3670_v32 = vld [vmem:[%s7145_s7 + $0xf0] sm:$0xf0]  ;;  %v3929_v49 = vor.u32 %v4741_v35, %v3926_v37  ;;  %v4725_v33 = vld [vmem:[%s7145_s7 + $0x264] sm:$0xf] }
 0x1bf   : > { %v1067_v55 = vrot.slane %v628_v46, 7  ;;  %v905_v59 = vmax.f32 %v903_v39, %v904_v47  ;;  %v901_v60 = vadd.f32 %v900_v52, %v792_v57  ;;  %v1030_v61 = vpop.f32.mrf.mxu3  ;;  %v4054_v40 = vld [vmem:[%s7145_s7 + $0x3f0] sm:$0xf0]  ;;  %v4673_v47 = vld [vmem:[%s7145_s7 + $0xc4] sm:$0xf] }
 0x1c0   : > { %v1100_v62 = vsel %vm1068_vm1, %v765_v50, %v1098_v45  ;;  %v1056_v2 = vmax.f32 %v1054_v41, %v1055_v51  ;;  %v1031_v3 = vadd.f32 %v1030_v61, %v935_v58  ;;  %v3673_v41 = vor.u32 %v4677_v31, %v3670_v32  ;;  %v3654_v48 = vld [vmem:[%s7145_s7 + $0xd0] sm:$0xf0]  ;;  %v4705_v51 = vld [vmem:[%s7145_s7 + $0x1c4] sm:$0xf] }
 0x1c1   : > { %v1069_v4 = vsel %vm1068_vm1, %v621_v11, %v1067_v55  ;;  %1106 = vst.msk [vmem:[#allocation2 + $0x2] sm:$0x3] %vm5860_vm2, %v1100_v62  ;;  %v910_v1 = vmax.f32 %v899_v56, %v901_v60  ;;  %v906_v63 = vrot.slane %v905_v59, 2  ;;  %v4057_v50 = vor.u32 %v4773_v38, %v4054_v40  ;;  %v3782_v52 = vld [vmem:[%s7145_s7 + $0x1d0] sm:$0xf0] }
 0x1c2   : > { %1075 = vst.msk [vmem:[#allocation2] sm:$0x3] %vm5860_vm2, %v1069_v4  ;;  %v1057_v17 = vrot.slane %v1056_v2, 2  ;;  %v1047_v57 = vmax.f32 %v1029_v0, %v1031_v3  ;;  %v4769_v55 = vld [vmem:[%s7145_s7 + $0x3c4] sm:$0xf]  ;;  %v3785_v60 = vor.u32 %v4705_v51, %v3782_v52  ;;  %v3913_v0 = vor.u32 %v4737_v53, %v3910_v54 }
 0x1c3   : > { %v911_v5 = vrot.slane %v910_v1, 4  ;;  %v907_v13 = vmax.f32 %v905_v59, %v906_v63  ;;  %v4038_v56 = vld [vmem:[%s7145_s7 + $0x3d0] sm:$0xf0]  ;;  %v3657_v59 = vor.u32 %v4673_v47, %v3654_v48  ;;  %v4669_v61 = vld [vmem:[%s7145_s7 + $0xa4] sm:$0xf] }
 0x1c4   : > { %v1058_v7 = vmax.f32 %v1056_v2, %v1057_v17  ;;  %v1048_v18 = vrot.slane %v1047_v57, 4  ;;  %v3638_v62 = vld [vmem:[%s7145_s7 + $0xb0] sm:$0xf0]  ;;  %v4041_v2 = vor.u32 %v4769_v55, %v4038_v56  ;;  %v4701_v3 = vld [vmem:[%s7145_s7 + $0x1a4] sm:$0xf] }
 0x1c5   : > { %v912_v58 = vmax.f32 %v910_v1, %v911_v5  ;;  %v908_v21 = vrot.slane %v907_v13, 1  ;;  %v3766_v4 = vld [vmem:[%s7145_s7 + $0x1b0] sm:$0xf0]  ;;  %v4733_v1 = vld [vmem:[%s7145_s7 + $0x2a4] sm:$0xf]  ;;  %v3641_v5 = vor.u32 %v4669_v61, %v3638_v62 }
 0x1c6   : > { %v1059_v8 = vrot.slane %v1058_v7, 1  ;;  %v1049_v12 = vmax.f32 %v1047_v57, %v1048_v18  ;;  %v3894_v17 = vld [vmem:[%s7145_s7 + $0x2b0] sm:$0xf0]  ;;  %v4765_v57 = vld [vmem:[%s7145_s7 + $0x3a4] sm:$0xf] }
 0x1c7   : > { %v913_v14 = vrot.slane %v912_v58, 2  ;;  %v909_v27 = vmax.f32 %v907_v13, %v908_v21  ;;  %v4022_v63 = vld [vmem:[%s7145_s7 + $0x3b0] sm:$0xf0]  ;;  %v4665_v18 = vld [vmem:[%s7145_s7 + $0x84] sm:$0xf] }
 0x1c8   : > { %v1050_v15 = vrot.slane %v1049_v12, 2  ;;  %v1060_v19 = vmax.f32 %v1058_v7, %v1059_v8  ;;  %v3769_v7 = vor.u32 %v4701_v3, %v3766_v4  ;;  %v3897_v8 = vor.u32 %v4733_v1, %v3894_v17  ;;  %v4697_v13 = vld [vmem:[%s7145_s7 + $0x184] sm:$0xf]  ;;  %v3862_v34 = vld [vmem:[%s7145_s7 + $0x270] sm:$0xf0] }
 0x1c9   : > { %v914_v16 = vmax.f32 %v912_v58, %v913_v14  ;;  %v3622_v58 = vld [vmem:[%s7145_s7 + $0x90] sm:$0xf0]  ;;  %v4661_v21 = vld [vmem:[%s7145_s7 + $0x64] sm:$0xf] }
 0x1ca   : > { %v1051_v20 = vmax.f32 %v1049_v12, %v1050_v15  ;;  %v1158_v25 = vrot.slane %v1060_v19, 7  ;;  %v4025_v12 = vor.u32 %v4765_v57, %v4022_v63  ;;  %v3750_v14 = vld [vmem:[%s7145_s7 + $0x190] sm:$0xf0]  ;;  %v4729_v15 = vld [vmem:[%s7145_s7 + $0x284] sm:$0xf] }
 0x1cb   : > { %v915_v22 = vrot.slane %v914_v16, 1  ;;  %v4761_v19 = vld [vmem:[%s7145_s7 + $0x384] sm:$0xf]  ;;  %v3990_v37 = vld [vmem:[%s7145_s7 + $0x370] sm:$0xf0] }
 0x1cc   : > { %v1052_v23 = vrot.slane %v1051_v20, 1  ;;  %v4757_v35 = vld [vmem:[%s7145_s7 + $0x364] sm:$0xf]  ;;  %v3590_v40 = vld [vmem:[%s7145_s7 + $0x50] sm:$0xf0] }
 0x1cd   : > { %v916_v24 = vmax.f32 %v914_v16, %v915_v22  ;;  %v3878_v16 = vld [vmem:[%s7145_s7 + $0x290] sm:$0xf0]  ;;  %v3993_v47 = vor.u32 %v4757_v35, %v3990_v37  ;;  %v4689_v48 = vld [vmem:[%s7145_s7 + $0x144] sm:$0xf] }
 0x1ce   : > { %v1053_v26 = vmax.f32 %v1051_v20, %v1052_v23  ;;  %v4006_v20 = vld [vmem:[%s7145_s7 + $0x390] sm:$0xf0]  ;;  %v3625_v23 = vor.u32 %v4665_v18, %v3622_v58  ;;  %v4753_v52 = vld [vmem:[%s7145_s7 + $0x344] sm:$0xf] }
 0x1cf   : > { %v1128_v28 = vrot.slane %v916_v24, 7  ;;  %v3606_v22 = vld [vmem:[%s7145_s7 + $0x70] sm:$0xf0]  ;;  %v3753_v24 = vor.u32 %v4697_v13, %v3750_v14  ;;  %v4653_v56 = vld [vmem:[%s7145_s7 + $0x24] sm:$0xf] }
 0x1d0   : > { %v1160_v29 = vsel %vm1068_vm1, %v1053_v26, %v1158_v25  ;;  %v3609_v38 = vor.u32 %v4661_v21, %v3606_v22  ;;  %v3846_v51 = vld [vmem:[%s7145_s7 + $0x250] sm:$0xf0]  ;;  %v4685_v62 = vld [vmem:[%s7145_s7 + $0x124] sm:$0xf] }
 0x1d1   : > { %v1130_v30 = vsel %vm1068_vm1, %v909_v27, %v1128_v28  ;;  %1166 = vst.msk [vmem:[#allocation2 + $0x6] sm:$0x3] %vm5860_vm2, %v1160_v29  ;;  %v4693_v27 = vld [vmem:[%s7145_s7 + $0x164] sm:$0xf]  ;;  %v3734_v28 = vld [vmem:[%s7145_s7 + $0x170] sm:$0xf0]  ;;  %v3881_v29 = vor.u32 %v4729_v15, %v3878_v16 }
 0x1d2   : > { %1136 = vst.msk [vmem:[#allocation2 + $0x4] sm:$0x3] %vm5860_vm2, %v1130_v30  ;;  %v4009_v30 = vor.u32 %v4761_v19, %v4006_v20  ;;  %v3974_v53 = vld [vmem:[%s7145_s7 + $0x350] sm:$0xf0]  ;;  %v4749_v4 = vld [vmem:[%s7145_s7 + $0x324] sm:$0xf] }
 0x1d3   : > { %v3977_v61 = vor.u32 %v4753_v52, %v3974_v53  ;;  %v3830_v3 = vld [vmem:[%s7145_s7 + $0x230] sm:$0xf0]  ;;  %v4649_v17 = vld [vmem:[%s7145_s7 + $0x4] sm:$0xf] }
 0x1d4   : > { %v3958_v1 = vld [vmem:[%s7145_s7 + $0x330] sm:$0xf0]  ;;  %v4745_v14 = vld [vmem:[%s7145_s7 + $0x304] sm:$0xf] }
 0x1d5   : > { %v3686_v18 = vld [vmem:[%s7145_s7 + $0x110] sm:$0xf0]  ;;  %v4805_v16 = vld [vmem:[%s7145_s7 + $0x4e4] sm:$0xf] }
 0x1d6   : > { %v3814_v13 = vld [vmem:[%s7145_s7 + $0x210] sm:$0xf0]  ;;  %v4837_v20 = vld [vmem:[%s7145_s7 + $0x5e4] sm:$0xf] }
 0x1d7   : > { %v3942_v15 = vld [vmem:[%s7145_s7 + $0x310] sm:$0xf0]  ;;  %v4869_v22 = vld [vmem:[%s7145_s7 + $0x6e4] sm:$0xf] }
 0x1d8   : > { %v4182_v19 = vld [vmem:[%s7145_s7 + $0x4f0] sm:$0xf0]  ;;  %v4833_v37 = vld [vmem:[%s7145_s7 + $0x5c4] sm:$0xf] }
 0x1d9   : > { %v5915_v36 = vld [vmem:[#allocation2] sm:$0xff]  ;;  %v4310_v21 = vld [vmem:[%s7145_s7 + $0x5f0] sm:$0xf0] }
 0x1da   : > { %v1445_v39 = vperm.slane %v5915_v36, 0  ;;  %v1446_v10 = vperm.slane %v5915_v36, 1  ;;  %v1447_v9 = vperm.slane %v5915_v36, 2  ;;  %v1448_v11 = vperm.slane %v5915_v36, 3  ;;  %v4829_v53 = vld [vmem:[%s7145_s7 + $0x5a4] sm:$0xf] }
 0x1db   : > { %v1449_v25 = vperm.slane %v5915_v36, 4  ;;  %v1450_v26 = vperm.slane %v5915_v36, 5  ;;  %v1451_v31 = vperm.slane %v5915_v36, 6  ;;  %v1452_v32 = vperm.slane %v5915_v36, 7 }
 0x1dc   : > { %v5930_v43 = vpack.c.bf16 %v1445_v39, %v1445_v39  ;;  %v5932_v44 = vpack.c.bf16 %v1446_v10, %v1446_v10  ;;  %v5934_v45 = vpack.c.bf16 %v1447_v9, %v1447_v9  ;;  %v5936_v46 = vpack.c.bf16 %v1448_v11, %v1448_v11  ;;  %v4657_v11 = vld [vmem:[%s7145_s7 + $0x44] sm:$0xf] }
 0x1dd   : > { %v3737_v39 = vor.u32 %v4693_v27, %v3734_v28  ;;  %v6042_v36 = vpack.c.bf16 %v1449_v25, %v1449_v25  ;;  %v6044_v10 = vpack.c.bf16 %v1450_v26, %v1450_v26  ;;  %v3865_v9 = vor.u32 %v4725_v33, %v3862_v34  ;;  %v4438_v25 = vld [vmem:[%s7145_s7 + $0x6f0] sm:$0xf0]  ;;  %v4901_v26 = vld [vmem:[%s7145_s7 + $0x7e4] sm:$0xf] }
 0x1de   : > { %2766 = vmatmul.bf16.vlgmr.msra.gmra.mxu1 %v5930_v43  ;;  %2779 = vmatmul.bf16.vlgmr.msra.gmra.mxu2 %v5932_v44  ;;  %v3593_v54 = vor.u32 %v4657_v11, %v3590_v40  ;;  %v4566_v27 = vld [vmem:[%s7145_s7 + $0x7f0] sm:$0xf0]  ;;  %v4441_v34 = vor.u32 %v4869_v22, %v4438_v25  ;;  %v4897_v11 = vld [vmem:[%s7145_s7 + $0x7c4] sm:$0xf] }
 0x1df   : > { %2792 = vmatmul.bf16.vlgmr.msra.gmra.mxu3 %v5934_v45  ;;  %2805 = vmatmul.bf16.vlgmr.msrb.gmra.mxu0 %v5936_v46  ;;  %v4166_v33 = vld [vmem:[%s7145_s7 + $0x4d0] sm:$0xf0]  ;;  %v4569_v35 = vor.u32 %v4901_v26, %v4566_v27  ;;  %v4785_v25 = vld [vmem:[%s7145_s7 + $0x444] sm:$0xf] }
 0x1e0   : > { %2862 = vmatpush.bf16.msra.mxu1 %v3673_v41  ;;  %2875 = vmatpush.bf16.msra.mxu2 %v3801_v42  ;;  %v6052_v41 = vpack.c.bf16 %v1451_v31, %v1451_v31  ;;  %v6054_v42 = vpack.c.bf16 %v1452_v32, %v1452_v32  ;;  %v4313_v31 = vor.u32 %v4837_v20, %v4310_v21  ;;  %v4801_v32 = vld [vmem:[%s7145_s7 + $0x4c4] sm:$0xf]  ;;  %v4550_v40 = vld [vmem:[%s7145_s7 + $0x7d0] sm:$0xf0] }
 0x1e1   : > { %2888 = vmatpush.bf16.msra.mxu3 %v3929_v49  ;;  %2901 = vmatpush.bf16.msrb.mxu0 %v4057_v50  ;;  %v3718_v49 = vld [vmem:[%s7145_s7 + $0x150] sm:$0xf0]  ;;  %v4721_v50 = vld [vmem:[%s7145_s7 + $0x244] sm:$0xf]  ;;  %v4553_v52 = vor.u32 %v4897_v11, %v4550_v40 }
 0x1e2   : > { %v3721_v55 = vor.u32 %v4689_v48, %v3718_v49  ;;  %v4797_v49 = vld [vmem:[%s7145_s7 + $0x4a4] sm:$0xf]  ;;  %v4374_v20 = vld [vmem:[%s7145_s7 + $0x670] sm:$0xf0] }
 0x1e3   : > { %v4885_v21 = vld [vmem:[%s7145_s7 + $0x764] sm:$0xf]  ;;  %v4502_v22 = vld [vmem:[%s7145_s7 + $0x770] sm:$0xf0] }
 0x1e4   : > { %2863 = vmatpush.bf16.msra.mxu1 %v3657_v59  ;;  %2876 = vmatpush.bf16.msra.mxu2 %v3785_v60  ;;  %v3574_v59 = vld [vmem:[%s7145_s7 + $0x30] sm:$0xf0]  ;;  %v3849_v60 = vor.u32 %v4721_v50, %v3846_v51  ;;  %v4813_v40 = vld [vmem:[%s7145_s7 + $0x524] sm:$0xf] }
 0x1e5   : > { %2889 = vmatpush.bf16.msra.mxu3 %v3913_v0  ;;  %2902 = vmatpush.bf16.msrb.mxu0 %v4041_v2  ;;  %v3702_v0 = vld [vmem:[%s7145_s7 + $0x130] sm:$0xf0]  ;;  %v4717_v2 = vld [vmem:[%s7145_s7 + $0x224] sm:$0xf]  ;;  %v3577_v57 = vor.u32 %v4653_v56, %v3574_v59 }
 0x1e6   : > { %v3705_v63 = vor.u32 %v4685_v62, %v3702_v0  ;;  %v3833_v58 = vor.u32 %v4717_v2, %v3830_v3  ;;  %v4150_v50 = vld [vmem:[%s7145_s7 + $0x4b0] sm:$0xf0]  ;;  %v4893_v59 = vld [vmem:[%s7145_s7 + $0x7a4] sm:$0xf] }
 0x1e7   : > { %v4406_v56 = vld [vmem:[%s7145_s7 + $0x6b0] sm:$0xf0]  ;;  %v4793_v0 = vld [vmem:[%s7145_s7 + $0x484] sm:$0xf] }
 0x1e8   : > { %2864 = vmatpush.bf16.msra.mxu1 %v3641_v5  ;;  %2877 = vmatpush.bf16.msra.mxu2 %v3769_v7  ;;  %v3558_v5 = vld [vmem:[%s7145_s7 + $0x10] sm:$0xf0]  ;;  %v4681_v7 = vld [vmem:[%s7145_s7 + $0x104] sm:$0xf] }
 0x1e9   : > { %2890 = vmatpush.bf16.msra.mxu3 %v3897_v8  ;;  %2903 = vmatpush.bf16.msrb.mxu0 %v4025_v12  ;;  %v3961_v8 = vor.u32 %v4749_v4, %v3958_v1  ;;  %v4713_v12 = vld [vmem:[%s7145_s7 + $0x204] sm:$0xf]  ;;  %v4134_v2 = vld [vmem:[%s7145_s7 + $0x490] sm:$0xf0] }
 0x1ea   : > { %v3817_v28 = vor.u32 %v4713_v12, %v3814_v13  ;;  %v4825_v1 = vld [vmem:[%s7145_s7 + $0x584] sm:$0xf]  ;;  %v4118_v12 = vld [vmem:[%s7145_s7 + $0x470] sm:$0xf0] }
 0x1eb   : > { %v4102_v26 = vld [vmem:[%s7145_s7 + $0x450] sm:$0xf0] }
 0x1ec   : > { %2865 = vmatpush.bf16.msra.mxu1 %v3625_v23  ;;  %2878 = vmatpush.bf16.msra.mxu2 %v3753_v24  ;;  %v3561_v23 = vor.u32 %v4649_v17, %v3558_v5  ;;  %v3689_v24 = vor.u32 %v4681_v7, %v3686_v18  ;;  %v4262_v17 = vld [vmem:[%s7145_s7 + $0x590] sm:$0xf0]  ;;  %v4889_v5 = vld [vmem:[%s7145_s7 + $0x784] sm:$0xf]  ;;  %v4137_v18 = vor.u32 %v4793_v0, %v4134_v2 }
 0x1ed   : > { %2891 = vmatpush.bf16.msra.mxu3 %v3881_v29  ;;  %2904 = vmatpush.bf16.msrb.mxu0 %v4009_v30  ;;  %v3945_v29 = vor.u32 %v4745_v14, %v3942_v15  ;;  %v4185_v30 = vor.u32 %v4805_v16, %v4182_v19  ;;  %v4518_v7 = vld [vmem:[%s7145_s7 + $0x790] sm:$0xf0]  ;;  %v4821_v15 = vld [vmem:[%s7145_s7 + $0x564] sm:$0xf] }
 0x1ee   : > { %2818 = vmatmul.bf16.vlgmr.msrb.gmra.mxu1 %v6042_v36  ;;  %2831 = vmatmul.bf16.vlgmr.msrb.gmra.mxu2 %v6044_v10  ;;  %v4521_v14 = vor.u32 %v4889_v5, %v4518_v7  ;;  %v4246_v16 = vld [vmem:[%s7145_s7 + $0x570] sm:$0xf0]  ;;  %v4853_v19 = vld [vmem:[%s7145_s7 + $0x664] sm:$0xf] }
 0x1ef   : > { %2844 = vmatmul.bf16.vlgmr.msrb.gmra.mxu3 %v6052_v41  ;;  %2857 = vmatmul.bf16.vlgmr.msra.gmra.mxu0 %v6054_v42  ;;  %v4377_v27 = vor.u32 %v4853_v19, %v4374_v20  ;;  %v4326_v0 = vld [vmem:[%s7145_s7 + $0x610] sm:$0xf0]  ;;  %v4873_v2 = vld [vmem:[%s7145_s7 + $0x704] sm:$0xf]  ;;  %v4676_v19 = vld [vmem:[%s7145_s7 + $0xd4] sm:$0xf0] }
 0x1f0   : > { %2866 = vmatpush.bf16.msra.mxu1 %v3609_v38  ;;  %2879 = vmatpush.bf16.msra.mxu2 %v3737_v39  ;;  %v4294_v38 = vld [vmem:[%s7145_s7 + $0x5d0] sm:$0xf0]  ;;  %v4865_v39 = vld [vmem:[%s7145_s7 + $0x6c4] sm:$0xf] }
 0x1f1   : > { %2892 = vmatpush.bf16.msra.mxu3 %v3865_v9  ;;  %2905 = vmatpush.bf16.msrb.mxu0 %v3993_v47  ;;  %v4422_v9 = vld [vmem:[%s7145_s7 + $0x6d0] sm:$0xf0]  ;;  %v4169_v47 = vor.u32 %v4801_v32, %v4166_v33  ;;  %v4297_v48 = vor.u32 %v4833_v37, %v4294_v38  ;;  %v4881_v33 = vld [vmem:[%s7145_s7 + $0x744] sm:$0xf] }
 0x1f2   : > { %v4425_v51 = vor.u32 %v4865_v39, %v4422_v9  ;;  %v4358_v32 = vld [vmem:[%s7145_s7 + $0x650] sm:$0xf0]  ;;  %v4781_v38 = vld [vmem:[%s7145_s7 + $0x424] sm:$0xf] }
 0x1f3   : > { %v4086_v39 = vld [vmem:[%s7145_s7 + $0x430] sm:$0xf0] }
 0x1f4   : > { %2867 = vmatpush.bf16.msra.mxu1 %v3593_v54  ;;  %2880 = vmatpush.bf16.msra.mxu2 %v3721_v55  ;;  %v4278_v54 = vld [vmem:[%s7145_s7 + $0x5b0] sm:$0xf0]  ;;  %v4861_v55 = vld [vmem:[%s7145_s7 + $0x6a4] sm:$0xf] }
 0x1f5   : > { %2893 = vmatpush.bf16.msra.mxu3 %v3849_v60  ;;  %2906 = vmatpush.bf16.msrb.mxu0 %v3977_v61  ;;  %v4534_v60 = vld [vmem:[%s7145_s7 + $0x7b0] sm:$0xf0]  ;;  %v4153_v61 = vor.u32 %v4797_v49, %v4150_v50  ;;  %v4281_v62 = vor.u32 %v4829_v53, %v4278_v54  ;;  %v4409_v3 = vor.u32 %v4861_v55, %v4406_v56  ;;  %v4877_v50 = vld [vmem:[%s7145_s7 + $0x724] sm:$0xf] }
 0x1f6   : > { %v4537_v4 = vor.u32 %v4893_v59, %v4534_v60  ;;  %v4342_v49 = vld [vmem:[%s7145_s7 + $0x630] sm:$0xf0]  ;;  %v4089_v53 = vor.u32 %v4781_v38, %v4086_v39  ;;  %v4809_v56 = vld [vmem:[%s7145_s7 + $0x504] sm:$0xf]  ;;  %v4736_v38 = vld [vmem:[%s7145_s7 + $0x2b4] sm:$0xf0] }
 0x1f7   : > { %v4070_v55 = vld [vmem:[%s7145_s7 + $0x410] sm:$0xf0]  ;;  %v4028_v39 = vld [vmem:[%s7145_s7 + $0x3a8] sm:$0xf] }
 0x1f8   : > { %2868 = vmatpush.bf16.msra.mxu1 %v3577_v57  ;;  %2881 = vmatpush.bf16.msra.mxu2 %v3705_v63  ;;  %v4857_v57 = vld [vmem:[%s7145_s7 + $0x684] sm:$0xf]  ;;  %v4390_v63 = vld [vmem:[%s7145_s7 + $0x690] sm:$0xf0] }
 0x1f9   : > { %2894 = vmatpush.bf16.msra.mxu3 %v3833_v58  ;;  %2907 = vmatpush.bf16.msrb.mxu0 %v3961_v8  ;;  %v4265_v58 = vor.u32 %v4825_v1, %v4262_v17  ;;  %v4789_v8 = vld [vmem:[%s7145_s7 + $0x464] sm:$0xf]  ;;  %v4393_v13 = vor.u32 %v4857_v57, %v4390_v63  ;;  %v4198_v59 = vld [vmem:[%s7145_s7 + $0x510] sm:$0xf0]  ;;  %v4680_v1 = vld [vmem:[%s7145_s7 + $0xf4] sm:$0xf0] }
 0x1fa   : > { %v3804_v17 = vld [vmem:[%s7145_s7 + $0x1e8] sm:$0xf]  ;;  %v4712_v57 = vld [vmem:[%s7145_s7 + $0x1f4] sm:$0xf0]  ;;  %v4201_v7 = vor.u32 %v4809_v56, %v4198_v59 }
 0x1fb   : > { %v3932_v63 = vld [vmem:[%s7145_s7 + $0x2e8] sm:$0xf]  ;;  %v4764_v56 = vld [vmem:[%s7145_s7 + $0x394] sm:$0xf0] }
 0x1fc   : > { %2869 = vmatpush.bf16.msra.mxu1 %v3561_v23  ;;  %2882 = vmatpush.bf16.msra.mxu2 %v3689_v24  ;;  %v4121_v23 = vor.u32 %v4789_v8, %v4118_v12  ;;  %v4249_v24 = vor.u32 %v4821_v15, %v4246_v16  ;;  %v4776_v8 = vld [vmem:[%s7145_s7 + $0x3f4] sm:$0xf0]  ;;  %v3805_v15 = vor.u32 %v4712_v57, %v3804_v17  ;;  %v3660_v16 = vld [vmem:[%s7145_s7 + $0xc8] sm:$0xf] }
 0x1fd   : > { %2895 = vmatpush.bf16.msra.mxu3 %v3817_v28  ;;  %2908 = vmatpush.bf16.msrb.mxu0 %v3945_v29  ;;  %v4505_v28 = vor.u32 %v4885_v21, %v4502_v22  ;;  %v4817_v29 = vld [vmem:[%s7145_s7 + $0x544] sm:$0xf]  ;;  %v3788_v22 = vld [vmem:[%s7145_s7 + $0x1c8] sm:$0xf]  ;;  %v4728_v17 = vld [vmem:[%s7145_s7 + $0x274] sm:$0xf0] }
 0x1fe   : > { %v3996_v57 = vld [vmem:[%s7145_s7 + $0x368] sm:$0xf] }
 0x1ff   : > { %2870 = vmatmul.bf16.vlgmr.msra.gmra.mxu1 %v5930_v43  ;;  %2883 = vmatmul.bf16.vlgmr.msra.gmra.mxu2 %v5932_v44 }
 0x200   : > { %2914 = vmatpush.bf16.msrb.mxu1 %v4185_v30  ;;  %2927 = vmatpush.bf16.msrb.mxu2 %v4313_v31  ;;  %v4230_v30 = vld [vmem:[%s7145_s7 + $0x550] sm:$0xf0]  ;;  %v4849_v31 = vld [vmem:[%s7145_s7 + $0x644] sm:$0xf] }
 0x201   : > { %2940 = vmatpush.bf16.msrb.mxu3 %v4441_v34  ;;  %2953 = vmatpush.bf16.msra.mxu0 %v4569_v35  ;;  %v4486_v34 = vld [vmem:[%s7145_s7 + $0x750] sm:$0xf0]  ;;  %v4105_v35 = vor.u32 %v4785_v25, %v4102_v26  ;;  %v4233_v37 = vor.u32 %v4817_v29, %v4230_v30  ;;  %v4361_v9 = vor.u32 %v4849_v31, %v4358_v32  ;;  %v4740_v25 = vld [vmem:[%s7145_s7 + $0x2d4] sm:$0xf0]  ;;  %v4044_v26 = vld [vmem:[%s7145_s7 + $0x3c8] sm:$0xf] }
 0x202   : > { %2896 = vmatmul.bf16.vlgmr.msra.gmra.mxu3 %v5934_v45  ;;  %2909 = vmatmul.bf16.vlgmr.msrb.gmra.mxu0 %v5936_v46  ;;  %v4489_v11 = vor.u32 %v4881_v33, %v4486_v34  ;;  %v3644_v30 = vld [vmem:[%s7145_s7 + $0xa8] sm:$0xf]  ;;  %v4672_v31 = vld [vmem:[%s7145_s7 + $0xb4] sm:$0xf0] }
 0x203   : > { %v3772_v34 = vld [vmem:[%s7145_s7 + $0x1a8] sm:$0xf] }
 0x204   : > { %2915 = vmatpush.bf16.msrb.mxu1 %v4169_v47  ;;  %2928 = vmatpush.bf16.msrb.mxu2 %v4297_v48  ;;  %v4214_v47 = vld [vmem:[%s7145_s7 + $0x530] sm:$0xf0]  ;;  %v4845_v48 = vld [vmem:[%s7145_s7 + $0x624] sm:$0xf] }
 0x205   : > { %2941 = vmatpush.bf16.msrb.mxu3 %v4425_v51  ;;  %2954 = vmatpush.bf16.msra.mxu0 %v4553_v52  ;;  %v4470_v51 = vld [vmem:[%s7145_s7 + $0x730] sm:$0xf0]  ;;  %v4777_v52 = vld [vmem:[%s7145_s7 + $0x404] sm:$0xf]  ;;  %v4217_v54 = vor.u32 %v4813_v40, %v4214_v47  ;;  %v4345_v60 = vor.u32 %v4845_v48, %v4342_v49  ;;  %v3628_v47 = vld [vmem:[%s7145_s7 + $0x88] sm:$0xf] }
 0x206   : > { %v4073_v5 = vor.u32 %v4777_v52, %v4070_v55  ;;  %v4668_v48 = vld [vmem:[%s7145_s7 + $0x94] sm:$0xf0]  ;;  %v4012_v55 = vld [vmem:[%s7145_s7 + $0x388] sm:$0xf] }
 0x207   : > { %v4700_v52 = vld [vmem:[%s7145_s7 + $0x194] sm:$0xf0]  ;;  %v3629_v59 = vor.u32 %v4668_v48, %v3628_v47  ;;  %v3948_v48 = vld [vmem:[%s7145_s7 + $0x308] sm:$0xf] }
 0x208   : > { %2916 = vmatpush.bf16.msrb.mxu1 %v4153_v61  ;;  %2929 = vmatpush.bf16.msrb.mxu2 %v4281_v62  ;;  %v4473_v61 = vor.u32 %v4877_v50, %v4470_v51  ;;  %v4841_v62 = vld [vmem:[%s7145_s7 + $0x604] sm:$0xf]  ;;  %v3756_v51 = vld [vmem:[%s7145_s7 + $0x188] sm:$0xf]  ;;  %v4716_v47 = vld [vmem:[%s7145_s7 + $0x214] sm:$0xf0] }
 0x209   : > { %2942 = vmatpush.bf16.msrb.mxu3 %v4409_v3  ;;  %2955 = vmatpush.bf16.msra.mxu0 %v4537_v4  ;;  %v4454_v3 = vld [vmem:[%s7145_s7 + $0x710] sm:$0xf0]  ;;  %v3676_v4 = vld [vmem:[%s7145_s7 + $0xe8] sm:$0xf]  ;;  %v4329_v12 = vor.u32 %v4841_v62, %v4326_v0  ;;  %v4664_v62 = vld [vmem:[%s7145_s7 + $0x74] sm:$0xf0] }
 0x20c   : > { %2917 = vmatpush.bf16.msrb.mxu1 %v4137_v18  ;;  %2930 = vmatpush.bf16.msrb.mxu2 %v4265_v58  ;;  %v4744_v18 = vld [vmem:[%s7145_s7 + $0x2f4] sm:$0xf0]  ;;  %v4060_v58 = vld [vmem:[%s7145_s7 + $0x3e8] sm:$0xf] }
 0x20d   : > { %2943 = vmatpush.bf16.msrb.mxu3 %v4393_v13  ;;  %2956 = vmatpush.bf16.msra.mxu0 %v4521_v14  ;;  %v4457_v13 = vor.u32 %v4873_v2, %v4454_v3  ;;  %v3677_v14 = vor.u32 %v4680_v1, %v3676_v4  ;;  %v3933_v20 = vor.u32 %v4744_v18, %v3932_v63  ;;  %v3740_v3 = vld [vmem:[%s7145_s7 + $0x168] sm:$0xf]  ;;  %v4696_v4 = vld [vmem:[%s7145_s7 + $0x174] sm:$0xf0] }
 0x20e   : > { %v4061_v21 = vor.u32 %v4776_v8, %v4060_v58  ;;  %v4013_v2 = vor.u32 %v4764_v56, %v4012_v55  ;;  %v3868_v1 = vld [vmem:[%s7145_s7 + $0x268] sm:$0xf]  ;;  %v4760_v63 = vld [vmem:[%s7145_s7 + $0x374] sm:$0xf0] }
 0x20f   : > { %v3596_v18 = vld [vmem:[%s7145_s7 + $0x48] sm:$0xf]  ;;  %v4660_v58 = vld [vmem:[%s7145_s7 + $0x54] sm:$0xf0]  ;;  %v3869_v8 = vor.u32 %v4728_v17, %v3868_v1 }
 0x210   : > { %2918 = vmatpush.bf16.msrb.mxu1 %v4121_v23  ;;  %2931 = vmatpush.bf16.msrb.mxu2 %v4249_v24  ;;  %v4708_v23 = vld [vmem:[%s7145_s7 + $0x1d4] sm:$0xf0]  ;;  %v3916_v24 = vld [vmem:[%s7145_s7 + $0x2c8] sm:$0xf] }
 0x211   : > { %2944 = vmatpush.bf16.msrb.mxu3 %v4377_v27  ;;  %2957 = vmatpush.bf16.msra.mxu0 %v4505_v28  ;;  %v4772_v27 = vld [vmem:[%s7145_s7 + $0x3d4] sm:$0xf0]  ;;  %v3661_v28 = vor.u32 %v4676_v19, %v3660_v16  ;;  %v3789_v29 = vor.u32 %v4708_v23, %v3788_v22  ;;  %v3917_v32 = vor.u32 %v4740_v25, %v3916_v24  ;;  %v3980_v19 = vld [vmem:[%s7145_s7 + $0x348] sm:$0xf] }
 0x212   : > { %v4045_v33 = vor.u32 %v4772_v27, %v4044_v26  ;;  %v4724_v16 = vld [vmem:[%s7145_s7 + $0x254] sm:$0xf0]  ;;  %v3580_v23 = vld [vmem:[%s7145_s7 + $0x28] sm:$0xf] }
 0x213   : > { %v4656_v24 = vld [vmem:[%s7145_s7 + $0x34] sm:$0xf0]  ;;  %v3708_v27 = vld [vmem:[%s7145_s7 + $0x128] sm:$0xf] }
 0x214   : > { %2919 = vmatpush.bf16.msrb.mxu1 %v4105_v35  ;;  %2932 = vmatpush.bf16.msrb.mxu2 %v4233_v37  ;;  %v4704_v35 = vld [vmem:[%s7145_s7 + $0x1b4] sm:$0xf0]  ;;  %v3900_v37 = vld [vmem:[%s7145_s7 + $0x2a8] sm:$0xf] }
 0x215   : > { %2945 = vmatpush.bf16.msrb.mxu3 %v4361_v9  ;;  %2958 = vmatpush.bf16.msra.mxu0 %v4489_v11  ;;  %v4768_v9 = vld [vmem:[%s7145_s7 + $0x3b4] sm:$0xf0]  ;;  %v3645_v11 = vor.u32 %v4672_v31, %v3644_v30  ;;  %v3773_v40 = vor.u32 %v4704_v35, %v3772_v34  ;;  %v3901_v49 = vor.u32 %v4736_v38, %v3900_v37  ;;  %v3964_v31 = vld [vmem:[%s7145_s7 + $0x328] sm:$0xf] }
 0x216   : > { %v4029_v50 = vor.u32 %v4768_v9, %v4028_v39  ;;  %v4720_v30 = vld [vmem:[%s7145_s7 + $0x234] sm:$0xf0]  ;;  %v3581_v34 = vor.u32 %v4656_v24, %v3580_v23  ;;  %v3692_v38 = vld [vmem:[%s7145_s7 + $0x108] sm:$0xf] }
 0x217   : > { %v4652_v37 = vld [vmem:[%s7145_s7 + $0x14] sm:$0xf0]  ;;  %v4540_v24 = vld [vmem:[%s7145_s7 + $0x7a8] sm:$0xf] }
 0x218   : > { %2920 = vmatpush.bf16.msrb.mxu1 %v4089_v53  ;;  %2933 = vmatpush.bf16.msrb.mxu2 %v4217_v54  ;;  %v3884_v53 = vld [vmem:[%s7145_s7 + $0x288] sm:$0xf]  ;;  %v4732_v54 = vld [vmem:[%s7145_s7 + $0x294] sm:$0xf0] }
 0x219   : > { %2946 = vmatpush.bf16.msrb.mxu3 %v4345_v60  ;;  %2959 = vmatpush.bf16.msra.mxu0 %v4473_v61  ;;  %v3757_v60 = vor.u32 %v4700_v52, %v3756_v51  ;;  %v3612_v61 = vld [vmem:[%s7145_s7 + $0x68] sm:$0xf]  ;;  %v3885_v0 = vor.u32 %v4732_v54, %v3884_v53  ;;  %v4684_v39 = vld [vmem:[%s7145_s7 + $0x114] sm:$0xf0] }
 0x21a   : > { %v4808_v51 = vld [vmem:[%s7145_s7 + $0x4f4] sm:$0xf0]  ;;  %v4316_v52 = vld [vmem:[%s7145_s7 + $0x5e8] sm:$0xf]  ;;  %v3693_v56 = vor.u32 %v4684_v39, %v3692_v38 }
 0x21b   : > { %v4840_v53 = vld [vmem:[%s7145_s7 + $0x5f4] sm:$0xf0]  ;;  %v4444_v54 = vld [vmem:[%s7145_s7 + $0x6e8] sm:$0xf] }
 0x21c   : > { %2921 = vmatpush.bf16.msrb.mxu1 %v4073_v5  ;;  %2934 = vmatpush.bf16.msrb.mxu2 %v4201_v7  ;;  %v3613_v5 = vor.u32 %v4664_v62, %v3612_v61  ;;  %v3741_v7 = vor.u32 %v4696_v4, %v3740_v3  ;;  %v4904_v61 = vld [vmem:[%s7145_s7 + $0x7f4] sm:$0xf0]  ;;  %v4317_v3 = vor.u32 %v4840_v53, %v4316_v52  ;;  %v4172_v4 = vld [vmem:[%s7145_s7 + $0x4c8] sm:$0xf] }
 0x21d   : > { %2947 = vmatpush.bf16.msrb.mxu3 %v4329_v12  ;;  %2960 = vmatpush.bf16.msra.mxu0 %v4457_v13  ;;  %v3997_v12 = vor.u32 %v4760_v63, %v3996_v57  ;;  %v3724_v13 = vld [vmem:[%s7145_s7 + $0x148] sm:$0xf]  ;;  %v4804_v1 = vld [vmem:[%s7145_s7 + $0x4d4] sm:$0xf0] }
 0x21e   : > { %v4300_v63 = vld [vmem:[%s7145_s7 + $0x5c8] sm:$0xf]  ;;  %v4864_v23 = vld [vmem:[%s7145_s7 + $0x6b4] sm:$0xf0] }
 0x21f   : > { %2922 = vmatmul.bf16.vlgmr.msrb.gmra.mxu1 %v6042_v36  ;;  %2935 = vmatmul.bf16.vlgmr.msrb.gmra.mxu2 %v6044_v10  ;;  %v4892_v38 = vld [vmem:[%s7145_s7 + $0x794] sm:$0xf0]  ;;  %v4508_v53 = vld [vmem:[%s7145_s7 + $0x768] sm:$0xf] }
 0x220   : > { %2966 = vmatpush.bf16.msra.mxu1 %v3677_v14  ;;  %2979 = vmatpush.bf16.msra.mxu2 %v3805_v15  ;;  %v4692_v14 = vld [vmem:[%s7145_s7 + $0x154] sm:$0xf0]  ;;  %v3852_v15 = vld [vmem:[%s7145_s7 + $0x248] sm:$0xf] }
 0x221   : > { %2992 = vmatpush.bf16.msra.mxu3 %v3933_v20  ;;  %3005 = vmatpush.bf16.msrb.mxu0 %v4061_v21  ;;  %v4756_v20 = vld [vmem:[%s7145_s7 + $0x354] sm:$0xf0]  ;;  %v3597_v21 = vor.u32 %v4660_v58, %v3596_v18  ;;  %v3725_v22 = vor.u32 %v4692_v14, %v3724_v13  ;;  %v3853_v25 = vor.u32 %v4724_v16, %v3852_v15  ;;  %v4556_v58 = vld [vmem:[%s7145_s7 + $0x7c8] sm:$0xf] }
 0x222   : > { %2948 = vmatmul.bf16.vlgmr.msrb.gmra.mxu3 %v6052_v41  ;;  %2961 = vmatmul.bf16.vlgmr.msra.gmra.mxu0 %v6054_v42  ;;  %v3981_v26 = vor.u32 %v4756_v20, %v3980_v19  ;;  %v4868_v18 = vld [vmem:[%s7145_s7 + $0x6d4] sm:$0xf0]  ;;  %v4156_v14 = vld [vmem:[%s7145_s7 + $0x4a8] sm:$0xf] }
 0x223   : > { %v4800_v15 = vld [vmem:[%s7145_s7 + $0x4b4] sm:$0xf0]  ;;  %v4284_v20 = vld [vmem:[%s7145_s7 + $0x5a8] sm:$0xf] }
 0x224   : > { %2967 = vmatpush.bf16.msra.mxu1 %v3661_v28  ;;  %2980 = vmatpush.bf16.msra.mxu2 %v3789_v29  ;;  %v4688_v28 = vld [vmem:[%s7145_s7 + $0x134] sm:$0xf0]  ;;  %v3836_v29 = vld [vmem:[%s7145_s7 + $0x228] sm:$0xf] }
 0x225   : > { %2993 = vmatpush.bf16.msra.mxu3 %v3917_v32  ;;  %3006 = vmatpush.bf16.msrb.mxu0 %v4045_v33  ;;  %v4752_v32 = vld [vmem:[%s7145_s7 + $0x334] sm:$0xf0]  ;;  %v3564_v33 = vld [vmem:[%s7145_s7 + $0x8] sm:$0xf]  ;;  %v3709_v35 = vor.u32 %v4688_v28, %v3708_v27  ;;  %v3837_v9 = vor.u32 %v4720_v30, %v3836_v29 }
 0x226   : > { %v3565_v55 = vor.u32 %v4652_v37, %v3564_v33  ;;  %v4140_v28 = vld [vmem:[%s7145_s7 + $0x488] sm:$0xf]  ;;  %v4796_v29 = vld [vmem:[%s7145_s7 + $0x494] sm:$0xf0] }
 0x227   : > { %v4828_v33 = vld [vmem:[%s7145_s7 + $0x594] sm:$0xf0]  ;;  %v4524_v37 = vld [vmem:[%s7145_s7 + $0x788] sm:$0xf]  ;;  %v4141_v39 = vor.u32 %v4796_v29, %v4140_v28 }
 0x228   : > { %2968 = vmatpush.bf16.msra.mxu1 %v3645_v11  ;;  %2981 = vmatpush.bf16.msra.mxu2 %v3773_v40  ;;  %v3965_v11 = vor.u32 %v4752_v32, %v3964_v31  ;;  %v3820_v40 = vld [vmem:[%s7145_s7 + $0x208] sm:$0xf]  ;;  %v4856_v52 = vld [vmem:[%s7145_s7 + $0x674] sm:$0xf0] }
 0x229   : > { %2994 = vmatpush.bf16.msra.mxu3 %v3901_v49  ;;  %3007 = vmatpush.bf16.msrb.mxu0 %v4029_v50  ;;  %v4748_v49 = vld [vmem:[%s7145_s7 + $0x314] sm:$0xf0]  ;;  %v4188_v50 = vld [vmem:[%s7145_s7 + $0x4e8] sm:$0xf]  ;;  %v3821_v62 = vor.u32 %v4716_v47, %v3820_v40 }
 0x22a   : > { %v4268_v32 = vld [vmem:[%s7145_s7 + $0x588] sm:$0xf]  ;;  %v4792_v40 = vld [vmem:[%s7145_s7 + $0x474] sm:$0xf0] }
 0x22b   : > { %v4844_v28 = vld [vmem:[%s7145_s7 + $0x614] sm:$0xf0]  ;;  %v4460_v29 = vld [vmem:[%s7145_s7 + $0x708] sm:$0xf] }
 0x22c   : > { %2969 = vmatpush.bf16.msra.mxu1 %v3629_v59  ;;  %2982 = vmatpush.bf16.msra.mxu2 %v3757_v60  ;;  %v4872_v59 = vld [vmem:[%s7145_s7 + $0x6f4] sm:$0xf0]  ;;  %v4572_v60 = vld [vmem:[%s7145_s7 + $0x7e8] sm:$0xf] }
 0x22d   : > { %2995 = vmatpush.bf16.msra.mxu3 %v3885_v0  ;;  %3008 = vmatpush.bf16.msrb.mxu0 %v4013_v2  ;;  %v3949_v0 = vor.u32 %v4748_v49, %v3948_v48  ;;  %v4189_v2 = vor.u32 %v4808_v51, %v4188_v50  ;;  %v4445_v17 = vor.u32 %v4872_v59, %v4444_v54  ;;  %v4252_v49 = vld [vmem:[%s7145_s7 + $0x568] sm:$0xf]  ;;  %v4824_v50 = vld [vmem:[%s7145_s7 + $0x574] sm:$0xf0] }
 0x22e   : > { %v4573_v57 = vor.u32 %v4904_v61, %v4572_v60  ;;  %v4525_v48 = vor.u32 %v4892_v38, %v4524_v37  ;;  %v4380_v51 = vld [vmem:[%s7145_s7 + $0x668] sm:$0xf]  ;;  %v4888_v54 = vld [vmem:[%s7145_s7 + $0x774] sm:$0xf0] }
 0x22f   : > { %v4108_v59 = vld [vmem:[%s7145_s7 + $0x448] sm:$0xf]  ;;  %v4788_v60 = vld [vmem:[%s7145_s7 + $0x454] sm:$0xf0]  ;;  %v4381_v61 = vor.u32 %v4856_v52, %v4380_v51  ;;  %v3662_v51 = vld [vmem:[%s7145_s7 + $0xd8] sm:$0xf0] }
 0x230   : > { %2970 = vmatpush.bf16.msra.mxu1 %v3613_v5  ;;  %2983 = vmatpush.bf16.msra.mxu2 %v3741_v7  ;;  %v4836_v5 = vld [vmem:[%s7145_s7 + $0x5d4] sm:$0xf0]  ;;  %v4428_v7 = vld [vmem:[%s7145_s7 + $0x6c8] sm:$0xf] }
 0x231   : > { %2996 = vmatpush.bf16.msra.mxu3 %v3869_v8  ;;  %3009 = vmatpush.bf16.msrb.mxu0 %v3997_v12  ;;  %v4900_v8 = vld [vmem:[%s7145_s7 + $0x7d4] sm:$0xf0]  ;;  %v4173_v12 = vor.u32 %v4804_v1, %v4172_v4  ;;  %v4301_v13 = vor.u32 %v4836_v5, %v4300_v63  ;;  %v4429_v16 = vor.u32 %v4868_v18, %v4428_v7  ;;  %v4492_v1 = vld [vmem:[%s7145_s7 + $0x748] sm:$0xf] }
 0x232   : > { %v4557_v19 = vor.u32 %v4900_v8, %v4556_v58  ;;  %v4852_v4 = vld [vmem:[%s7145_s7 + $0x654] sm:$0xf0]  ;;  %v4092_v5 = vld [vmem:[%s7145_s7 + $0x428] sm:$0xf] }
 0x233   : > { %v4784_v7 = vld [vmem:[%s7145_s7 + $0x434] sm:$0xf0]  ;;  %v4220_v8 = vld [vmem:[%s7145_s7 + $0x528] sm:$0xf] }
 0x234   : > { %2971 = vmatpush.bf16.msra.mxu1 %v3597_v21  ;;  %2984 = vmatpush.bf16.msra.mxu2 %v3725_v22  ;;  %v4832_v21 = vld [vmem:[%s7145_s7 + $0x5b4] sm:$0xf0]  ;;  %v4412_v22 = vld [vmem:[%s7145_s7 + $0x6a8] sm:$0xf] }
 0x235   : > { %2997 = vmatpush.bf16.msra.mxu3 %v3853_v25  ;;  %3010 = vmatpush.bf16.msrb.mxu0 %v3981_v26  ;;  %v4896_v25 = vld [vmem:[%s7145_s7 + $0x7b4] sm:$0xf0]  ;;  %v4157_v26 = vor.u32 %v4800_v15, %v4156_v14  ;;  %v4285_v27 = vor.u32 %v4832_v21, %v4284_v20  ;;  %v4413_v30 = vor.u32 %v4864_v23, %v4412_v22  ;;  %v4476_v15 = vld [vmem:[%s7145_s7 + $0x728] sm:$0xf] }
 0x236   : > { %v4541_v31 = vor.u32 %v4896_v25, %v4540_v24  ;;  %v4848_v14 = vld [vmem:[%s7145_s7 + $0x634] sm:$0xf0]  ;;  %v4093_v20 = vor.u32 %v4784_v7, %v4092_v5  ;;  %v4204_v23 = vld [vmem:[%s7145_s7 + $0x508] sm:$0xf]  ;;  %v6780_v5 = vld [vmem:[%s7146_s8] sm:$0xf] }
 0x237   : > { %v4780_v22 = vld [vmem:[%s7145_s7 + $0x414] sm:$0xf0]  ;;  %v3902_v7 = vld [vmem:[%s7145_s7 + $0x2b8] sm:$0xf0] }
 0x238   : > { %2972 = vmatpush.bf16.msra.mxu1 %v3581_v34  ;;  %2985 = vmatpush.bf16.msra.mxu2 %v3709_v35  ;;  %v4396_v34 = vld [vmem:[%s7145_s7 + $0x688] sm:$0xf]  ;;  %v4860_v35 = vld [vmem:[%s7145_s7 + $0x694] sm:$0xf0] }
 0x239   : > { %2998 = vmatpush.bf16.msra.mxu3 %v3837_v9  ;;  %3011 = vmatpush.bf16.msrb.mxu0 %v3965_v11  ;;  %v4269_v9 = vor.u32 %v4828_v33, %v4268_v32  ;;  %v4124_v11 = vld [vmem:[%s7145_s7 + $0x468] sm:$0xf]  ;;  %v4397_v47 = vor.u32 %v4860_v35, %v4396_v34  ;;  %v4812_v24 = vld [vmem:[%s7145_s7 + $0x514] sm:$0xf0]  ;;  %v3678_v32 = vld [vmem:[%s7145_s7 + $0xf8] sm:$0xf0] }
 0x23a   : > { %v4710_v33 = vld [vmem:[%s7145_s7 + $0x1ec] sm:$0xf]  ;;  %v3806_v34 = vld [vmem:[%s7145_s7 + $0x1f8] sm:$0xf0]  ;;  %v4205_v38 = vor.u32 %v4812_v24, %v4204_v23 }
 0x23b   : > { %v4742_v35 = vld [vmem:[%s7145_s7 + $0x2ec] sm:$0xf]  ;;  %v3758_v23 = vld [vmem:[%s7145_s7 + $0x198] sm:$0xf0] }
 0x23c   : > { %2973 = vmatpush.bf16.msra.mxu1 %v3565_v55  ;;  %2986 = vmatpush.bf16.msra.mxu2 %v3693_v56  ;;  %v4125_v55 = vor.u32 %v4792_v40, %v4124_v11  ;;  %v4253_v56 = vor.u32 %v4824_v50, %v4252_v49  ;;  %v4062_v11 = vld [vmem:[%s7145_s7 + $0x3f8] sm:$0xf0]  ;;  %v3809_v49 = vor.u32 %v4710_v33, %v3806_v34  ;;  %v4674_v50 = vld [vmem:[%s7145_s7 + $0xcc] sm:$0xf] }
 0x23d   : > { %2999 = vmatpush.bf16.msra.mxu3 %v3821_v62  ;;  %3012 = vmatpush.bf16.msrb.mxu0 %v3949_v0  ;;  %v4509_v62 = vor.u32 %v4888_v54, %v4508_v53  ;;  %v4236_v0 = vld [vmem:[%s7145_s7 + $0x548] sm:$0xf]  ;;  %v4706_v54 = vld [vmem:[%s7145_s7 + $0x1cc] sm:$0xf] }
 0x23e   : > { %v4730_v24 = vld [vmem:[%s7145_s7 + $0x28c] sm:$0xf] }
 0x23f   : > { %2974 = vmatmul.bf16.vlgmr.msra.gmra.mxu1 %v5930_v43  ;;  %2987 = vmatmul.bf16.vlgmr.msra.gmra.mxu2 %v5932_v44 }
 0x240   : > { %3018 = vmatpush.bf16.msrb.mxu1 %v4189_v2  ;;  %3031 = vmatpush.bf16.msrb.mxu2 %v4317_v3  ;;  %v4820_v2 = vld [vmem:[%s7145_s7 + $0x554] sm:$0xf0]  ;;  %v4364_v3 = vld [vmem:[%s7145_s7 + $0x648] sm:$0xf] }
 0x241   : > { %3044 = vmatpush.bf16.msrb.mxu3 %v4445_v17  ;;  %3057 = vmatpush.bf16.msra.mxu0 %v4573_v57  ;;  %v4884_v17 = vld [vmem:[%s7145_s7 + $0x754] sm:$0xf0]  ;;  %v4109_v57 = vor.u32 %v4788_v60, %v4108_v59  ;;  %v4237_v63 = vor.u32 %v4820_v2, %v4236_v0  ;;  %v4365_v18 = vor.u32 %v4852_v4, %v4364_v3  ;;  %v3918_v59 = vld [vmem:[%s7145_s7 + $0x2d8] sm:$0xf0]  ;;  %v4770_v60 = vld [vmem:[%s7145_s7 + $0x3cc] sm:$0xf] }
 0x242   : > { %3000 = vmatmul.bf16.vlgmr.msra.gmra.mxu3 %v5934_v45  ;;  %3013 = vmatmul.bf16.vlgmr.msrb.gmra.mxu0 %v5936_v46  ;;  %v4493_v58 = vor.u32 %v4884_v17, %v4492_v1  ;;  %v4670_v2 = vld [vmem:[%s7145_s7 + $0xac] sm:$0xf]  ;;  %v3646_v3 = vld [vmem:[%s7145_s7 + $0xb8] sm:$0xf0] }
 0x243   : > { %v4702_v4 = vld [vmem:[%s7145_s7 + $0x1ac] sm:$0xf] }
 0x244   : > { %3019 = vmatpush.bf16.msrb.mxu1 %v4173_v12  ;;  %3032 = vmatpush.bf16.msrb.mxu2 %v4301_v13  ;;  %v4816_v12 = vld [vmem:[%s7145_s7 + $0x534] sm:$0xf0]  ;;  %v4348_v13 = vld [vmem:[%s7145_s7 + $0x628] sm:$0xf] }
 0x245   : > { %3045 = vmatpush.bf16.msrb.mxu3 %v4429_v16  ;;  %3058 = vmatpush.bf16.msra.mxu0 %v4557_v19  ;;  %v4880_v16 = vld [vmem:[%s7145_s7 + $0x734] sm:$0xf0]  ;;  %v4076_v19 = vld [vmem:[%s7145_s7 + $0x408] sm:$0xf]  ;;  %v4221_v21 = vor.u32 %v4816_v12, %v4220_v8  ;;  %v4349_v25 = vor.u32 %v4848_v14, %v4348_v13  ;;  %v3649_v12 = vor.u32 %v4670_v2, %v3646_v3  ;;  %v2750_v14 = vperm.slane %v6780_v5, 0 }
 0x246   : > { %v4077_v37 = vor.u32 %v4780_v22, %v4076_v19  ;;  %v3630_v19 = vld [vmem:[%s7145_s7 + $0x98] sm:$0xf0]  ;;  %v4698_v22 = vld [vmem:[%s7145_s7 + $0x18c] sm:$0xf] }
 0x247   : > { %v4754_v2 = vld [vmem:[%s7145_s7 + $0x34c] sm:$0xf]  ;;  %v3982_v3 = vld [vmem:[%s7145_s7 + $0x358] sm:$0xf0] }
 0x248   : > { %3020 = vmatpush.bf16.msrb.mxu1 %v4157_v26  ;;  %3033 = vmatpush.bf16.msrb.mxu2 %v4285_v27  ;;  %v4477_v26 = vor.u32 %v4880_v16, %v4476_v15  ;;  %v4332_v27 = vld [vmem:[%s7145_s7 + $0x608] sm:$0xf]  ;;  %v4666_v16 = vld [vmem:[%s7145_s7 + $0x8c] sm:$0xf] }
 0x249   : > { %3046 = vmatpush.bf16.msrb.mxu3 %v4413_v30  ;;  %3059 = vmatpush.bf16.msra.mxu0 %v4541_v31  ;;  %v4876_v30 = vld [vmem:[%s7145_s7 + $0x714] sm:$0xf0]  ;;  %v4678_v31 = vld [vmem:[%s7145_s7 + $0xec] sm:$0xf]  ;;  %v4333_v40 = vor.u32 %v4844_v28, %v4332_v27  ;;  %v4014_v27 = vld [vmem:[%s7145_s7 + $0x398] sm:$0xf0] }
 0x24c   : > { %3021 = vmatpush.bf16.msrb.mxu1 %v4141_v39  ;;  %3034 = vmatpush.bf16.msrb.mxu2 %v4269_v9  ;;  %v3934_v39 = vld [vmem:[%s7145_s7 + $0x2f8] sm:$0xf0]  ;;  %v4774_v9 = vld [vmem:[%s7145_s7 + $0x3ec] sm:$0xf] }
 0x24d   : > { %3047 = vmatpush.bf16.msrb.mxu3 %v4397_v47  ;;  %3060 = vmatpush.bf16.msra.mxu0 %v4525_v48  ;;  %v4461_v47 = vor.u32 %v4876_v30, %v4460_v29  ;;  %v3681_v48 = vor.u32 %v4678_v31, %v3678_v32  ;;  %v3937_v52 = vor.u32 %v4742_v35, %v3934_v39  ;;  %v4662_v31 = vld [vmem:[%s7145_s7 + $0x6c] sm:$0xf]  ;;  %v3614_v32 = vld [vmem:[%s7145_s7 + $0x78] sm:$0xf0] }
 0x24e   : > { %v4065_v53 = vor.u32 %v4774_v9, %v4062_v11  ;;  %v3633_v29 = vor.u32 %v4666_v16, %v3630_v19  ;;  %v3761_v30 = vor.u32 %v4698_v22, %v3758_v23  ;;  %v4726_v39 = vld [vmem:[%s7145_s7 + $0x26c] sm:$0xf]  ;;  %v3966_v19 = vld [vmem:[%s7145_s7 + $0x338] sm:$0xf0] }
 0x24f   : > { %v4750_v16 = vld [vmem:[%s7145_s7 + $0x32c] sm:$0xf] }
 0x250   : > { %3022 = vmatpush.bf16.msrb.mxu1 %v4125_v55  ;;  %3035 = vmatpush.bf16.msrb.mxu2 %v4253_v56  ;;  %v3790_v55 = vld [vmem:[%s7145_s7 + $0x1d8] sm:$0xf0]  ;;  %v4738_v56 = vld [vmem:[%s7145_s7 + $0x2cc] sm:$0xf] }
 0x251   : > { %3048 = vmatpush.bf16.msrb.mxu3 %v4381_v61  ;;  %3061 = vmatpush.bf16.msra.mxu0 %v4509_v62  ;;  %v4046_v61 = vld [vmem:[%s7145_s7 + $0x3d8] sm:$0xf0]  ;;  %v3665_v62 = vor.u32 %v4674_v50, %v3662_v51  ;;  %v3793_v0 = vor.u32 %v4706_v54, %v3790_v55  ;;  %v3921_v1 = vor.u32 %v4738_v56, %v3918_v59  ;;  %v4658_v54 = vld [vmem:[%s7145_s7 + $0x4c] sm:$0xf] }
 0x252   : > { %v4049_v17 = vor.u32 %v4770_v60, %v4046_v61  ;;  %v3617_v51 = vor.u32 %v4662_v31, %v3614_v32  ;;  %v3598_v55 = vld [vmem:[%s7145_s7 + $0x58] sm:$0xf0]  ;;  %v4690_v60 = vld [vmem:[%s7145_s7 + $0x14c] sm:$0xf] }
 0x253   : > { %v3726_v61 = vld [vmem:[%s7145_s7 + $0x158] sm:$0xf0]  ;;  %v4714_v31 = vld [vmem:[%s7145_s7 + $0x20c] sm:$0xf] }
 0x254   : > { %3023 = vmatpush.bf16.msrb.mxu1 %v4109_v57  ;;  %3036 = vmatpush.bf16.msrb.mxu2 %v4237_v63  ;;  %v3774_v57 = vld [vmem:[%s7145_s7 + $0x1b8] sm:$0xf0]  ;;  %v4734_v63 = vld [vmem:[%s7145_s7 + $0x2ac] sm:$0xf] }
 0x255   : > { %3049 = vmatpush.bf16.msrb.mxu3 %v4365_v18  ;;  %3062 = vmatpush.bf16.msra.mxu0 %v4493_v58  ;;  %v4766_v18 = vld [vmem:[%s7145_s7 + $0x3ac] sm:$0xf]  ;;  %v4030_v58 = vld [vmem:[%s7145_s7 + $0x3b8] sm:$0xf0]  ;;  %v3777_v13 = vor.u32 %v4702_v4, %v3774_v57 }
 0x256   : > { %v4654_v57 = vld [vmem:[%s7145_s7 + $0x2c] sm:$0xf]  ;;  %v3822_v32 = vld [vmem:[%s7145_s7 + $0x218] sm:$0xf0] }
 0x258   : > { %3024 = vmatpush.bf16.msrb.mxu1 %v4093_v20  ;;  %3037 = vmatpush.bf16.msrb.mxu2 %v4221_v21  ;;  %v3905_v20 = vor.u32 %v4734_v63, %v3902_v7  ;;  %v4033_v21 = vor.u32 %v4766_v18, %v4030_v58  ;;  %v3582_v63 = vld [vmem:[%s7145_s7 + $0x38] sm:$0xf0]  ;;  %v3985_v18 = vor.u32 %v4754_v2, %v3982_v3  ;;  %v4834_v2 = vld [vmem:[%s7145_s7 + $0x5cc] sm:$0xf] }
 0x259   : > { %3050 = vmatpush.bf16.msrb.mxu3 %v4349_v25  ;;  %3063 = vmatpush.bf16.msra.mxu0 %v4477_v26  ;;  %v3886_v25 = vld [vmem:[%s7145_s7 + $0x298] sm:$0xf0]  ;;  %v4762_v26 = vld [vmem:[%s7145_s7 + $0x38c] sm:$0xf]  ;;  %v3585_v22 = vor.u32 %v4654_v57, %v3582_v63 }
 0x25a   : > { %v3889_v33 = vor.u32 %v4730_v24, %v3886_v25  ;;  %v4017_v34 = vor.u32 %v4762_v26, %v4014_v27  ;;  %v3566_v26 = vld [vmem:[%s7145_s7 + $0x18] sm:$0xf0]  ;;  %v4682_v27 = vld [vmem:[%s7145_s7 + $0x10c] sm:$0xf] }
 0x25b   : > { %v2767_v8 = vpop.f32.mrf.mxu1  ;;  %v4302_v3 = vld [vmem:[%s7145_s7 + $0x5d8] sm:$0xf0]  ;;  %v4898_v63 = vld [vmem:[%s7145_s7 + $0x7cc] sm:$0xf] }
 0x25c   : > { %3025 = vmatpush.bf16.msrb.mxu1 %v4077_v37  ;;  %3038 = vmatpush.bf16.msrb.mxu2 %v4205_v38  ;;  %v2806_v15 = vpop.f32.mrf.mxu0  ;;  %v2768_v28 = vadd.f32 %v2767_v8, %v2750_v14  ;;  %v4694_v37 = vld [vmem:[%s7145_s7 + $0x16c] sm:$0xf]  ;;  %v3742_v38 = vld [vmem:[%s7145_s7 + $0x178] sm:$0xf0] }
 0x25d   : > { %3051 = vmatpush.bf16.msrb.mxu3 %v4333_v40  ;;  %3064 = vmatpush.bf16.msra.mxu0 %v4461_v47  ;;  %v3870_v40 = vld [vmem:[%s7145_s7 + $0x278] sm:$0xf0]  ;;  %v4758_v47 = vld [vmem:[%s7145_s7 + $0x36c] sm:$0xf] }
 0x25e   : > { %v3873_v56 = vor.u32 %v4726_v39, %v3870_v40  ;;  %v4686_v8 = vld [vmem:[%s7145_s7 + $0x12c] sm:$0xf]  ;;  %v4318_v39 = vld [vmem:[%s7145_s7 + $0x5f8] sm:$0xf0] }
 0x25f   : > { %3026 = vmatmul.bf16.vlgmr.msrb.gmra.mxu1 %v6042_v36  ;;  %3039 = vmatmul.bf16.vlgmr.msrb.gmra.mxu2 %v6044_v10  ;;  %v4430_v57 = vld [vmem:[%s7145_s7 + $0x6d8] sm:$0xf0] }
 0x260   : > { %3070 = vmatpush.bf16.msra.mxu1 %v3681_v48  ;;  %3083 = vmatpush.bf16.msra.mxu2 %v3809_v49  ;;  %v3998_v48 = vld [vmem:[%s7145_s7 + $0x378] sm:$0xf0] }
 0x261   : > { %3096 = vmatpush.bf16.msra.mxu3 %v3937_v52  ;;  %3109 = vmatpush.bf16.msrb.mxu0 %v4065_v53  ;;  %v2780_v35 = vpop.f32.mrf.mxu2  ;;  %v3745_v52 = vor.u32 %v4694_v37, %v3742_v38  ;;  %v4001_v59 = vor.u32 %v4758_v47, %v3998_v48  ;;  %v4190_v37 = vld [vmem:[%s7145_s7 + $0x4f8] sm:$0xf0]  ;;  %v4838_v38 = vld [vmem:[%s7145_s7 + $0x5ec] sm:$0xf] }
 0x262   : > { %3052 = vmatmul.bf16.vlgmr.msrb.gmra.mxu3 %v6052_v41  ;;  %3065 = vmatmul.bf16.vlgmr.msra.gmra.mxu0 %v6054_v42  ;;  %v2781_v9 = vadd.f32 %v2780_v35, %v2768_v28  ;;  %v2793_v11 = vpop.f32.mrf.mxu3  ;;  %v3694_v28 = vld [vmem:[%s7145_s7 + $0x118] sm:$0xf0]  ;;  %v4806_v35 = vld [vmem:[%s7145_s7 + $0x4ec] sm:$0xf] }
 0x263   : > { %v2769_v49 = vpop.f32.mrf.mxu1  ;;  %v3697_v40 = vor.u32 %v4682_v27, %v3694_v28  ;;  %v4446_v47 = vld [vmem:[%s7145_s7 + $0x6f8] sm:$0xf0]  ;;  %v4902_v48 = vld [vmem:[%s7145_s7 + $0x7ec] sm:$0xf] }
 0x264   : > { %3071 = vmatpush.bf16.msra.mxu1 %v3665_v62  ;;  %3084 = vmatpush.bf16.msra.mxu2 %v3793_v0  ;;  %v2794_v50 = vadd.f32 %v2793_v11, %v2781_v9  ;;  %v2808_v53 = vpop.f32.mrf.mxu0  ;;  %v4722_v62 = vld [vmem:[%s7145_s7 + $0x24c] sm:$0xf]  ;;  %v3854_v0 = vld [vmem:[%s7145_s7 + $0x258] sm:$0xf0] }
 0x265   : > { %3097 = vmatpush.bf16.msra.mxu3 %v3921_v1  ;;  %3110 = vmatpush.bf16.msrb.mxu0 %v4049_v17  ;;  %v3601_v1 = vor.u32 %v4658_v54, %v3598_v55  ;;  %v3729_v17 = vor.u32 %v4690_v60, %v3726_v61  ;;  %v3857_v7 = vor.u32 %v4722_v62, %v3854_v0  ;;  %v4870_v9 = vld [vmem:[%s7145_s7 + $0x6ec] sm:$0xf]  ;;  %v4574_v49 = vld [vmem:[%s7145_s7 + $0x7f8] sm:$0xf0] }
 0x266   : > { %v2807_v4 = vadd.f32 %v2806_v15, %v2794_v50  ;;  %v3838_v15 = vld [vmem:[%s7145_s7 + $0x238] sm:$0xf0]  ;;  %v3825_v50 = vor.u32 %v4714_v31, %v3822_v32  ;;  %v4193_v53 = vor.u32 %v4806_v35, %v4190_v37  ;;  %v4321_v54 = vor.u32 %v4838_v38, %v4318_v39  ;;  %v4890_v32 = vld [vmem:[%s7145_s7 + $0x78c] sm:$0xf] }
 0x267   : > { %v4174_v60 = vld [vmem:[%s7145_s7 + $0x4d8] sm:$0xf0]  ;;  %v4449_v61 = vor.u32 %v4870_v9, %v4446_v47  ;;  %v4577_v62 = vor.u32 %v4902_v48, %v4574_v49  ;;  %v2751_v35 = vperm.slane %v6780_v5, 1  ;;  %v4790_v9 = vld [vmem:[%s7145_s7 + $0x46c] sm:$0xf] }
 0x268   : > { %3072 = vmatpush.bf16.msra.mxu1 %v3649_v12  ;;  %3085 = vmatpush.bf16.msra.mxu2 %v3777_v13  ;;  %v3710_v12 = vld [vmem:[%s7145_s7 + $0x138] sm:$0xf0]  ;;  %v4718_v13 = vld [vmem:[%s7145_s7 + $0x22c] sm:$0xf] }
 0x269   : > { %3098 = vmatpush.bf16.msra.mxu3 %v3905_v20  ;;  %3111 = vmatpush.bf16.msrb.mxu0 %v4033_v21  ;;  %v2782_v58 = vpop.f32.mrf.mxu2  ;;  %v4650_v21 = vld [vmem:[%s7145_s7 + $0xc] sm:$0xf]  ;;  %v3713_v23 = vor.u32 %v4686_v8, %v3710_v12  ;;  %v4305_v8 = vor.u32 %v4834_v2, %v4302_v3  ;;  %v4142_v27 = vld [vmem:[%s7145_s7 + $0x498] sm:$0xf0] }
 0x26a   : > { %v2795_v14 = vpop.f32.mrf.mxu3  ;;  %v3569_v11 = vor.u32 %v4650_v21, %v3566_v26  ;;  %v4798_v12 = vld [vmem:[%s7145_s7 + $0x4ac] sm:$0xf]  ;;  %v4414_v21 = vld [vmem:[%s7145_s7 + $0x6b8] sm:$0xf0] }
 0x26b   : > { %v2819_v20 = vpop.f32.mrf.mxu1  ;;  %v4794_v26 = vld [vmem:[%s7145_s7 + $0x48c] sm:$0xf]  ;;  %v4398_v31 = vld [vmem:[%s7145_s7 + $0x698] sm:$0xf0] }
 0x26c   : > { %3073 = vmatpush.bf16.msra.mxu1 %v3633_v29  ;;  %3086 = vmatpush.bf16.msra.mxu2 %v3761_v30  ;;  %v2820_v24 = vadd.f32 %v2819_v20, %v2807_v4  ;;  %v2858_v25 = vpop.f32.mrf.mxu0  ;;  %v3841_v29 = vor.u32 %v4718_v13, %v3838_v15  ;;  %v3969_v30 = vor.u32 %v4750_v16, %v3966_v19  ;;  %v4866_v4 = vld [vmem:[%s7145_s7 + $0x6cc] sm:$0xf]  ;;  %v4158_v13 = vld [vmem:[%s7145_s7 + $0x4b8] sm:$0xf0] }
 0x26d   : > { %3099 = vmatpush.bf16.msra.mxu3 %v3889_v33  ;;  %3112 = vmatpush.bf16.msrb.mxu0 %v4017_v34  ;;  %v4746_v33 = vld [vmem:[%s7145_s7 + $0x30c] sm:$0xf]  ;;  %v3950_v34 = vld [vmem:[%s7145_s7 + $0x318] sm:$0xf0]  ;;  %v4433_v14 = vor.u32 %v4866_v4, %v4430_v57  ;;  %v4145_v38 = vor.u32 %v4794_v26, %v4142_v27 }
 0x26e   : > { %v4830_v16 = vld [vmem:[%s7145_s7 + $0x5ac] sm:$0xf]  ;;  %v4286_v19 = vld [vmem:[%s7145_s7 + $0x5b8] sm:$0xf0] }
 0x26f   : > { %v4862_v20 = vld [vmem:[%s7145_s7 + $0x6ac] sm:$0xf]  ;;  %v4254_v49 = vld [vmem:[%s7145_s7 + $0x578] sm:$0xf0] }
 0x270   : > { %3074 = vmatpush.bf16.msra.mxu1 %v3617_v51  ;;  %3087 = vmatpush.bf16.msra.mxu2 %v3745_v52  ;;  %v3953_v51 = vor.u32 %v4746_v33, %v3950_v34  ;;  %v4417_v28 = vor.u32 %v4862_v20, %v4414_v21  ;;  %v4526_v33 = vld [vmem:[%s7145_s7 + $0x798] sm:$0xf0]  ;;  %v4822_v48 = vld [vmem:[%s7145_s7 + $0x56c] sm:$0xf] }
 0x271   : > { %3100 = vmatpush.bf16.msra.mxu3 %v3873_v56  ;;  %3113 = vmatpush.bf16.msrb.mxu0 %v4001_v59  ;;  %v2832_v52 = vpop.f32.mrf.mxu2  ;;  %v4802_v59 = vld [vmem:[%s7145_s7 + $0x4cc] sm:$0xf]  ;;  %v4529_v47 = vor.u32 %v4890_v32, %v4526_v33  ;;  %v4238_v3 = vld [vmem:[%s7145_s7 + $0x558] sm:$0xf0] }
 0x272   : > { %v2833_v55 = vadd.f32 %v2832_v52, %v2820_v24  ;;  %v2845_v56 = vpop.f32.mrf.mxu3  ;;  %v4177_v58 = vor.u32 %v4802_v59, %v4174_v60  ;;  %v4886_v52 = vld [vmem:[%s7145_s7 + $0x76c] sm:$0xf]  ;;  %v4110_v60 = vld [vmem:[%s7145_s7 + $0x458] sm:$0xf0] }
 0x273   : > { %v2821_v0 = vpop.f32.mrf.mxu1  ;;  %v4786_v59 = vld [vmem:[%s7145_s7 + $0x44c] sm:$0xf]  ;;  %v4366_v57 = vld [vmem:[%s7145_s7 + $0x658] sm:$0xf0] }
 0x274   : > { %3075 = vmatpush.bf16.msra.mxu1 %v3601_v1  ;;  %3088 = vmatpush.bf16.msra.mxu2 %v3729_v17  ;;  %v2846_v1 = vadd.f32 %v2845_v56, %v2833_v55  ;;  %v2860_v17 = vpop.f32.mrf.mxu0  ;;  %v4257_v56 = vor.u32 %v4822_v48, %v4254_v49  ;;  %v4818_v2 = vld [vmem:[%s7145_s7 + $0x54c] sm:$0xf]  ;;  %v4206_v32 = vld [vmem:[%s7145_s7 + $0x518] sm:$0xf0] }
 0x275   : > { %3101 = vmatpush.bf16.msra.mxu3 %v3857_v7  ;;  %3114 = vmatpush.bf16.msrb.mxu0 %v3985_v18  ;;  %v4558_v7 = vld [vmem:[%s7145_s7 + $0x7d8] sm:$0xf0]  ;;  %v4850_v4 = vld [vmem:[%s7145_s7 + $0x64c] sm:$0xf] }
 0x276   : > { %v6964_v18 = vadd.f32 %v2858_v25, %v2846_v1  ;;  %v4561_v15 = vor.u32 %v4898_v63, %v4558_v7  ;;  %v4882_v63 = vld [vmem:[%s7145_s7 + $0x74c] sm:$0xf]  ;;  %v4494_v7 = vld [vmem:[%s7145_s7 + $0x758] sm:$0xf0] }
 0x277   : > { %v4497_v20 = vor.u32 %v4882_v63, %v4494_v7  ;;  %v4814_v21 = vld [vmem:[%s7145_s7 + $0x52c] sm:$0xf] }
 0x278   : > { %3076 = vmatpush.bf16.msra.mxu1 %v3585_v22  ;;  %3089 = vmatpush.bf16.msra.mxu2 %v3713_v23  ;;  %v4894_v22 = vld [vmem:[%s7145_s7 + $0x7ac] sm:$0xf]  ;;  %v4542_v23 = vld [vmem:[%s7145_s7 + $0x7b8] sm:$0xf0] }
 0x279   : > { %3102 = vmatpush.bf16.msra.mxu3 %v3841_v29  ;;  %3115 = vmatpush.bf16.msrb.mxu0 %v3969_v30  ;;  %v2834_v24 = vpop.f32.mrf.mxu2  ;;  %v4270_v29 = vld [vmem:[%s7145_s7 + $0x598] sm:$0xf0]  ;;  %v4858_v30 = vld [vmem:[%s7145_s7 + $0x68c] sm:$0xf] }
 0x27a   : > { %v2847_v25 = vpop.f32.mrf.mxu3  ;;  %v4350_v24 = vld [vmem:[%s7145_s7 + $0x638] sm:$0xf0]  ;;  %v4842_v33 = vld [vmem:[%s7145_s7 + $0x60c] sm:$0xf] }
 0x27c   : > { %3077 = vmatpush.bf16.msra.mxu1 %v3569_v11  ;;  %3090 = vmatpush.bf16.msra.mxu2 %v3697_v40  ;;  %v2871_v34 = vpop.f32.mrf.mxu1  ;;  %v4126_v11 = vld [vmem:[%s7145_s7 + $0x478] sm:$0xf0]  ;;  %v4401_v40 = vor.u32 %v4858_v30, %v4398_v31  ;;  %v4810_v31 = vld [vmem:[%s7145_s7 + $0x50c] sm:$0xf] }
 0x27d   : > { %3103 = vmatpush.bf16.msra.mxu3 %v3825_v50  ;;  %3116 = vmatpush.bf16.msrb.mxu0 %v3953_v51  ;;  %v4854_v50 = vld [vmem:[%s7145_s7 + $0x66c] sm:$0xf]  ;;  %v4382_v51 = vld [vmem:[%s7145_s7 + $0x678] sm:$0xf0]  ;;  %v4129_v55 = vor.u32 %v4790_v9, %v4126_v11  ;;  %v4209_v9 = vor.u32 %v4810_v31, %v4206_v32 }
 0x27f   : > { %3078 = vmatmul.bf16.vlgmr.msra.gmra.mxu1 %v5930_v43  ;;  %3091 = vmatmul.bf16.vlgmr.msra.gmra.mxu2 %v5932_v44  ;;  %v4161_v43 = vor.u32 %v4798_v12, %v4158_v13  ;;  %v4289_v44 = vor.u32 %v4830_v16, %v4286_v19  ;;  %v2910_v37 = vpop.f32.mrf.mxu0  ;;  %v4113_v13 = vor.u32 %v4786_v59, %v4110_v60  ;;  %v4094_v16 = vld [vmem:[%s7145_s7 + $0x438] sm:$0xf0] }
 0x280   : > { %3122 = vmatpush.bf16.msrb.mxu1 %v4193_v53  ;;  %3135 = vmatpush.bf16.msrb.mxu2 %v4321_v54  ;;  %v4510_v53 = vld [vmem:[%s7145_s7 + $0x778] sm:$0xf0]  ;;  %v2872_v54 = vadd.f32 %v2871_v34, %v2751_v35  ;;  %v4369_v19 = vor.u32 %v4850_v4, %v4366_v57 }
 0x281   : > { %3148 = vmatpush.bf16.msrb.mxu3 %v4449_v61  ;;  %3161 = vmatpush.bf16.msra.mxu0 %v4577_v62  ;;  %v4385_v61 = vor.u32 %v4854_v50, %v4382_v51  ;;  %v4513_v62 = vor.u32 %v4886_v52, %v4510_v53  ;;  %v4334_v35 = vld [vmem:[%s7145_s7 + $0x618] sm:$0xf0] }
 0x282   : > { %3104 = vmatmul.bf16.vlgmr.msra.gmra.mxu3 %v5934_v45  ;;  %3117 = vmatmul.bf16.vlgmr.msrb.gmra.mxu0 %v5936_v46  ;;  %v4545_v45 = vor.u32 %v4894_v22, %v4542_v23  ;;  %v4826_v46 = vld [vmem:[%s7145_s7 + $0x58c] sm:$0xf]  ;;  %v2884_v0 = vpop.f32.mrf.mxu2  ;;  %v4222_v22 = vld [vmem:[%s7145_s7 + $0x538] sm:$0xf0]  ;;  %v4337_v11 = vor.u32 %v4842_v33, %v4334_v35 }
 0x283   : > { %v4273_v39 = vor.u32 %v4826_v46, %v4270_v29  ;;  %v2885_v1 = vadd.f32 %v2884_v0, %v2872_v54  ;;  %v4846_v23 = vld [vmem:[%s7145_s7 + $0x62c] sm:$0xf]  ;;  %v4225_v27 = vor.u32 %v4814_v21, %v4222_v22 }
 0x284   : > { %3123 = vmatpush.bf16.msrb.mxu1 %v4177_v58  ;;  %3136 = vmatpush.bf16.msrb.mxu2 %v4305_v8  ;;  %v2873_v58 = vpop.f32.mrf.mxu1  ;;  %v4353_v46 = vor.u32 %v4846_v23, %v4350_v24 }
 0x285   : > { %3149 = vmatpush.bf16.msrb.mxu3 %v4433_v14  ;;  %3162 = vmatpush.bf16.msra.mxu0 %v4561_v15  ;;  %v2897_v17 = vpop.f32.mrf.mxu3  ;;  %v4241_v14 = vor.u32 %v4818_v2, %v4238_v3  ;;  %v4782_v15 = vld [vmem:[%s7145_s7 + $0x42c] sm:$0xf] }
 0x286   : > { %v2898_v8 = vadd.f32 %v2897_v17, %v2885_v1  ;;  %v4097_v26 = vor.u32 %v4782_v15, %v4094_v16 }
 0x287   : > { %v2912_v12 = vpop.f32.mrf.mxu0 }
 0x288   : > { %3124 = vmatpush.bf16.msrb.mxu1 %v4161_v43  ;;  %3137 = vmatpush.bf16.msrb.mxu2 %v4289_v44  ;;  %v4878_v43 = vld [vmem:[%s7145_s7 + $0x72c] sm:$0xf]  ;;  %v4478_v44 = vld [vmem:[%s7145_s7 + $0x738] sm:$0xf0]  ;;  %v2911_v25 = vadd.f32 %v2910_v37, %v2898_v8 }
 0x289   : > { %3150 = vmatpush.bf16.msrb.mxu3 %v4417_v28  ;;  %3163 = vmatpush.bf16.msra.mxu0 %v4545_v45  ;;  %v4778_v28 = vld [vmem:[%s7145_s7 + $0x40c] sm:$0xf]  ;;  %v4078_v45 = vld [vmem:[%s7145_s7 + $0x418] sm:$0xf0]  ;;  %v4481_v29 = vor.u32 %v4878_v43, %v4478_v44 }
 0x28a   : > { %v2886_v30 = vpop.f32.mrf.mxu2  ;;  %v4874_v37 = vld [vmem:[%s7145_s7 + $0x70c] sm:$0xf] }
 0x28c   : > { %3125 = vmatpush.bf16.msrb.mxu1 %v4145_v38  ;;  %3138 = vmatpush.bf16.msrb.mxu2 %v4273_v39  ;;  %v4462_v38 = vld [vmem:[%s7145_s7 + $0x718] sm:$0xf0]  ;;  %v4081_v39 = vor.u32 %v4778_v28, %v4078_v45  ;;  %v2753_v45 = vperm.slane %v6780_v5, 3 }
 0x28d   : > { %3151 = vmatpush.bf16.msrb.mxu3 %v4401_v40  ;;  %3164 = vmatpush.bf16.msra.mxu0 %v4529_v47  ;;  %v2899_v34 = vpop.f32.mrf.mxu3  ;;  %v4465_v40 = vor.u32 %v4874_v37, %v4462_v38 }
 0x290   : > { %3126 = vmatpush.bf16.msrb.mxu1 %v4129_v55  ;;  %3139 = vmatpush.bf16.msrb.mxu2 %v4257_v56 }
 0x291   : > { %3152 = vmatpush.bf16.msrb.mxu3 %v4385_v61  ;;  %3165 = vmatpush.bf16.msra.mxu0 %v4513_v62 }
 0x294   : > { %3127 = vmatpush.bf16.msrb.mxu1 %v4113_v13  ;;  %3140 = vmatpush.bf16.msrb.mxu2 %v4241_v14 }
 0x295   : > { %3153 = vmatpush.bf16.msrb.mxu3 %v4369_v19  ;;  %3166 = vmatpush.bf16.msra.mxu0 %v4497_v20 }
 0x298   : > { %3128 = vmatpush.bf16.msrb.mxu1 %v4097_v26  ;;  %3141 = vmatpush.bf16.msrb.mxu2 %v4225_v27 }
 0x299   : > { %3154 = vmatpush.bf16.msrb.mxu3 %v4353_v46  ;;  %3167 = vmatpush.bf16.msra.mxu0 %v4481_v29 }
 0x29c   : > { %3129 = vmatpush.bf16.msrb.mxu1 %v4081_v39  ;;  %3142 = vmatpush.bf16.msrb.mxu2 %v4209_v9  ;;  %v2923_v47 = vpop.f32.mrf.mxu1 }
 0x29d   : > { %3155 = vmatpush.bf16.msrb.mxu3 %v4337_v11  ;;  %3168 = vmatpush.bf16.msra.mxu0 %v4465_v40  ;;  %v2924_v48 = vadd.f32 %v2923_v47, %v2911_v25 }
 0x29f   : > { %3130 = vmatmul.bf16.vlgmr.msrb.gmra.mxu1 %v6042_v36  ;;  %3143 = vmatmul.bf16.vlgmr.msrb.gmra.mxu2 %v6044_v10  ;;  %v2962_v49 = vpop.f32.mrf.mxu0 }
 0x2a0   : > { %3156 = vmatmul.bf16.vlgmr.msrb.gmra.mxu3 %v6052_v41  ;;  %3169 = vmatmul.bf16.vlgmr.msra.gmra.mxu0 %v6054_v42  ;;  %v2752_v41 = vperm.slane %v6780_v5, 2 }
 0x2a2   : > { %v2936_v50 = vpop.f32.mrf.mxu2 }
 0x2a3   : > { %v2937_v51 = vadd.f32 %v2936_v50, %v2924_v48 }
 0x2a4   : > { %v2925_v53 = vpop.f32.mrf.mxu1 }
 0x2a5   : > { %v2949_v52 = vpop.f32.mrf.mxu3 }
 0x2a6   : > { %v2950_v54 = vadd.f32 %v2949_v52, %v2937_v51 }
 0x2a7   : > { %v2964_v55 = vpop.f32.mrf.mxu0 }
 0x2a8   : > { %v2963_v56 = vadd.f32 %v2962_v49, %v2950_v54 }
 0x2aa   : > { %v3178_v59 = vrot.slane %v2963_v56, 7  ;;  %v2938_v60 = vpop.f32.mrf.mxu2 }
 0x2ac   : > { %v3182_v36 = vsel %vm1068_vm1, %v6964_v18, %v3178_v59 }
 0x2ad   : > { %v2951_v10 = vpop.f32.mrf.mxu3 }
 0x2bc   : > { %v2975_v61 = vpop.f32.mrf.mxu1 }
 0x2bd   : > { %v2976_v62 = vadd.f32 %v2975_v61, %v2752_v41 }
 0x2bf   : > { %v3014_v42 = vpop.f32.mrf.mxu0 }
 0x2c2   : > { %v2988_v0 = vpop.f32.mrf.mxu2 }
 0x2c3   : > { %v2989_v2 = vadd.f32 %v2988_v0, %v2976_v62 }
 0x2c4   : > { %v2977_v4 = vpop.f32.mrf.mxu1 }
 0x2c5   : > { %v3001_v3 = vpop.f32.mrf.mxu3 }
 0x2c6   : > { %v3002_v1 = vadd.f32 %v3001_v3, %v2989_v2 }
 0x2c7   : > { %v3016_v17 = vpop.f32.mrf.mxu0 }
 0x2c8   : > { %v3015_v57 = vadd.f32 %v3014_v42, %v3002_v1 }
 0x2ca   : > { %v2990_v63 = vpop.f32.mrf.mxu2 }
 0x2cd   : > { %v3003_v7 = vpop.f32.mrf.mxu3 }
 0x2dc   : > { %v3027_v58 = vpop.f32.mrf.mxu1 }
 0x2dd   : > { %v3028_v12 = vadd.f32 %v3027_v58, %v3015_v57 }
 0x2df   : > { %v3066_v8 = vpop.f32.mrf.mxu0 }
 0x2e2   : > { %v3040_v13 = vpop.f32.mrf.mxu2 }
 0x2e3   : > { %v3041_v18 = vadd.f32 %v3040_v13, %v3028_v12 }
 0x2e4   : > { %v3029_v15 = vpop.f32.mrf.mxu1 }
 0x2e5   : > { %v3053_v14 = vpop.f32.mrf.mxu3 }
 0x2e6   : > { %v3054_v16 = vadd.f32 %v3053_v14, %v3041_v18 }
 0x2e7   : > { %v3068_v19 = vpop.f32.mrf.mxu0 }
 0x2e8   : > { %v3067_v20 = vadd.f32 %v3066_v8, %v3054_v16 }
 0x2ea   : > { %v3042_v21 = vpop.f32.mrf.mxu2  ;;  %v3179_v47 = vrot.slane %v3067_v20, 6 }
 0x2ed   : > { %v3055_v22 = vpop.f32.mrf.mxu3 }
 0x2fc   : > { %v3079_v23 = vpop.f32.mrf.mxu1 }
 0x2fd   : > { %v3080_v46 = vadd.f32 %v3079_v23, %v2753_v45 }
 0x2ff   : > { %v3118_v24 = vpop.f32.mrf.mxu0 }
 0x302   : > { %v3092_v43 = vpop.f32.mrf.mxu2 }
 0x303   : > { %v3093_v29 = vadd.f32 %v3092_v43, %v3080_v46 }
 0x304   : > { %v3081_v25 = vpop.f32.mrf.mxu1 }
 0x305   : > { %v3105_v44 = vpop.f32.mrf.mxu3 }
 0x306   : > { %v3106_v30 = vadd.f32 %v3105_v44, %v3093_v29 }
 0x307   : > { %v3120_v26 = vpop.f32.mrf.mxu0 }
 0x308   : > { %v3119_v33 = vadd.f32 %v3118_v24, %v3106_v30 }
 0x30a   : > { %v3094_v27 = vpop.f32.mrf.mxu2 }
 0x30d   : > { %v3107_v28 = vpop.f32.mrf.mxu3 }
 0x31c   : > { %v3131_v31 = vpop.f32.mrf.mxu1 }
 0x31d   : > { %v3170_v32 = vpop.f32.mrf.mxu0  ;;  %v3132_v34 = vadd.f32 %v3131_v31, %v3119_v33 }
 0x322   : > { %v3144_v35 = vpop.f32.mrf.mxu2 }
 0x323   : > { %v3145_v37 = vadd.f32 %v3144_v35, %v3132_v34  ;;  %v3157_v38 = vpop.f32.mrf.mxu3 }
 0x324   : > { %v3133_v39 = vpop.f32.mrf.mxu1 }
 0x325   : > { %v3158_v9 = vadd.f32 %v3157_v38, %v3145_v37  ;;  %v3172_v11 = vpop.f32.mrf.mxu0 }
 0x327   : > { %v3171_v40 = vadd.f32 %v3170_v32, %v3158_v9 }
 0x329   : > { %v3180_v48 = vrot.slane %v3171_v40, 5 }
 0x32a   : > { %v3146_v5 = vpop.f32.mrf.mxu2 }
 0x32b   : > { %v3184_v49 = vsel %vm3183_vm3, %v3179_v47, %v3180_v48  ;;  %v3159_v50 = vpop.f32.mrf.mxu3 }
 0x32c   : > { %v3186_v51 = vsel %vm3185_vm4, %v3182_v36, %v3184_v49 }
 0x32d   : > { %3192 = vst.msk [vmem:[%s375_s29] sm:$0xf] %vm3190_vm5, %v3186_v51 }
 0x32e PF: > { %s19_s11 = sadd.s32 1, %s4960_s11   ;;  %s7150_s30 = smov %s4956_s10 }
 0x32f   : > { %p16_p5 = scmp.ge.s32.totalorder %s19_s11, 4   ;;  %s7151_s10 = smov %s7153_s12 }
 0x331   :  { %18 = sbr.rel (!%p16_p5) target bundleno = 2 (0x2), region = 125 }

</bundles_post_ra>
